<compile_context>
chip_gen: v5e
topology: v5e:2x2
jax: 0.10.0
libtpu: 0.0.40
codegen_flags: <defaults>
</compile_context>

<pallas_src>
import functools

import jax
import jax.numpy as jnp
from jax.experimental import pallas as pl
from jax.experimental.pallas import tpu as pltpu

_SIGN_I32 = -2147483648  # 0x80000000 as int32
_NATIVE_DTYPES = (jnp.dtype(jnp.float32), jnp.dtype(jnp.bfloat16),
                  jnp.dtype(jnp.float16))


def _to_i32(u):
    """Interpret a Python unsigned 32-bit pattern as a signed int32 value."""
    u &= 0xFFFFFFFF
    return u - (1 << 32) if u >= (1 << 31) else u


def median_norm_kernel(x_ref, o_ref, *, k, radix_bits=4):
    """o = x - median(x), median = k-th smallest real element (k static).

    x_ref / o_ref : (rows, 128) tiles in the I/O dtype; padding (if any) holds
                    +inf so it occupies the top ranks and never reaches rank k.
    """
    xf = x_ref[...].astype(jnp.float32)  # upcast right after load (v5e-safe)

    # Order-preserving key transform: unsigned bit order of `ubits` == float
    # order of x (negatives: flip all bits; non-negatives: flip sign bit).
    bits = pltpu.bitcast(xf, jnp.int32)
    flip = jnp.where(bits < 0, jnp.int32(-1), jnp.int32(_SIGN_I32))
    ubits = bits ^ flip

    nb = 1 << radix_bits          # buckets per stage
    n_steps = 32 // radix_bits    # 8 stages for radix_bits=4

    kk = jnp.int32(k)             # remaining rank inside the in-play set
    prefix = jnp.int32(0)         # decided high bits of the selected key

    # Static unroll: bit tests depend only on `ubits` + compile-time masks, so
    # the scheduler can hoist the next stage's work under this stage's reduce.
    for s in range(n_steps):
        shift = 32 - radix_bits * (s + 1)
        # Mask of already-decided (higher) bits — a compile-time constant.
        decided_mask = _to_i32(~((1 << (shift + radix_bits)) - 1))

        digit = (ubits >> shift) & (nb - 1)
        if s == 0:
            md = digit                                   # everything in play
        else:
            member = (ubits & jnp.int32(decided_mask)) == prefix
            md = jnp.where(member, digit, jnp.int32(nb))  # nb == "not in play"

        # nb-1 independent bucket counts (last bucket is the fallback); the
        # bucket containing rank kk is picked with cheap scalar-unit ops.
        digit_sel = jnp.int32(0)
        base = jnp.int32(0)
        cum = jnp.int32(0)
        for j in range(nb - 1):
            cnt = jnp.sum((md == j).astype(jnp.int32))   # exact int32 count
            cum = cum + cnt
            le = cum <= kk
            digit_sel = digit_sel + le.astype(jnp.int32)
            base = jnp.where(le, cum, base)
        kk = kk - base
        prefix = prefix | (digit_sel << shift)

    # `prefix` is the exact 32-bit key of the k-th smallest element; invert the
    # key transform scalar-side to recover the median's bit pattern.
    med_bits = jnp.where(prefix < 0, prefix ^ jnp.int32(_SIGN_I32), ~prefix)
    mu = pltpu.bitcast(jnp.broadcast_to(med_bits, xf.shape), jnp.float32)
    o_ref[...] = (xf - mu).astype(o_ref.dtype)


def median_norm(x):
    """Pallas MedianNorm: subtract the global (lower) median of x."""
    orig_shape = x.shape
    orig_dtype = x.dtype
    n = x.size                                 # static Python int
    if n == 0:
        raise ValueError("MedianNorm: median of an empty tensor is undefined")
    k = (n - 1) // 2                           # torch.median: lower median

    # 16-bit floats stay native across the kernel boundary; everything else
    # computes (and moves) as f32.
    io_dtype = orig_dtype if jnp.dtype(orig_dtype) in _NATIVE_DTYPES \
        else jnp.dtype(jnp.float32)

    lanes = 128
    rows = -(-n // lanes)                      # ceil(n / 128)
    rows = max(8, ((rows + 7) // 8) * 8)       # sublane multiple of 8
    padded = rows * lanes

    flat = x.reshape(-1).astype(io_dtype)      # no-op cast for native floats
    if padded != n:
        flat = jnp.concatenate(
            [flat, jnp.full((padded - n,), jnp.inf, dtype=io_dtype)])
    x2d = flat.reshape(rows, lanes)

    # VMEM budget: in + out tiles (double-buffered) + f32/i32 in-kernel temps.
    elem_bytes = jnp.dtype(io_dtype).itemsize
    needed = rows * lanes * (4 * elem_bytes + 3 * 4)
    vmem_limit = int(min(max(needed, 32 * 1024 * 1024), 96 * 1024 * 1024))

    kernel = functools.partial(median_norm_kernel, k=k)
    out2d = pl.pallas_call(
        kernel,
        out_shape=jax.ShapeDtypeStruct((rows, lanes), io_dtype),
        grid_spec=pltpu.PrefetchScalarGridSpec(
            num_scalar_prefetch=0,
            grid=(1,),
            in_specs=[pl.BlockSpec((rows, lanes), lambda i: (0, 0))],
            out_specs=pl.BlockSpec((rows, lanes), lambda i: (0, 0)),
        ),
        compiler_params=pltpu.CompilerParams(
            dimension_semantics=("arbitrary",),
            vmem_limit_bytes=vmem_limit),
    )(x2d)

    out = out2d.reshape(-1)
    if padded != n:
        out = out[:n]
    return out.reshape(orig_shape).astype(orig_dtype)


def median_norm_ref(x):
    """Pure-JAX reference mirroring torch.median (lower median) semantics."""
    flat = x.reshape(-1)
    mu = jnp.sort(flat)[(flat.shape[0] - 1) // 2]
    return x - mu


if __name__ == "__main__":
    key = jax.random.PRNGKey(0)
    k1, k2, k3 = jax.random.split(key, 3)

    # Even element count: 2*4*16*16 = 2048 exactly fills a (16, 128) tile.
    x1 = jax.random.normal(k1, (2, 4, 16, 16), dtype=jnp.float32)
    out1 = jax.block_until_ready(median_norm(x1))
    ref1 = median_norm_ref(x1)
    assert out1.shape == x1.shape and out1.dtype == x1.dtype
    assert jnp.allclose(out1, ref1, atol=1e-6, rtol=0.0), "mismatch (even N)"

    # Odd element count with duplicate values: exercises +inf padding and ties.
    x2 = jnp.round(jax.random.normal(k2, (3, 5, 7), dtype=jnp.float32) * 4.0) / 4.0
    out2 = jax.block_until_ready(median_norm(x2))
    ref2 = median_norm_ref(x2)
    assert jnp.allclose(out2, ref2, atol=1e-6, rtol=0.0), "mismatch (odd N)"

    # bf16 input stays bf16 across the kernel boundary (in-kernel up/down cast).
    x3 = jax.random.normal(k3, (2, 4, 16, 8), dtype=jnp.bfloat16)
    out3 = jax.block_until_ready(median_norm(x3))
    ref3 = median_norm_ref(x3.astype(jnp.float32)).astype(jnp.bfloat16)
    assert out3.dtype == jnp.bfloat16
    assert jnp.allclose(out3.astype(jnp.float32), ref3.astype(jnp.float32),
                        atol=2e-2, rtol=0.0), "mismatch (bf16)"

    print("KERNEL_OK")
</pallas_src>

<mosaic_0001>
module attributes {stable_mosaic.version = 11 : i64} {
  func.func @median_norm_kernel(%arg0: i32, %arg1: memref<16x128xf32, #tpu.memory_space<vmem>>, %arg2: memref<16x128xf32, #tpu.memory_space<vmem>>) attributes {dimension_semantics = [#tpu.dimension_semantics<arbitrary>], iteration_bounds = array<i64: 1>, scalar_prefetch = 0 : i64, scratch_operands = 0 : i64, tpu.core_type = #tpu.core_type<tc>, window_params = [{pipeline_mode = #tpu.pipeline_mode<synchronous>, transform_indices = @transform_0, window_bounds = array<i64: 16, 128>}, {pipeline_mode = #tpu.pipeline_mode<synchronous>, transform_indices = @transform_1, window_bounds = array<i64: 16, 128>}]} {
    %c0 = arith.constant 0 : index
    %c0_0 = arith.constant 0 : index
    %0 = vector.load %arg1[%c0, %c0_0] : memref<16x128xf32, #tpu.memory_space<vmem>>, vector<16x128xf32>
    %1 = tpu.bitcast %0 : vector<16x128xf32> -> vector<16x128xi32>
    %c0_i32 = arith.constant 0 : i32
    %2 = vector.broadcast %c0_i32 : i32 to vector<16x128xi32>
    %3 = arith.cmpi slt, %1, %2 : vector<16x128xi32>
    %c-1_i32 = arith.constant -1 : i32
    %c-2147483648_i32 = arith.constant -2147483648 : i32
    %4 = vector.broadcast %c-1_i32 : i32 to vector<16x128xi32>
    %5 = vector.broadcast %c-2147483648_i32 : i32 to vector<16x128xi32>
    %6 = arith.select %3, %4, %5 : vector<16x128xi1>, vector<16x128xi32>
    %7 = arith.xori %1, %6 : vector<16x128xi32>
    %c28_i32 = arith.constant 28 : i32
    %8 = vector.broadcast %c28_i32 : i32 to vector<16x128xi32>
    %9 = arith.shrsi %7, %8 : vector<16x128xi32>
    %c15_i32 = arith.constant 15 : i32
    %10 = vector.broadcast %c15_i32 : i32 to vector<16x128xi32>
    %11 = arith.andi %9, %10 : vector<16x128xi32>
    %c0_i32_1 = arith.constant 0 : i32
    %12 = vector.broadcast %c0_i32_1 : i32 to vector<16x128xi32>
    %13 = arith.cmpi eq, %11, %12 : vector<16x128xi32>
    %14 = arith.extui %13 : vector<16x128xi1> to vector<16x128xi32>
    %15 = vector.shape_cast %14 : vector<16x128xi32> to vector<1x16x128xi32>
    %cst = arith.constant dense<0> : vector<1xi32>
    %16 = vector.multi_reduction <add>, %15, %cst [1, 2] : vector<1x16x128xi32> to vector<1xi32>
    %17 = vector.shape_cast %16 : vector<1xi32> to vector<1x1x1xi32>
    %18 = vector.extract %17[0, 0, 0] : i32 from vector<1x1x1xi32>
    %c0_i32_2 = arith.constant 0 : i32
    %19 = arith.addi %c0_i32_2, %18 : i32
    %c1023_i32 = arith.constant 1023 : i32
    %20 = arith.cmpi sle, %19, %c1023_i32 : i32
    %21 = arith.extui %20 : i1 to i32
    %c0_i32_3 = arith.constant 0 : i32
    %22 = arith.addi %c0_i32_3, %21 : i32
    %c0_i32_4 = arith.constant 0 : i32
    %23 = arith.select %20, %19, %c0_i32_4 : i32
    %c1_i32 = arith.constant 1 : i32
    %24 = vector.broadcast %c1_i32 : i32 to vector<16x128xi32>
    %25 = arith.cmpi eq, %11, %24 : vector<16x128xi32>
    %26 = arith.extui %25 : vector<16x128xi1> to vector<16x128xi32>
    %27 = vector.shape_cast %26 : vector<16x128xi32> to vector<1x16x128xi32>
    %cst_5 = arith.constant dense<0> : vector<1xi32>
    %28 = vector.multi_reduction <add>, %27, %cst_5 [1, 2] : vector<1x16x128xi32> to vector<1xi32>
    %29 = vector.shape_cast %28 : vector<1xi32> to vector<1x1x1xi32>
    %30 = vector.extract %29[0, 0, 0] : i32 from vector<1x1x1xi32>
    %31 = arith.addi %19, %30 : i32
    %c1023_i32_6 = arith.constant 1023 : i32
    %32 = arith.cmpi sle, %31, %c1023_i32_6 : i32
    %33 = arith.extui %32 : i1 to i32
    %34 = arith.addi %22, %33 : i32
    %35 = arith.select %32, %31, %23 : i32
    %c2_i32 = arith.constant 2 : i32
    %36 = vector.broadcast %c2_i32 : i32 to vector<16x128xi32>
    %37 = arith.cmpi eq, %11, %36 : vector<16x128xi32>
    %38 = arith.extui %37 : vector<16x128xi1> to vector<16x128xi32>
    %39 = vector.shape_cast %38 : vector<16x128xi32> to vector<1x16x128xi32>
    %cst_7 = arith.constant dense<0> : vector<1xi32>
    %40 = vector.multi_reduction <add>, %39, %cst_7 [1, 2] : vector<1x16x128xi32> to vector<1xi32>
    %41 = vector.shape_cast %40 : vector<1xi32> to vector<1x1x1xi32>
    %42 = vector.extract %41[0, 0, 0] : i32 from vector<1x1x1xi32>
    %43 = arith.addi %31, %42 : i32
    %c1023_i32_8 = arith.constant 1023 : i32
    %44 = arith.cmpi sle, %43, %c1023_i32_8 : i32
    %45 = arith.extui %44 : i1 to i32
    %46 = arith.addi %34, %45 : i32
    %47 = arith.select %44, %43, %35 : i32
    %c3_i32 = arith.constant 3 : i32
    %48 = vector.broadcast %c3_i32 : i32 to vector<16x128xi32>
    %49 = arith.cmpi eq, %11, %48 : vector<16x128xi32>
    %50 = arith.extui %49 : vector<16x128xi1> to vector<16x128xi32>
    %51 = vector.shape_cast %50 : vector<16x128xi32> to vector<1x16x128xi32>
    %cst_9 = arith.constant dense<0> : vector<1xi32>
    %52 = vector.multi_reduction <add>, %51, %cst_9 [1, 2] : vector<1x16x128xi32> to vector<1xi32>
    %53 = vector.shape_cast %52 : vector<1xi32> to vector<1x1x1xi32>
    %54 = vector.extract %53[0, 0, 0] : i32 from vector<1x1x1xi32>
    %55 = arith.addi %43, %54 : i32
    %c1023_i32_10 = arith.constant 1023 : i32
    %56 = arith.cmpi sle, %55, %c1023_i32_10 : i32
    %57 = arith.extui %56 : i1 to i32
    %58 = arith.addi %46, %57 : i32
    %59 = arith.select %56, %55, %47 : i32
    %c4_i32 = arith.constant 4 : i32
    %60 = vector.broadcast %c4_i32 : i32 to vector<16x128xi32>
    %61 = arith.cmpi eq, %11, %60 : vector<16x128xi32>
    %62 = arith.extui %61 : vector<16x128xi1> to vector<16x128xi32>
    %63 = vector.shape_cast %62 : vector<16x128xi32> to vector<1x16x128xi32>
    %cst_11 = arith.constant dense<0> : vector<1xi32>
    %64 = vector.multi_reduction <add>, %63, %cst_11 [1, 2] : vector<1x16x128xi32> to vector<1xi32>
    %65 = vector.shape_cast %64 : vector<1xi32> to vector<1x1x1xi32>
    %66 = vector.extract %65[0, 0, 0] : i32 from vector<1x1x1xi32>
    %67 = arith.addi %55, %66 : i32
    %c1023_i32_12 = arith.constant 1023 : i32
    %68 = arith.cmpi sle, %67, %c1023_i32_12 : i32
    %69 = arith.extui %68 : i1 to i32
    %70 = arith.addi %58, %69 : i32
    %71 = arith.select %68, %67, %59 : i32
    %c5_i32 = arith.constant 5 : i32
    %72 = vector.broadcast %c5_i32 : i32 to vector<16x128xi32>
    %73 = arith.cmpi eq, %11, %72 : vector<16x128xi32>
    %74 = arith.extui %73 : vector<16x128xi1> to vector<16x128xi32>
    %75 = vector.shape_cast %74 : vector<16x128xi32> to vector<1x16x128xi32>
    %cst_13 = arith.constant dense<0> : vector<1xi32>
    %76 = vector.multi_reduction <add>, %75, %cst_13 [1, 2] : vector<1x16x128xi32> to vector<1xi32>
    %77 = vector.shape_cast %76 : vector<1xi32> to vector<1x1x1xi32>
    %78 = vector.extract %77[0, 0, 0] : i32 from vector<1x1x1xi32>
    %79 = arith.addi %67, %78 : i32
    %c1023_i32_14 = arith.constant 1023 : i32
    %80 = arith.cmpi sle, %79, %c1023_i32_14 : i32
    %81 = arith.extui %80 : i1 to i32
    %82 = arith.addi %70, %81 : i32
    %83 = arith.select %80, %79, %71 : i32
    %c6_i32 = arith.constant 6 : i32
    %84 = vector.broadcast %c6_i32 : i32 to vector<16x128xi32>
    %85 = arith.cmpi eq, %11, %84 : vector<16x128xi32>
    %86 = arith.extui %85 : vector<16x128xi1> to vector<16x128xi32>
    %87 = vector.shape_cast %86 : vector<16x128xi32> to vector<1x16x128xi32>
    %cst_15 = arith.constant dense<0> : vector<1xi32>
    %88 = vector.multi_reduction <add>, %87, %cst_15 [1, 2] : vector<1x16x128xi32> to vector<1xi32>
    %89 = vector.shape_cast %88 : vector<1xi32> to vector<1x1x1xi32>
    %90 = vector.extract %89[0, 0, 0] : i32 from vector<1x1x1xi32>
    %91 = arith.addi %79, %90 : i32
    %c1023_i32_16 = arith.constant 1023 : i32
    %92 = arith.cmpi sle, %91, %c1023_i32_16 : i32
    %93 = arith.extui %92 : i1 to i32
    %94 = arith.addi %82, %93 : i32
    %95 = arith.select %92, %91, %83 : i32
    %c7_i32 = arith.constant 7 : i32
    %96 = vector.broadcast %c7_i32 : i32 to vector<16x128xi32>
    %97 = arith.cmpi eq, %11, %96 : vector<16x128xi32>
    %98 = arith.extui %97 : vector<16x128xi1> to vector<16x128xi32>
    %99 = vector.shape_cast %98 : vector<16x128xi32> to vector<1x16x128xi32>
    %cst_17 = arith.constant dense<0> : vector<1xi32>
    %100 = vector.multi_reduction <add>, %99, %cst_17 [1, 2] : vector<1x16x128xi32> to vector<1xi32>
    %101 = vector.shape_cast %100 : vector<1xi32> to vector<1x1x1xi32>
    %102 = vector.extract %101[0, 0, 0] : i32 from vector<1x1x1xi32>
    %103 = arith.addi %91, %102 : i32
    %c1023_i32_18 = arith.constant 1023 : i32
    %104 = arith.cmpi sle, %103, %c1023_i32_18 : i32
    %105 = arith.extui %104 : i1 to i32
    %106 = arith.addi %94, %105 : i32
    %107 = arith.select %104, %103, %95 : i32
    %c8_i32 = arith.constant 8 : i32
    %108 = vector.broadcast %c8_i32 : i32 to vector<16x128xi32>
    %109 = arith.cmpi eq, %11, %108 : vector<16x128xi32>
    %110 = arith.extui %109 : vector<16x128xi1> to vector<16x128xi32>
    %111 = vector.shape_cast %110 : vector<16x128xi32> to vector<1x16x128xi32>
    %cst_19 = arith.constant dense<0> : vector<1xi32>
    %112 = vector.multi_reduction <add>, %111, %cst_19 [1, 2] : vector<1x16x128xi32> to vector<1xi32>
    %113 = vector.shape_cast %112 : vector<1xi32> to vector<1x1x1xi32>
    %114 = vector.extract %113[0, 0, 0] : i32 from vector<1x1x1xi32>
    %115 = arith.addi %103, %114 : i32
    %c1023_i32_20 = arith.constant 1023 : i32
    %116 = arith.cmpi sle, %115, %c1023_i32_20 : i32
    %117 = arith.extui %116 : i1 to i32
    %118 = arith.addi %106, %117 : i32
    %119 = arith.select %116, %115, %107 : i32
    %c9_i32 = arith.constant 9 : i32
    %120 = vector.broadcast %c9_i32 : i32 to vector<16x128xi32>
    %121 = arith.cmpi eq, %11, %120 : vector<16x128xi32>
    %122 = arith.extui %121 : vector<16x128xi1> to vector<16x128xi32>
    %123 = vector.shape_cast %122 : vector<16x128xi32> to vector<1x16x128xi32>
    %cst_21 = arith.constant dense<0> : vector<1xi32>
    %124 = vector.multi_reduction <add>, %123, %cst_21 [1, 2] : vector<1x16x128xi32> to vector<1xi32>
    %125 = vector.shape_cast %124 : vector<1xi32> to vector<1x1x1xi32>
    %126 = vector.extract %125[0, 0, 0] : i32 from vector<1x1x1xi32>
    %127 = arith.addi %115, %126 : i32
    %c1023_i32_22 = arith.constant 1023 : i32
    %128 = arith.cmpi sle, %127, %c1023_i32_22 : i32
    %129 = arith.extui %128 : i1 to i32
    %130 = arith.addi %118, %129 : i32
    %131 = arith.select %128, %127, %119 : i32
    %c10_i32 = arith.constant 10 : i32
    %132 = vector.broadcast %c10_i32 : i32 to vector<16x128xi32>
    %133 = arith.cmpi eq, %11, %132 : vector<16x128xi32>
    %134 = arith.extui %133 : vector<16x128xi1> to vector<16x128xi32>
    %135 = vector.shape_cast %134 : vector<16x128xi32> to vector<1x16x128xi32>
    %cst_23 = arith.constant dense<0> : vector<1xi32>
    %136 = vector.multi_reduction <add>, %135, %cst_23 [1, 2] : vector<1x16x128xi32> to vector<1xi32>
    %137 = vector.shape_cast %136 : vector<1xi32> to vector<1x1x1xi32>
    %138 = vector.extract %137[0, 0, 0] : i32 from vector<1x1x1xi32>
    %139 = arith.addi %127, %138 : i32
    %c1023_i32_24 = arith.constant 1023 : i32
    %140 = arith.cmpi sle, %139, %c1023_i32_24 : i32
    %141 = arith.extui %140 : i1 to i32
    %142 = arith.addi %130, %141 : i32
    %143 = arith.select %140, %139, %131 : i32
    %c11_i32 = arith.constant 11 : i32
    %144 = vector.broadcast %c11_i32 : i32 to vector<16x128xi32>
    %145 = arith.cmpi eq, %11, %144 : vector<16x128xi32>
    %146 = arith.extui %145 : vector<16x128xi1> to vector<16x128xi32>
    %147 = vector.shape_cast %146 : vector<16x128xi32> to vector<1x16x128xi32>
    %cst_25 = arith.constant dense<0> : vector<1xi32>
    %148 = vector.multi_reduction <add>, %147, %cst_25 [1, 2] : vector<1x16x128xi32> to vector<1xi32>
    %149 = vector.shape_cast %148 : vector<1xi32> to vector<1x1x1xi32>
    %150 = vector.extract %149[0, 0, 0] : i32 from vector<1x1x1xi32>
    %151 = arith.addi %139, %150 : i32
    %c1023_i32_26 = arith.constant 1023 : i32
    %152 = arith.cmpi sle, %151, %c1023_i32_26 : i32
    %153 = arith.extui %152 : i1 to i32
    %154 = arith.addi %142, %153 : i32
    %155 = arith.select %152, %151, %143 : i32
    %c12_i32 = arith.constant 12 : i32
    %156 = vector.broadcast %c12_i32 : i32 to vector<16x128xi32>
    %157 = arith.cmpi eq, %11, %156 : vector<16x128xi32>
    %158 = arith.extui %157 : vector<16x128xi1> to vector<16x128xi32>
    %159 = vector.shape_cast %158 : vector<16x128xi32> to vector<1x16x128xi32>
    %cst_27 = arith.constant dense<0> : vector<1xi32>
    %160 = vector.multi_reduction <add>, %159, %cst_27 [1, 2] : vector<1x16x128xi32> to vector<1xi32>
    %161 = vector.shape_cast %160 : vector<1xi32> to vector<1x1x1xi32>
    %162 = vector.extract %161[0, 0, 0] : i32 from vector<1x1x1xi32>
    %163 = arith.addi %151, %162 : i32
    %c1023_i32_28 = arith.constant 1023 : i32
    %164 = arith.cmpi sle, %163, %c1023_i32_28 : i32
    %165 = arith.extui %164 : i1 to i32
    %166 = arith.addi %154, %165 : i32
    %167 = arith.select %164, %163, %155 : i32
    %c13_i32 = arith.constant 13 : i32
    %168 = vector.broadcast %c13_i32 : i32 to vector<16x128xi32>
    %169 = arith.cmpi eq, %11, %168 : vector<16x128xi32>
    %170 = arith.extui %169 : vector<16x128xi1> to vector<16x128xi32>
    %171 = vector.shape_cast %170 : vector<16x128xi32> to vector<1x16x128xi32>
    %cst_29 = arith.constant dense<0> : vector<1xi32>
    %172 = vector.multi_reduction <add>, %171, %cst_29 [1, 2] : vector<1x16x128xi32> to vector<1xi32>
    %173 = vector.shape_cast %172 : vector<1xi32> to vector<1x1x1xi32>
    %174 = vector.extract %173[0, 0, 0] : i32 from vector<1x1x1xi32>
    %175 = arith.addi %163, %174 : i32
    %c1023_i32_30 = arith.constant 1023 : i32
    %176 = arith.cmpi sle, %175, %c1023_i32_30 : i32
    %177 = arith.extui %176 : i1 to i32
    %178 = arith.addi %166, %177 : i32
    %179 = arith.select %176, %175, %167 : i32
    %c14_i32 = arith.constant 14 : i32
    %180 = vector.broadcast %c14_i32 : i32 to vector<16x128xi32>
    %181 = arith.cmpi eq, %11, %180 : vector<16x128xi32>
    %182 = arith.extui %181 : vector<16x128xi1> to vector<16x128xi32>
    %183 = vector.shape_cast %182 : vector<16x128xi32> to vector<1x16x128xi32>
    %cst_31 = arith.constant dense<0> : vector<1xi32>
    %184 = vector.multi_reduction <add>, %183, %cst_31 [1, 2] : vector<1x16x128xi32> to vector<1xi32>
    %185 = vector.shape_cast %184 : vector<1xi32> to vector<1x1x1xi32>
    %186 = vector.extract %185[0, 0, 0] : i32 from vector<1x1x1xi32>
    %187 = arith.addi %175, %186 : i32
    %c1023_i32_32 = arith.constant 1023 : i32
    %188 = arith.cmpi sle, %187, %c1023_i32_32 : i32
    %189 = arith.extui %188 : i1 to i32
    %190 = arith.addi %178, %189 : i32
    %191 = arith.select %188, %187, %179 : i32
    %c1023_i32_33 = arith.constant 1023 : i32
    %192 = arith.subi %c1023_i32_33, %191 : i32
    %c28_i32_34 = arith.constant 28 : i32
    %193 = arith.shli %190, %c28_i32_34 : i32
    %c0_i32_35 = arith.constant 0 : i32
    %194 = arith.ori %c0_i32_35, %193 : i32
    %c24_i32 = arith.constant 24 : i32
    %195 = vector.broadcast %c24_i32 : i32 to vector<16x128xi32>
    %196 = arith.shrsi %7, %195 : vector<16x128xi32>
    %c15_i32_36 = arith.constant 15 : i32
    %197 = vector.broadcast %c15_i32_36 : i32 to vector<16x128xi32>
    %198 = arith.andi %196, %197 : vector<16x128xi32>
    %c-268435456_i32 = arith.constant -268435456 : i32
    %199 = vector.broadcast %c-268435456_i32 : i32 to vector<16x128xi32>
    %200 = arith.andi %7, %199 : vector<16x128xi32>
    %201 = vector.broadcast %194 : i32 to vector<16x128xi32>
    %202 = arith.cmpi eq, %200, %201 : vector<16x128xi32>
    %c16_i32 = arith.constant 16 : i32
    %203 = vector.broadcast %c16_i32 : i32 to vector<16x128xi32>
    %204 = arith.select %202, %198, %203 : vector<16x128xi1>, vector<16x128xi32>
    %c0_i32_37 = arith.constant 0 : i32
    %205 = vector.broadcast %c0_i32_37 : i32 to vector<16x128xi32>
    %206 = arith.cmpi eq, %204, %205 : vector<16x128xi32>
    %207 = arith.extui %206 : vector<16x128xi1> to vector<16x128xi32>
    %208 = vector.shape_cast %207 : vector<16x128xi32> to vector<1x16x128xi32>
    %cst_38 = arith.constant dense<0> : vector<1xi32>
    %209 = vector.multi_reduction <add>, %208, %cst_38 [1, 2] : vector<1x16x128xi32> to vector<1xi32>
    %210 = vector.shape_cast %209 : vector<1xi32> to vector<1x1x1xi32>
    %211 = vector.extract %210[0, 0, 0] : i32 from vector<1x1x1xi32>
    %c0_i32_39 = arith.constant 0 : i32
    %212 = arith.addi %c0_i32_39, %211 : i32
    %213 = arith.cmpi sle, %212, %192 : i32
    %214 = arith.extui %213 : i1 to i32
    %c0_i32_40 = arith.constant 0 : i32
    %215 = arith.addi %c0_i32_40, %214 : i32
    %c0_i32_41 = arith.constant 0 : i32
    %216 = arith.select %213, %212, %c0_i32_41 : i32
    %c1_i32_42 = arith.constant 1 : i32
    %217 = vector.broadcast %c1_i32_42 : i32 to vector<16x128xi32>
    %218 = arith.cmpi eq, %204, %217 : vector<16x128xi32>
    %219 = arith.extui %218 : vector<16x128xi1> to vector<16x128xi32>
    %220 = vector.shape_cast %219 : vector<16x128xi32> to vector<1x16x128xi32>
    %cst_43 = arith.constant dense<0> : vector<1xi32>
    %221 = vector.multi_reduction <add>, %220, %cst_43 [1, 2] : vector<1x16x128xi32> to vector<1xi32>
    %222 = vector.shape_cast %221 : vector<1xi32> to vector<1x1x1xi32>
    %223 = vector.extract %222[0, 0, 0] : i32 from vector<1x1x1xi32>
    %224 = arith.addi %212, %223 : i32
    %225 = arith.cmpi sle, %224, %192 : i32
    %226 = arith.extui %225 : i1 to i32
    %227 = arith.addi %215, %226 : i32
    %228 = arith.select %225, %224, %216 : i32
    %c2_i32_44 = arith.constant 2 : i32
    %229 = vector.broadcast %c2_i32_44 : i32 to vector<16x128xi32>
    %230 = arith.cmpi eq, %204, %229 : vector<16x128xi32>
    %231 = arith.extui %230 : vector<16x128xi1> to vector<16x128xi32>
    %232 = vector.shape_cast %231 : vector<16x128xi32> to vector<1x16x128xi32>
    %cst_45 = arith.constant dense<0> : vector<1xi32>
    %233 = vector.multi_reduction <add>, %232, %cst_45 [1, 2] : vector<1x16x128xi32> to vector<1xi32>
    %234 = vector.shape_cast %233 : vector<1xi32> to vector<1x1x1xi32>
    %235 = vector.extract %234[0, 0, 0] : i32 from vector<1x1x1xi32>
    %236 = arith.addi %224, %235 : i32
    %237 = arith.cmpi sle, %236, %192 : i32
    %238 = arith.extui %237 : i1 to i32
    %239 = arith.addi %227, %238 : i32
    %240 = arith.select %237, %236, %228 : i32
    %c3_i32_46 = arith.constant 3 : i32
    %241 = vector.broadcast %c3_i32_46 : i32 to vector<16x128xi32>
    %242 = arith.cmpi eq, %204, %241 : vector<16x128xi32>
    %243 = arith.extui %242 : vector<16x128xi1> to vector<16x128xi32>
    %244 = vector.shape_cast %243 : vector<16x128xi32> to vector<1x16x128xi32>
    %cst_47 = arith.constant dense<0> : vector<1xi32>
    %245 = vector.multi_reduction <add>, %244, %cst_47 [1, 2] : vector<1x16x128xi32> to vector<1xi32>
    %246 = vector.shape_cast %245 : vector<1xi32> to vector<1x1x1xi32>
    %247 = vector.extract %246[0, 0, 0] : i32 from vector<1x1x1xi32>
    %248 = arith.addi %236, %247 : i32
    %249 = arith.cmpi sle, %248, %192 : i32
    %250 = arith.extui %249 : i1 to i32
    %251 = arith.addi %239, %250 : i32
    %252 = arith.select %249, %248, %240 : i32
    %c4_i32_48 = arith.constant 4 : i32
    %253 = vector.broadcast %c4_i32_48 : i32 to vector<16x128xi32>
    %254 = arith.cmpi eq, %204, %253 : vector<16x128xi32>
    %255 = arith.extui %254 : vector<16x128xi1> to vector<16x128xi32>
    %256 = vector.shape_cast %255 : vector<16x128xi32> to vector<1x16x128xi32>
    %cst_49 = arith.constant dense<0> : vector<1xi32>
    %257 = vector.multi_reduction <add>, %256, %cst_49 [1, 2] : vector<1x16x128xi32> to vector<1xi32>
    %258 = vector.shape_cast %257 : vector<1xi32> to vector<1x1x1xi32>
    %259 = vector.extract %258[0, 0, 0] : i32 from vector<1x1x1xi32>
    %260 = arith.addi %248, %259 : i32
    %261 = arith.cmpi sle, %260, %192 : i32
    %262 = arith.extui %261 : i1 to i32
    %263 = arith.addi %251, %262 : i32
    %264 = arith.select %261, %260, %252 : i32
    %c5_i32_50 = arith.constant 5 : i32
    %265 = vector.broadcast %c5_i32_50 : i32 to vector<16x128xi32>
    %266 = arith.cmpi eq, %204, %265 : vector<16x128xi32>
    %267 = arith.extui %266 : vector<16x128xi1> to vector<16x128xi32>
    %268 = vector.shape_cast %267 : vector<16x128xi32> to vector<1x16x128xi32>
    %cst_51 = arith.constant dense<0> : vector<1xi32>
    %269 = vector.multi_reduction <add>, %268, %cst_51 [1, 2] : vector<1x16x128xi32> to vector<1xi32>
    %270 = vector.shape_cast %269 : vector<1xi32> to vector<1x1x1xi32>
    %271 = vector.extract %270[0, 0, 0] : i32 from vector<1x1x1xi32>
    %272 = arith.addi %260, %271 : i32
    %273 = arith.cmpi sle, %272, %192 : i32
    %274 = arith.extui %273 : i1 to i32
    %275 = arith.addi %263, %274 : i32
    %276 = arith.select %273, %272, %264 : i32
    %c6_i32_52 = arith.constant 6 : i32
    %277 = vector.broadcast %c6_i32_52 : i32 to vector<16x128xi32>
    %278 = arith.cmpi eq, %204, %277 : vector<16x128xi32>
    %279 = arith.extui %278 : vector<16x128xi1> to vector<16x128xi32>
    %280 = vector.shape_cast %279 : vector<16x128xi32> to vector<1x16x128xi32>
    %cst_53 = arith.constant dense<0> : vector<1xi32>
    %281 = vector.multi_reduction <add>, %280, %cst_53 [1, 2] : vector<1x16x128xi32> to vector<1xi32>
    %282 = vector.shape_cast %281 : vector<1xi32> to vector<1x1x1xi32>
    %283 = vector.extract %282[0, 0, 0] : i32 from vector<1x1x1xi32>
    %284 = arith.addi %272, %283 : i32
    %285 = arith.cmpi sle, %284, %192 : i32
    %286 = arith.extui %285 : i1 to i32
    %287 = arith.addi %275, %286 : i32
    %288 = arith.select %285, %284, %276 : i32
    %c7_i32_54 = arith.constant 7 : i32
    %289 = vector.broadcast %c7_i32_54 : i32 to vector<16x128xi32>
    %290 = arith.cmpi eq, %204, %289 : vector<16x128xi32>
    %291 = arith.extui %290 : vector<16x128xi1> to vector<16x128xi32>
    %292 = vector.shape_cast %291 : vector<16x128xi32> to vector<1x16x128xi32>
    %cst_55 = arith.constant dense<0> : vector<1xi32>
    %293 = vector.multi_reduction <add>, %292, %cst_55 [1, 2] : vector<1x16x128xi32> to vector<1xi32>
    %294 = vector.shape_cast %293 : vector<1xi32> to vector<1x1x1xi32>
    %295 = vector.extract %294[0, 0, 0] : i32 from vector<1x1x1xi32>
    %296 = arith.addi %284, %295 : i32
    %297 = arith.cmpi sle, %296, %192 : i32
    %298 = arith.extui %297 : i1 to i32
    %299 = arith.addi %287, %298 : i32
    %300 = arith.select %297, %296, %288 : i32
    %c8_i32_56 = arith.constant 8 : i32
    %301 = vector.broadcast %c8_i32_56 : i32 to vector<16x128xi32>
    %302 = arith.cmpi eq, %204, %301 : vector<16x128xi32>
    %303 = arith.extui %302 : vector<16x128xi1> to vector<16x128xi32>
    %304 = vector.shape_cast %303 : vector<16x128xi32> to vector<1x16x128xi32>
    %cst_57 = arith.constant dense<0> : vector<1xi32>
    %305 = vector.multi_reduction <add>, %304, %cst_57 [1, 2] : vector<1x16x128xi32> to vector<1xi32>
    %306 = vector.shape_cast %305 : vector<1xi32> to vector<1x1x1xi32>
    %307 = vector.extract %306[0, 0, 0] : i32 from vector<1x1x1xi32>
    %308 = arith.addi %296, %307 : i32
    %309 = arith.cmpi sle, %308, %192 : i32
    %310 = arith.extui %309 : i1 to i32
    %311 = arith.addi %299, %310 : i32
    %312 = arith.select %309, %308, %300 : i32
    %c9_i32_58 = arith.constant 9 : i32
    %313 = vector.broadcast %c9_i32_58 : i32 to vector<16x128xi32>
    %314 = arith.cmpi eq, %204, %313 : vector<16x128xi32>
    %315 = arith.extui %314 : vector<16x128xi1> to vector<16x128xi32>
    %316 = vector.shape_cast %315 : vector<16x128xi32> to vector<1x16x128xi32>
    %cst_59 = arith.constant dense<0> : vector<1xi32>
    %317 = vector.multi_reduction <add>, %316, %cst_59 [1, 2] : vector<1x16x128xi32> to vector<1xi32>
    %318 = vector.shape_cast %317 : vector<1xi32> to vector<1x1x1xi32>
    %319 = vector.extract %318[0, 0, 0] : i32 from vector<1x1x1xi32>
    %320 = arith.addi %308, %319 : i32
    %321 = arith.cmpi sle, %320, %192 : i32
    %322 = arith.extui %321 : i1 to i32
    %323 = arith.addi %311, %322 : i32
    %324 = arith.select %321, %320, %312 : i32
    %c10_i32_60 = arith.constant 10 : i32
    %325 = vector.broadcast %c10_i32_60 : i32 to vector<16x128xi32>
    %326 = arith.cmpi eq, %204, %325 : vector<16x128xi32>
    %327 = arith.extui %326 : vector<16x128xi1> to vector<16x128xi32>
    %328 = vector.shape_cast %327 : vector<16x128xi32> to vector<1x16x128xi32>
    %cst_61 = arith.constant dense<0> : vector<1xi32>
    %329 = vector.multi_reduction <add>, %328, %cst_61 [1, 2] : vector<1x16x128xi32> to vector<1xi32>
    %330 = vector.shape_cast %329 : vector<1xi32> to vector<1x1x1xi32>
    %331 = vector.extract %330[0, 0, 0] : i32 from vector<1x1x1xi32>
    %332 = arith.addi %320, %331 : i32
    %333 = arith.cmpi sle, %332, %192 : i32
    %334 = arith.extui %333 : i1 to i32
    %335 = arith.addi %323, %334 : i32
    %336 = arith.select %333, %332, %324 : i32
    %c11_i32_62 = arith.constant 11 : i32
    %337 = vector.broadcast %c11_i32_62 : i32 to vector<16x128xi32>
    %338 = arith.cmpi eq, %204, %337 : vector<16x128xi32>
    %339 = arith.extui %338 : vector<16x128xi1> to vector<16x128xi32>
    %340 = vector.shape_cast %339 : vector<16x128xi32> to vector<1x16x128xi32>
    %cst_63 = arith.constant dense<0> : vector<1xi32>
    %341 = vector.multi_reduction <add>, %340, %cst_63 [1, 2] : vector<1x16x128xi32> to vector<1xi32>
    %342 = vector.shape_cast %341 : vector<1xi32> to vector<1x1x1xi32>
    %343 = vector.extract %342[0, 0, 0] : i32 from vector<1x1x1xi32>
    %344 = arith.addi %332, %343 : i32
    %345 = arith.cmpi sle, %344, %192 : i32
    %346 = arith.extui %345 : i1 to i32
    %347 = arith.addi %335, %346 : i32
    %348 = arith.select %345, %344, %336 : i32
    %c12_i32_64 = arith.constant 12 : i32
    %349 = vector.broadcast %c12_i32_64 : i32 to vector<16x128xi32>
    %350 = arith.cmpi eq, %204, %349 : vector<16x128xi32>
    %351 = arith.extui %350 : vector<16x128xi1> to vector<16x128xi32>
    %352 = vector.shape_cast %351 : vector<16x128xi32> to vector<1x16x128xi32>
    %cst_65 = arith.constant dense<0> : vector<1xi32>
    %353 = vector.multi_reduction <add>, %352, %cst_65 [1, 2] : vector<1x16x128xi32> to vector<1xi32>
    %354 = vector.shape_cast %353 : vector<1xi32> to vector<1x1x1xi32>
    %355 = vector.extract %354[0, 0, 0] : i32 from vector<1x1x1xi32>
    %356 = arith.addi %344, %355 : i32
    %357 = arith.cmpi sle, %356, %192 : i32
    %358 = arith.extui %357 : i1 to i32
    %359 = arith.addi %347, %358 : i32
    %360 = arith.select %357, %356, %348 : i32
    %c13_i32_66 = arith.constant 13 : i32
    %361 = vector.broadcast %c13_i32_66 : i32 to vector<16x128xi32>
    %362 = arith.cmpi eq, %204, %361 : vector<16x128xi32>
    %363 = arith.extui %362 : vector<16x128xi1> to vector<16x128xi32>
    %364 = vector.shape_cast %363 : vector<16x128xi32> to vector<1x16x128xi32>
    %cst_67 = arith.constant dense<0> : vector<1xi32>
    %365 = vector.multi_reduction <add>, %364, %cst_67 [1, 2] : vector<1x16x128xi32> to vector<1xi32>
    %366 = vector.shape_cast %365 : vector<1xi32> to vector<1x1x1xi32>
    %367 = vector.extract %366[0, 0, 0] : i32 from vector<1x1x1xi32>
    %368 = arith.addi %356, %367 : i32
    %369 = arith.cmpi sle, %368, %192 : i32
    %370 = arith.extui %369 : i1 to i32
    %371 = arith.addi %359, %370 : i32
    %372 = arith.select %369, %368, %360 : i32
    %c14_i32_68 = arith.constant 14 : i32
    %373 = vector.broadcast %c14_i32_68 : i32 to vector<16x128xi32>
    %374 = arith.cmpi eq, %204, %373 : vector<16x128xi32>
    %375 = arith.extui %374 : vector<16x128xi1> to vector<16x128xi32>
    %376 = vector.shape_cast %375 : vector<16x128xi32> to vector<1x16x128xi32>
    %cst_69 = arith.constant dense<0> : vector<1xi32>
    %377 = vector.multi_reduction <add>, %376, %cst_69 [1, 2] : vector<1x16x128xi32> to vector<1xi32>
    %378 = vector.shape_cast %377 : vector<1xi32> to vector<1x1x1xi32>
    %379 = vector.extract %378[0, 0, 0] : i32 from vector<1x1x1xi32>
    %380 = arith.addi %368, %379 : i32
    %381 = arith.cmpi sle, %380, %192 : i32
    %382 = arith.extui %381 : i1 to i32
    %383 = arith.addi %371, %382 : i32
    %384 = arith.select %381, %380, %372 : i32
    %385 = arith.subi %192, %384 : i32
    %c24_i32_70 = arith.constant 24 : i32
    %386 = arith.shli %383, %c24_i32_70 : i32
    %387 = arith.ori %194, %386 : i32
    %c20_i32 = arith.constant 20 : i32
    %388 = vector.broadcast %c20_i32 : i32 to vector<16x128xi32>
    %389 = arith.shrsi %7, %388 : vector<16x128xi32>
    %c15_i32_71 = arith.constant 15 : i32
    %390 = vector.broadcast %c15_i32_71 : i32 to vector<16x128xi32>
    %391 = arith.andi %389, %390 : vector<16x128xi32>
    %c-16777216_i32 = arith.constant -16777216 : i32
    %392 = vector.broadcast %c-16777216_i32 : i32 to vector<16x128xi32>
    %393 = arith.andi %7, %392 : vector<16x128xi32>
    %394 = vector.broadcast %387 : i32 to vector<16x128xi32>
    %395 = arith.cmpi eq, %393, %394 : vector<16x128xi32>
    %c16_i32_72 = arith.constant 16 : i32
    %396 = vector.broadcast %c16_i32_72 : i32 to vector<16x128xi32>
    %397 = arith.select %395, %391, %396 : vector<16x128xi1>, vector<16x128xi32>
    %c0_i32_73 = arith.constant 0 : i32
    %398 = vector.broadcast %c0_i32_73 : i32 to vector<16x128xi32>
    %399 = arith.cmpi eq, %397, %398 : vector<16x128xi32>
    %400 = arith.extui %399 : vector<16x128xi1> to vector<16x128xi32>
    %401 = vector.shape_cast %400 : vector<16x128xi32> to vector<1x16x128xi32>
    %cst_74 = arith.constant dense<0> : vector<1xi32>
    %402 = vector.multi_reduction <add>, %401, %cst_74 [1, 2] : vector<1x16x128xi32> to vector<1xi32>
    %403 = vector.shape_cast %402 : vector<1xi32> to vector<1x1x1xi32>
    %404 = vector.extract %403[0, 0, 0] : i32 from vector<1x1x1xi32>
    %c0_i32_75 = arith.constant 0 : i32
    %405 = arith.addi %c0_i32_75, %404 : i32
    %406 = arith.cmpi sle, %405, %385 : i32
    %407 = arith.extui %406 : i1 to i32
    %c0_i32_76 = arith.constant 0 : i32
    %408 = arith.addi %c0_i32_76, %407 : i32
    %c0_i32_77 = arith.constant 0 : i32
    %409 = arith.select %406, %405, %c0_i32_77 : i32
    %c1_i32_78 = arith.constant 1 : i32
    %410 = vector.broadcast %c1_i32_78 : i32 to vector<16x128xi32>
    %411 = arith.cmpi eq, %397, %410 : vector<16x128xi32>
    %412 = arith.extui %411 : vector<16x128xi1> to vector<16x128xi32>
    %413 = vector.shape_cast %412 : vector<16x128xi32> to vector<1x16x128xi32>
    %cst_79 = arith.constant dense<0> : vector<1xi32>
    %414 = vector.multi_reduction <add>, %413, %cst_79 [1, 2] : vector<1x16x128xi32> to vector<1xi32>
    %415 = vector.shape_cast %414 : vector<1xi32> to vector<1x1x1xi32>
    %416 = vector.extract %415[0, 0, 0] : i32 from vector<1x1x1xi32>
    %417 = arith.addi %405, %416 : i32
    %418 = arith.cmpi sle, %417, %385 : i32
    %419 = arith.extui %418 : i1 to i32
    %420 = arith.addi %408, %419 : i32
    %421 = arith.select %418, %417, %409 : i32
    %c2_i32_80 = arith.constant 2 : i32
    %422 = vector.broadcast %c2_i32_80 : i32 to vector<16x128xi32>
    %423 = arith.cmpi eq, %397, %422 : vector<16x128xi32>
    %424 = arith.extui %423 : vector<16x128xi1> to vector<16x128xi32>
    %425 = vector.shape_cast %424 : vector<16x128xi32> to vector<1x16x128xi32>
    %cst_81 = arith.constant dense<0> : vector<1xi32>
    %426 = vector.multi_reduction <add>, %425, %cst_81 [1, 2] : vector<1x16x128xi32> to vector<1xi32>
    %427 = vector.shape_cast %426 : vector<1xi32> to vector<1x1x1xi32>
    %428 = vector.extract %427[0, 0, 0] : i32 from vector<1x1x1xi32>
    %429 = arith.addi %417, %428 : i32
    %430 = arith.cmpi sle, %429, %385 : i32
    %431 = arith.extui %430 : i1 to i32
    %432 = arith.addi %420, %431 : i32
    %433 = arith.select %430, %429, %421 : i32
    %c3_i32_82 = arith.constant 3 : i32
    %434 = vector.broadcast %c3_i32_82 : i32 to vector<16x128xi32>
    %435 = arith.cmpi eq, %397, %434 : vector<16x128xi32>
    %436 = arith.extui %435 : vector<16x128xi1> to vector<16x128xi32>
    %437 = vector.shape_cast %436 : vector<16x128xi32> to vector<1x16x128xi32>
    %cst_83 = arith.constant dense<0> : vector<1xi32>
    %438 = vector.multi_reduction <add>, %437, %cst_83 [1, 2] : vector<1x16x128xi32> to vector<1xi32>
    %439 = vector.shape_cast %438 : vector<1xi32> to vector<1x1x1xi32>
    %440 = vector.extract %439[0, 0, 0] : i32 from vector<1x1x1xi32>
    %441 = arith.addi %429, %440 : i32
    %442 = arith.cmpi sle, %441, %385 : i32
    %443 = arith.extui %442 : i1 to i32
    %444 = arith.addi %432, %443 : i32
    %445 = arith.select %442, %441, %433 : i32
    %c4_i32_84 = arith.constant 4 : i32
    %446 = vector.broadcast %c4_i32_84 : i32 to vector<16x128xi32>
    %447 = arith.cmpi eq, %397, %446 : vector<16x128xi32>
    %448 = arith.extui %447 : vector<16x128xi1> to vector<16x128xi32>
    %449 = vector.shape_cast %448 : vector<16x128xi32> to vector<1x16x128xi32>
    %cst_85 = arith.constant dense<0> : vector<1xi32>
    %450 = vector.multi_reduction <add>, %449, %cst_85 [1, 2] : vector<1x16x128xi32> to vector<1xi32>
    %451 = vector.shape_cast %450 : vector<1xi32> to vector<1x1x1xi32>
    %452 = vector.extract %451[0, 0, 0] : i32 from vector<1x1x1xi32>
    %453 = arith.addi %441, %452 : i32
    %454 = arith.cmpi sle, %453, %385 : i32
    %455 = arith.extui %454 : i1 to i32
    %456 = arith.addi %444, %455 : i32
    %457 = arith.select %454, %453, %445 : i32
    %c5_i32_86 = arith.constant 5 : i32
    %458 = vector.broadcast %c5_i32_86 : i32 to vector<16x128xi32>
    %459 = arith.cmpi eq, %397, %458 : vector<16x128xi32>
    %460 = arith.extui %459 : vector<16x128xi1> to vector<16x128xi32>
    %461 = vector.shape_cast %460 : vector<16x128xi32> to vector<1x16x128xi32>
    %cst_87 = arith.constant dense<0> : vector<1xi32>
    %462 = vector.multi_reduction <add>, %461, %cst_87 [1, 2] : vector<1x16x128xi32> to vector<1xi32>
    %463 = vector.shape_cast %462 : vector<1xi32> to vector<1x1x1xi32>
    %464 = vector.extract %463[0, 0, 0] : i32 from vector<1x1x1xi32>
    %465 = arith.addi %453, %464 : i32
    %466 = arith.cmpi sle, %465, %385 : i32
    %467 = arith.extui %466 : i1 to i32
    %468 = arith.addi %456, %467 : i32
    %469 = arith.select %466, %465, %457 : i32
    %c6_i32_88 = arith.constant 6 : i32
    %470 = vector.broadcast %c6_i32_88 : i32 to vector<16x128xi32>
    %471 = arith.cmpi eq, %397, %470 : vector<16x128xi32>
    %472 = arith.extui %471 : vector<16x128xi1> to vector<16x128xi32>
    %473 = vector.shape_cast %472 : vector<16x128xi32> to vector<1x16x128xi32>
    %cst_89 = arith.constant dense<0> : vector<1xi32>
    %474 = vector.multi_reduction <add>, %473, %cst_89 [1, 2] : vector<1x16x128xi32> to vector<1xi32>
    %475 = vector.shape_cast %474 : vector<1xi32> to vector<1x1x1xi32>
    %476 = vector.extract %475[0, 0, 0] : i32 from vector<1x1x1xi32>
    %477 = arith.addi %465, %476 : i32
    %478 = arith.cmpi sle, %477, %385 : i32
    %479 = arith.extui %478 : i1 to i32
    %480 = arith.addi %468, %479 : i32
    %481 = arith.select %478, %477, %469 : i32
    %c7_i32_90 = arith.constant 7 : i32
    %482 = vector.broadcast %c7_i32_90 : i32 to vector<16x128xi32>
    %483 = arith.cmpi eq, %397, %482 : vector<16x128xi32>
    %484 = arith.extui %483 : vector<16x128xi1> to vector<16x128xi32>
    %485 = vector.shape_cast %484 : vector<16x128xi32> to vector<1x16x128xi32>
    %cst_91 = arith.constant dense<0> : vector<1xi32>
    %486 = vector.multi_reduction <add>, %485, %cst_91 [1, 2] : vector<1x16x128xi32> to vector<1xi32>
    %487 = vector.shape_cast %486 : vector<1xi32> to vector<1x1x1xi32>
    %488 = vector.extract %487[0, 0, 0] : i32 from vector<1x1x1xi32>
    %489 = arith.addi %477, %488 : i32
    %490 = arith.cmpi sle, %489, %385 : i32
    %491 = arith.extui %490 : i1 to i32
    %492 = arith.addi %480, %491 : i32
    %493 = arith.select %490, %489, %481 : i32
    %c8_i32_92 = arith.constant 8 : i32
    %494 = vector.broadcast %c8_i32_92 : i32 to vector<16x128xi32>
    %495 = arith.cmpi eq, %397, %494 : vector<16x128xi32>
    %496 = arith.extui %495 : vector<16x128xi1> to vector<16x128xi32>
    %497 = vector.shape_cast %496 : vector<16x128xi32> to vector<1x16x128xi32>
    %cst_93 = arith.constant dense<0> : vector<1xi32>
    %498 = vector.multi_reduction <add>, %497, %cst_93 [1, 2] : vector<1x16x128xi32> to vector<1xi32>
    %499 = vector.shape_cast %498 : vector<1xi32> to vector<1x1x1xi32>
    %500 = vector.extract %499[0, 0, 0] : i32 from vector<1x1x1xi32>
    %501 = arith.addi %489, %500 : i32
    %502 = arith.cmpi sle, %501, %385 : i32
    %503 = arith.extui %502 : i1 to i32
    %504 = arith.addi %492, %503 : i32
    %505 = arith.select %502, %501, %493 : i32
    %c9_i32_94 = arith.constant 9 : i32
    %506 = vector.broadcast %c9_i32_94 : i32 to vector<16x128xi32>
    %507 = arith.cmpi eq, %397, %506 : vector<16x128xi32>
    %508 = arith.extui %507 : vector<16x128xi1> to vector<16x128xi32>
    %509 = vector.shape_cast %508 : vector<16x128xi32> to vector<1x16x128xi32>
    %cst_95 = arith.constant dense<0> : vector<1xi32>
    %510 = vector.multi_reduction <add>, %509, %cst_95 [1, 2] : vector<1x16x128xi32> to vector<1xi32>
    %511 = vector.shape_cast %510 : vector<1xi32> to vector<1x1x1xi32>
    %512 = vector.extract %511[0, 0, 0] : i32 from vector<1x1x1xi32>
    %513 = arith.addi %501, %512 : i32
    %514 = arith.cmpi sle, %513, %385 : i32
    %515 = arith.extui %514 : i1 to i32
    %516 = arith.addi %504, %515 : i32
    %517 = arith.select %514, %513, %505 : i32
    %c10_i32_96 = arith.constant 10 : i32
    %518 = vector.broadcast %c10_i32_96 : i32 to vector<16x128xi32>
    %519 = arith.cmpi eq, %397, %518 : vector<16x128xi32>
    %520 = arith.extui %519 : vector<16x128xi1> to vector<16x128xi32>
    %521 = vector.shape_cast %520 : vector<16x128xi32> to vector<1x16x128xi32>
    %cst_97 = arith.constant dense<0> : vector<1xi32>
    %522 = vector.multi_reduction <add>, %521, %cst_97 [1, 2] : vector<1x16x128xi32> to vector<1xi32>
    %523 = vector.shape_cast %522 : vector<1xi32> to vector<1x1x1xi32>
    %524 = vector.extract %523[0, 0, 0] : i32 from vector<1x1x1xi32>
    %525 = arith.addi %513, %524 : i32
    %526 = arith.cmpi sle, %525, %385 : i32
    %527 = arith.extui %526 : i1 to i32
    %528 = arith.addi %516, %527 : i32
    %529 = arith.select %526, %525, %517 : i32
    %c11_i32_98 = arith.constant 11 : i32
    %530 = vector.broadcast %c11_i32_98 : i32 to vector<16x128xi32>
    %531 = arith.cmpi eq, %397, %530 : vector<16x128xi32>
    %532 = arith.extui %531 : vector<16x128xi1> to vector<16x128xi32>
    %533 = vector.shape_cast %532 : vector<16x128xi32> to vector<1x16x128xi32>
    %cst_99 = arith.constant dense<0> : vector<1xi32>
    %534 = vector.multi_reduction <add>, %533, %cst_99 [1, 2] : vector<1x16x128xi32> to vector<1xi32>
    %535 = vector.shape_cast %534 : vector<1xi32> to vector<1x1x1xi32>
    %536 = vector.extract %535[0, 0, 0] : i32 from vector<1x1x1xi32>
    %537 = arith.addi %525, %536 : i32
    %538 = arith.cmpi sle, %537, %385 : i32
    %539 = arith.extui %538 : i1 to i32
    %540 = arith.addi %528, %539 : i32
    %541 = arith.select %538, %537, %529 : i32
    %c12_i32_100 = arith.constant 12 : i32
    %542 = vector.broadcast %c12_i32_100 : i32 to vector<16x128xi32>
    %543 = arith.cmpi eq, %397, %542 : vector<16x128xi32>
    %544 = arith.extui %543 : vector<16x128xi1> to vector<16x128xi32>
    %545 = vector.shape_cast %544 : vector<16x128xi32> to vector<1x16x128xi32>
    %cst_101 = arith.constant dense<0> : vector<1xi32>
    %546 = vector.multi_reduction <add>, %545, %cst_101 [1, 2] : vector<1x16x128xi32> to vector<1xi32>
    %547 = vector.shape_cast %546 : vector<1xi32> to vector<1x1x1xi32>
    %548 = vector.extract %547[0, 0, 0] : i32 from vector<1x1x1xi32>
    %549 = arith.addi %537, %548 : i32
    %550 = arith.cmpi sle, %549, %385 : i32
    %551 = arith.extui %550 : i1 to i32
    %552 = arith.addi %540, %551 : i32
    %553 = arith.select %550, %549, %541 : i32
    %c13_i32_102 = arith.constant 13 : i32
    %554 = vector.broadcast %c13_i32_102 : i32 to vector<16x128xi32>
    %555 = arith.cmpi eq, %397, %554 : vector<16x128xi32>
    %556 = arith.extui %555 : vector<16x128xi1> to vector<16x128xi32>
    %557 = vector.shape_cast %556 : vector<16x128xi32> to vector<1x16x128xi32>
    %cst_103 = arith.constant dense<0> : vector<1xi32>
    %558 = vector.multi_reduction <add>, %557, %cst_103 [1, 2] : vector<1x16x128xi32> to vector<1xi32>
    %559 = vector.shape_cast %558 : vector<1xi32> to vector<1x1x1xi32>
    %560 = vector.extract %559[0, 0, 0] : i32 from vector<1x1x1xi32>
    %561 = arith.addi %549, %560 : i32
    %562 = arith.cmpi sle, %561, %385 : i32
    %563 = arith.extui %562 : i1 to i32
    %564 = arith.addi %552, %563 : i32
    %565 = arith.select %562, %561, %553 : i32
    %c14_i32_104 = arith.constant 14 : i32
    %566 = vector.broadcast %c14_i32_104 : i32 to vector<16x128xi32>
    %567 = arith.cmpi eq, %397, %566 : vector<16x128xi32>
    %568 = arith.extui %567 : vector<16x128xi1> to vector<16x128xi32>
    %569 = vector.shape_cast %568 : vector<16x128xi32> to vector<1x16x128xi32>
    %cst_105 = arith.constant dense<0> : vector<1xi32>
    %570 = vector.multi_reduction <add>, %569, %cst_105 [1, 2] : vector<1x16x128xi32> to vector<1xi32>
    %571 = vector.shape_cast %570 : vector<1xi32> to vector<1x1x1xi32>
    %572 = vector.extract %571[0, 0, 0] : i32 from vector<1x1x1xi32>
    %573 = arith.addi %561, %572 : i32
    %574 = arith.cmpi sle, %573, %385 : i32
    %575 = arith.extui %574 : i1 to i32
    %576 = arith.addi %564, %575 : i32
    %577 = arith.select %574, %573, %565 : i32
    %578 = arith.subi %385, %577 : i32
    %c20_i32_106 = arith.constant 20 : i32
    %579 = arith.shli %576, %c20_i32_106 : i32
    %580 = arith.ori %387, %579 : i32
    %c16_i32_107 = arith.constant 16 : i32
    %581 = vector.broadcast %c16_i32_107 : i32 to vector<16x128xi32>
    %582 = arith.shrsi %7, %581 : vector<16x128xi32>
    %c15_i32_108 = arith.constant 15 : i32
    %583 = vector.broadcast %c15_i32_108 : i32 to vector<16x128xi32>
    %584 = arith.andi %582, %583 : vector<16x128xi32>
    %c-1048576_i32 = arith.constant -1048576 : i32
    %585 = vector.broadcast %c-1048576_i32 : i32 to vector<16x128xi32>
    %586 = arith.andi %7, %585 : vector<16x128xi32>
    %587 = vector.broadcast %580 : i32 to vector<16x128xi32>
    %588 = arith.cmpi eq, %586, %587 : vector<16x128xi32>
    %c16_i32_109 = arith.constant 16 : i32
    %589 = vector.broadcast %c16_i32_109 : i32 to vector<16x128xi32>
    %590 = arith.select %588, %584, %589 : vector<16x128xi1>, vector<16x128xi32>
    %c0_i32_110 = arith.constant 0 : i32
    %591 = vector.broadcast %c0_i32_110 : i32 to vector<16x128xi32>
    %592 = arith.cmpi eq, %590, %591 : vector<16x128xi32>
    %593 = arith.extui %592 : vector<16x128xi1> to vector<16x128xi32>
    %594 = vector.shape_cast %593 : vector<16x128xi32> to vector<1x16x128xi32>
    %cst_111 = arith.constant dense<0> : vector<1xi32>
    %595 = vector.multi_reduction <add>, %594, %cst_111 [1, 2] : vector<1x16x128xi32> to vector<1xi32>
    %596 = vector.shape_cast %595 : vector<1xi32> to vector<1x1x1xi32>
    %597 = vector.extract %596[0, 0, 0] : i32 from vector<1x1x1xi32>
    %c0_i32_112 = arith.constant 0 : i32
    %598 = arith.addi %c0_i32_112, %597 : i32
    %599 = arith.cmpi sle, %598, %578 : i32
    %600 = arith.extui %599 : i1 to i32
    %c0_i32_113 = arith.constant 0 : i32
    %601 = arith.addi %c0_i32_113, %600 : i32
    %c0_i32_114 = arith.constant 0 : i32
    %602 = arith.select %599, %598, %c0_i32_114 : i32
    %c1_i32_115 = arith.constant 1 : i32
    %603 = vector.broadcast %c1_i32_115 : i32 to vector<16x128xi32>
    %604 = arith.cmpi eq, %590, %603 : vector<16x128xi32>
    %605 = arith.extui %604 : vector<16x128xi1> to vector<16x128xi32>
    %606 = vector.shape_cast %605 : vector<16x128xi32> to vector<1x16x128xi32>
    %cst_116 = arith.constant dense<0> : vector<1xi32>
    %607 = vector.multi_reduction <add>, %606, %cst_116 [1, 2] : vector<1x16x128xi32> to vector<1xi32>
    %608 = vector.shape_cast %607 : vector<1xi32> to vector<1x1x1xi32>
    %609 = vector.extract %608[0, 0, 0] : i32 from vector<1x1x1xi32>
    %610 = arith.addi %598, %609 : i32
    %611 = arith.cmpi sle, %610, %578 : i32
    %612 = arith.extui %611 : i1 to i32
    %613 = arith.addi %601, %612 : i32
    %614 = arith.select %611, %610, %602 : i32
    %c2_i32_117 = arith.constant 2 : i32
    %615 = vector.broadcast %c2_i32_117 : i32 to vector<16x128xi32>
    %616 = arith.cmpi eq, %590, %615 : vector<16x128xi32>
    %617 = arith.extui %616 : vector<16x128xi1> to vector<16x128xi32>
    %618 = vector.shape_cast %617 : vector<16x128xi32> to vector<1x16x128xi32>
    %cst_118 = arith.constant dense<0> : vector<1xi32>
    %619 = vector.multi_reduction <add>, %618, %cst_118 [1, 2] : vector<1x16x128xi32> to vector<1xi32>
    %620 = vector.shape_cast %619 : vector<1xi32> to vector<1x1x1xi32>
    %621 = vector.extract %620[0, 0, 0] : i32 from vector<1x1x1xi32>
    %622 = arith.addi %610, %621 : i32
    %623 = arith.cmpi sle, %622, %578 : i32
    %624 = arith.extui %623 : i1 to i32
    %625 = arith.addi %613, %624 : i32
    %626 = arith.select %623, %622, %614 : i32
    %c3_i32_119 = arith.constant 3 : i32
    %627 = vector.broadcast %c3_i32_119 : i32 to vector<16x128xi32>
    %628 = arith.cmpi eq, %590, %627 : vector<16x128xi32>
    %629 = arith.extui %628 : vector<16x128xi1> to vector<16x128xi32>
    %630 = vector.shape_cast %629 : vector<16x128xi32> to vector<1x16x128xi32>
    %cst_120 = arith.constant dense<0> : vector<1xi32>
    %631 = vector.multi_reduction <add>, %630, %cst_120 [1, 2] : vector<1x16x128xi32> to vector<1xi32>
    %632 = vector.shape_cast %631 : vector<1xi32> to vector<1x1x1xi32>
    %633 = vector.extract %632[0, 0, 0] : i32 from vector<1x1x1xi32>
    %634 = arith.addi %622, %633 : i32
    %635 = arith.cmpi sle, %634, %578 : i32
    %636 = arith.extui %635 : i1 to i32
    %637 = arith.addi %625, %636 : i32
    %638 = arith.select %635, %634, %626 : i32
    %c4_i32_121 = arith.constant 4 : i32
    %639 = vector.broadcast %c4_i32_121 : i32 to vector<16x128xi32>
    %640 = arith.cmpi eq, %590, %639 : vector<16x128xi32>
    %641 = arith.extui %640 : vector<16x128xi1> to vector<16x128xi32>
    %642 = vector.shape_cast %641 : vector<16x128xi32> to vector<1x16x128xi32>
    %cst_122 = arith.constant dense<0> : vector<1xi32>
    %643 = vector.multi_reduction <add>, %642, %cst_122 [1, 2] : vector<1x16x128xi32> to vector<1xi32>
    %644 = vector.shape_cast %643 : vector<1xi32> to vector<1x1x1xi32>
    %645 = vector.extract %644[0, 0, 0] : i32 from vector<1x1x1xi32>
    %646 = arith.addi %634, %645 : i32
    %647 = arith.cmpi sle, %646, %578 : i32
    %648 = arith.extui %647 : i1 to i32
    %649 = arith.addi %637, %648 : i32
    %650 = arith.select %647, %646, %638 : i32
    %c5_i32_123 = arith.constant 5 : i32
    %651 = vector.broadcast %c5_i32_123 : i32 to vector<16x128xi32>
    %652 = arith.cmpi eq, %590, %651 : vector<16x128xi32>
    %653 = arith.extui %652 : vector<16x128xi1> to vector<16x128xi32>
    %654 = vector.shape_cast %653 : vector<16x128xi32> to vector<1x16x128xi32>
    %cst_124 = arith.constant dense<0> : vector<1xi32>
    %655 = vector.multi_reduction <add>, %654, %cst_124 [1, 2] : vector<1x16x128xi32> to vector<1xi32>
    %656 = vector.shape_cast %655 : vector<1xi32> to vector<1x1x1xi32>
    %657 = vector.extract %656[0, 0, 0] : i32 from vector<1x1x1xi32>
    %658 = arith.addi %646, %657 : i32
    %659 = arith.cmpi sle, %658, %578 : i32
    %660 = arith.extui %659 : i1 to i32
    %661 = arith.addi %649, %660 : i32
    %662 = arith.select %659, %658, %650 : i32
    %c6_i32_125 = arith.constant 6 : i32
    %663 = vector.broadcast %c6_i32_125 : i32 to vector<16x128xi32>
    %664 = arith.cmpi eq, %590, %663 : vector<16x128xi32>
    %665 = arith.extui %664 : vector<16x128xi1> to vector<16x128xi32>
    %666 = vector.shape_cast %665 : vector<16x128xi32> to vector<1x16x128xi32>
    %cst_126 = arith.constant dense<0> : vector<1xi32>
    %667 = vector.multi_reduction <add>, %666, %cst_126 [1, 2] : vector<1x16x128xi32> to vector<1xi32>
    %668 = vector.shape_cast %667 : vector<1xi32> to vector<1x1x1xi32>
    %669 = vector.extract %668[0, 0, 0] : i32 from vector<1x1x1xi32>
    %670 = arith.addi %658, %669 : i32
    %671 = arith.cmpi sle, %670, %578 : i32
    %672 = arith.extui %671 : i1 to i32
    %673 = arith.addi %661, %672 : i32
    %674 = arith.select %671, %670, %662 : i32
    %c7_i32_127 = arith.constant 7 : i32
    %675 = vector.broadcast %c7_i32_127 : i32 to vector<16x128xi32>
    %676 = arith.cmpi eq, %590, %675 : vector<16x128xi32>
    %677 = arith.extui %676 : vector<16x128xi1> to vector<16x128xi32>
    %678 = vector.shape_cast %677 : vector<16x128xi32> to vector<1x16x128xi32>
    %cst_128 = arith.constant dense<0> : vector<1xi32>
    %679 = vector.multi_reduction <add>, %678, %cst_128 [1, 2] : vector<1x16x128xi32> to vector<1xi32>
    %680 = vector.shape_cast %679 : vector<1xi32> to vector<1x1x1xi32>
    %681 = vector.extract %680[0, 0, 0] : i32 from vector<1x1x1xi32>
    %682 = arith.addi %670, %681 : i32
    %683 = arith.cmpi sle, %682, %578 : i32
    %684 = arith.extui %683 : i1 to i32
    %685 = arith.addi %673, %684 : i32
    %686 = arith.select %683, %682, %674 : i32
    %c8_i32_129 = arith.constant 8 : i32
    %687 = vector.broadcast %c8_i32_129 : i32 to vector<16x128xi32>
    %688 = arith.cmpi eq, %590, %687 : vector<16x128xi32>
    %689 = arith.extui %688 : vector<16x128xi1> to vector<16x128xi32>
    %690 = vector.shape_cast %689 : vector<16x128xi32> to vector<1x16x128xi32>
    %cst_130 = arith.constant dense<0> : vector<1xi32>
    %691 = vector.multi_reduction <add>, %690, %cst_130 [1, 2] : vector<1x16x128xi32> to vector<1xi32>
    %692 = vector.shape_cast %691 : vector<1xi32> to vector<1x1x1xi32>
    %693 = vector.extract %692[0, 0, 0] : i32 from vector<1x1x1xi32>
    %694 = arith.addi %682, %693 : i32
    %695 = arith.cmpi sle, %694, %578 : i32
    %696 = arith.extui %695 : i1 to i32
    %697 = arith.addi %685, %696 : i32
    %698 = arith.select %695, %694, %686 : i32
    %c9_i32_131 = arith.constant 9 : i32
    %699 = vector.broadcast %c9_i32_131 : i32 to vector<16x128xi32>
    %700 = arith.cmpi eq, %590, %699 : vector<16x128xi32>
    %701 = arith.extui %700 : vector<16x128xi1> to vector<16x128xi32>
    %702 = vector.shape_cast %701 : vector<16x128xi32> to vector<1x16x128xi32>
    %cst_132 = arith.constant dense<0> : vector<1xi32>
    %703 = vector.multi_reduction <add>, %702, %cst_132 [1, 2] : vector<1x16x128xi32> to vector<1xi32>
    %704 = vector.shape_cast %703 : vector<1xi32> to vector<1x1x1xi32>
    %705 = vector.extract %704[0, 0, 0] : i32 from vector<1x1x1xi32>
    %706 = arith.addi %694, %705 : i32
    %707 = arith.cmpi sle, %706, %578 : i32
    %708 = arith.extui %707 : i1 to i32
    %709 = arith.addi %697, %708 : i32
    %710 = arith.select %707, %706, %698 : i32
    %c10_i32_133 = arith.constant 10 : i32
    %711 = vector.broadcast %c10_i32_133 : i32 to vector<16x128xi32>
    %712 = arith.cmpi eq, %590, %711 : vector<16x128xi32>
    %713 = arith.extui %712 : vector<16x128xi1> to vector<16x128xi32>
    %714 = vector.shape_cast %713 : vector<16x128xi32> to vector<1x16x128xi32>
    %cst_134 = arith.constant dense<0> : vector<1xi32>
    %715 = vector.multi_reduction <add>, %714, %cst_134 [1, 2] : vector<1x16x128xi32> to vector<1xi32>
    %716 = vector.shape_cast %715 : vector<1xi32> to vector<1x1x1xi32>
    %717 = vector.extract %716[0, 0, 0] : i32 from vector<1x1x1xi32>
    %718 = arith.addi %706, %717 : i32
    %719 = arith.cmpi sle, %718, %578 : i32
    %720 = arith.extui %719 : i1 to i32
    %721 = arith.addi %709, %720 : i32
    %722 = arith.select %719, %718, %710 : i32
    %c11_i32_135 = arith.constant 11 : i32
    %723 = vector.broadcast %c11_i32_135 : i32 to vector<16x128xi32>
    %724 = arith.cmpi eq, %590, %723 : vector<16x128xi32>
    %725 = arith.extui %724 : vector<16x128xi1> to vector<16x128xi32>
    %726 = vector.shape_cast %725 : vector<16x128xi32> to vector<1x16x128xi32>
    %cst_136 = arith.constant dense<0> : vector<1xi32>
    %727 = vector.multi_reduction <add>, %726, %cst_136 [1, 2] : vector<1x16x128xi32> to vector<1xi32>
    %728 = vector.shape_cast %727 : vector<1xi32> to vector<1x1x1xi32>
    %729 = vector.extract %728[0, 0, 0] : i32 from vector<1x1x1xi32>
    %730 = arith.addi %718, %729 : i32
    %731 = arith.cmpi sle, %730, %578 : i32
    %732 = arith.extui %731 : i1 to i32
    %733 = arith.addi %721, %732 : i32
    %734 = arith.select %731, %730, %722 : i32
    %c12_i32_137 = arith.constant 12 : i32
    %735 = vector.broadcast %c12_i32_137 : i32 to vector<16x128xi32>
    %736 = arith.cmpi eq, %590, %735 : vector<16x128xi32>
    %737 = arith.extui %736 : vector<16x128xi1> to vector<16x128xi32>
    %738 = vector.shape_cast %737 : vector<16x128xi32> to vector<1x16x128xi32>
    %cst_138 = arith.constant dense<0> : vector<1xi32>
    %739 = vector.multi_reduction <add>, %738, %cst_138 [1, 2] : vector<1x16x128xi32> to vector<1xi32>
    %740 = vector.shape_cast %739 : vector<1xi32> to vector<1x1x1xi32>
    %741 = vector.extract %740[0, 0, 0] : i32 from vector<1x1x1xi32>
    %742 = arith.addi %730, %741 : i32
    %743 = arith.cmpi sle, %742, %578 : i32
    %744 = arith.extui %743 : i1 to i32
    %745 = arith.addi %733, %744 : i32
    %746 = arith.select %743, %742, %734 : i32
    %c13_i32_139 = arith.constant 13 : i32
    %747 = vector.broadcast %c13_i32_139 : i32 to vector<16x128xi32>
    %748 = arith.cmpi eq, %590, %747 : vector<16x128xi32>
    %749 = arith.extui %748 : vector<16x128xi1> to vector<16x128xi32>
    %750 = vector.shape_cast %749 : vector<16x128xi32> to vector<1x16x128xi32>
    %cst_140 = arith.constant dense<0> : vector<1xi32>
    %751 = vector.multi_reduction <add>, %750, %cst_140 [1, 2] : vector<1x16x128xi32> to vector<1xi32>
    %752 = vector.shape_cast %751 : vector<1xi32> to vector<1x1x1xi32>
    %753 = vector.extract %752[0, 0, 0] : i32 from vector<1x1x1xi32>
    %754 = arith.addi %742, %753 : i32
    %755 = arith.cmpi sle, %754, %578 : i32
    %756 = arith.extui %755 : i1 to i32
    %757 = arith.addi %745, %756 : i32
    %758 = arith.select %755, %754, %746 : i32
    %c14_i32_141 = arith.constant 14 : i32
    %759 = vector.broadcast %c14_i32_141 : i32 to vector<16x128xi32>
    %760 = arith.cmpi eq, %590, %759 : vector<16x128xi32>
    %761 = arith.extui %760 : vector<16x128xi1> to vector<16x128xi32>
    %762 = vector.shape_cast %761 : vector<16x128xi32> to vector<1x16x128xi32>
    %cst_142 = arith.constant dense<0> : vector<1xi32>
    %763 = vector.multi_reduction <add>, %762, %cst_142 [1, 2] : vector<1x16x128xi32> to vector<1xi32>
    %764 = vector.shape_cast %763 : vector<1xi32> to vector<1x1x1xi32>
    %765 = vector.extract %764[0, 0, 0] : i32 from vector<1x1x1xi32>
    %766 = arith.addi %754, %765 : i32
    %767 = arith.cmpi sle, %766, %578 : i32
    %768 = arith.extui %767 : i1 to i32
    %769 = arith.addi %757, %768 : i32
    %770 = arith.select %767, %766, %758 : i32
    %771 = arith.subi %578, %770 : i32
    %c16_i32_143 = arith.constant 16 : i32
    %772 = arith.shli %769, %c16_i32_143 : i32
    %773 = arith.ori %580, %772 : i32
    %c12_i32_144 = arith.constant 12 : i32
    %774 = vector.broadcast %c12_i32_144 : i32 to vector<16x128xi32>
    %775 = arith.shrsi %7, %774 : vector<16x128xi32>
    %c15_i32_145 = arith.constant 15 : i32
    %776 = vector.broadcast %c15_i32_145 : i32 to vector<16x128xi32>
    %777 = arith.andi %775, %776 : vector<16x128xi32>
    %c-65536_i32 = arith.constant -65536 : i32
    %778 = vector.broadcast %c-65536_i32 : i32 to vector<16x128xi32>
    %779 = arith.andi %7, %778 : vector<16x128xi32>
    %780 = vector.broadcast %773 : i32 to vector<16x128xi32>
    %781 = arith.cmpi eq, %779, %780 : vector<16x128xi32>
    %c16_i32_146 = arith.constant 16 : i32
    %782 = vector.broadcast %c16_i32_146 : i32 to vector<16x128xi32>
    %783 = arith.select %781, %777, %782 : vector<16x128xi1>, vector<16x128xi32>
    %c0_i32_147 = arith.constant 0 : i32
    %784 = vector.broadcast %c0_i32_147 : i32 to vector<16x128xi32>
    %785 = arith.cmpi eq, %783, %784 : vector<16x128xi32>
    %786 = arith.extui %785 : vector<16x128xi1> to vector<16x128xi32>
    %787 = vector.shape_cast %786 : vector<16x128xi32> to vector<1x16x128xi32>
    %cst_148 = arith.constant dense<0> : vector<1xi32>
    %788 = vector.multi_reduction <add>, %787, %cst_148 [1, 2] : vector<1x16x128xi32> to vector<1xi32>
    %789 = vector.shape_cast %788 : vector<1xi32> to vector<1x1x1xi32>
    %790 = vector.extract %789[0, 0, 0] : i32 from vector<1x1x1xi32>
    %c0_i32_149 = arith.constant 0 : i32
    %791 = arith.addi %c0_i32_149, %790 : i32
    %792 = arith.cmpi sle, %791, %771 : i32
    %793 = arith.extui %792 : i1 to i32
    %c0_i32_150 = arith.constant 0 : i32
    %794 = arith.addi %c0_i32_150, %793 : i32
    %c0_i32_151 = arith.constant 0 : i32
    %795 = arith.select %792, %791, %c0_i32_151 : i32
    %c1_i32_152 = arith.constant 1 : i32
    %796 = vector.broadcast %c1_i32_152 : i32 to vector<16x128xi32>
    %797 = arith.cmpi eq, %783, %796 : vector<16x128xi32>
    %798 = arith.extui %797 : vector<16x128xi1> to vector<16x128xi32>
    %799 = vector.shape_cast %798 : vector<16x128xi32> to vector<1x16x128xi32>
    %cst_153 = arith.constant dense<0> : vector<1xi32>
    %800 = vector.multi_reduction <add>, %799, %cst_153 [1, 2] : vector<1x16x128xi32> to vector<1xi32>
    %801 = vector.shape_cast %800 : vector<1xi32> to vector<1x1x1xi32>
    %802 = vector.extract %801[0, 0, 0] : i32 from vector<1x1x1xi32>
    %803 = arith.addi %791, %802 : i32
    %804 = arith.cmpi sle, %803, %771 : i32
    %805 = arith.extui %804 : i1 to i32
    %806 = arith.addi %794, %805 : i32
    %807 = arith.select %804, %803, %795 : i32
    %c2_i32_154 = arith.constant 2 : i32
    %808 = vector.broadcast %c2_i32_154 : i32 to vector<16x128xi32>
    %809 = arith.cmpi eq, %783, %808 : vector<16x128xi32>
    %810 = arith.extui %809 : vector<16x128xi1> to vector<16x128xi32>
    %811 = vector.shape_cast %810 : vector<16x128xi32> to vector<1x16x128xi32>
    %cst_155 = arith.constant dense<0> : vector<1xi32>
    %812 = vector.multi_reduction <add>, %811, %cst_155 [1, 2] : vector<1x16x128xi32> to vector<1xi32>
    %813 = vector.shape_cast %812 : vector<1xi32> to vector<1x1x1xi32>
    %814 = vector.extract %813[0, 0, 0] : i32 from vector<1x1x1xi32>
    %815 = arith.addi %803, %814 : i32
    %816 = arith.cmpi sle, %815, %771 : i32
    %817 = arith.extui %816 : i1 to i32
    %818 = arith.addi %806, %817 : i32
    %819 = arith.select %816, %815, %807 : i32
    %c3_i32_156 = arith.constant 3 : i32
    %820 = vector.broadcast %c3_i32_156 : i32 to vector<16x128xi32>
    %821 = arith.cmpi eq, %783, %820 : vector<16x128xi32>
    %822 = arith.extui %821 : vector<16x128xi1> to vector<16x128xi32>
    %823 = vector.shape_cast %822 : vector<16x128xi32> to vector<1x16x128xi32>
    %cst_157 = arith.constant dense<0> : vector<1xi32>
    %824 = vector.multi_reduction <add>, %823, %cst_157 [1, 2] : vector<1x16x128xi32> to vector<1xi32>
    %825 = vector.shape_cast %824 : vector<1xi32> to vector<1x1x1xi32>
    %826 = vector.extract %825[0, 0, 0] : i32 from vector<1x1x1xi32>
    %827 = arith.addi %815, %826 : i32
    %828 = arith.cmpi sle, %827, %771 : i32
    %829 = arith.extui %828 : i1 to i32
    %830 = arith.addi %818, %829 : i32
    %831 = arith.select %828, %827, %819 : i32
    %c4_i32_158 = arith.constant 4 : i32
    %832 = vector.broadcast %c4_i32_158 : i32 to vector<16x128xi32>
    %833 = arith.cmpi eq, %783, %832 : vector<16x128xi32>
    %834 = arith.extui %833 : vector<16x128xi1> to vector<16x128xi32>
    %835 = vector.shape_cast %834 : vector<16x128xi32> to vector<1x16x128xi32>
    %cst_159 = arith.constant dense<0> : vector<1xi32>
    %836 = vector.multi_reduction <add>, %835, %cst_159 [1, 2] : vector<1x16x128xi32> to vector<1xi32>
    %837 = vector.shape_cast %836 : vector<1xi32> to vector<1x1x1xi32>
    %838 = vector.extract %837[0, 0, 0] : i32 from vector<1x1x1xi32>
    %839 = arith.addi %827, %838 : i32
    %840 = arith.cmpi sle, %839, %771 : i32
    %841 = arith.extui %840 : i1 to i32
    %842 = arith.addi %830, %841 : i32
    %843 = arith.select %840, %839, %831 : i32
    %c5_i32_160 = arith.constant 5 : i32
    %844 = vector.broadcast %c5_i32_160 : i32 to vector<16x128xi32>
    %845 = arith.cmpi eq, %783, %844 : vector<16x128xi32>
    %846 = arith.extui %845 : vector<16x128xi1> to vector<16x128xi32>
    %847 = vector.shape_cast %846 : vector<16x128xi32> to vector<1x16x128xi32>
    %cst_161 = arith.constant dense<0> : vector<1xi32>
    %848 = vector.multi_reduction <add>, %847, %cst_161 [1, 2] : vector<1x16x128xi32> to vector<1xi32>
    %849 = vector.shape_cast %848 : vector<1xi32> to vector<1x1x1xi32>
    %850 = vector.extract %849[0, 0, 0] : i32 from vector<1x1x1xi32>
    %851 = arith.addi %839, %850 : i32
    %852 = arith.cmpi sle, %851, %771 : i32
    %853 = arith.extui %852 : i1 to i32
    %854 = arith.addi %842, %853 : i32
    %855 = arith.select %852, %851, %843 : i32
    %c6_i32_162 = arith.constant 6 : i32
    %856 = vector.broadcast %c6_i32_162 : i32 to vector<16x128xi32>
    %857 = arith.cmpi eq, %783, %856 : vector<16x128xi32>
    %858 = arith.extui %857 : vector<16x128xi1> to vector<16x128xi32>
    %859 = vector.shape_cast %858 : vector<16x128xi32> to vector<1x16x128xi32>
    %cst_163 = arith.constant dense<0> : vector<1xi32>
    %860 = vector.multi_reduction <add>, %859, %cst_163 [1, 2] : vector<1x16x128xi32> to vector<1xi32>
    %861 = vector.shape_cast %860 : vector<1xi32> to vector<1x1x1xi32>
    %862 = vector.extract %861[0, 0, 0] : i32 from vector<1x1x1xi32>
    %863 = arith.addi %851, %862 : i32
    %864 = arith.cmpi sle, %863, %771 : i32
    %865 = arith.extui %864 : i1 to i32
    %866 = arith.addi %854, %865 : i32
    %867 = arith.select %864, %863, %855 : i32
    %c7_i32_164 = arith.constant 7 : i32
    %868 = vector.broadcast %c7_i32_164 : i32 to vector<16x128xi32>
    %869 = arith.cmpi eq, %783, %868 : vector<16x128xi32>
    %870 = arith.extui %869 : vector<16x128xi1> to vector<16x128xi32>
    %871 = vector.shape_cast %870 : vector<16x128xi32> to vector<1x16x128xi32>
    %cst_165 = arith.constant dense<0> : vector<1xi32>
    %872 = vector.multi_reduction <add>, %871, %cst_165 [1, 2] : vector<1x16x128xi32> to vector<1xi32>
    %873 = vector.shape_cast %872 : vector<1xi32> to vector<1x1x1xi32>
    %874 = vector.extract %873[0, 0, 0] : i32 from vector<1x1x1xi32>
    %875 = arith.addi %863, %874 : i32
    %876 = arith.cmpi sle, %875, %771 : i32
    %877 = arith.extui %876 : i1 to i32
    %878 = arith.addi %866, %877 : i32
    %879 = arith.select %876, %875, %867 : i32
    %c8_i32_166 = arith.constant 8 : i32
    %880 = vector.broadcast %c8_i32_166 : i32 to vector<16x128xi32>
    %881 = arith.cmpi eq, %783, %880 : vector<16x128xi32>
    %882 = arith.extui %881 : vector<16x128xi1> to vector<16x128xi32>
    %883 = vector.shape_cast %882 : vector<16x128xi32> to vector<1x16x128xi32>
    %cst_167 = arith.constant dense<0> : vector<1xi32>
    %884 = vector.multi_reduction <add>, %883, %cst_167 [1, 2] : vector<1x16x128xi32> to vector<1xi32>
    %885 = vector.shape_cast %884 : vector<1xi32> to vector<1x1x1xi32>
    %886 = vector.extract %885[0, 0, 0] : i32 from vector<1x1x1xi32>
    %887 = arith.addi %875, %886 : i32
    %888 = arith.cmpi sle, %887, %771 : i32
    %889 = arith.extui %888 : i1 to i32
    %890 = arith.addi %878, %889 : i32
    %891 = arith.select %888, %887, %879 : i32
    %c9_i32_168 = arith.constant 9 : i32
    %892 = vector.broadcast %c9_i32_168 : i32 to vector<16x128xi32>
    %893 = arith.cmpi eq, %783, %892 : vector<16x128xi32>
    %894 = arith.extui %893 : vector<16x128xi1> to vector<16x128xi32>
    %895 = vector.shape_cast %894 : vector<16x128xi32> to vector<1x16x128xi32>
    %cst_169 = arith.constant dense<0> : vector<1xi32>
    %896 = vector.multi_reduction <add>, %895, %cst_169 [1, 2] : vector<1x16x128xi32> to vector<1xi32>
    %897 = vector.shape_cast %896 : vector<1xi32> to vector<1x1x1xi32>
    %898 = vector.extract %897[0, 0, 0] : i32 from vector<1x1x1xi32>
    %899 = arith.addi %887, %898 : i32
    %900 = arith.cmpi sle, %899, %771 : i32
    %901 = arith.extui %900 : i1 to i32
    %902 = arith.addi %890, %901 : i32
    %903 = arith.select %900, %899, %891 : i32
    %c10_i32_170 = arith.constant 10 : i32
    %904 = vector.broadcast %c10_i32_170 : i32 to vector<16x128xi32>
    %905 = arith.cmpi eq, %783, %904 : vector<16x128xi32>
    %906 = arith.extui %905 : vector<16x128xi1> to vector<16x128xi32>
    %907 = vector.shape_cast %906 : vector<16x128xi32> to vector<1x16x128xi32>
    %cst_171 = arith.constant dense<0> : vector<1xi32>
    %908 = vector.multi_reduction <add>, %907, %cst_171 [1, 2] : vector<1x16x128xi32> to vector<1xi32>
    %909 = vector.shape_cast %908 : vector<1xi32> to vector<1x1x1xi32>
    %910 = vector.extract %909[0, 0, 0] : i32 from vector<1x1x1xi32>
    %911 = arith.addi %899, %910 : i32
    %912 = arith.cmpi sle, %911, %771 : i32
    %913 = arith.extui %912 : i1 to i32
    %914 = arith.addi %902, %913 : i32
    %915 = arith.select %912, %911, %903 : i32
    %c11_i32_172 = arith.constant 11 : i32
    %916 = vector.broadcast %c11_i32_172 : i32 to vector<16x128xi32>
    %917 = arith.cmpi eq, %783, %916 : vector<16x128xi32>
    %918 = arith.extui %917 : vector<16x128xi1> to vector<16x128xi32>
    %919 = vector.shape_cast %918 : vector<16x128xi32> to vector<1x16x128xi32>
    %cst_173 = arith.constant dense<0> : vector<1xi32>
    %920 = vector.multi_reduction <add>, %919, %cst_173 [1, 2] : vector<1x16x128xi32> to vector<1xi32>
    %921 = vector.shape_cast %920 : vector<1xi32> to vector<1x1x1xi32>
    %922 = vector.extract %921[0, 0, 0] : i32 from vector<1x1x1xi32>
    %923 = arith.addi %911, %922 : i32
    %924 = arith.cmpi sle, %923, %771 : i32
    %925 = arith.extui %924 : i1 to i32
    %926 = arith.addi %914, %925 : i32
    %927 = arith.select %924, %923, %915 : i32
    %c12_i32_174 = arith.constant 12 : i32
    %928 = vector.broadcast %c12_i32_174 : i32 to vector<16x128xi32>
    %929 = arith.cmpi eq, %783, %928 : vector<16x128xi32>
    %930 = arith.extui %929 : vector<16x128xi1> to vector<16x128xi32>
    %931 = vector.shape_cast %930 : vector<16x128xi32> to vector<1x16x128xi32>
    %cst_175 = arith.constant dense<0> : vector<1xi32>
    %932 = vector.multi_reduction <add>, %931, %cst_175 [1, 2] : vector<1x16x128xi32> to vector<1xi32>
    %933 = vector.shape_cast %932 : vector<1xi32> to vector<1x1x1xi32>
    %934 = vector.extract %933[0, 0, 0] : i32 from vector<1x1x1xi32>
    %935 = arith.addi %923, %934 : i32
    %936 = arith.cmpi sle, %935, %771 : i32
    %937 = arith.extui %936 : i1 to i32
    %938 = arith.addi %926, %937 : i32
    %939 = arith.select %936, %935, %927 : i32
    %c13_i32_176 = arith.constant 13 : i32
    %940 = vector.broadcast %c13_i32_176 : i32 to vector<16x128xi32>
    %941 = arith.cmpi eq, %783, %940 : vector<16x128xi32>
    %942 = arith.extui %941 : vector<16x128xi1> to vector<16x128xi32>
    %943 = vector.shape_cast %942 : vector<16x128xi32> to vector<1x16x128xi32>
    %cst_177 = arith.constant dense<0> : vector<1xi32>
    %944 = vector.multi_reduction <add>, %943, %cst_177 [1, 2] : vector<1x16x128xi32> to vector<1xi32>
    %945 = vector.shape_cast %944 : vector<1xi32> to vector<1x1x1xi32>
    %946 = vector.extract %945[0, 0, 0] : i32 from vector<1x1x1xi32>
    %947 = arith.addi %935, %946 : i32
    %948 = arith.cmpi sle, %947, %771 : i32
    %949 = arith.extui %948 : i1 to i32
    %950 = arith.addi %938, %949 : i32
    %951 = arith.select %948, %947, %939 : i32
    %c14_i32_178 = arith.constant 14 : i32
    %952 = vector.broadcast %c14_i32_178 : i32 to vector<16x128xi32>
    %953 = arith.cmpi eq, %783, %952 : vector<16x128xi32>
    %954 = arith.extui %953 : vector<16x128xi1> to vector<16x128xi32>
    %955 = vector.shape_cast %954 : vector<16x128xi32> to vector<1x16x128xi32>
    %cst_179 = arith.constant dense<0> : vector<1xi32>
    %956 = vector.multi_reduction <add>, %955, %cst_179 [1, 2] : vector<1x16x128xi32> to vector<1xi32>
    %957 = vector.shape_cast %956 : vector<1xi32> to vector<1x1x1xi32>
    %958 = vector.extract %957[0, 0, 0] : i32 from vector<1x1x1xi32>
    %959 = arith.addi %947, %958 : i32
    %960 = arith.cmpi sle, %959, %771 : i32
    %961 = arith.extui %960 : i1 to i32
    %962 = arith.addi %950, %961 : i32
    %963 = arith.select %960, %959, %951 : i32
    %964 = arith.subi %771, %963 : i32
    %c12_i32_180 = arith.constant 12 : i32
    %965 = arith.shli %962, %c12_i32_180 : i32
    %966 = arith.ori %773, %965 : i32
    %c8_i32_181 = arith.constant 8 : i32
    %967 = vector.broadcast %c8_i32_181 : i32 to vector<16x128xi32>
    %968 = arith.shrsi %7, %967 : vector<16x128xi32>
    %c15_i32_182 = arith.constant 15 : i32
    %969 = vector.broadcast %c15_i32_182 : i32 to vector<16x128xi32>
    %970 = arith.andi %968, %969 : vector<16x128xi32>
    %c-4096_i32 = arith.constant -4096 : i32
    %971 = vector.broadcast %c-4096_i32 : i32 to vector<16x128xi32>
    %972 = arith.andi %7, %971 : vector<16x128xi32>
    %973 = vector.broadcast %966 : i32 to vector<16x128xi32>
    %974 = arith.cmpi eq, %972, %973 : vector<16x128xi32>
    %c16_i32_183 = arith.constant 16 : i32
    %975 = vector.broadcast %c16_i32_183 : i32 to vector<16x128xi32>
    %976 = arith.select %974, %970, %975 : vector<16x128xi1>, vector<16x128xi32>
    %c0_i32_184 = arith.constant 0 : i32
    %977 = vector.broadcast %c0_i32_184 : i32 to vector<16x128xi32>
    %978 = arith.cmpi eq, %976, %977 : vector<16x128xi32>
    %979 = arith.extui %978 : vector<16x128xi1> to vector<16x128xi32>
    %980 = vector.shape_cast %979 : vector<16x128xi32> to vector<1x16x128xi32>
    %cst_185 = arith.constant dense<0> : vector<1xi32>
    %981 = vector.multi_reduction <add>, %980, %cst_185 [1, 2] : vector<1x16x128xi32> to vector<1xi32>
    %982 = vector.shape_cast %981 : vector<1xi32> to vector<1x1x1xi32>
    %983 = vector.extract %982[0, 0, 0] : i32 from vector<1x1x1xi32>
    %c0_i32_186 = arith.constant 0 : i32
    %984 = arith.addi %c0_i32_186, %983 : i32
    %985 = arith.cmpi sle, %984, %964 : i32
    %986 = arith.extui %985 : i1 to i32
    %c0_i32_187 = arith.constant 0 : i32
    %987 = arith.addi %c0_i32_187, %986 : i32
    %c0_i32_188 = arith.constant 0 : i32
    %988 = arith.select %985, %984, %c0_i32_188 : i32
    %c1_i32_189 = arith.constant 1 : i32
    %989 = vector.broadcast %c1_i32_189 : i32 to vector<16x128xi32>
    %990 = arith.cmpi eq, %976, %989 : vector<16x128xi32>
    %991 = arith.extui %990 : vector<16x128xi1> to vector<16x128xi32>
    %992 = vector.shape_cast %991 : vector<16x128xi32> to vector<1x16x128xi32>
    %cst_190 = arith.constant dense<0> : vector<1xi32>
    %993 = vector.multi_reduction <add>, %992, %cst_190 [1, 2] : vector<1x16x128xi32> to vector<1xi32>
    %994 = vector.shape_cast %993 : vector<1xi32> to vector<1x1x1xi32>
    %995 = vector.extract %994[0, 0, 0] : i32 from vector<1x1x1xi32>
    %996 = arith.addi %984, %995 : i32
    %997 = arith.cmpi sle, %996, %964 : i32
    %998 = arith.extui %997 : i1 to i32
    %999 = arith.addi %987, %998 : i32
    %1000 = arith.select %997, %996, %988 : i32
    %c2_i32_191 = arith.constant 2 : i32
    %1001 = vector.broadcast %c2_i32_191 : i32 to vector<16x128xi32>
    %1002 = arith.cmpi eq, %976, %1001 : vector<16x128xi32>
    %1003 = arith.extui %1002 : vector<16x128xi1> to vector<16x128xi32>
    %1004 = vector.shape_cast %1003 : vector<16x128xi32> to vector<1x16x128xi32>
    %cst_192 = arith.constant dense<0> : vector<1xi32>
    %1005 = vector.multi_reduction <add>, %1004, %cst_192 [1, 2] : vector<1x16x128xi32> to vector<1xi32>
    %1006 = vector.shape_cast %1005 : vector<1xi32> to vector<1x1x1xi32>
    %1007 = vector.extract %1006[0, 0, 0] : i32 from vector<1x1x1xi32>
    %1008 = arith.addi %996, %1007 : i32
    %1009 = arith.cmpi sle, %1008, %964 : i32
    %1010 = arith.extui %1009 : i1 to i32
    %1011 = arith.addi %999, %1010 : i32
    %1012 = arith.select %1009, %1008, %1000 : i32
    %c3_i32_193 = arith.constant 3 : i32
    %1013 = vector.broadcast %c3_i32_193 : i32 to vector<16x128xi32>
    %1014 = arith.cmpi eq, %976, %1013 : vector<16x128xi32>
    %1015 = arith.extui %1014 : vector<16x128xi1> to vector<16x128xi32>
    %1016 = vector.shape_cast %1015 : vector<16x128xi32> to vector<1x16x128xi32>
    %cst_194 = arith.constant dense<0> : vector<1xi32>
    %1017 = vector.multi_reduction <add>, %1016, %cst_194 [1, 2] : vector<1x16x128xi32> to vector<1xi32>
    %1018 = vector.shape_cast %1017 : vector<1xi32> to vector<1x1x1xi32>
    %1019 = vector.extract %1018[0, 0, 0] : i32 from vector<1x1x1xi32>
    %1020 = arith.addi %1008, %1019 : i32
    %1021 = arith.cmpi sle, %1020, %964 : i32
    %1022 = arith.extui %1021 : i1 to i32
    %1023 = arith.addi %1011, %1022 : i32
    %1024 = arith.select %1021, %1020, %1012 : i32
    %c4_i32_195 = arith.constant 4 : i32
    %1025 = vector.broadcast %c4_i32_195 : i32 to vector<16x128xi32>
    %1026 = arith.cmpi eq, %976, %1025 : vector<16x128xi32>
    %1027 = arith.extui %1026 : vector<16x128xi1> to vector<16x128xi32>
    %1028 = vector.shape_cast %1027 : vector<16x128xi32> to vector<1x16x128xi32>
    %cst_196 = arith.constant dense<0> : vector<1xi32>
    %1029 = vector.multi_reduction <add>, %1028, %cst_196 [1, 2] : vector<1x16x128xi32> to vector<1xi32>
    %1030 = vector.shape_cast %1029 : vector<1xi32> to vector<1x1x1xi32>
    %1031 = vector.extract %1030[0, 0, 0] : i32 from vector<1x1x1xi32>
    %1032 = arith.addi %1020, %1031 : i32
    %1033 = arith.cmpi sle, %1032, %964 : i32
    %1034 = arith.extui %1033 : i1 to i32
    %1035 = arith.addi %1023, %1034 : i32
    %1036 = arith.select %1033, %1032, %1024 : i32
    %c5_i32_197 = arith.constant 5 : i32
    %1037 = vector.broadcast %c5_i32_197 : i32 to vector<16x128xi32>
    %1038 = arith.cmpi eq, %976, %1037 : vector<16x128xi32>
    %1039 = arith.extui %1038 : vector<16x128xi1> to vector<16x128xi32>
    %1040 = vector.shape_cast %1039 : vector<16x128xi32> to vector<1x16x128xi32>
    %cst_198 = arith.constant dense<0> : vector<1xi32>
    %1041 = vector.multi_reduction <add>, %1040, %cst_198 [1, 2] : vector<1x16x128xi32> to vector<1xi32>
    %1042 = vector.shape_cast %1041 : vector<1xi32> to vector<1x1x1xi32>
    %1043 = vector.extract %1042[0, 0, 0] : i32 from vector<1x1x1xi32>
    %1044 = arith.addi %1032, %1043 : i32
    %1045 = arith.cmpi sle, %1044, %964 : i32
    %1046 = arith.extui %1045 : i1 to i32
    %1047 = arith.addi %1035, %1046 : i32
    %1048 = arith.select %1045, %1044, %1036 : i32
    %c6_i32_199 = arith.constant 6 : i32
    %1049 = vector.broadcast %c6_i32_199 : i32 to vector<16x128xi32>
    %1050 = arith.cmpi eq, %976, %1049 : vector<16x128xi32>
    %1051 = arith.extui %1050 : vector<16x128xi1> to vector<16x128xi32>
    %1052 = vector.shape_cast %1051 : vector<16x128xi32> to vector<1x16x128xi32>
    %cst_200 = arith.constant dense<0> : vector<1xi32>
    %1053 = vector.multi_reduction <add>, %1052, %cst_200 [1, 2] : vector<1x16x128xi32> to vector<1xi32>
    %1054 = vector.shape_cast %1053 : vector<1xi32> to vector<1x1x1xi32>
    %1055 = vector.extract %1054[0, 0, 0] : i32 from vector<1x1x1xi32>
    %1056 = arith.addi %1044, %1055 : i32
    %1057 = arith.cmpi sle, %1056, %964 : i32
    %1058 = arith.extui %1057 : i1 to i32
    %1059 = arith.addi %1047, %1058 : i32
    %1060 = arith.select %1057, %1056, %1048 : i32
    %c7_i32_201 = arith.constant 7 : i32
    %1061 = vector.broadcast %c7_i32_201 : i32 to vector<16x128xi32>
    %1062 = arith.cmpi eq, %976, %1061 : vector<16x128xi32>
    %1063 = arith.extui %1062 : vector<16x128xi1> to vector<16x128xi32>
    %1064 = vector.shape_cast %1063 : vector<16x128xi32> to vector<1x16x128xi32>
    %cst_202 = arith.constant dense<0> : vector<1xi32>
    %1065 = vector.multi_reduction <add>, %1064, %cst_202 [1, 2] : vector<1x16x128xi32> to vector<1xi32>
    %1066 = vector.shape_cast %1065 : vector<1xi32> to vector<1x1x1xi32>
    %1067 = vector.extract %1066[0, 0, 0] : i32 from vector<1x1x1xi32>
    %1068 = arith.addi %1056, %1067 : i32
    %1069 = arith.cmpi sle, %1068, %964 : i32
    %1070 = arith.extui %1069 : i1 to i32
    %1071 = arith.addi %1059, %1070 : i32
    %1072 = arith.select %1069, %1068, %1060 : i32
    %c8_i32_203 = arith.constant 8 : i32
    %1073 = vector.broadcast %c8_i32_203 : i32 to vector<16x128xi32>
    %1074 = arith.cmpi eq, %976, %1073 : vector<16x128xi32>
    %1075 = arith.extui %1074 : vector<16x128xi1> to vector<16x128xi32>
    %1076 = vector.shape_cast %1075 : vector<16x128xi32> to vector<1x16x128xi32>
    %cst_204 = arith.constant dense<0> : vector<1xi32>
    %1077 = vector.multi_reduction <add>, %1076, %cst_204 [1, 2] : vector<1x16x128xi32> to vector<1xi32>
    %1078 = vector.shape_cast %1077 : vector<1xi32> to vector<1x1x1xi32>
    %1079 = vector.extract %1078[0, 0, 0] : i32 from vector<1x1x1xi32>
    %1080 = arith.addi %1068, %1079 : i32
    %1081 = arith.cmpi sle, %1080, %964 : i32
    %1082 = arith.extui %1081 : i1 to i32
    %1083 = arith.addi %1071, %1082 : i32
    %1084 = arith.select %1081, %1080, %1072 : i32
    %c9_i32_205 = arith.constant 9 : i32
    %1085 = vector.broadcast %c9_i32_205 : i32 to vector<16x128xi32>
    %1086 = arith.cmpi eq, %976, %1085 : vector<16x128xi32>
    %1087 = arith.extui %1086 : vector<16x128xi1> to vector<16x128xi32>
    %1088 = vector.shape_cast %1087 : vector<16x128xi32> to vector<1x16x128xi32>
    %cst_206 = arith.constant dense<0> : vector<1xi32>
    %1089 = vector.multi_reduction <add>, %1088, %cst_206 [1, 2] : vector<1x16x128xi32> to vector<1xi32>
    %1090 = vector.shape_cast %1089 : vector<1xi32> to vector<1x1x1xi32>
    %1091 = vector.extract %1090[0, 0, 0] : i32 from vector<1x1x1xi32>
    %1092 = arith.addi %1080, %1091 : i32
    %1093 = arith.cmpi sle, %1092, %964 : i32
    %1094 = arith.extui %1093 : i1 to i32
    %1095 = arith.addi %1083, %1094 : i32
    %1096 = arith.select %1093, %1092, %1084 : i32
    %c10_i32_207 = arith.constant 10 : i32
    %1097 = vector.broadcast %c10_i32_207 : i32 to vector<16x128xi32>
    %1098 = arith.cmpi eq, %976, %1097 : vector<16x128xi32>
    %1099 = arith.extui %1098 : vector<16x128xi1> to vector<16x128xi32>
    %1100 = vector.shape_cast %1099 : vector<16x128xi32> to vector<1x16x128xi32>
    %cst_208 = arith.constant dense<0> : vector<1xi32>
    %1101 = vector.multi_reduction <add>, %1100, %cst_208 [1, 2] : vector<1x16x128xi32> to vector<1xi32>
    %1102 = vector.shape_cast %1101 : vector<1xi32> to vector<1x1x1xi32>
    %1103 = vector.extract %1102[0, 0, 0] : i32 from vector<1x1x1xi32>
    %1104 = arith.addi %1092, %1103 : i32
    %1105 = arith.cmpi sle, %1104, %964 : i32
    %1106 = arith.extui %1105 : i1 to i32
    %1107 = arith.addi %1095, %1106 : i32
    %1108 = arith.select %1105, %1104, %1096 : i32
    %c11_i32_209 = arith.constant 11 : i32
    %1109 = vector.broadcast %c11_i32_209 : i32 to vector<16x128xi32>
    %1110 = arith.cmpi eq, %976, %1109 : vector<16x128xi32>
    %1111 = arith.extui %1110 : vector<16x128xi1> to vector<16x128xi32>
    %1112 = vector.shape_cast %1111 : vector<16x128xi32> to vector<1x16x128xi32>
    %cst_210 = arith.constant dense<0> : vector<1xi32>
    %1113 = vector.multi_reduction <add>, %1112, %cst_210 [1, 2] : vector<1x16x128xi32> to vector<1xi32>
    %1114 = vector.shape_cast %1113 : vector<1xi32> to vector<1x1x1xi32>
    %1115 = vector.extract %1114[0, 0, 0] : i32 from vector<1x1x1xi32>
    %1116 = arith.addi %1104, %1115 : i32
    %1117 = arith.cmpi sle, %1116, %964 : i32
    %1118 = arith.extui %1117 : i1 to i32
    %1119 = arith.addi %1107, %1118 : i32
    %1120 = arith.select %1117, %1116, %1108 : i32
    %c12_i32_211 = arith.constant 12 : i32
    %1121 = vector.broadcast %c12_i32_211 : i32 to vector<16x128xi32>
    %1122 = arith.cmpi eq, %976, %1121 : vector<16x128xi32>
    %1123 = arith.extui %1122 : vector<16x128xi1> to vector<16x128xi32>
    %1124 = vector.shape_cast %1123 : vector<16x128xi32> to vector<1x16x128xi32>
    %cst_212 = arith.constant dense<0> : vector<1xi32>
    %1125 = vector.multi_reduction <add>, %1124, %cst_212 [1, 2] : vector<1x16x128xi32> to vector<1xi32>
    %1126 = vector.shape_cast %1125 : vector<1xi32> to vector<1x1x1xi32>
    %1127 = vector.extract %1126[0, 0, 0] : i32 from vector<1x1x1xi32>
    %1128 = arith.addi %1116, %1127 : i32
    %1129 = arith.cmpi sle, %1128, %964 : i32
    %1130 = arith.extui %1129 : i1 to i32
    %1131 = arith.addi %1119, %1130 : i32
    %1132 = arith.select %1129, %1128, %1120 : i32
    %c13_i32_213 = arith.constant 13 : i32
    %1133 = vector.broadcast %c13_i32_213 : i32 to vector<16x128xi32>
    %1134 = arith.cmpi eq, %976, %1133 : vector<16x128xi32>
    %1135 = arith.extui %1134 : vector<16x128xi1> to vector<16x128xi32>
    %1136 = vector.shape_cast %1135 : vector<16x128xi32> to vector<1x16x128xi32>
    %cst_214 = arith.constant dense<0> : vector<1xi32>
    %1137 = vector.multi_reduction <add>, %1136, %cst_214 [1, 2] : vector<1x16x128xi32> to vector<1xi32>
    %1138 = vector.shape_cast %1137 : vector<1xi32> to vector<1x1x1xi32>
    %1139 = vector.extract %1138[0, 0, 0] : i32 from vector<1x1x1xi32>
    %1140 = arith.addi %1128, %1139 : i32
    %1141 = arith.cmpi sle, %1140, %964 : i32
    %1142 = arith.extui %1141 : i1 to i32
    %1143 = arith.addi %1131, %1142 : i32
    %1144 = arith.select %1141, %1140, %1132 : i32
    %c14_i32_215 = arith.constant 14 : i32
    %1145 = vector.broadcast %c14_i32_215 : i32 to vector<16x128xi32>
    %1146 = arith.cmpi eq, %976, %1145 : vector<16x128xi32>
    %1147 = arith.extui %1146 : vector<16x128xi1> to vector<16x128xi32>
    %1148 = vector.shape_cast %1147 : vector<16x128xi32> to vector<1x16x128xi32>
    %cst_216 = arith.constant dense<0> : vector<1xi32>
    %1149 = vector.multi_reduction <add>, %1148, %cst_216 [1, 2] : vector<1x16x128xi32> to vector<1xi32>
    %1150 = vector.shape_cast %1149 : vector<1xi32> to vector<1x1x1xi32>
    %1151 = vector.extract %1150[0, 0, 0] : i32 from vector<1x1x1xi32>
    %1152 = arith.addi %1140, %1151 : i32
    %1153 = arith.cmpi sle, %1152, %964 : i32
    %1154 = arith.extui %1153 : i1 to i32
    %1155 = arith.addi %1143, %1154 : i32
    %1156 = arith.select %1153, %1152, %1144 : i32
    %1157 = arith.subi %964, %1156 : i32
    %c8_i32_217 = arith.constant 8 : i32
    %1158 = arith.shli %1155, %c8_i32_217 : i32
    %1159 = arith.ori %966, %1158 : i32
    %c4_i32_218 = arith.constant 4 : i32
    %1160 = vector.broadcast %c4_i32_218 : i32 to vector<16x128xi32>
    %1161 = arith.shrsi %7, %1160 : vector<16x128xi32>
    %c15_i32_219 = arith.constant 15 : i32
    %1162 = vector.broadcast %c15_i32_219 : i32 to vector<16x128xi32>
    %1163 = arith.andi %1161, %1162 : vector<16x128xi32>
    %c-256_i32 = arith.constant -256 : i32
    %1164 = vector.broadcast %c-256_i32 : i32 to vector<16x128xi32>
    %1165 = arith.andi %7, %1164 : vector<16x128xi32>
    %1166 = vector.broadcast %1159 : i32 to vector<16x128xi32>
    %1167 = arith.cmpi eq, %1165, %1166 : vector<16x128xi32>
    %c16_i32_220 = arith.constant 16 : i32
    %1168 = vector.broadcast %c16_i32_220 : i32 to vector<16x128xi32>
    %1169 = arith.select %1167, %1163, %1168 : vector<16x128xi1>, vector<16x128xi32>
    %c0_i32_221 = arith.constant 0 : i32
    %1170 = vector.broadcast %c0_i32_221 : i32 to vector<16x128xi32>
    %1171 = arith.cmpi eq, %1169, %1170 : vector<16x128xi32>
    %1172 = arith.extui %1171 : vector<16x128xi1> to vector<16x128xi32>
    %1173 = vector.shape_cast %1172 : vector<16x128xi32> to vector<1x16x128xi32>
    %cst_222 = arith.constant dense<0> : vector<1xi32>
    %1174 = vector.multi_reduction <add>, %1173, %cst_222 [1, 2] : vector<1x16x128xi32> to vector<1xi32>
    %1175 = vector.shape_cast %1174 : vector<1xi32> to vector<1x1x1xi32>
    %1176 = vector.extract %1175[0, 0, 0] : i32 from vector<1x1x1xi32>
    %c0_i32_223 = arith.constant 0 : i32
    %1177 = arith.addi %c0_i32_223, %1176 : i32
    %1178 = arith.cmpi sle, %1177, %1157 : i32
    %1179 = arith.extui %1178 : i1 to i32
    %c0_i32_224 = arith.constant 0 : i32
    %1180 = arith.addi %c0_i32_224, %1179 : i32
    %c0_i32_225 = arith.constant 0 : i32
    %1181 = arith.select %1178, %1177, %c0_i32_225 : i32
    %c1_i32_226 = arith.constant 1 : i32
    %1182 = vector.broadcast %c1_i32_226 : i32 to vector<16x128xi32>
    %1183 = arith.cmpi eq, %1169, %1182 : vector<16x128xi32>
    %1184 = arith.extui %1183 : vector<16x128xi1> to vector<16x128xi32>
    %1185 = vector.shape_cast %1184 : vector<16x128xi32> to vector<1x16x128xi32>
    %cst_227 = arith.constant dense<0> : vector<1xi32>
    %1186 = vector.multi_reduction <add>, %1185, %cst_227 [1, 2] : vector<1x16x128xi32> to vector<1xi32>
    %1187 = vector.shape_cast %1186 : vector<1xi32> to vector<1x1x1xi32>
    %1188 = vector.extract %1187[0, 0, 0] : i32 from vector<1x1x1xi32>
    %1189 = arith.addi %1177, %1188 : i32
    %1190 = arith.cmpi sle, %1189, %1157 : i32
    %1191 = arith.extui %1190 : i1 to i32
    %1192 = arith.addi %1180, %1191 : i32
    %1193 = arith.select %1190, %1189, %1181 : i32
    %c2_i32_228 = arith.constant 2 : i32
    %1194 = vector.broadcast %c2_i32_228 : i32 to vector<16x128xi32>
    %1195 = arith.cmpi eq, %1169, %1194 : vector<16x128xi32>
    %1196 = arith.extui %1195 : vector<16x128xi1> to vector<16x128xi32>
    %1197 = vector.shape_cast %1196 : vector<16x128xi32> to vector<1x16x128xi32>
    %cst_229 = arith.constant dense<0> : vector<1xi32>
    %1198 = vector.multi_reduction <add>, %1197, %cst_229 [1, 2] : vector<1x16x128xi32> to vector<1xi32>
    %1199 = vector.shape_cast %1198 : vector<1xi32> to vector<1x1x1xi32>
    %1200 = vector.extract %1199[0, 0, 0] : i32 from vector<1x1x1xi32>
    %1201 = arith.addi %1189, %1200 : i32
    %1202 = arith.cmpi sle, %1201, %1157 : i32
    %1203 = arith.extui %1202 : i1 to i32
    %1204 = arith.addi %1192, %1203 : i32
    %1205 = arith.select %1202, %1201, %1193 : i32
    %c3_i32_230 = arith.constant 3 : i32
    %1206 = vector.broadcast %c3_i32_230 : i32 to vector<16x128xi32>
    %1207 = arith.cmpi eq, %1169, %1206 : vector<16x128xi32>
    %1208 = arith.extui %1207 : vector<16x128xi1> to vector<16x128xi32>
    %1209 = vector.shape_cast %1208 : vector<16x128xi32> to vector<1x16x128xi32>
    %cst_231 = arith.constant dense<0> : vector<1xi32>
    %1210 = vector.multi_reduction <add>, %1209, %cst_231 [1, 2] : vector<1x16x128xi32> to vector<1xi32>
    %1211 = vector.shape_cast %1210 : vector<1xi32> to vector<1x1x1xi32>
    %1212 = vector.extract %1211[0, 0, 0] : i32 from vector<1x1x1xi32>
    %1213 = arith.addi %1201, %1212 : i32
    %1214 = arith.cmpi sle, %1213, %1157 : i32
    %1215 = arith.extui %1214 : i1 to i32
    %1216 = arith.addi %1204, %1215 : i32
    %1217 = arith.select %1214, %1213, %1205 : i32
    %c4_i32_232 = arith.constant 4 : i32
    %1218 = vector.broadcast %c4_i32_232 : i32 to vector<16x128xi32>
    %1219 = arith.cmpi eq, %1169, %1218 : vector<16x128xi32>
    %1220 = arith.extui %1219 : vector<16x128xi1> to vector<16x128xi32>
    %1221 = vector.shape_cast %1220 : vector<16x128xi32> to vector<1x16x128xi32>
    %cst_233 = arith.constant dense<0> : vector<1xi32>
    %1222 = vector.multi_reduction <add>, %1221, %cst_233 [1, 2] : vector<1x16x128xi32> to vector<1xi32>
    %1223 = vector.shape_cast %1222 : vector<1xi32> to vector<1x1x1xi32>
    %1224 = vector.extract %1223[0, 0, 0] : i32 from vector<1x1x1xi32>
    %1225 = arith.addi %1213, %1224 : i32
    %1226 = arith.cmpi sle, %1225, %1157 : i32
    %1227 = arith.extui %1226 : i1 to i32
    %1228 = arith.addi %1216, %1227 : i32
    %1229 = arith.select %1226, %1225, %1217 : i32
    %c5_i32_234 = arith.constant 5 : i32
    %1230 = vector.broadcast %c5_i32_234 : i32 to vector<16x128xi32>
    %1231 = arith.cmpi eq, %1169, %1230 : vector<16x128xi32>
    %1232 = arith.extui %1231 : vector<16x128xi1> to vector<16x128xi32>
    %1233 = vector.shape_cast %1232 : vector<16x128xi32> to vector<1x16x128xi32>
    %cst_235 = arith.constant dense<0> : vector<1xi32>
    %1234 = vector.multi_reduction <add>, %1233, %cst_235 [1, 2] : vector<1x16x128xi32> to vector<1xi32>
    %1235 = vector.shape_cast %1234 : vector<1xi32> to vector<1x1x1xi32>
    %1236 = vector.extract %1235[0, 0, 0] : i32 from vector<1x1x1xi32>
    %1237 = arith.addi %1225, %1236 : i32
    %1238 = arith.cmpi sle, %1237, %1157 : i32
    %1239 = arith.extui %1238 : i1 to i32
    %1240 = arith.addi %1228, %1239 : i32
    %1241 = arith.select %1238, %1237, %1229 : i32
    %c6_i32_236 = arith.constant 6 : i32
    %1242 = vector.broadcast %c6_i32_236 : i32 to vector<16x128xi32>
    %1243 = arith.cmpi eq, %1169, %1242 : vector<16x128xi32>
    %1244 = arith.extui %1243 : vector<16x128xi1> to vector<16x128xi32>
    %1245 = vector.shape_cast %1244 : vector<16x128xi32> to vector<1x16x128xi32>
    %cst_237 = arith.constant dense<0> : vector<1xi32>
    %1246 = vector.multi_reduction <add>, %1245, %cst_237 [1, 2] : vector<1x16x128xi32> to vector<1xi32>
    %1247 = vector.shape_cast %1246 : vector<1xi32> to vector<1x1x1xi32>
    %1248 = vector.extract %1247[0, 0, 0] : i32 from vector<1x1x1xi32>
    %1249 = arith.addi %1237, %1248 : i32
    %1250 = arith.cmpi sle, %1249, %1157 : i32
    %1251 = arith.extui %1250 : i1 to i32
    %1252 = arith.addi %1240, %1251 : i32
    %1253 = arith.select %1250, %1249, %1241 : i32
    %c7_i32_238 = arith.constant 7 : i32
    %1254 = vector.broadcast %c7_i32_238 : i32 to vector<16x128xi32>
    %1255 = arith.cmpi eq, %1169, %1254 : vector<16x128xi32>
    %1256 = arith.extui %1255 : vector<16x128xi1> to vector<16x128xi32>
    %1257 = vector.shape_cast %1256 : vector<16x128xi32> to vector<1x16x128xi32>
    %cst_239 = arith.constant dense<0> : vector<1xi32>
    %1258 = vector.multi_reduction <add>, %1257, %cst_239 [1, 2] : vector<1x16x128xi32> to vector<1xi32>
    %1259 = vector.shape_cast %1258 : vector<1xi32> to vector<1x1x1xi32>
    %1260 = vector.extract %1259[0, 0, 0] : i32 from vector<1x1x1xi32>
    %1261 = arith.addi %1249, %1260 : i32
    %1262 = arith.cmpi sle, %1261, %1157 : i32
    %1263 = arith.extui %1262 : i1 to i32
    %1264 = arith.addi %1252, %1263 : i32
    %1265 = arith.select %1262, %1261, %1253 : i32
    %c8_i32_240 = arith.constant 8 : i32
    %1266 = vector.broadcast %c8_i32_240 : i32 to vector<16x128xi32>
    %1267 = arith.cmpi eq, %1169, %1266 : vector<16x128xi32>
    %1268 = arith.extui %1267 : vector<16x128xi1> to vector<16x128xi32>
    %1269 = vector.shape_cast %1268 : vector<16x128xi32> to vector<1x16x128xi32>
    %cst_241 = arith.constant dense<0> : vector<1xi32>
    %1270 = vector.multi_reduction <add>, %1269, %cst_241 [1, 2] : vector<1x16x128xi32> to vector<1xi32>
    %1271 = vector.shape_cast %1270 : vector<1xi32> to vector<1x1x1xi32>
    %1272 = vector.extract %1271[0, 0, 0] : i32 from vector<1x1x1xi32>
    %1273 = arith.addi %1261, %1272 : i32
    %1274 = arith.cmpi sle, %1273, %1157 : i32
    %1275 = arith.extui %1274 : i1 to i32
    %1276 = arith.addi %1264, %1275 : i32
    %1277 = arith.select %1274, %1273, %1265 : i32
    %c9_i32_242 = arith.constant 9 : i32
    %1278 = vector.broadcast %c9_i32_242 : i32 to vector<16x128xi32>
    %1279 = arith.cmpi eq, %1169, %1278 : vector<16x128xi32>
    %1280 = arith.extui %1279 : vector<16x128xi1> to vector<16x128xi32>
    %1281 = vector.shape_cast %1280 : vector<16x128xi32> to vector<1x16x128xi32>
    %cst_243 = arith.constant dense<0> : vector<1xi32>
    %1282 = vector.multi_reduction <add>, %1281, %cst_243 [1, 2] : vector<1x16x128xi32> to vector<1xi32>
    %1283 = vector.shape_cast %1282 : vector<1xi32> to vector<1x1x1xi32>
    %1284 = vector.extract %1283[0, 0, 0] : i32 from vector<1x1x1xi32>
    %1285 = arith.addi %1273, %1284 : i32
    %1286 = arith.cmpi sle, %1285, %1157 : i32
    %1287 = arith.extui %1286 : i1 to i32
    %1288 = arith.addi %1276, %1287 : i32
    %1289 = arith.select %1286, %1285, %1277 : i32
    %c10_i32_244 = arith.constant 10 : i32
    %1290 = vector.broadcast %c10_i32_244 : i32 to vector<16x128xi32>
    %1291 = arith.cmpi eq, %1169, %1290 : vector<16x128xi32>
    %1292 = arith.extui %1291 : vector<16x128xi1> to vector<16x128xi32>
    %1293 = vector.shape_cast %1292 : vector<16x128xi32> to vector<1x16x128xi32>
    %cst_245 = arith.constant dense<0> : vector<1xi32>
    %1294 = vector.multi_reduction <add>, %1293, %cst_245 [1, 2] : vector<1x16x128xi32> to vector<1xi32>
    %1295 = vector.shape_cast %1294 : vector<1xi32> to vector<1x1x1xi32>
    %1296 = vector.extract %1295[0, 0, 0] : i32 from vector<1x1x1xi32>
    %1297 = arith.addi %1285, %1296 : i32
    %1298 = arith.cmpi sle, %1297, %1157 : i32
    %1299 = arith.extui %1298 : i1 to i32
    %1300 = arith.addi %1288, %1299 : i32
    %1301 = arith.select %1298, %1297, %1289 : i32
    %c11_i32_246 = arith.constant 11 : i32
    %1302 = vector.broadcast %c11_i32_246 : i32 to vector<16x128xi32>
    %1303 = arith.cmpi eq, %1169, %1302 : vector<16x128xi32>
    %1304 = arith.extui %1303 : vector<16x128xi1> to vector<16x128xi32>
    %1305 = vector.shape_cast %1304 : vector<16x128xi32> to vector<1x16x128xi32>
    %cst_247 = arith.constant dense<0> : vector<1xi32>
    %1306 = vector.multi_reduction <add>, %1305, %cst_247 [1, 2] : vector<1x16x128xi32> to vector<1xi32>
    %1307 = vector.shape_cast %1306 : vector<1xi32> to vector<1x1x1xi32>
    %1308 = vector.extract %1307[0, 0, 0] : i32 from vector<1x1x1xi32>
    %1309 = arith.addi %1297, %1308 : i32
    %1310 = arith.cmpi sle, %1309, %1157 : i32
    %1311 = arith.extui %1310 : i1 to i32
    %1312 = arith.addi %1300, %1311 : i32
    %1313 = arith.select %1310, %1309, %1301 : i32
    %c12_i32_248 = arith.constant 12 : i32
    %1314 = vector.broadcast %c12_i32_248 : i32 to vector<16x128xi32>
    %1315 = arith.cmpi eq, %1169, %1314 : vector<16x128xi32>
    %1316 = arith.extui %1315 : vector<16x128xi1> to vector<16x128xi32>
    %1317 = vector.shape_cast %1316 : vector<16x128xi32> to vector<1x16x128xi32>
    %cst_249 = arith.constant dense<0> : vector<1xi32>
    %1318 = vector.multi_reduction <add>, %1317, %cst_249 [1, 2] : vector<1x16x128xi32> to vector<1xi32>
    %1319 = vector.shape_cast %1318 : vector<1xi32> to vector<1x1x1xi32>
    %1320 = vector.extract %1319[0, 0, 0] : i32 from vector<1x1x1xi32>
    %1321 = arith.addi %1309, %1320 : i32
    %1322 = arith.cmpi sle, %1321, %1157 : i32
    %1323 = arith.extui %1322 : i1 to i32
    %1324 = arith.addi %1312, %1323 : i32
    %1325 = arith.select %1322, %1321, %1313 : i32
    %c13_i32_250 = arith.constant 13 : i32
    %1326 = vector.broadcast %c13_i32_250 : i32 to vector<16x128xi32>
    %1327 = arith.cmpi eq, %1169, %1326 : vector<16x128xi32>
    %1328 = arith.extui %1327 : vector<16x128xi1> to vector<16x128xi32>
    %1329 = vector.shape_cast %1328 : vector<16x128xi32> to vector<1x16x128xi32>
    %cst_251 = arith.constant dense<0> : vector<1xi32>
    %1330 = vector.multi_reduction <add>, %1329, %cst_251 [1, 2] : vector<1x16x128xi32> to vector<1xi32>
    %1331 = vector.shape_cast %1330 : vector<1xi32> to vector<1x1x1xi32>
    %1332 = vector.extract %1331[0, 0, 0] : i32 from vector<1x1x1xi32>
    %1333 = arith.addi %1321, %1332 : i32
    %1334 = arith.cmpi sle, %1333, %1157 : i32
    %1335 = arith.extui %1334 : i1 to i32
    %1336 = arith.addi %1324, %1335 : i32
    %1337 = arith.select %1334, %1333, %1325 : i32
    %c14_i32_252 = arith.constant 14 : i32
    %1338 = vector.broadcast %c14_i32_252 : i32 to vector<16x128xi32>
    %1339 = arith.cmpi eq, %1169, %1338 : vector<16x128xi32>
    %1340 = arith.extui %1339 : vector<16x128xi1> to vector<16x128xi32>
    %1341 = vector.shape_cast %1340 : vector<16x128xi32> to vector<1x16x128xi32>
    %cst_253 = arith.constant dense<0> : vector<1xi32>
    %1342 = vector.multi_reduction <add>, %1341, %cst_253 [1, 2] : vector<1x16x128xi32> to vector<1xi32>
    %1343 = vector.shape_cast %1342 : vector<1xi32> to vector<1x1x1xi32>
    %1344 = vector.extract %1343[0, 0, 0] : i32 from vector<1x1x1xi32>
    %1345 = arith.addi %1333, %1344 : i32
    %1346 = arith.cmpi sle, %1345, %1157 : i32
    %1347 = arith.extui %1346 : i1 to i32
    %1348 = arith.addi %1336, %1347 : i32
    %1349 = arith.select %1346, %1345, %1337 : i32
    %1350 = arith.subi %1157, %1349 : i32
    %c4_i32_254 = arith.constant 4 : i32
    %1351 = arith.shli %1348, %c4_i32_254 : i32
    %1352 = arith.ori %1159, %1351 : i32
    %c0_i32_255 = arith.constant 0 : i32
    %1353 = vector.broadcast %c0_i32_255 : i32 to vector<16x128xi32>
    %1354 = arith.shrsi %7, %1353 : vector<16x128xi32>
    %c15_i32_256 = arith.constant 15 : i32
    %1355 = vector.broadcast %c15_i32_256 : i32 to vector<16x128xi32>
    %1356 = arith.andi %1354, %1355 : vector<16x128xi32>
    %c-16_i32 = arith.constant -16 : i32
    %1357 = vector.broadcast %c-16_i32 : i32 to vector<16x128xi32>
    %1358 = arith.andi %7, %1357 : vector<16x128xi32>
    %1359 = vector.broadcast %1352 : i32 to vector<16x128xi32>
    %1360 = arith.cmpi eq, %1358, %1359 : vector<16x128xi32>
    %c16_i32_257 = arith.constant 16 : i32
    %1361 = vector.broadcast %c16_i32_257 : i32 to vector<16x128xi32>
    %1362 = arith.select %1360, %1356, %1361 : vector<16x128xi1>, vector<16x128xi32>
    %c0_i32_258 = arith.constant 0 : i32
    %1363 = vector.broadcast %c0_i32_258 : i32 to vector<16x128xi32>
    %1364 = arith.cmpi eq, %1362, %1363 : vector<16x128xi32>
    %1365 = arith.extui %1364 : vector<16x128xi1> to vector<16x128xi32>
    %1366 = vector.shape_cast %1365 : vector<16x128xi32> to vector<1x16x128xi32>
    %cst_259 = arith.constant dense<0> : vector<1xi32>
    %1367 = vector.multi_reduction <add>, %1366, %cst_259 [1, 2] : vector<1x16x128xi32> to vector<1xi32>
    %1368 = vector.shape_cast %1367 : vector<1xi32> to vector<1x1x1xi32>
    %1369 = vector.extract %1368[0, 0, 0] : i32 from vector<1x1x1xi32>
    %c0_i32_260 = arith.constant 0 : i32
    %1370 = arith.addi %c0_i32_260, %1369 : i32
    %1371 = arith.cmpi sle, %1370, %1350 : i32
    %1372 = arith.extui %1371 : i1 to i32
    %c0_i32_261 = arith.constant 0 : i32
    %1373 = arith.addi %c0_i32_261, %1372 : i32
    %c1_i32_262 = arith.constant 1 : i32
    %1374 = vector.broadcast %c1_i32_262 : i32 to vector<16x128xi32>
    %1375 = arith.cmpi eq, %1362, %1374 : vector<16x128xi32>
    %1376 = arith.extui %1375 : vector<16x128xi1> to vector<16x128xi32>
    %1377 = vector.shape_cast %1376 : vector<16x128xi32> to vector<1x16x128xi32>
    %cst_263 = arith.constant dense<0> : vector<1xi32>
    %1378 = vector.multi_reduction <add>, %1377, %cst_263 [1, 2] : vector<1x16x128xi32> to vector<1xi32>
    %1379 = vector.shape_cast %1378 : vector<1xi32> to vector<1x1x1xi32>
    %1380 = vector.extract %1379[0, 0, 0] : i32 from vector<1x1x1xi32>
    %1381 = arith.addi %1370, %1380 : i32
    %1382 = arith.cmpi sle, %1381, %1350 : i32
    %1383 = arith.extui %1382 : i1 to i32
    %1384 = arith.addi %1373, %1383 : i32
    %c2_i32_264 = arith.constant 2 : i32
    %1385 = vector.broadcast %c2_i32_264 : i32 to vector<16x128xi32>
    %1386 = arith.cmpi eq, %1362, %1385 : vector<16x128xi32>
    %1387 = arith.extui %1386 : vector<16x128xi1> to vector<16x128xi32>
    %1388 = vector.shape_cast %1387 : vector<16x128xi32> to vector<1x16x128xi32>
    %cst_265 = arith.constant dense<0> : vector<1xi32>
    %1389 = vector.multi_reduction <add>, %1388, %cst_265 [1, 2] : vector<1x16x128xi32> to vector<1xi32>
    %1390 = vector.shape_cast %1389 : vector<1xi32> to vector<1x1x1xi32>
    %1391 = vector.extract %1390[0, 0, 0] : i32 from vector<1x1x1xi32>
    %1392 = arith.addi %1381, %1391 : i32
    %1393 = arith.cmpi sle, %1392, %1350 : i32
    %1394 = arith.extui %1393 : i1 to i32
    %1395 = arith.addi %1384, %1394 : i32
    %c3_i32_266 = arith.constant 3 : i32
    %1396 = vector.broadcast %c3_i32_266 : i32 to vector<16x128xi32>
    %1397 = arith.cmpi eq, %1362, %1396 : vector<16x128xi32>
    %1398 = arith.extui %1397 : vector<16x128xi1> to vector<16x128xi32>
    %1399 = vector.shape_cast %1398 : vector<16x128xi32> to vector<1x16x128xi32>
    %cst_267 = arith.constant dense<0> : vector<1xi32>
    %1400 = vector.multi_reduction <add>, %1399, %cst_267 [1, 2] : vector<1x16x128xi32> to vector<1xi32>
    %1401 = vector.shape_cast %1400 : vector<1xi32> to vector<1x1x1xi32>
    %1402 = vector.extract %1401[0, 0, 0] : i32 from vector<1x1x1xi32>
    %1403 = arith.addi %1392, %1402 : i32
    %1404 = arith.cmpi sle, %1403, %1350 : i32
    %1405 = arith.extui %1404 : i1 to i32
    %1406 = arith.addi %1395, %1405 : i32
    %c4_i32_268 = arith.constant 4 : i32
    %1407 = vector.broadcast %c4_i32_268 : i32 to vector<16x128xi32>
    %1408 = arith.cmpi eq, %1362, %1407 : vector<16x128xi32>
    %1409 = arith.extui %1408 : vector<16x128xi1> to vector<16x128xi32>
    %1410 = vector.shape_cast %1409 : vector<16x128xi32> to vector<1x16x128xi32>
    %cst_269 = arith.constant dense<0> : vector<1xi32>
    %1411 = vector.multi_reduction <add>, %1410, %cst_269 [1, 2] : vector<1x16x128xi32> to vector<1xi32>
    %1412 = vector.shape_cast %1411 : vector<1xi32> to vector<1x1x1xi32>
    %1413 = vector.extract %1412[0, 0, 0] : i32 from vector<1x1x1xi32>
    %1414 = arith.addi %1403, %1413 : i32
    %1415 = arith.cmpi sle, %1414, %1350 : i32
    %1416 = arith.extui %1415 : i1 to i32
    %1417 = arith.addi %1406, %1416 : i32
    %c5_i32_270 = arith.constant 5 : i32
    %1418 = vector.broadcast %c5_i32_270 : i32 to vector<16x128xi32>
    %1419 = arith.cmpi eq, %1362, %1418 : vector<16x128xi32>
    %1420 = arith.extui %1419 : vector<16x128xi1> to vector<16x128xi32>
    %1421 = vector.shape_cast %1420 : vector<16x128xi32> to vector<1x16x128xi32>
    %cst_271 = arith.constant dense<0> : vector<1xi32>
    %1422 = vector.multi_reduction <add>, %1421, %cst_271 [1, 2] : vector<1x16x128xi32> to vector<1xi32>
    %1423 = vector.shape_cast %1422 : vector<1xi32> to vector<1x1x1xi32>
    %1424 = vector.extract %1423[0, 0, 0] : i32 from vector<1x1x1xi32>
    %1425 = arith.addi %1414, %1424 : i32
    %1426 = arith.cmpi sle, %1425, %1350 : i32
    %1427 = arith.extui %1426 : i1 to i32
    %1428 = arith.addi %1417, %1427 : i32
    %c6_i32_272 = arith.constant 6 : i32
    %1429 = vector.broadcast %c6_i32_272 : i32 to vector<16x128xi32>
    %1430 = arith.cmpi eq, %1362, %1429 : vector<16x128xi32>
    %1431 = arith.extui %1430 : vector<16x128xi1> to vector<16x128xi32>
    %1432 = vector.shape_cast %1431 : vector<16x128xi32> to vector<1x16x128xi32>
    %cst_273 = arith.constant dense<0> : vector<1xi32>
    %1433 = vector.multi_reduction <add>, %1432, %cst_273 [1, 2] : vector<1x16x128xi32> to vector<1xi32>
    %1434 = vector.shape_cast %1433 : vector<1xi32> to vector<1x1x1xi32>
    %1435 = vector.extract %1434[0, 0, 0] : i32 from vector<1x1x1xi32>
    %1436 = arith.addi %1425, %1435 : i32
    %1437 = arith.cmpi sle, %1436, %1350 : i32
    %1438 = arith.extui %1437 : i1 to i32
    %1439 = arith.addi %1428, %1438 : i32
    %c7_i32_274 = arith.constant 7 : i32
    %1440 = vector.broadcast %c7_i32_274 : i32 to vector<16x128xi32>
    %1441 = arith.cmpi eq, %1362, %1440 : vector<16x128xi32>
    %1442 = arith.extui %1441 : vector<16x128xi1> to vector<16x128xi32>
    %1443 = vector.shape_cast %1442 : vector<16x128xi32> to vector<1x16x128xi32>
    %cst_275 = arith.constant dense<0> : vector<1xi32>
    %1444 = vector.multi_reduction <add>, %1443, %cst_275 [1, 2] : vector<1x16x128xi32> to vector<1xi32>
    %1445 = vector.shape_cast %1444 : vector<1xi32> to vector<1x1x1xi32>
    %1446 = vector.extract %1445[0, 0, 0] : i32 from vector<1x1x1xi32>
    %1447 = arith.addi %1436, %1446 : i32
    %1448 = arith.cmpi sle, %1447, %1350 : i32
    %1449 = arith.extui %1448 : i1 to i32
    %1450 = arith.addi %1439, %1449 : i32
    %c8_i32_276 = arith.constant 8 : i32
    %1451 = vector.broadcast %c8_i32_276 : i32 to vector<16x128xi32>
    %1452 = arith.cmpi eq, %1362, %1451 : vector<16x128xi32>
    %1453 = arith.extui %1452 : vector<16x128xi1> to vector<16x128xi32>
    %1454 = vector.shape_cast %1453 : vector<16x128xi32> to vector<1x16x128xi32>
    %cst_277 = arith.constant dense<0> : vector<1xi32>
    %1455 = vector.multi_reduction <add>, %1454, %cst_277 [1, 2] : vector<1x16x128xi32> to vector<1xi32>
    %1456 = vector.shape_cast %1455 : vector<1xi32> to vector<1x1x1xi32>
    %1457 = vector.extract %1456[0, 0, 0] : i32 from vector<1x1x1xi32>
    %1458 = arith.addi %1447, %1457 : i32
    %1459 = arith.cmpi sle, %1458, %1350 : i32
    %1460 = arith.extui %1459 : i1 to i32
    %1461 = arith.addi %1450, %1460 : i32
    %c9_i32_278 = arith.constant 9 : i32
    %1462 = vector.broadcast %c9_i32_278 : i32 to vector<16x128xi32>
    %1463 = arith.cmpi eq, %1362, %1462 : vector<16x128xi32>
    %1464 = arith.extui %1463 : vector<16x128xi1> to vector<16x128xi32>
    %1465 = vector.shape_cast %1464 : vector<16x128xi32> to vector<1x16x128xi32>
    %cst_279 = arith.constant dense<0> : vector<1xi32>
    %1466 = vector.multi_reduction <add>, %1465, %cst_279 [1, 2] : vector<1x16x128xi32> to vector<1xi32>
    %1467 = vector.shape_cast %1466 : vector<1xi32> to vector<1x1x1xi32>
    %1468 = vector.extract %1467[0, 0, 0] : i32 from vector<1x1x1xi32>
    %1469 = arith.addi %1458, %1468 : i32
    %1470 = arith.cmpi sle, %1469, %1350 : i32
    %1471 = arith.extui %1470 : i1 to i32
    %1472 = arith.addi %1461, %1471 : i32
    %c10_i32_280 = arith.constant 10 : i32
    %1473 = vector.broadcast %c10_i32_280 : i32 to vector<16x128xi32>
    %1474 = arith.cmpi eq, %1362, %1473 : vector<16x128xi32>
    %1475 = arith.extui %1474 : vector<16x128xi1> to vector<16x128xi32>
    %1476 = vector.shape_cast %1475 : vector<16x128xi32> to vector<1x16x128xi32>
    %cst_281 = arith.constant dense<0> : vector<1xi32>
    %1477 = vector.multi_reduction <add>, %1476, %cst_281 [1, 2] : vector<1x16x128xi32> to vector<1xi32>
    %1478 = vector.shape_cast %1477 : vector<1xi32> to vector<1x1x1xi32>
    %1479 = vector.extract %1478[0, 0, 0] : i32 from vector<1x1x1xi32>
    %1480 = arith.addi %1469, %1479 : i32
    %1481 = arith.cmpi sle, %1480, %1350 : i32
    %1482 = arith.extui %1481 : i1 to i32
    %1483 = arith.addi %1472, %1482 : i32
    %c11_i32_282 = arith.constant 11 : i32
    %1484 = vector.broadcast %c11_i32_282 : i32 to vector<16x128xi32>
    %1485 = arith.cmpi eq, %1362, %1484 : vector<16x128xi32>
    %1486 = arith.extui %1485 : vector<16x128xi1> to vector<16x128xi32>
    %1487 = vector.shape_cast %1486 : vector<16x128xi32> to vector<1x16x128xi32>
    %cst_283 = arith.constant dense<0> : vector<1xi32>
    %1488 = vector.multi_reduction <add>, %1487, %cst_283 [1, 2] : vector<1x16x128xi32> to vector<1xi32>
    %1489 = vector.shape_cast %1488 : vector<1xi32> to vector<1x1x1xi32>
    %1490 = vector.extract %1489[0, 0, 0] : i32 from vector<1x1x1xi32>
    %1491 = arith.addi %1480, %1490 : i32
    %1492 = arith.cmpi sle, %1491, %1350 : i32
    %1493 = arith.extui %1492 : i1 to i32
    %1494 = arith.addi %1483, %1493 : i32
    %c12_i32_284 = arith.constant 12 : i32
    %1495 = vector.broadcast %c12_i32_284 : i32 to vector<16x128xi32>
    %1496 = arith.cmpi eq, %1362, %1495 : vector<16x128xi32>
    %1497 = arith.extui %1496 : vector<16x128xi1> to vector<16x128xi32>
    %1498 = vector.shape_cast %1497 : vector<16x128xi32> to vector<1x16x128xi32>
    %cst_285 = arith.constant dense<0> : vector<1xi32>
    %1499 = vector.multi_reduction <add>, %1498, %cst_285 [1, 2] : vector<1x16x128xi32> to vector<1xi32>
    %1500 = vector.shape_cast %1499 : vector<1xi32> to vector<1x1x1xi32>
    %1501 = vector.extract %1500[0, 0, 0] : i32 from vector<1x1x1xi32>
    %1502 = arith.addi %1491, %1501 : i32
    %1503 = arith.cmpi sle, %1502, %1350 : i32
    %1504 = arith.extui %1503 : i1 to i32
    %1505 = arith.addi %1494, %1504 : i32
    %c13_i32_286 = arith.constant 13 : i32
    %1506 = vector.broadcast %c13_i32_286 : i32 to vector<16x128xi32>
    %1507 = arith.cmpi eq, %1362, %1506 : vector<16x128xi32>
    %1508 = arith.extui %1507 : vector<16x128xi1> to vector<16x128xi32>
    %1509 = vector.shape_cast %1508 : vector<16x128xi32> to vector<1x16x128xi32>
    %cst_287 = arith.constant dense<0> : vector<1xi32>
    %1510 = vector.multi_reduction <add>, %1509, %cst_287 [1, 2] : vector<1x16x128xi32> to vector<1xi32>
    %1511 = vector.shape_cast %1510 : vector<1xi32> to vector<1x1x1xi32>
    %1512 = vector.extract %1511[0, 0, 0] : i32 from vector<1x1x1xi32>
    %1513 = arith.addi %1502, %1512 : i32
    %1514 = arith.cmpi sle, %1513, %1350 : i32
    %1515 = arith.extui %1514 : i1 to i32
    %1516 = arith.addi %1505, %1515 : i32
    %c14_i32_288 = arith.constant 14 : i32
    %1517 = vector.broadcast %c14_i32_288 : i32 to vector<16x128xi32>
    %1518 = arith.cmpi eq, %1362, %1517 : vector<16x128xi32>
    %1519 = arith.extui %1518 : vector<16x128xi1> to vector<16x128xi32>
    %1520 = vector.shape_cast %1519 : vector<16x128xi32> to vector<1x16x128xi32>
    %cst_289 = arith.constant dense<0> : vector<1xi32>
    %1521 = vector.multi_reduction <add>, %1520, %cst_289 [1, 2] : vector<1x16x128xi32> to vector<1xi32>
    %1522 = vector.shape_cast %1521 : vector<1xi32> to vector<1x1x1xi32>
    %1523 = vector.extract %1522[0, 0, 0] : i32 from vector<1x1x1xi32>
    %1524 = arith.addi %1513, %1523 : i32
    %1525 = arith.cmpi sle, %1524, %1350 : i32
    %1526 = arith.extui %1525 : i1 to i32
    %1527 = arith.addi %1516, %1526 : i32
    %c0_i32_290 = arith.constant 0 : i32
    %1528 = arith.shli %1527, %c0_i32_290 : i32
    %1529 = arith.ori %1352, %1528 : i32
    %c0_i32_291 = arith.constant 0 : i32
    %1530 = arith.cmpi slt, %1529, %c0_i32_291 : i32
    %c-2147483648_i32_292 = arith.constant -2147483648 : i32
    %1531 = arith.xori %1529, %c-2147483648_i32_292 : i32
    %c-1_i32_293 = arith.constant -1 : i32
    %1532 = arith.xori %1529, %c-1_i32_293 : i32
    %1533 = arith.select %1530, %1531, %1532 : i32
    %1534 = vector.broadcast %1533 : i32 to vector<16x128xi32>
    %1535 = tpu.bitcast %1534 : vector<16x128xi32> -> vector<16x128xf32>
    %1536 = arith.subf %0, %1535 : vector<16x128xf32>
    %c0_294 = arith.constant 0 : index
    %c0_295 = arith.constant 0 : index
    %1537 = vector.load %arg2[%c0_294, %c0_295] : memref<16x128xf32, #tpu.memory_space<vmem>>, vector<16x128xf32>
    tpu.vector_store %arg2[%c0_294, %c0_295], %1536 {strides = array<i32>} : memref<16x128xf32, #tpu.memory_space<vmem>>, vector<16x128xf32>,
    return
  }
  func.func @transform_0(%arg0: i32) -> (i32, i32) {
    %c0_i32 = arith.constant 0 : i32
    %c0_i32_0 = arith.constant 0 : i32
    %c0_i32_1 = arith.constant 0 : i32
    return %c0_i32, %c0_i32_0 : i32, i32
  }
  func.func @transform_1(%arg0: i32) -> (i32, i32) {
    %c0_i32 = arith.constant 0 : i32
    %c0_i32_0 = arith.constant 0 : i32
    %c0_i32_1 = arith.constant 0 : i32
    return %c0_i32, %c0_i32_0 : i32, i32
  }
}

</mosaic_0001>

<bundles_post_ra>
// kernel: tpu_custom_call.1
= control target key start
LH: loop header
LB: loop body
LE: loop exit
PB: predicated region body
PF: predicated region fallthrough
CT: control target
= control target key end

     0   :  { %6 = vsyncpa [#allocation3], 0  ;;  %s5107_s0 = inlined_call_operand.hbm [shape: f32[16,128], index: 0, kind: input, shape index: {}]   ;;  %s5108_s1 = inlined_call_operand.hbm [shape: f32[16,128], index: 1, kind: output, shape index: {}]  }
   0x1   :  { %7 = vsyncpa [#allocation4], 0  ;;  %s12_s8 = sshll.u32 %s5107_s0, 4  ;;  %s3915_s9 = smov [#allocation2]   ;;  %s13_s8 = int_to_ptr.hbm [resolvable:$true] %s12_s8 }
   0x2   :  { %s14_s10 = sshll.u32 %s3915_s9, 4  ;;  %s3916_s11 = smov 128   ;;  %s15_s10 = int_to_ptr.vmem [resolvable:$true] %s14_s10 }
   0x3   :  { %s3917_s12 = smov 8  }
   0x4   :  { %20 = dma.hbm_to_vmem [thread:$0]  %s13_s8, 256, %s15_s10, [#allocation3], %s3916_s11, %s3916_s11, %s3917_s12  }
   0x5   :  { %3911 = dma.done.wait [#allocation3], 256  }
   0x6   :  { %3912 = vsyncadd [#allocation3], 4294967040  ;;  %v25_v0 = vld [vmem:[#allocation2] sm:$0xff]  ;;  %v26_v1 = vld [vmem:[#allocation2 + $0x8] sm:$0xff]  ;;  %v3918_v2 = vmov 2147483648   ;;  %v3919_v9 = vmov 0  }
   0x7   :  { %vm29_vm0 = vcmp.lt.s32.totalorder %v25_v0, 0  ;;  %vm30_vm1 = vcmp.lt.s32.totalorder %v26_v1, 0 }
   0x8   :  { %v31_v3 = vsel %vm29_vm0, 4294967295, %v3918_v2  ;;  %v32_v4 = vsel %vm30_vm1, 4294967295, %v3918_v2 }
   0x9   :  { %v3937_v5 = vxor.u32 %v31_v3, %v25_v0  ;;  %v3939_v6 = vxor.u32 %v32_v4, %v26_v1 }
   0xb   :  { %v3942_v7 = vshrl.u32 %v3937_v5, 28  ;;  %v3945_v8 = vshrl.u32 %v3939_v6, 28 }
   0xd   :  { %vm95_vm2 = vcmp.eq.s32.totalorder %v3942_v7, 2  ;;  %vm96_vm3 = vcmp.eq.s32.totalorder %v3945_v8, 2  ;;  %vm66_vm4 = vcmp.eq.s32.totalorder %v3942_v7, 1  ;;  %vm67_vm5 = vcmp.eq.s32.totalorder %v3945_v8, 1 }
   0xe   :  { %v97_v10 = vsel %vm95_vm2, 1, %v3919_v9  ;;  %v98_v11 = vsel %vm96_vm3, 1, %v3919_v9  ;;  %v68_v12 = vsel %vm66_vm4, 1, %v3919_v9  ;;  %v69_v13 = vsel %vm67_vm5, 1, %v3919_v9 }
   0xf   :  { %v99_v14 = vadd.s32 %v98_v11, %v97_v10  ;;  %v70_v15 = vadd.s32 %v69_v13, %v68_v12  ;;  %vm39_vm6 = vcmp.eq.s32.totalorder %v3942_v7, 0  ;;  %vm40_vm7 = vcmp.eq.s32.totalorder %v3945_v8, 0 }
  0x10   :  { %v41_v16 = vsel %vm39_vm6, 1, %v3919_v9  ;;  %v42_v17 = vsel %vm40_vm7, 1, %v3919_v9  ;;  %vm124_vm8 = vcmp.eq.s32.totalorder %v3942_v7, 3  ;;  %vm125_vm9 = vcmp.eq.s32.totalorder %v3945_v8, 3 }
  0x11   :  { %v101_v18 = vshrl.u32 %v99_v14, 16  ;;  %v71_v19 = vand.u32 65535, %v70_v15  ;;  %v43_v20 = vadd.s32 %v42_v17, %v41_v16  ;;  %v126_v21 = vsel %vm124_vm8, 1, %v3919_v9 }
  0x12   :  { %v127_v22 = vsel %vm125_vm9, 1, %v3919_v9  ;;  %vm153_vm10 = vcmp.eq.s32.totalorder %v3942_v7, 4  ;;  %vm154_vm11 = vcmp.eq.s32.totalorder %v3945_v8, 4  ;;  %v72_v32 = vshrl.u32 %v70_v15, 16 }
  0x13   :  { %v103_v23 = vcvt.s32.f32 %v101_v18  ;;  %v73_v24 = vcvt.s32.f32 %v71_v19  ;;  %v45_v25 = vshrl.u32 %v43_v20, 16  ;;  %v128_v26 = vadd.s32 %v127_v22, %v126_v21 }
  0x14   :  { %v44_v29 = vand.u32 65535, %v43_v20  ;;  %v155_v30 = vsel %vm153_vm10, 1, %v3919_v9  ;;  %v156_v31 = vsel %vm154_vm11, 1, %v3919_v9  ;;  %v74_v36 = vcvt.s32.f32 %v72_v32 }
  0x15   :  { %106 = vadd.xlane.f32.xlu1 %v103_v23  ;;  %75 = vadd.xlane.f32.xlu2 %v73_v24  ;;  %v47_v27 = vcvt.s32.f32 %v45_v25  ;;  %v130_v28 = vshrl.u32 %v128_v26, 16  ;;  %v157_v35 = vadd.s32 %v156_v31, %v155_v30  ;;  %vm211_vm12 = vcmp.eq.s32.totalorder %v3942_v7, 6 }
  0x16   :  { %v46_v34 = vcvt.s32.f32 %v44_v29  ;;  %vm212_vm13 = vcmp.eq.s32.totalorder %v3945_v8, 6  ;;  %v129_v37 = vand.u32 65535, %v128_v26  ;;  %vm182_vm14 = vcmp.eq.s32.totalorder %v3942_v7, 5 }
  0x17   :  { %50 = vadd.xlane.f32.xlu0 %v47_v27  ;;  %v132_v33 = vcvt.s32.f32 %v130_v28  ;;  %v159_v38 = vshrl.u32 %v157_v35, 16  ;;  %vm183_vm15 = vcmp.eq.s32.totalorder %v3945_v8, 5  ;;  %v213_v39 = vsel %vm211_vm12, 1, %v3919_v9 }
  0x18   :  { %v214_v40 = vsel %vm212_vm13, 1, %v3919_v9  ;;  %v100_v41 = vand.u32 65535, %v99_v14  ;;  %v184_v42 = vsel %vm182_vm14, 1, %v3919_v9  ;;  %v185_v43 = vsel %vm183_vm15, 1, %v3919_v9 }
  0x19   :  { %v131_v44 = vcvt.s32.f32 %v129_v37  ;;  %v161_v45 = vcvt.s32.f32 %v159_v38  ;;  %v215_v46 = vadd.s32 %v214_v40, %v213_v39  ;;  %v186_v48 = vadd.s32 %v185_v43, %v184_v42 }
  0x1a   :  { %v102_v47 = vcvt.s32.f32 %v100_v41  ;;  %vm240_vm0 = vcmp.eq.s32.totalorder %v3942_v7, 7  ;;  %vm241_vm1 = vcmp.eq.s32.totalorder %v3945_v8, 7  ;;  %v158_v50 = vand.u32 65535, %v157_v35 }
  0x1b   :  { %v217_v49 = vshrl.u32 %v215_v46, 16  ;;  %v242_v51 = vsel %vm240_vm0, 1, %v3919_v9  ;;  %v243_v52 = vsel %vm241_vm1, 1, %v3919_v9  ;;  %v188_v53 = vshrl.u32 %v186_v48, 16 }
  0x1c   :  { %v160_v55 = vcvt.s32.f32 %v158_v50  ;;  %v244_v56 = vadd.s32 %v243_v52, %v242_v51  ;;  %vm298_vm2 = vcmp.eq.s32.totalorder %v3942_v7, 9  ;;  %vm299_vm3 = vcmp.eq.s32.totalorder %v3945_v8, 9 }
  0x1d   :  { %135 = vadd.xlane.f32.xlu2 %v132_v33  ;;  %48 = vadd.xlane.f32.xlu1 %v46_v34  ;;  %v219_v54 = vcvt.s32.f32 %v217_v49  ;;  %v190_v57 = vcvt.s32.f32 %v188_v53  ;;  %v216_v58 = vand.u32 65535, %v215_v46  ;;  %vm269_vm4 = vcmp.eq.s32.totalorder %v3942_v7, 8 }
  0x1e   :  { %v246_v59 = vshrl.u32 %v244_v56, 16  ;;  %vm270_vm5 = vcmp.eq.s32.totalorder %v3945_v8, 8  ;;  %v300_v60 = vsel %vm298_vm2, 1, %v3919_v9  ;;  %v301_v61 = vsel %vm299_vm3, 1, %v3919_v9 }
  0x1f   :  { %77 = vadd.xlane.f32.xlu0 %v74_v36  ;;  %v187_v62 = vand.u32 65535, %v186_v48  ;;  %vm414_vm6 = vcmp.eq.s32.totalorder %v3942_v7, 13  ;;  %vm415_vm7 = vcmp.eq.s32.totalorder %v3945_v8, 13  ;;  %v271_v63 = vsel %vm269_vm4, 1, %v3919_v9 }
  0x20   :  { %v272_v0 = vsel %vm270_vm5, 1, %v3919_v9  ;;  %v416_v1 = vsel %vm414_vm6, 1, %v3919_v9  ;;  %v417_v2 = vsel %vm415_vm7, 1, %v3919_v9  ;;  %v218_v3 = vcvt.s32.f32 %v216_v58 }
  0x21   :  { %v248_v4 = vcvt.s32.f32 %v246_v59  ;;  %v302_v10 = vadd.s32 %v301_v61, %v300_v60  ;;  %v3991_v11 = vadd.s32 %v417_v2, %v416_v1  ;;  %v189_v12 = vcvt.s32.f32 %v187_v62 }
  0x22   :  { %v273_v13 = vadd.s32 %v272_v0, %v271_v63  ;;  %vm327_vm8 = vcmp.eq.s32.totalorder %v3942_v7, 10  ;;  %vm328_vm9 = vcmp.eq.s32.totalorder %v3945_v8, 10  ;;  %v245_v15 = vand.u32 65535, %v244_v56 }
  0x23   :  { %v304_v14 = vshrl.u32 %v302_v10, 16  ;;  %v329_v16 = vsel %vm327_vm8, 1, %v3919_v9  ;;  %v330_v17 = vsel %vm328_vm9, 1, %v3919_v9  ;;  %vm443_vm10 = vcmp.eq.s32.totalorder %v3942_v7, 14 }
  0x24   :  { %v275_v18 = vshrl.u32 %v273_v13, 16  ;;  %vm444_vm11 = vcmp.eq.s32.totalorder %v3945_v8, 14  ;;  %v445_v19 = vsel %vm443_vm10, 1, %v3919_v9  ;;  %v247_v22 = vcvt.s32.f32 %v245_v15 }
  0x25   :  { %133 = vadd.xlane.f32.xlu2 %v131_v44  ;;  %164 = vadd.xlane.f32.xlu1 %v161_v45  ;;  %v446_v20 = vsel %vm444_vm11, 1, %v3919_v9  ;;  %v306_v21 = vcvt.s32.f32 %v304_v14  ;;  %v331_v23 = vadd.s32 %v330_v17, %v329_v16  ;;  %vm385_vm12 = vcmp.eq.s32.totalorder %v3942_v7, 12 }
  0x26   :  { %v447_v24 = vadd.s32 %v446_v20, %v445_v19  ;;  %v277_v25 = vcvt.s32.f32 %v275_v18  ;;  %vm386_vm13 = vcmp.eq.s32.totalorder %v3945_v8, 12  ;;  %v303_v26 = vand.u32 65535, %v302_v10 }
  0x27   :  { %104 = vadd.xlane.f32.xlu0 %v102_v47  ;;  %v333_v27 = vshrl.u32 %v331_v23, 16  ;;  %vm356_vm14 = vcmp.eq.s32.totalorder %v3942_v7, 11  ;;  %vm357_vm15 = vcmp.eq.s32.totalorder %v3945_v8, 11  ;;  %v387_v28 = vsel %vm385_vm12, 1, %v3919_v9 }
  0x28   :  { %v388_v29 = vsel %vm386_vm13, 1, %v3919_v9  ;;  %v274_v30 = vand.u32 65535, %v273_v13  ;;  %v358_v31 = vsel %vm356_vm14, 1, %v3919_v9  ;;  %v359_v32 = vsel %vm357_vm15, 1, %v3919_v9 }
  0x29   :  { %v305_v33 = vcvt.s32.f32 %v303_v26  ;;  %v335_v34 = vcvt.s32.f32 %v333_v27  ;;  %v389_v35 = vadd.s32 %v388_v29, %v387_v28  ;;  %v360_v37 = vadd.s32 %v359_v32, %v358_v31 }
  0x2a   :  { %v276_v36 = vcvt.s32.f32 %v274_v30  ;;  %v332_v38 = vand.u32 65535, %v331_v23  ;;  %v420_v43 = vshrl.u32 %v3991_v11, 16  ;;  %v419_v48 = vand.u32 65535, %v3991_v11 }
  0x2b   :  { %v391_v7 = vshrl.u32 %v389_v35, 16  ;;  %v362_v8 = vshrl.u32 %v360_v37, 16  ;;  %v390_v42 = vand.u32 65535, %v389_v35  ;;  %v361_v44 = vand.u32 65535, %v360_v37 }
  0x2c   :  { %v334_v40 = vcvt.s32.f32 %v332_v38  ;;  %v422_v46 = vcvt.s32.f32 %v420_v43  ;;  %v448_v49 = vand.u32 65535, %v447_v24  ;;  %v449_v50 = vshrl.u32 %v447_v24, 16 }
  0x2d   :  { %222 = vadd.xlane.f32.xlu2 %v219_v54  ;;  %162 = vadd.xlane.f32.xlu1 %v160_v55  ;;  %v393_v39 = vcvt.s32.f32 %v391_v7  ;;  %v364_v41 = vcvt.s32.f32 %v362_v8  ;;  %v392_v45 = vcvt.s32.f32 %v390_v42  ;;  %v363_v47 = vcvt.s32.f32 %v361_v44 }
  0x2e   :  { %v421_v51 = vcvt.s32.f32 %v419_v48  ;;  %v450_v52 = vcvt.s32.f32 %v448_v49  ;;  %v451_v53 = vcvt.s32.f32 %v449_v50 }
  0x2f   :  { %193 = vadd.xlane.f32.xlu0 %v190_v57 }
  0x35   :  { %220 = vadd.xlane.f32.xlu2 %v218_v3  ;;  %251 = vadd.xlane.f32.xlu1 %v248_v4 }
  0x37   :  { %191 = vadd.xlane.f32.xlu0 %v189_v12 }
  0x3d   :  { %309 = vadd.xlane.f32.xlu2 %v306_v21  ;;  %249 = vadd.xlane.f32.xlu1 %v247_v22 }
  0x3f   :  { %280 = vadd.xlane.f32.xlu0 %v277_v25 }
  0x45   :  { %307 = vadd.xlane.f32.xlu2 %v305_v33  ;;  %338 = vadd.xlane.f32.xlu1 %v335_v34 }
  0x47   :  { %278 = vadd.xlane.f32.xlu0 %v276_v36 }
  0x4d   :  { %396 = vadd.xlane.f32.xlu2 %v393_v39  ;;  %336 = vadd.xlane.f32.xlu1 %v334_v40 }
  0x4f   :  { %367 = vadd.xlane.f32.xlu0 %v364_v41 }
  0x55   :  { %394 = vadd.xlane.f32.xlu2 %v392_v45  ;;  %425 = vadd.xlane.f32.xlu1 %v422_v46 }
  0x57   :  { %365 = vadd.xlane.f32.xlu0 %v363_v47 }
  0x5d   :  { %423 = vadd.xlane.f32.xlu1 %v421_v51  ;;  %452 = vadd.xlane.f32.xlu2 %v450_v52 }
  0x5f   :  { %454 = vadd.xlane.f32.xlu0 %v451_v53 }
  0x88   :  { %v107_v54 = vpop.xlane.xlu1 %106  ;;  %v76_v55 = vpop.xlane.xlu2 %75 }
  0x89   :  { %v79_v1 = vcvt.f32.s32 %v76_v55  ;;  %v109_v10 = vcvt.f32.s32 %v107_v54 }
  0x8a   :  { %v51_v56 = vpop.xlane.xlu0 %50 }
  0x8b   :  { %v53_v57 = vcvt.f32.s32 %v51_v56  ;;  %v110_v20 = vshll.u32 %v109_v10, 16 }
  0x8d   :  { %v54_v60 = vshll.u32 %v53_v57, 16 }
  0x90   :  { %v136_v58 = vpop.xlane.xlu2 %135  ;;  %v49_v59 = vpop.xlane.xlu1 %48 }
  0x91   :  { %v52_v61 = vcvt.f32.s32 %v49_v59  ;;  %v138_v2 = vcvt.f32.s32 %v136_v58 }
  0x92   :  { %v78_v62 = vpop.xlane.xlu0 %77 }
  0x93   :  { %v80_v63 = vcvt.f32.s32 %v78_v62  ;;  %v55_v0 = vadd.s32 %v54_v60, %v52_v61  ;;  %v139_v15 = vshll.u32 %v138_v2, 16 }
  0x95   :  { %v81_v3 = vshll.u32 %v80_v63, 16  ;;  %v56_v4 = vrot.slane %v55_v0, 4 }
  0x97   :  { %v82_v11 = vadd.s32 %v81_v3, %v79_v1  ;;  %v57_v12 = vadd.s32 %v56_v4, %v55_v0 }
  0x98   :  { %v134_v13 = vpop.xlane.xlu2 %133  ;;  %v165_v14 = vpop.xlane.xlu1 %164 }
  0x99   :  { %v83_v16 = vrot.slane %v82_v11, 4  ;;  %v137_v17 = vcvt.f32.s32 %v134_v13  ;;  %v58_v18 = vrot.slane %v57_v12, 2  ;;  %v167_v27 = vcvt.f32.s32 %v165_v14 }
  0x9a   :  { %v105_v19 = vpop.xlane.xlu0 %104 }
  0x9b   :  { %v140_v21 = vadd.s32 %v139_v15, %v137_v17  ;;  %v108_v22 = vcvt.f32.s32 %v105_v19  ;;  %v59_v23 = vadd.s32 %v58_v18, %v57_v12  ;;  %v84_v24 = vadd.s32 %v83_v16, %v82_v11 }
  0x9c   :  { %v168_v36 = vshll.u32 %v167_v27, 16 }
  0x9d   :  { %v141_v25 = vrot.slane %v140_v21, 4  ;;  %v111_v26 = vadd.s32 %v110_v20, %v108_v22  ;;  %v60_v28 = vrot.slane %v59_v23, 1  ;;  %v85_v29 = vrot.slane %v84_v24, 2 }
  0x9f   :  { %v112_v30 = vrot.slane %v111_v26, 4  ;;  %v61_v31 = vadd.s32 %v60_v28, %v59_v23  ;;  %v142_v32 = vadd.s32 %v141_v25, %v140_v21  ;;  %v86_v35 = vadd.s32 %v85_v29, %v84_v24 }
  0xa0   :  { %v223_v33 = vpop.xlane.xlu2 %222  ;;  %v163_v34 = vpop.xlane.xlu1 %162 }
  0xa1   :  { %v166_v37 = vcvt.f32.s32 %v163_v34  ;;  %3615 = vpush %v61_v31  ;;  %v113_v7 = vadd.s32 %v112_v30, %v111_v26  ;;  %v143_v38 = vrot.slane %v142_v32, 2  ;;  %v87_v39 = vrot.slane %v86_v35, 1 }
  0xa2   :  { %v194_v8 = vpop.xlane.xlu0 %193  ;;  %v225_v44 = vcvt.f32.s32 %v223_v33 }
  0xa3   :  { %v169_v40 = vadd.s32 %v168_v36, %v166_v37  ;;  %v114_v41 = vrot.slane %v113_v7, 2  ;;  %v88_v42 = vadd.s32 %v87_v39, %v86_v35  ;;  %v144_v43 = vadd.s32 %v143_v38, %v142_v32 }
  0xa4   :  { %v196_v48 = vcvt.f32.s32 %v194_v8  ;;  %v226_v54 = vshll.u32 %v225_v44, 16 }
  0xa5   :  { %v170_v45 = vrot.slane %v169_v40, 4  ;;  %v115_v46 = vadd.s32 %v114_v41, %v113_v7  ;;  %3617 = vpush %v88_v42  ;;  %v145_v47 = vrot.slane %v144_v43, 1 }
  0xa6   :  { %v197_v59 = vshll.u32 %v196_v48, 16 }
  0xa7   :  { %v116_v49 = vrot.slane %v115_v46, 1  ;;  %v171_v50 = vadd.s32 %v170_v45, %v169_v40  ;;  %v146_v53 = vadd.s32 %v145_v47, %v144_v43 }
  0xa8   :  { %v221_v51 = vpop.xlane.xlu2 %220  ;;  %v252_v52 = vpop.xlane.xlu1 %251 }
  0xa9   :  { %v224_v55 = vcvt.f32.s32 %v221_v51  ;;  %v117_v56 = vadd.s32 %v116_v49, %v115_v46  ;;  %v172_v57 = vrot.slane %v171_v50, 2  ;;  %v254_v1 = vcvt.f32.s32 %v252_v52 }
  0xaa   :  { %v192_v58 = vpop.xlane.xlu0 %191 }
  0xab   :  { %v227_v60 = vadd.s32 %v226_v54, %v224_v55  ;;  %v195_v61 = vcvt.f32.s32 %v192_v58  ;;  %3619 = vpush %v117_v56  ;;  %v173_v62 = vadd.s32 %v172_v57, %v171_v50  ;;  %v255_v13 = vshll.u32 %v254_v1, 16 }
  0xac   :  { %3621 = vpush %v146_v53 }
  0xad   :  { %v228_v63 = vrot.slane %v227_v60, 4  ;;  %v198_v0 = vadd.s32 %v197_v59, %v195_v61  ;;  %v174_v2 = vrot.slane %v173_v62, 1 }
  0xaf   :  { %v199_v3 = vrot.slane %v198_v0, 4  ;;  %v175_v4 = vadd.s32 %v174_v2, %v173_v62  ;;  %v229_v10 = vadd.s32 %v228_v63, %v227_v60 }
  0xb0   :  { %v310_v11 = vpop.xlane.xlu2 %309  ;;  %v250_v12 = vpop.xlane.xlu1 %249 }
  0xb1   :  { %v253_v14 = vcvt.f32.s32 %v250_v12  ;;  %3623 = vpush %v175_v4  ;;  %v200_v15 = vadd.s32 %v199_v3, %v198_v0  ;;  %v230_v16 = vrot.slane %v229_v10, 2  ;;  %v312_v21 = vcvt.f32.s32 %v310_v11 }
  0xb2   :  { %v281_v17 = vpop.xlane.xlu0 %280 }
  0xb3   :  { %v256_v18 = vadd.s32 %v255_v13, %v253_v14  ;;  %v201_v19 = vrot.slane %v200_v15, 2  ;;  %v231_v20 = vadd.s32 %v230_v16, %v229_v10  ;;  %v283_v25 = vcvt.f32.s32 %v281_v17 }
  0xb4   :  { %v313_v31 = vshll.u32 %v312_v21, 16 }
  0xb5   :  { %v257_v22 = vrot.slane %v256_v18, 4  ;;  %v202_v23 = vadd.s32 %v201_v19, %v200_v15  ;;  %v232_v24 = vrot.slane %v231_v20, 1  ;;  %v284_v36 = vshll.u32 %v283_v25, 16 }
  0xb7   :  { %v203_v26 = vrot.slane %v202_v23, 1  ;;  %v258_v27 = vadd.s32 %v257_v22, %v256_v18  ;;  %v233_v30 = vadd.s32 %v232_v24, %v231_v20 }
  0xb8   :  { %v308_v28 = vpop.xlane.xlu2 %307  ;;  %v339_v29 = vpop.xlane.xlu1 %338 }
  0xb9   :  { %v311_v32 = vcvt.f32.s32 %v308_v28  ;;  %v204_v33 = vadd.s32 %v203_v26, %v202_v23  ;;  %v259_v34 = vrot.slane %v258_v27, 2  ;;  %v341_v40 = vcvt.f32.s32 %v339_v29 }
  0xba   :  { %v279_v35 = vpop.xlane.xlu0 %278 }
  0xbb   :  { %v314_v37 = vadd.s32 %v313_v31, %v311_v32  ;;  %v282_v7 = vcvt.f32.s32 %v279_v35  ;;  %3625 = vpush %v204_v33  ;;  %v260_v38 = vadd.s32 %v259_v34, %v258_v27  ;;  %v342_v47 = vshll.u32 %v341_v40, 16 }
  0xbc   :  { %3627 = vpush %v233_v30 }
  0xbd   :  { %v315_v8 = vrot.slane %v314_v37, 4  ;;  %v285_v39 = vadd.s32 %v284_v36, %v282_v7  ;;  %v261_v41 = vrot.slane %v260_v38, 1 }
  0xbf   :  { %v286_v42 = vrot.slane %v285_v39, 4  ;;  %v262_v43 = vadd.s32 %v261_v41, %v260_v38  ;;  %v316_v44 = vadd.s32 %v315_v8, %v314_v37 }
  0xc0   :  { %v397_v45 = vpop.xlane.xlu2 %396  ;;  %v337_v46 = vpop.xlane.xlu1 %336 }
  0xc1   :  { %v340_v48 = vcvt.f32.s32 %v337_v46  ;;  %3629 = vpush %v262_v43  ;;  %v287_v49 = vadd.s32 %v286_v42, %v285_v39  ;;  %v317_v50 = vrot.slane %v316_v44, 2  ;;  %v399_v55 = vcvt.f32.s32 %v397_v45 }
  0xc2   :  { %v368_v51 = vpop.xlane.xlu0 %367 }
  0xc3   :  { %v343_v52 = vadd.s32 %v342_v47, %v340_v48  ;;  %v288_v53 = vrot.slane %v287_v49, 2  ;;  %v318_v54 = vadd.s32 %v317_v50, %v316_v44  ;;  %v370_v59 = vcvt.f32.s32 %v368_v51 }
  0xc4   :  { %v400_v1 = vshll.u32 %v399_v55, 16  ;;  %v474_v51 = vshra.s32 %v3937_v5, 24 }
  0xc5   :  { %v344_v56 = vrot.slane %v343_v52, 4  ;;  %v289_v57 = vadd.s32 %v288_v53, %v287_v49  ;;  %v319_v58 = vrot.slane %v318_v54, 1  ;;  %v371_v11 = vshll.u32 %v370_v59, 16 }
  0xc6   :  { %v478_v53 = vand.u32 4026531840, %v3937_v5  ;;  %v476_v55 = vand.u32 15, %v474_v51 }
  0xc7   :  { %v290_v60 = vrot.slane %v289_v57, 1  ;;  %v345_v61 = vadd.s32 %v344_v56, %v343_v52  ;;  %v320_v0 = vadd.s32 %v319_v58, %v318_v54  ;;  %v475_v52 = vshra.s32 %v3939_v6, 24 }
  0xc8   :  { %v395_v62 = vpop.xlane.xlu2 %394  ;;  %v426_v63 = vpop.xlane.xlu1 %425  ;;  %v479_v54 = vand.u32 4026531840, %v3939_v6 }
  0xc9   :  { %v398_v2 = vcvt.f32.s32 %v395_v62  ;;  %v291_v3 = vadd.s32 %v290_v60, %v289_v57  ;;  %v346_v4 = vrot.slane %v345_v61, 2  ;;  %v428_v17 = vcvt.f32.s32 %v426_v63 }
  0xca   :  { %v366_v10 = vpop.xlane.xlu0 %365  ;;  %v477_v56 = vand.u32 15, %v475_v52 }
  0xcb   :  { %v401_v12 = vadd.s32 %v400_v1, %v398_v2  ;;  %v369_v13 = vcvt.f32.s32 %v366_v10  ;;  %3631 = vpush %v291_v3  ;;  %v347_v14 = vadd.s32 %v346_v4, %v345_v61  ;;  %v429_v24 = vshll.u32 %v428_v17, 16 }
  0xcc   :  { %3633 = vpush %v320_v0 }
  0xcd   :  { %v402_v15 = vrot.slane %v401_v12, 4  ;;  %v372_v16 = vadd.s32 %v371_v11, %v369_v13  ;;  %v348_v18 = vrot.slane %v347_v14, 1 }
  0xcf   :  { %v373_v19 = vrot.slane %v372_v16, 4  ;;  %v349_v20 = vadd.s32 %v348_v18, %v347_v14  ;;  %v403_v21 = vadd.s32 %v402_v15, %v401_v12 }
  0xd0   :  { %v424_v22 = vpop.xlane.xlu1 %423  ;;  %v453_v23 = vpop.xlane.xlu2 %452 }
  0xd1   :  { %v427_v25 = vcvt.f32.s32 %v424_v22  ;;  %3635 = vpush %v349_v20  ;;  %v374_v26 = vadd.s32 %v373_v19, %v372_v16  ;;  %v404_v27 = vrot.slane %v403_v21, 2  ;;  %v456_v29 = vcvt.f32.s32 %v453_v23 }
  0xd2   :  { %v455_v28 = vpop.xlane.xlu0 %454  ;;  %s4011_s0 = spop %3615 }
  0xd3   :  { %v457_v30 = vcvt.f32.s32 %v455_v28  ;;  %v430_v31 = vadd.s32 %v429_v24, %v427_v25  ;;  %p63_p0 = scmp.le.s32.totalorder %s4011_s0, 1023  ;;  %v375_v32 = vrot.slane %v374_v26, 2  ;;  %v405_v33 = vadd.s32 %v404_v27, %v403_v21 }
  0xd5   :  { %v458_v34 = vshll.u32 %v457_v30, 16  ;;  %v431_v35 = vrot.slane %v430_v31, 4  ;;  %v376_v36 = vadd.s32 %v375_v32, %v374_v26  ;;  %v406_v37 = vrot.slane %v405_v33, 1  ;;  %s65_s13 = scalar_select %p63_p0, %s4011_s0, 0 }
  0xd6   :  { %s3618_s14 = spop %3617 }
  0xd7   :  { %v459_v7 = vadd.s32 %v458_v34, %v456_v29  ;;  %v377_v38 = vrot.slane %v376_v36, 1  ;;  %v432_v8 = vadd.s32 %v431_v35, %v430_v31  ;;  %s4018_s15 = sadd.s32 %s3618_s14, %s4011_s0  ;;  %v407_v39 = vadd.s32 %v406_v37, %v405_v33 }
  0xd8   :  { %p91_p1 = scmp.le.s32.totalorder %s4018_s15, 1023 }
  0xd9   :  { %v460_v40 = vrot.slane %v459_v7, 4  ;;  %v378_v41 = vadd.s32 %v377_v38, %v376_v36  ;;  %v433_v42 = vrot.slane %v432_v8, 2  ;;  %s64_s4 = scalar_select %p63_p0, 1, 0 }
  0xda   :  { %s94_s16 = scalar_select %p91_p1, %s4018_s15, %s65_s13 }
  0xdb   :  { %3637 = vpush %v378_v41  ;;  %v434_v43 = vadd.s32 %v433_v42, %v432_v8  ;;  %v461_v44 = vadd.s32 %v460_v40, %v459_v7  ;;  %s92_s30 = scalar_select %p91_p1, 1, 0 }
  0xdc   :  { %3639 = vpush %v407_v39  ;;  %s3620_s17 = spop %3619 }
  0xdd   :  { %v435_v45 = vrot.slane %v434_v43, 1  ;;  %v462_v46 = vrot.slane %v461_v44, 2  ;;  %s4025_s18 = sadd.s32 %s3620_s17, %s4018_s15  ;;  %s3622_s19 = spop %3621 }
  0xde   :  { %p120_p2 = scmp.le.s32.totalorder %s4025_s18, 1023  ;;  %s148_s20 = sadd.s32 %s3622_s19, %s4025_s18 }
  0xdf   :  { %v436_v47 = vadd.s32 %v435_v45, %v434_v43  ;;  %v463_v48 = vadd.s32 %v462_v46, %v461_v44  ;;  %p149_p3 = scmp.le.s32.totalorder %s148_s20, 1023  ;;  %s93_s7 = sadd.s32 %s92_s30, %s64_s4 }
  0xe0   :  { %s123_s21 = scalar_select %p120_p2, %s4025_s18, %s94_s16 }
  0xe1   :  { %3641 = vpush %v436_v47  ;;  %v464_v49 = vrot.slane %v463_v48, 1  ;;  %s121_s8 = scalar_select %p120_p2, 1, 0 }
  0xe2   :  { %s3624_s22 = spop %3623 }
  0xe3   :  { %v465_v50 = vadd.s32 %v464_v49, %v463_v48  ;;  %s152_s23 = scalar_select %p149_p3, %s148_s20, %s123_s21 }
  0xe4   :  { %s177_s24 = sadd.s32 %s3624_s22, %s148_s20  ;;  %s122_s15 = sadd.s32 %s121_s8, %s93_s7 }
  0xe5   :  { %3643 = vpush %v465_v50  ;;  %p178_p4 = scmp.le.s32.totalorder %s177_s24, 1023 }
  0xe6   :  { %s150_s9 = scalar_select %p149_p3, 1, 0 }
  0xe7   :  { %s181_s25 = scalar_select %p178_p4, %s177_s24, %s152_s23 }
  0xe8   :  { %s179_s13 = scalar_select %p178_p4, 1, 0 }
  0xe9   :  { %s151_s22 = sadd.s32 %s150_s9, %s122_s15 }
  0xea   :  { %s180_s20 = sadd.s32 %s179_s13, %s151_s22 }
  0xec   :  { %s3626_s26 = spop %3625 }
  0xed   :  { %s206_s27 = sadd.s32 %s3626_s26, %s177_s24  ;;  %s3628_s28 = spop %3627 }
  0xee   :  { %p207_p5 = scmp.le.s32.totalorder %s206_s27, 1023  ;;  %s235_s29 = sadd.s32 %s3628_s28, %s206_s27 }
  0xef   :  { %p236_p6 = scmp.le.s32.totalorder %s235_s29, 1023 }
  0xf0   :  { %s210_s2 = scalar_select %p207_p5, %s206_s27, %s181_s25 }
  0xf1   :  { %s208_s14 = scalar_select %p207_p5, 1, 0 }
  0xf2   :  { %s3630_s3 = spop %3629 }
  0xf3   :  { %s239_s5 = scalar_select %p236_p6, %s235_s29, %s210_s2 }
  0xf4   :  { %s264_s6 = sadd.s32 %s3630_s3, %s235_s29  ;;  %s209_s25 = sadd.s32 %s208_s14, %s180_s20 }
  0xf5   :  { %p265_p7 = scmp.le.s32.totalorder %s264_s6, 1023 }
  0xf6   :  { %s237_s21 = scalar_select %p236_p6, 1, 0 }
  0xf7   :  { %s268_s10 = scalar_select %p265_p7, %s264_s6, %s239_s5 }
  0xf8   :  { %s238_s28 = sadd.s32 %s237_s21, %s209_s25 }
  0xf9   :  { %s266_s27 = scalar_select %p265_p7, 1, 0 }
  0xfb   :  { %s267_s29 = sadd.s32 %s266_s27, %s238_s28 }
  0xfc   :  { %s3632_s16 = spop %3631 }
  0xfd   :  { %s293_s17 = sadd.s32 %s3632_s16, %s264_s6  ;;  %s3634_s0 = spop %3633 }
  0xfe   :  { %p294_p8 = scmp.le.s32.totalorder %s293_s17, 1023  ;;  %s322_s19 = sadd.s32 %s3634_s0, %s293_s17 }
  0xff   :  { %p323_p9 = scmp.le.s32.totalorder %s322_s19, 1023 }
 0x100   :  { %s297_s18 = scalar_select %p294_p8, %s293_s17, %s268_s10 }
 0x101   :  { %s295_s30 = scalar_select %p294_p8, 1, 0 }
 0x102   :  { %s3636_s23 = spop %3635 }
 0x103   :  { %s326_s26 = scalar_select %p323_p9, %s322_s19, %s297_s18 }
 0x104   :  { %s351_s24 = sadd.s32 %s3636_s23, %s322_s19  ;;  %s296_s10 = sadd.s32 %s295_s30, %s267_s29 }
 0x105   :  { %p352_p10 = scmp.le.s32.totalorder %s351_s24, 1023 }
 0x106   :  { %s324_s3 = scalar_select %p323_p9, 1, 0 }
 0x107   :  { %s355_s2 = scalar_select %p352_p10, %s351_s24, %s326_s26 }
 0x108   :  { %s353_s4 = scalar_select %p352_p10, 1, 0 }
 0x109   :  { %s325_s14 = sadd.s32 %s324_s3, %s296_s10 }
 0x10a   :  { %s354_s0 = sadd.s32 %s353_s4, %s325_s14 }
 0x10c   :  { %s3638_s5 = spop %3637 }
 0x10d   :  { %s380_s7 = sadd.s32 %s3638_s5, %s351_s24  ;;  %s3640_s8 = spop %3639 }
 0x10e   :  { %p381_p11 = scmp.le.s32.totalorder %s380_s7, 1023  ;;  %s409_s9 = sadd.s32 %s3640_s8, %s380_s7 }
 0x10f   :  { %p410_p12 = scmp.le.s32.totalorder %s409_s9, 1023 }
 0x110   :  { %s382_s13 = scalar_select %p381_p11, 1, 0 }
 0x111   :  { %s5110_s7 = smov (!%p381_p11, %s380_s7), %s355_s2 }
 0x112   :  { %s3642_s15 = spop %3641  ;;  %s383_s21 = sadd.s32 %s382_s13, %s354_s0 }
 0x113   :  { %s411_s16 = scalar_select %p410_p12, 1, 0 }
 0x114   :  { %s413_s6 = scalar_select %p410_p12, %s409_s9, %s5110_s7 }
 0x115   :  { %s438_s17 = sadd.s32 %s3642_s15, %s409_s9  ;;  %s412_s20 = sadd.s32 %s411_s16, %s383_s21 }
 0x116   :  { %p439_p13 = scmp.le.s32.totalorder %s438_s17, 1023  ;;  %s3644_s19 = spop %3643 }
 0x117   :  { %s467_s22 = sadd.s32 %s3644_s19, %s438_s17 }
 0x118   :  { %s440_s18 = scalar_select %p439_p13, 1, 0 }
 0x119   :  { %s5112_s17 = smov (!%p439_p13, %s438_s17), %s413_s6  ;;  %p468_p0 = scmp.le.s32.totalorder %s467_s22, 1023 }
 0x11a   :  { %s441_s23 = sadd.s32 %s440_s18, %s412_s20 }
 0x11b   :  { %s469_s25 = scalar_select %p468_p0, 1, 0 }
 0x11c   :  { %s5114_s22 = smov (!%p468_p0, %s467_s22), %s5112_s17 }
 0x11d   :  { %s4056_s26 = sadd.s32 %s469_s25, %s441_s23  ;;  %s4134_s28 = ssub.s32 1023, %s5114_s22 }
 0x11e   :  { %s473_s24 = sshll.u32 %s4056_s26, 28 }
 0x11f   :  { %v480_v57 = vstv %s473_s24 }
 0x120   :  { %vm481_vm0 = vcmp.eq.s32.totalorder %v478_v53, %v480_v57  ;;  %vm482_vm1 = vcmp.eq.s32.totalorder %v479_v54, %v480_v57 }
 0x121   :  { %v4061_v58 = vsel %vm481_vm0, %v476_v55, 16  ;;  %v4063_v59 = vsel %vm482_vm1, %v477_v56, 16 }
 0x122   :  { %vm541_vm2 = vcmp.eq.s32.totalorder %v4061_v58, 2  ;;  %vm542_vm3 = vcmp.eq.s32.totalorder %v4063_v59, 2  ;;  %vm512_vm4 = vcmp.eq.s32.totalorder %v4061_v58, 1  ;;  %vm513_vm5 = vcmp.eq.s32.totalorder %v4063_v59, 1 }
 0x123   :  { %v543_v60 = vsel %vm541_vm2, 1, %v3919_v9  ;;  %v544_v61 = vsel %vm542_vm3, 1, %v3919_v9  ;;  %v514_v62 = vsel %vm512_vm4, 1, %v3919_v9  ;;  %v515_v63 = vsel %vm513_vm5, 1, %v3919_v9 }
 0x124   :  { %v545_v0 = vadd.s32 %v544_v61, %v543_v60  ;;  %v516_v1 = vadd.s32 %v515_v63, %v514_v62  ;;  %vm485_vm6 = vcmp.eq.s32.totalorder %v4061_v58, 0  ;;  %vm486_vm7 = vcmp.eq.s32.totalorder %v4063_v59, 0 }
 0x125   :  { %v487_v2 = vsel %vm485_vm6, 1, %v3919_v9  ;;  %v488_v3 = vsel %vm486_vm7, 1, %v3919_v9  ;;  %vm570_vm8 = vcmp.eq.s32.totalorder %v4061_v58, 3  ;;  %vm571_vm9 = vcmp.eq.s32.totalorder %v4063_v59, 3 }
 0x126   :  { %v547_v4 = vshrl.u32 %v545_v0, 16  ;;  %v518_v10 = vshrl.u32 %v516_v1, 16  ;;  %v489_v11 = vadd.s32 %v488_v3, %v487_v2  ;;  %v572_v12 = vsel %vm570_vm8, 1, %v3919_v9 }
 0x127   :  { %v573_v13 = vsel %vm571_vm9, 1, %v3919_v9  ;;  %vm599_vm10 = vcmp.eq.s32.totalorder %v4061_v58, 4  ;;  %vm600_vm11 = vcmp.eq.s32.totalorder %v4063_v59, 4  ;;  %v517_v20 = vand.u32 65535, %v516_v1 }
 0x128   :  { %v549_v14 = vcvt.s32.f32 %v547_v4  ;;  %v520_v15 = vcvt.s32.f32 %v518_v10  ;;  %v491_v16 = vshrl.u32 %v489_v11, 16  ;;  %v574_v17 = vadd.s32 %v573_v13, %v572_v12 }
 0x129   :  { %v601_v21 = vsel %vm599_vm10, 1, %v3919_v9  ;;  %v602_v22 = vsel %vm600_vm11, 1, %v3919_v9  ;;  %v490_v23 = vand.u32 65535, %v489_v11  ;;  %v519_v25 = vcvt.s32.f32 %v517_v20 }
 0x12a   :  { %552 = vadd.xlane.f32.xlu2 %v549_v14  ;;  %523 = vadd.xlane.f32.xlu1 %v520_v15  ;;  %v493_v18 = vcvt.s32.f32 %v491_v16  ;;  %v576_v19 = vshrl.u32 %v574_v17, 16  ;;  %v603_v26 = vadd.s32 %v602_v22, %v601_v21  ;;  %vm657_vm12 = vcmp.eq.s32.totalorder %v4061_v58, 6 }
 0x12b   :  { %v492_v27 = vcvt.s32.f32 %v490_v23  ;;  %vm658_vm13 = vcmp.eq.s32.totalorder %v4063_v59, 6  ;;  %v575_v28 = vand.u32 65535, %v574_v17  ;;  %vm628_vm14 = vcmp.eq.s32.totalorder %v4061_v58, 5 }
 0x12c   :  { %496 = vadd.xlane.f32.xlu0 %v493_v18  ;;  %v578_v24 = vcvt.s32.f32 %v576_v19  ;;  %v605_v29 = vshrl.u32 %v603_v26, 16  ;;  %vm629_vm15 = vcmp.eq.s32.totalorder %v4063_v59, 5  ;;  %v659_v30 = vsel %vm657_vm12, 1, %v3919_v9 }
 0x12d   :  { %v660_v31 = vsel %vm658_vm13, 1, %v3919_v9  ;;  %v546_v32 = vand.u32 65535, %v545_v0  ;;  %v630_v33 = vsel %vm628_vm14, 1, %v3919_v9  ;;  %v631_v34 = vsel %vm629_vm15, 1, %v3919_v9 }
 0x12e   :  { %v577_v35 = vcvt.s32.f32 %v575_v28  ;;  %v607_v36 = vcvt.s32.f32 %v605_v29  ;;  %v661_v37 = vadd.s32 %v660_v31, %v659_v30  ;;  %v632_v38 = vadd.s32 %v631_v34, %v630_v33 }
 0x12f   :  { %v548_v7 = vcvt.s32.f32 %v546_v32  ;;  %vm686_vm0 = vcmp.eq.s32.totalorder %v4061_v58, 7  ;;  %vm687_vm1 = vcmp.eq.s32.totalorder %v4063_v59, 7  ;;  %v604_v8 = vand.u32 65535, %v603_v26 }
 0x130   :  { %v663_v39 = vshrl.u32 %v661_v37, 16  ;;  %vm860_vm2 = vcmp.eq.s32.totalorder %v4061_v58, 13  ;;  %vm861_vm3 = vcmp.eq.s32.totalorder %v4063_v59, 13  ;;  %v688_v40 = vsel %vm686_vm0, 1, %v3919_v9 }
 0x131   :  { %v689_v41 = vsel %vm687_vm1, 1, %v3919_v9  ;;  %v634_v42 = vshrl.u32 %v632_v38, 16  ;;  %v862_v43 = vsel %vm860_vm2, 1, %v3919_v9  ;;  %v863_v44 = vsel %vm861_vm3, 1, %v3919_v9 }
 0x132   :  { %581 = vadd.xlane.f32.xlu2 %v578_v24  ;;  %521 = vadd.xlane.f32.xlu1 %v519_v25  ;;  %vm889_vm4 = vcmp.eq.s32.totalorder %v4061_v58, 14  ;;  %v606_v45 = vcvt.s32.f32 %v604_v8  ;;  %v4102_v46 = vadd.s32 %v863_v44, %v862_v43  ;;  %v665_v47 = vcvt.s32.f32 %v663_v39 }
 0x133   :  { %v690_v48 = vadd.s32 %v689_v41, %v688_v40  ;;  %vm890_vm5 = vcmp.eq.s32.totalorder %v4063_v59, 14  ;;  %v891_v49 = vsel %vm889_vm4, 1, %v3919_v9  ;;  %v636_v51 = vcvt.s32.f32 %v634_v42 }
 0x134   :  { %494 = vadd.xlane.f32.xlu0 %v492_v27  ;;  %v892_v50 = vsel %vm890_vm5, 1, %v3919_v9  ;;  %vm744_vm6 = vcmp.eq.s32.totalorder %v4061_v58, 9  ;;  %vm745_vm7 = vcmp.eq.s32.totalorder %v4063_v59, 9  ;;  %v662_v53 = vand.u32 65535, %v661_v37 }
 0x135   :  { %v4109_v52 = vadd.s32 %v892_v50, %v891_v49  ;;  %v692_v54 = vshrl.u32 %v690_v48, 16  ;;  %vm715_vm8 = vcmp.eq.s32.totalorder %v4061_v58, 8  ;;  %vm716_vm9 = vcmp.eq.s32.totalorder %v4063_v59, 8 }
 0x136   :  { %v746_v55 = vsel %vm744_vm6, 1, %v3919_v9  ;;  %v747_v56 = vsel %vm745_vm7, 1, %v3919_v9  ;;  %v633_v57 = vand.u32 65535, %v632_v38  ;;  %v717_v60 = vsel %vm715_vm8, 1, %v3919_v9 }
 0x137   :  { %v718_v61 = vsel %vm716_vm9, 1, %v3919_v9  ;;  %v664_v62 = vcvt.s32.f32 %v662_v53  ;;  %v694_v63 = vcvt.s32.f32 %v692_v54  ;;  %v748_v0 = vadd.s32 %v747_v56, %v746_v55 }
 0x138   :  { %v635_v1 = vcvt.s32.f32 %v633_v57  ;;  %v719_v2 = vadd.s32 %v718_v61, %v717_v60  ;;  %vm773_vm10 = vcmp.eq.s32.totalorder %v4061_v58, 10  ;;  %vm774_vm11 = vcmp.eq.s32.totalorder %v4063_v59, 10 }
 0x139   :  { %v750_v3 = vshrl.u32 %v748_v0, 16  ;;  %v691_v4 = vand.u32 65535, %v690_v48  ;;  %v775_v10 = vsel %vm773_vm10, 1, %v3919_v9  ;;  %v776_v11 = vsel %vm774_vm11, 1, %v3919_v9 }
 0x13a   :  { %579 = vadd.xlane.f32.xlu2 %v577_v35  ;;  %610 = vadd.xlane.f32.xlu1 %v607_v36  ;;  %v721_v12 = vshrl.u32 %v719_v2, 16  ;;  %v777_v15 = vadd.s32 %v776_v11, %v775_v10  ;;  %vm831_vm12 = vcmp.eq.s32.totalorder %v4061_v58, 12  ;;  %vm832_vm13 = vcmp.eq.s32.totalorder %v4063_v59, 12 }
 0x13b   :  { %v752_v13 = vcvt.s32.f32 %v750_v3  ;;  %v693_v14 = vcvt.s32.f32 %v691_v4  ;;  %v749_v17 = vand.u32 65535, %v748_v0  ;;  %vm802_vm14 = vcmp.eq.s32.totalorder %v4061_v58, 11 }
 0x13c   :  { %550 = vadd.xlane.f32.xlu0 %v548_v7  ;;  %v723_v16 = vcvt.s32.f32 %v721_v12  ;;  %v779_v18 = vshrl.u32 %v777_v15, 16  ;;  %vm803_vm15 = vcmp.eq.s32.totalorder %v4063_v59, 11  ;;  %v833_v19 = vsel %vm831_vm12, 1, %v3919_v9 }
 0x13d   :  { %v834_v20 = vsel %vm832_vm13, 1, %v3919_v9  ;;  %v720_v21 = vand.u32 65535, %v719_v2  ;;  %v804_v22 = vsel %vm802_vm14, 1, %v3919_v9  ;;  %v805_v23 = vsel %vm803_vm15, 1, %v3919_v9 }
 0x13e   :  { %v751_v24 = vcvt.s32.f32 %v749_v17  ;;  %v781_v25 = vcvt.s32.f32 %v779_v18  ;;  %v835_v26 = vadd.s32 %v834_v20, %v833_v19  ;;  %v806_v28 = vadd.s32 %v805_v23, %v804_v22 }
 0x13f   :  { %v722_v27 = vcvt.s32.f32 %v720_v21  ;;  %v778_v29 = vand.u32 65535, %v777_v15  ;;  %v866_v34 = vshrl.u32 %v4102_v46, 16  ;;  %v894_v38 = vand.u32 65535, %v4109_v52 }
 0x140   :  { %v837_v58 = vshrl.u32 %v835_v26, 16  ;;  %v808_v59 = vshrl.u32 %v806_v28, 16  ;;  %v836_v33 = vand.u32 65535, %v835_v26  ;;  %v807_v35 = vand.u32 65535, %v806_v28 }
 0x141   :  { %v780_v31 = vcvt.s32.f32 %v778_v29  ;;  %v868_v37 = vcvt.s32.f32 %v866_v34  ;;  %v865_v8 = vand.u32 65535, %v4102_v46  ;;  %v895_v39 = vshrl.u32 %v4109_v52, 16 }
 0x142   :  { %668 = vadd.xlane.f32.xlu2 %v665_v47  ;;  %608 = vadd.xlane.f32.xlu1 %v606_v45  ;;  %v839_v30 = vcvt.s32.f32 %v837_v58  ;;  %v810_v32 = vcvt.s32.f32 %v808_v59  ;;  %v838_v36 = vcvt.s32.f32 %v836_v33  ;;  %v809_v7 = vcvt.s32.f32 %v807_v35 }
 0x143   :  { %v896_v40 = vcvt.s32.f32 %v894_v38  ;;  %v867_v41 = vcvt.s32.f32 %v865_v8  ;;  %v897_v42 = vcvt.s32.f32 %v895_v39 }
 0x144   :  { %639 = vadd.xlane.f32.xlu0 %v636_v51 }
 0x14a   :  { %666 = vadd.xlane.f32.xlu2 %v664_v62  ;;  %697 = vadd.xlane.f32.xlu1 %v694_v63 }
 0x14c   :  { %637 = vadd.xlane.f32.xlu0 %v635_v1 }
 0x152   :  { %755 = vadd.xlane.f32.xlu2 %v752_v13  ;;  %695 = vadd.xlane.f32.xlu1 %v693_v14 }
 0x154   :  { %726 = vadd.xlane.f32.xlu0 %v723_v16 }
 0x15a   :  { %753 = vadd.xlane.f32.xlu2 %v751_v24  ;;  %784 = vadd.xlane.f32.xlu1 %v781_v25 }
 0x15c   :  { %724 = vadd.xlane.f32.xlu0 %v722_v27 }
 0x162   :  { %842 = vadd.xlane.f32.xlu2 %v839_v30  ;;  %782 = vadd.xlane.f32.xlu1 %v780_v31 }
 0x164   :  { %813 = vadd.xlane.f32.xlu0 %v810_v32 }
 0x16a   :  { %840 = vadd.xlane.f32.xlu2 %v838_v36  ;;  %871 = vadd.xlane.f32.xlu1 %v868_v37 }
 0x16c   :  { %811 = vadd.xlane.f32.xlu0 %v809_v7 }
 0x172   :  { %898 = vadd.xlane.f32.xlu2 %v896_v40  ;;  %869 = vadd.xlane.f32.xlu1 %v867_v41 }
 0x174   :  { %900 = vadd.xlane.f32.xlu0 %v897_v42 }
 0x19d   :  { %v553_v43 = vpop.xlane.xlu2 %552  ;;  %v524_v44 = vpop.xlane.xlu1 %523 }
 0x19e   :  { %v526_v47 = vcvt.f32.s32 %v524_v44  ;;  %v555_v61 = vcvt.f32.s32 %v553_v43 }
 0x19f   :  { %v497_v45 = vpop.xlane.xlu0 %496 }
 0x1a0   :  { %v499_v48 = vcvt.f32.s32 %v497_v45  ;;  %v527_v51 = vshll.u32 %v526_v47, 16  ;;  %v556_v12 = vshll.u32 %v555_v61, 16 }
 0x1a2   :  { %v500_v55 = vshll.u32 %v499_v48, 16 }
 0x1a5   :  { %v582_v49 = vpop.xlane.xlu2 %581  ;;  %v522_v50 = vpop.xlane.xlu1 %521 }
 0x1a6   :  { %v525_v53 = vcvt.f32.s32 %v522_v50  ;;  %v584_v52 = vcvt.f32.s32 %v582_v49 }
 0x1a7   :  { %v495_v54 = vpop.xlane.xlu0 %494 }
 0x1a8   :  { %v528_v46 = vadd.s32 %v527_v51, %v525_v53  ;;  %v498_v56 = vcvt.f32.s32 %v495_v54  ;;  %v585_v2 = vshll.u32 %v584_v52, 16 }
 0x1aa   :  { %v529_v57 = vrot.slane %v528_v46, 4  ;;  %v501_v60 = vadd.s32 %v500_v55, %v498_v56 }
 0x1ac   :  { %v502_v62 = vrot.slane %v501_v60, 4  ;;  %v530_v63 = vadd.s32 %v529_v57, %v528_v46 }
 0x1ad   :  { %v580_v0 = vpop.xlane.xlu2 %579  ;;  %v611_v1 = vpop.xlane.xlu1 %610 }
 0x1ae   :  { %v583_v3 = vcvt.f32.s32 %v580_v0  ;;  %v503_v4 = vadd.s32 %v502_v62, %v501_v60  ;;  %v531_v10 = vrot.slane %v530_v63, 2  ;;  %v613_v18 = vcvt.f32.s32 %v611_v1 }
 0x1af   :  { %v551_v11 = vpop.xlane.xlu0 %550 }
 0x1b0   :  { %v586_v13 = vadd.s32 %v585_v2, %v583_v3  ;;  %v554_v14 = vcvt.f32.s32 %v551_v11  ;;  %v504_v15 = vrot.slane %v503_v4, 2  ;;  %v532_v16 = vadd.s32 %v531_v10, %v530_v63 }
 0x1b1   :  { %v614_v28 = vshll.u32 %v613_v18, 16 }
 0x1b2   :  { %v587_v17 = vrot.slane %v586_v13, 4  ;;  %v557_v19 = vadd.s32 %v556_v12, %v554_v14  ;;  %v505_v20 = vadd.s32 %v504_v15, %v503_v4  ;;  %v533_v21 = vrot.slane %v532_v16, 1 }
 0x1b4   :  { %v558_v22 = vrot.slane %v557_v19, 4  ;;  %v506_v23 = vrot.slane %v505_v20, 1  ;;  %v588_v24 = vadd.s32 %v587_v17, %v586_v13  ;;  %v534_v27 = vadd.s32 %v533_v21, %v532_v16 }
 0x1b5   :  { %v669_v25 = vpop.xlane.xlu2 %668  ;;  %v609_v26 = vpop.xlane.xlu1 %608 }
 0x1b6   :  { %v612_v58 = vcvt.f32.s32 %v609_v26  ;;  %v507_v29 = vadd.s32 %v506_v23, %v505_v20  ;;  %v559_v59 = vadd.s32 %v558_v22, %v557_v19  ;;  %v589_v31 = vrot.slane %v588_v24, 2 }
 0x1b7   :  { %v640_v30 = vpop.xlane.xlu0 %639  ;;  %v671_v35 = vcvt.f32.s32 %v669_v25 }
 0x1b8   :  { %v615_v32 = vadd.s32 %v614_v28, %v612_v58  ;;  %3645 = vpush %v507_v29  ;;  %v560_v33 = vrot.slane %v559_v59, 2  ;;  %v590_v34 = vadd.s32 %v589_v31, %v588_v24  ;;  %v642_v38 = vcvt.f32.s32 %v640_v30 }
 0x1b9   :  { %3647 = vpush %v534_v27  ;;  %v672_v43 = vshll.u32 %v671_v35, 16 }
 0x1ba   :  { %v616_v36 = vrot.slane %v615_v32, 4  ;;  %v561_v37 = vadd.s32 %v560_v33, %v559_v59  ;;  %v591_v7 = vrot.slane %v590_v34, 1  ;;  %v643_v49 = vshll.u32 %v642_v38, 16 }
 0x1bc   :  { %v562_v8 = vrot.slane %v561_v37, 1  ;;  %v617_v39 = vadd.s32 %v616_v36, %v615_v32  ;;  %v592_v42 = vadd.s32 %v591_v7, %v590_v34 }
 0x1bd   :  { %v667_v40 = vpop.xlane.xlu2 %666  ;;  %v698_v41 = vpop.xlane.xlu1 %697 }
 0x1be   :  { %v670_v44 = vcvt.f32.s32 %v667_v40  ;;  %v563_v45 = vadd.s32 %v562_v8, %v561_v37  ;;  %v618_v47 = vrot.slane %v617_v39, 2  ;;  %v700_v55 = vcvt.f32.s32 %v698_v41 }
 0x1bf   :  { %v638_v48 = vpop.xlane.xlu0 %637 }
 0x1c0   :  { %v673_v50 = vadd.s32 %v672_v43, %v670_v44  ;;  %v641_v51 = vcvt.f32.s32 %v638_v48  ;;  %3649 = vpush %v563_v45  ;;  %v619_v53 = vadd.s32 %v618_v47, %v617_v39  ;;  %v701_v63 = vshll.u32 %v700_v55, 16 }
 0x1c1   :  { %3651 = vpush %v592_v42 }
 0x1c2   :  { %v674_v54 = vrot.slane %v673_v50, 4  ;;  %v644_v46 = vadd.s32 %v643_v49, %v641_v51  ;;  %v620_v56 = vrot.slane %v619_v53, 1 }
 0x1c4   :  { %v645_v52 = vrot.slane %v644_v46, 4  ;;  %v621_v57 = vadd.s32 %v620_v56, %v619_v53  ;;  %v675_v60 = vadd.s32 %v674_v54, %v673_v50 }
 0x1c5   :  { %v756_v61 = vpop.xlane.xlu2 %755  ;;  %v696_v62 = vpop.xlane.xlu1 %695 }
 0x1c6   :  { %v699_v0 = vcvt.f32.s32 %v696_v62  ;;  %3653 = vpush %v621_v57  ;;  %v646_v1 = vadd.s32 %v645_v52, %v644_v46  ;;  %v676_v2 = vrot.slane %v675_v60, 2  ;;  %v758_v12 = vcvt.f32.s32 %v756_v61 }
 0x1c7   :  { %v727_v3 = vpop.xlane.xlu0 %726 }
 0x1c8   :  { %v702_v4 = vadd.s32 %v701_v63, %v699_v0  ;;  %v647_v10 = vrot.slane %v646_v1, 2  ;;  %v677_v11 = vadd.s32 %v676_v2, %v675_v60  ;;  %v729_v16 = vcvt.f32.s32 %v727_v3 }
 0x1c9   :  { %v759_v22 = vshll.u32 %v758_v12, 16 }
 0x1ca   :  { %v703_v13 = vrot.slane %v702_v4, 4  ;;  %v648_v14 = vadd.s32 %v647_v10, %v646_v1  ;;  %v678_v15 = vrot.slane %v677_v11, 1  ;;  %v730_v27 = vshll.u32 %v729_v16, 16 }
 0x1cc   :  { %v649_v17 = vrot.slane %v648_v14, 1  ;;  %v704_v18 = vadd.s32 %v703_v13, %v702_v4  ;;  %v679_v21 = vadd.s32 %v678_v15, %v677_v11 }
 0x1cd   :  { %v754_v19 = vpop.xlane.xlu2 %753  ;;  %v785_v20 = vpop.xlane.xlu1 %784 }
 0x1ce   :  { %v757_v23 = vcvt.f32.s32 %v754_v19  ;;  %v650_v24 = vadd.s32 %v649_v17, %v648_v14  ;;  %v705_v25 = vrot.slane %v704_v18, 2  ;;  %v787_v30 = vcvt.f32.s32 %v785_v20 }
 0x1cf   :  { %v725_v26 = vpop.xlane.xlu0 %724 }
 0x1d0   :  { %v760_v28 = vadd.s32 %v759_v22, %v757_v23  ;;  %v728_v58 = vcvt.f32.s32 %v725_v26  ;;  %3655 = vpush %v650_v24  ;;  %v706_v29 = vadd.s32 %v705_v25, %v704_v18  ;;  %v788_v7 = vshll.u32 %v787_v30, 16 }
 0x1d1   :  { %3657 = vpush %v679_v21 }
 0x1d2   :  { %v761_v59 = vrot.slane %v760_v28, 4  ;;  %v731_v31 = vadd.s32 %v730_v27, %v728_v58  ;;  %v707_v32 = vrot.slane %v706_v29, 1 }
 0x1d4   :  { %v732_v33 = vrot.slane %v731_v31, 4  ;;  %v708_v34 = vadd.s32 %v707_v32, %v706_v29  ;;  %v762_v35 = vadd.s32 %v761_v59, %v760_v28 }
 0x1d5   :  { %v843_v36 = vpop.xlane.xlu2 %842  ;;  %v783_v37 = vpop.xlane.xlu1 %782 }
 0x1d6   :  { %v786_v38 = vcvt.f32.s32 %v783_v37  ;;  %3659 = vpush %v708_v34  ;;  %v733_v8 = vadd.s32 %v732_v33, %v731_v31  ;;  %v763_v39 = vrot.slane %v762_v35, 2  ;;  %v845_v44 = vcvt.f32.s32 %v843_v36 }
 0x1d7   :  { %v814_v40 = vpop.xlane.xlu0 %813 }
 0x1d8   :  { %v789_v41 = vadd.s32 %v788_v7, %v786_v38  ;;  %v734_v42 = vrot.slane %v733_v8, 2  ;;  %v764_v43 = vadd.s32 %v763_v39, %v762_v35  ;;  %v816_v49 = vcvt.f32.s32 %v814_v40 }
 0x1d9   :  { %v846_v46 = vshll.u32 %v845_v44, 16  ;;  %v921_v40 = vshra.s32 %v3937_v5, 20 }
 0x1da   :  { %v790_v45 = vrot.slane %v789_v41, 4  ;;  %v735_v47 = vadd.s32 %v734_v42, %v733_v8  ;;  %v765_v48 = vrot.slane %v764_v43, 1  ;;  %v817_v61 = vshll.u32 %v816_v49, 16 }
 0x1db   :  { %v925_v42 = vand.u32 4278190080, %v3937_v5  ;;  %v923_v44 = vand.u32 15, %v921_v40 }
 0x1dc   :  { %v736_v50 = vrot.slane %v735_v47, 1  ;;  %v791_v51 = vadd.s32 %v790_v45, %v789_v41  ;;  %v766_v55 = vadd.s32 %v765_v48, %v764_v43  ;;  %v922_v41 = vshra.s32 %v3939_v6, 20 }
 0x1dd   :  { %v841_v53 = vpop.xlane.xlu2 %840  ;;  %v872_v54 = vpop.xlane.xlu1 %871  ;;  %v926_v43 = vand.u32 4278190080, %v3939_v6 }
 0x1de   :  { %v844_v56 = vcvt.f32.s32 %v841_v53  ;;  %v737_v52 = vadd.s32 %v736_v50, %v735_v47  ;;  %v792_v57 = vrot.slane %v791_v51, 2  ;;  %v874_v2 = vcvt.f32.s32 %v872_v54 }
 0x1df   :  { %v812_v60 = vpop.xlane.xlu0 %811  ;;  %v924_v45 = vand.u32 15, %v922_v41 }
 0x1e0   :  { %v847_v62 = vadd.s32 %v846_v46, %v844_v56  ;;  %v815_v63 = vcvt.f32.s32 %v812_v60  ;;  %3661 = vpush %v737_v52  ;;  %v793_v0 = vadd.s32 %v792_v57, %v791_v51  ;;  %v875_v14 = vshll.u32 %v874_v2, 16 }
 0x1e1   :  { %3663 = vpush %v766_v55 }
 0x1e2   :  { %v848_v1 = vrot.slane %v847_v62, 4  ;;  %v818_v3 = vadd.s32 %v817_v61, %v815_v63  ;;  %v794_v4 = vrot.slane %v793_v0, 1 }
 0x1e4   :  { %v819_v10 = vrot.slane %v818_v3, 4  ;;  %v795_v11 = vadd.s32 %v794_v4, %v793_v0  ;;  %v849_v12 = vadd.s32 %v848_v1, %v847_v62 }
 0x1e5   :  { %v870_v13 = vpop.xlane.xlu1 %869  ;;  %v899_v15 = vpop.xlane.xlu2 %898 }
 0x1e6   :  { %v873_v16 = vcvt.f32.s32 %v870_v13  ;;  %3665 = vpush %v795_v11  ;;  %v820_v17 = vadd.s32 %v819_v10, %v818_v3  ;;  %v850_v18 = vrot.slane %v849_v12, 2  ;;  %v902_v24 = vcvt.f32.s32 %v899_v15 }
 0x1e7   :  { %v901_v19 = vpop.xlane.xlu0 %900 }
 0x1e8   :  { %v876_v20 = vadd.s32 %v875_v14, %v873_v16  ;;  %v903_v21 = vcvt.f32.s32 %v901_v19  ;;  %v821_v22 = vrot.slane %v820_v17, 2  ;;  %v851_v23 = vadd.s32 %v850_v18, %v849_v12 }
 0x1e9   :  { %s4136_s27 = spop %3645 }
 0x1ea   :  { %v877_v25 = vrot.slane %v876_v20, 4  ;;  %v904_v26 = vshll.u32 %v903_v21, 16  ;;  %p509_p1 = scmp.le.s32.totalorder %s4136_s27, %s4134_s28  ;;  %s3648_s30 = spop %3647  ;;  %v822_v27 = vadd.s32 %v821_v22, %v820_v17  ;;  %v852_v28 = vrot.slane %v851_v23, 1 }
 0x1eb   :  { %s4141_s2 = sadd.s32 %s3648_s30, %s4136_s27 }
 0x1ec   :  { %v905_v58 = vadd.s32 %v904_v26, %v902_v24  ;;  %v823_v29 = vrot.slane %v822_v27, 1  ;;  %v878_v59 = vadd.s32 %v877_v25, %v876_v20  ;;  %s511_s3 = scalar_select %p509_p1, %s4136_s27, 0  ;;  %v853_v30 = vadd.s32 %v852_v28, %v851_v23 }
 0x1ed   :  { %p537_p2 = scmp.le.s32.totalorder %s4141_s2, %s4134_s28 }
 0x1ee   :  { %v906_v31 = vrot.slane %v905_v58, 4  ;;  %v824_v32 = vadd.s32 %v823_v29, %v822_v27  ;;  %v879_v33 = vrot.slane %v878_v59, 2  ;;  %s510_s16 = scalar_select %p509_p1, 1, 0 }
 0x1ef   :  { %s540_s4 = scalar_select %p537_p2, %s4141_s2, %s511_s3 }
 0x1f0   :  { %3667 = vpush %v824_v32  ;;  %v880_v34 = vadd.s32 %v879_v33, %v878_v59  ;;  %v907_v35 = vadd.s32 %v906_v31, %v905_v58  ;;  %s538_s21 = scalar_select %p537_p2, 1, 0 }
 0x1f1   :  { %3669 = vpush %v853_v30  ;;  %s3650_s29 = spop %3649 }
 0x1f2   :  { %v881_v36 = vrot.slane %v880_v34, 1  ;;  %v908_v37 = vrot.slane %v907_v35, 2  ;;  %s4154_s5 = sadd.s32 %s3650_s29, %s4141_s2  ;;  %s3652_s7 = spop %3651 }
 0x1f3   :  { %p566_p3 = scmp.le.s32.totalorder %s4154_s5, %s4134_s28  ;;  %s594_s8 = sadd.s32 %s3652_s7, %s4154_s5 }
 0x1f4   :  { %v882_v7 = vadd.s32 %v881_v36, %v880_v34  ;;  %v909_v38 = vadd.s32 %v908_v37, %v907_v35  ;;  %p595_p4 = scmp.le.s32.totalorder %s594_s8, %s4134_s28  ;;  %s539_s25 = sadd.s32 %s538_s21, %s510_s16 }
 0x1f5   :  { %s569_s9 = scalar_select %p566_p3, %s4154_s5, %s540_s4 }
 0x1f6   :  { %3671 = vpush %v882_v7  ;;  %v910_v8 = vrot.slane %v909_v38, 1  ;;  %s567_s27 = scalar_select %p566_p3, 1, 0 }
 0x1f7   :  { %s3654_s10 = spop %3653 }
 0x1f8   :  { %v911_v39 = vadd.s32 %v910_v8, %v909_v38  ;;  %s598_s13 = scalar_select %p595_p4, %s594_s8, %s569_s9 }
 0x1f9   :  { %s623_s14 = sadd.s32 %s3654_s10, %s594_s8  ;;  %s568_s29 = sadd.s32 %s567_s27, %s539_s25 }
 0x1fa   :  { %3673 = vpush %v911_v39  ;;  %p624_p5 = scmp.le.s32.totalorder %s623_s14, %s4134_s28 }
 0x1fb   :  { %s596_s30 = scalar_select %p595_p4, 1, 0 }
 0x1fc   :  { %s627_s15 = scalar_select %p624_p5, %s623_s14, %s598_s13 }
 0x1fd   :  { %s625_s3 = scalar_select %p624_p5, 1, 0 }
 0x201   :  { %s3656_s6 = spop %3655 }
 0x202   :  { %s652_s0 = sadd.s32 %s3656_s6, %s623_s14  ;;  %s3658_s17 = spop %3657 }
 0x203   :  { %p653_p6 = scmp.le.s32.totalorder %s652_s0, %s4134_s28  ;;  %s681_s19 = sadd.s32 %s3658_s17, %s652_s0 }
 0x204   :  { %p682_p7 = scmp.le.s32.totalorder %s681_s19, %s4134_s28 }
 0x205   :  { %s656_s22 = scalar_select %p653_p6, %s652_s0, %s627_s15 }
 0x206   :  { %s654_s4 = scalar_select %p653_p6, 1, 0 }
 0x207   :  { %s3660_s18 = spop %3659  ;;  %s597_s15 = sadd.s32 %s596_s30, %s568_s29 }
 0x208   :  { %s685_s20 = scalar_select %p682_p7, %s681_s19, %s656_s22 }
 0x209   :  { %s710_s23 = sadd.s32 %s3660_s18, %s681_s19  ;;  %s626_s16 = sadd.s32 %s625_s3, %s597_s15 }
 0x20a   :  { %p711_p8 = scmp.le.s32.totalorder %s710_s23, %s4134_s28  ;;  %s655_s6 = sadd.s32 %s654_s4, %s626_s16 }
 0x20b   :  { %s683_s5 = scalar_select %p682_p7, 1, 0 }
 0x20c   :  { %s714_s2 = scalar_select %p711_p8, %s710_s23, %s685_s20 }
 0x20d   :  { %s684_s21 = sadd.s32 %s683_s5, %s655_s6 }
 0x20e   :  { %s712_s22 = scalar_select %p711_p8, 1, 0 }
 0x210   :  { %s713_s27 = sadd.s32 %s712_s22, %s684_s21 }
 0x211   :  { %s3662_s7 = spop %3661 }
 0x212   :  { %s739_s9 = sadd.s32 %s3662_s7, %s710_s23  ;;  %s3664_s10 = spop %3663 }
 0x213   :  { %p740_p9 = scmp.le.s32.totalorder %s739_s9, %s4134_s28  ;;  %s768_s13 = sadd.s32 %s3664_s10, %s739_s9 }
 0x214   :  { %p769_p10 = scmp.le.s32.totalorder %s768_s13, %s4134_s28 }
 0x215   :  { %s743_s8 = scalar_select %p740_p9, %s739_s9, %s714_s2 }
 0x216   :  { %s741_s18 = scalar_select %p740_p9, 1, 0 }
 0x217   :  { %s3666_s14 = spop %3665 }
 0x218   :  { %s772_s0 = scalar_select %p769_p10, %s768_s13, %s743_s8 }
 0x219   :  { %s797_s17 = sadd.s32 %s3666_s14, %s768_s13  ;;  %s742_s4 = sadd.s32 %s741_s18, %s713_s27 }
 0x21a   :  { %p798_p11 = scmp.le.s32.totalorder %s797_s17, %s4134_s28 }
 0x21b   :  { %s770_s19 = scalar_select %p769_p10, 1, 0 }
 0x21c   :  { %s801_s20 = scalar_select %p798_p11, %s797_s17, %s772_s0 }
 0x21d   :  { %s799_s25 = scalar_select %p798_p11, 1, 0 }
 0x21e   :  { %s771_s10 = sadd.s32 %s770_s19, %s742_s4 }
 0x21f   :  { %s800_s5 = sadd.s32 %s799_s25, %s771_s10 }
 0x221   :  { %s3668_s30 = spop %3667 }
 0x222   :  { %s826_s2 = sadd.s32 %s3668_s30, %s797_s17  ;;  %s3670_s3 = spop %3669 }
 0x223   :  { %p827_p12 = scmp.le.s32.totalorder %s826_s2, %s4134_s28  ;;  %s855_s29 = sadd.s32 %s3670_s3, %s826_s2 }
 0x224   :  { %p856_p13 = scmp.le.s32.totalorder %s855_s29, %s4134_s28 }
 0x225   :  { %s828_s7 = scalar_select %p827_p12, 1, 0 }
 0x226   :  { %s5116_s2 = smov (!%p827_p12, %s826_s2), %s801_s20 }
 0x227   :  { %s3672_s23 = spop %3671  ;;  %s829_s16 = sadd.s32 %s828_s7, %s800_s5 }
 0x228   :  { %s857_s13 = scalar_select %p856_p13, 1, 0 }
 0x229   :  { %s859_s9 = scalar_select %p856_p13, %s855_s29, %s5116_s2 }
 0x22a   :  { %s884_s15 = sadd.s32 %s3672_s23, %s855_s29  ;;  %s858_s0 = sadd.s32 %s857_s13, %s829_s16 }
 0x22b   :  { %p885_p0 = scmp.le.s32.totalorder %s884_s15, %s4134_s28  ;;  %s3674_s8 = spop %3673 }
 0x22c   :  { %s913_s14 = sadd.s32 %s3674_s8, %s884_s15 }
 0x22d   :  { %s886_s6 = scalar_select %p885_p0, 1, 0 }
 0x22e   :  { %s5118_s15 = smov (!%p885_p0, %s884_s15), %s859_s9  ;;  %p914_p1 = scmp.le.s32.totalorder %s913_s14, %s4134_s28 }
 0x22f   :  { %s887_s17 = sadd.s32 %s886_s6, %s858_s0 }
 0x230   :  { %s915_s21 = scalar_select %p914_p1, 1, 0 }
 0x231   :  { %s5120_s14 = smov (!%p914_p1, %s913_s14), %s5118_s15 }
 0x232   :  { %s916_s22 = sadd.s32 %s915_s21, %s887_s17  ;;  %s4293_s26 = ssub.s32 %s4134_s28, %s5120_s14 }
 0x233   :  { %s919_s18 = sshll.u32 %s916_s22, 24 }
 0x234   :  { %s4216_s20 = sor.u32 %s919_s18, %s473_s24 }
 0x235   :  { %v927_v47 = vstv %s4216_s20 }
 0x236   :  { %vm928_vm0 = vcmp.eq.s32.totalorder %v925_v42, %v927_v47  ;;  %vm929_vm1 = vcmp.eq.s32.totalorder %v926_v43, %v927_v47 }
 0x237   :  { %v4219_v48 = vsel %vm928_vm0, %v923_v44, 16  ;;  %v4221_v49 = vsel %vm929_vm1, %v924_v45, 16 }
 0x238   :  { %vm988_vm2 = vcmp.eq.s32.totalorder %v4219_v48, 2  ;;  %vm989_vm3 = vcmp.eq.s32.totalorder %v4221_v49, 2  ;;  %vm959_vm4 = vcmp.eq.s32.totalorder %v4219_v48, 1  ;;  %vm960_vm5 = vcmp.eq.s32.totalorder %v4221_v49, 1 }
 0x239   :  { %v990_v50 = vsel %vm988_vm2, 1, %v3919_v9  ;;  %v991_v51 = vsel %vm989_vm3, 1, %v3919_v9  ;;  %v961_v53 = vsel %vm959_vm4, 1, %v3919_v9  ;;  %v962_v54 = vsel %vm960_vm5, 1, %v3919_v9 }
 0x23a   :  { %v992_v55 = vadd.s32 %v991_v51, %v990_v50  ;;  %v963_v46 = vadd.s32 %v962_v54, %v961_v53  ;;  %vm932_vm6 = vcmp.eq.s32.totalorder %v4219_v48, 0  ;;  %vm933_vm7 = vcmp.eq.s32.totalorder %v4221_v49, 0 }
 0x23b   :  { %v934_v56 = vsel %vm932_vm6, 1, %v3919_v9  ;;  %v935_v52 = vsel %vm933_vm7, 1, %v3919_v9  ;;  %vm1017_vm8 = vcmp.eq.s32.totalorder %v4219_v48, 3  ;;  %vm1018_vm9 = vcmp.eq.s32.totalorder %v4221_v49, 3 }
 0x23c   :  { %v994_v57 = vshrl.u32 %v992_v55, 16  ;;  %v965_v60 = vshrl.u32 %v963_v46, 16  ;;  %v936_v61 = vadd.s32 %v935_v52, %v934_v56  ;;  %v1019_v62 = vsel %vm1017_vm8, 1, %v3919_v9 }
 0x23d   :  { %v1020_v63 = vsel %vm1018_vm9, 1, %v3919_v9  ;;  %vm1046_vm10 = vcmp.eq.s32.totalorder %v4219_v48, 4  ;;  %vm1047_vm11 = vcmp.eq.s32.totalorder %v4221_v49, 4  ;;  %v964_v11 = vand.u32 65535, %v963_v46 }
 0x23e   :  { %v996_v0 = vcvt.s32.f32 %v994_v57  ;;  %v967_v1 = vcvt.s32.f32 %v965_v60  ;;  %v938_v2 = vshrl.u32 %v936_v61, 16  ;;  %v1021_v3 = vadd.s32 %v1020_v63, %v1019_v62 }
 0x23f   :  { %v1048_v12 = vsel %vm1046_vm10, 1, %v3919_v9  ;;  %v1049_v13 = vsel %vm1047_vm11, 1, %v3919_v9  ;;  %v937_v14 = vand.u32 65535, %v936_v61  ;;  %v966_v16 = vcvt.s32.f32 %v964_v11 }
 0x240   :  { %999 = vadd.xlane.f32.xlu2 %v996_v0  ;;  %970 = vadd.xlane.f32.xlu1 %v967_v1  ;;  %v940_v4 = vcvt.s32.f32 %v938_v2  ;;  %v1023_v10 = vshrl.u32 %v1021_v3, 16  ;;  %v1050_v17 = vadd.s32 %v1049_v13, %v1048_v12  ;;  %vm1104_vm12 = vcmp.eq.s32.totalorder %v4219_v48, 6 }
 0x241   :  { %v939_v18 = vcvt.s32.f32 %v937_v14  ;;  %vm1105_vm13 = vcmp.eq.s32.totalorder %v4221_v49, 6  ;;  %v1022_v19 = vand.u32 65535, %v1021_v3  ;;  %vm1075_vm14 = vcmp.eq.s32.totalorder %v4219_v48, 5 }
 0x242   :  { %943 = vadd.xlane.f32.xlu0 %v940_v4  ;;  %v1025_v15 = vcvt.s32.f32 %v1023_v10  ;;  %v1052_v20 = vshrl.u32 %v1050_v17, 16  ;;  %vm1076_vm15 = vcmp.eq.s32.totalorder %v4221_v49, 5  ;;  %v1106_v21 = vsel %vm1104_vm12, 1, %v3919_v9 }
 0x243   :  { %v1107_v22 = vsel %vm1105_vm13, 1, %v3919_v9  ;;  %v993_v23 = vand.u32 65535, %v992_v55  ;;  %v1077_v24 = vsel %vm1075_vm14, 1, %v3919_v9  ;;  %v1078_v25 = vsel %vm1076_vm15, 1, %v3919_v9 }
 0x244   :  { %v1024_v26 = vcvt.s32.f32 %v1022_v19  ;;  %v1054_v27 = vcvt.s32.f32 %v1052_v20  ;;  %v1108_v28 = vadd.s32 %v1107_v22, %v1106_v21  ;;  %v1079_v29 = vadd.s32 %v1078_v25, %v1077_v24 }
 0x245   :  { %v995_v58 = vcvt.s32.f32 %v993_v23  ;;  %vm1133_vm0 = vcmp.eq.s32.totalorder %v4219_v48, 7  ;;  %vm1134_vm1 = vcmp.eq.s32.totalorder %v4221_v49, 7  ;;  %v1051_v59 = vand.u32 65535, %v1050_v17 }
 0x246   :  { %v1110_v30 = vshrl.u32 %v1108_v28, 16  ;;  %vm1307_vm2 = vcmp.eq.s32.totalorder %v4219_v48, 13  ;;  %vm1308_vm3 = vcmp.eq.s32.totalorder %v4221_v49, 13  ;;  %v1135_v31 = vsel %vm1133_vm0, 1, %v3919_v9 }
 0x247   :  { %v1136_v32 = vsel %vm1134_vm1, 1, %v3919_v9  ;;  %v1081_v33 = vshrl.u32 %v1079_v29, 16  ;;  %v1309_v34 = vsel %vm1307_vm2, 1, %v3919_v9  ;;  %v1310_v35 = vsel %vm1308_vm3, 1, %v3919_v9 }
 0x248   :  { %1028 = vadd.xlane.f32.xlu2 %v1025_v15  ;;  %968 = vadd.xlane.f32.xlu1 %v966_v16  ;;  %vm1336_vm4 = vcmp.eq.s32.totalorder %v4219_v48, 14  ;;  %v1053_v36 = vcvt.s32.f32 %v1051_v59  ;;  %v4260_v37 = vadd.s32 %v1310_v35, %v1309_v34  ;;  %v1112_v7 = vcvt.s32.f32 %v1110_v30 }
 0x249   :  { %v1137_v38 = vadd.s32 %v1136_v32, %v1135_v31  ;;  %vm1337_vm5 = vcmp.eq.s32.totalorder %v4221_v49, 14  ;;  %v1338_v8 = vsel %vm1336_vm4, 1, %v3919_v9  ;;  %v1083_v40 = vcvt.s32.f32 %v1081_v33 }
 0x24a   :  { %941 = vadd.xlane.f32.xlu0 %v939_v18  ;;  %v1339_v39 = vsel %vm1337_vm5, 1, %v3919_v9  ;;  %vm1191_vm6 = vcmp.eq.s32.totalorder %v4219_v48, 9  ;;  %vm1192_vm7 = vcmp.eq.s32.totalorder %v4221_v49, 9  ;;  %v1109_v42 = vand.u32 65535, %v1108_v28 }
 0x24b   :  { %v4267_v41 = vadd.s32 %v1339_v39, %v1338_v8  ;;  %v1139_v43 = vshrl.u32 %v1137_v38, 16  ;;  %vm1162_vm8 = vcmp.eq.s32.totalorder %v4219_v48, 8  ;;  %vm1163_vm9 = vcmp.eq.s32.totalorder %v4221_v49, 8 }
 0x24c   :  { %v1193_v44 = vsel %vm1191_vm6, 1, %v3919_v9  ;;  %v1194_v45 = vsel %vm1192_vm7, 1, %v3919_v9  ;;  %v1080_v47 = vand.u32 65535, %v1079_v29  ;;  %v1164_v50 = vsel %vm1162_vm8, 1, %v3919_v9 }
 0x24d   :  { %v1165_v51 = vsel %vm1163_vm9, 1, %v3919_v9  ;;  %v1111_v53 = vcvt.s32.f32 %v1109_v42  ;;  %v1141_v54 = vcvt.s32.f32 %v1139_v43  ;;  %v1195_v55 = vadd.s32 %v1194_v45, %v1193_v44 }
 0x24e   :  { %v1082_v46 = vcvt.s32.f32 %v1080_v47  ;;  %v1166_v56 = vadd.s32 %v1165_v51, %v1164_v50  ;;  %vm1220_vm10 = vcmp.eq.s32.totalorder %v4219_v48, 10  ;;  %vm1221_vm11 = vcmp.eq.s32.totalorder %v4221_v49, 10 }
 0x24f   :  { %v1197_v52 = vshrl.u32 %v1195_v55, 16  ;;  %v1138_v57 = vand.u32 65535, %v1137_v38  ;;  %v1222_v60 = vsel %vm1220_vm10, 1, %v3919_v9  ;;  %v1223_v61 = vsel %vm1221_vm11, 1, %v3919_v9 }
 0x250   :  { %1026 = vadd.xlane.f32.xlu2 %v1024_v26  ;;  %1057 = vadd.xlane.f32.xlu1 %v1054_v27  ;;  %v1168_v62 = vshrl.u32 %v1166_v56, 16  ;;  %v1224_v1 = vadd.s32 %v1223_v61, %v1222_v60  ;;  %vm1278_vm12 = vcmp.eq.s32.totalorder %v4219_v48, 12  ;;  %vm1279_vm13 = vcmp.eq.s32.totalorder %v4221_v49, 12 }
 0x251   :  { %v1199_v63 = vcvt.s32.f32 %v1197_v52  ;;  %v1140_v0 = vcvt.s32.f32 %v1138_v57  ;;  %v1196_v3 = vand.u32 65535, %v1195_v55  ;;  %vm1249_vm14 = vcmp.eq.s32.totalorder %v4219_v48, 11 }
 0x252   :  { %997 = vadd.xlane.f32.xlu0 %v995_v58  ;;  %v1170_v2 = vcvt.s32.f32 %v1168_v62  ;;  %v1226_v4 = vshrl.u32 %v1224_v1, 16  ;;  %vm1250_vm15 = vcmp.eq.s32.totalorder %v4221_v49, 11  ;;  %v1280_v10 = vsel %vm1278_vm12, 1, %v3919_v9 }
 0x253   :  { %v1281_v11 = vsel %vm1279_vm13, 1, %v3919_v9  ;;  %v1167_v12 = vand.u32 65535, %v1166_v56  ;;  %v1251_v13 = vsel %vm1249_vm14, 1, %v3919_v9  ;;  %v1252_v14 = vsel %vm1250_vm15, 1, %v3919_v9 }
 0x254   :  { %v1198_v15 = vcvt.s32.f32 %v1196_v3  ;;  %v1228_v16 = vcvt.s32.f32 %v1226_v4  ;;  %v1282_v17 = vadd.s32 %v1281_v11, %v1280_v10  ;;  %v1253_v19 = vadd.s32 %v1252_v14, %v1251_v13 }
 0x255   :  { %v1169_v18 = vcvt.s32.f32 %v1167_v12  ;;  %v1225_v20 = vand.u32 65535, %v1224_v1  ;;  %v1313_v25 = vshrl.u32 %v4260_v37, 16  ;;  %v1341_v29 = vand.u32 65535, %v4267_v41 }
 0x256   :  { %v1284_v48 = vshrl.u32 %v1282_v17, 16  ;;  %v1255_v49 = vshrl.u32 %v1253_v19, 16  ;;  %v1283_v24 = vand.u32 65535, %v1282_v17  ;;  %v1254_v26 = vand.u32 65535, %v1253_v19 }
 0x257   :  { %v1227_v22 = vcvt.s32.f32 %v1225_v20  ;;  %v1315_v28 = vcvt.s32.f32 %v1313_v25  ;;  %v1312_v59 = vand.u32 65535, %v4260_v37  ;;  %v1342_v30 = vshrl.u32 %v4267_v41, 16 }
 0x258   :  { %1115 = vadd.xlane.f32.xlu2 %v1112_v7  ;;  %1055 = vadd.xlane.f32.xlu1 %v1053_v36  ;;  %v1286_v21 = vcvt.s32.f32 %v1284_v48  ;;  %v1257_v23 = vcvt.s32.f32 %v1255_v49  ;;  %v1285_v27 = vcvt.s32.f32 %v1283_v24  ;;  %v1256_v58 = vcvt.s32.f32 %v1254_v26 }
 0x259   :  { %v1343_v31 = vcvt.s32.f32 %v1341_v29  ;;  %v1314_v32 = vcvt.s32.f32 %v1312_v59  ;;  %v1344_v33 = vcvt.s32.f32 %v1342_v30 }
 0x25a   :  { %1086 = vadd.xlane.f32.xlu0 %v1083_v40 }
 0x260   :  { %1113 = vadd.xlane.f32.xlu2 %v1111_v53  ;;  %1144 = vadd.xlane.f32.xlu1 %v1141_v54 }
 0x262   :  { %1084 = vadd.xlane.f32.xlu0 %v1082_v46 }
 0x268   :  { %1202 = vadd.xlane.f32.xlu2 %v1199_v63  ;;  %1142 = vadd.xlane.f32.xlu1 %v1140_v0 }
 0x26a   :  { %1173 = vadd.xlane.f32.xlu0 %v1170_v2 }
 0x270   :  { %1200 = vadd.xlane.f32.xlu2 %v1198_v15  ;;  %1231 = vadd.xlane.f32.xlu1 %v1228_v16 }
 0x272   :  { %1171 = vadd.xlane.f32.xlu0 %v1169_v18 }
 0x278   :  { %1289 = vadd.xlane.f32.xlu2 %v1286_v21  ;;  %1229 = vadd.xlane.f32.xlu1 %v1227_v22 }
 0x27a   :  { %1260 = vadd.xlane.f32.xlu0 %v1257_v23 }
 0x280   :  { %1287 = vadd.xlane.f32.xlu2 %v1285_v27  ;;  %1318 = vadd.xlane.f32.xlu1 %v1315_v28 }
 0x282   :  { %1258 = vadd.xlane.f32.xlu0 %v1256_v58 }
 0x288   :  { %1345 = vadd.xlane.f32.xlu2 %v1343_v31  ;;  %1316 = vadd.xlane.f32.xlu1 %v1314_v32 }
 0x28a   :  { %1347 = vadd.xlane.f32.xlu0 %v1344_v33 }
 0x2b3   :  { %v1000_v34 = vpop.xlane.xlu2 %999  ;;  %v971_v35 = vpop.xlane.xlu1 %970 }
 0x2b4   :  { %v973_v7 = vcvt.f32.s32 %v971_v35  ;;  %v1002_v51 = vcvt.f32.s32 %v1000_v34 }
 0x2b5   :  { %v944_v36 = vpop.xlane.xlu0 %943 }
 0x2b6   :  { %v946_v38 = vcvt.f32.s32 %v944_v36  ;;  %v974_v40 = vshll.u32 %v973_v7, 16  ;;  %v1003_v62 = vshll.u32 %v1002_v51, 16 }
 0x2b8   :  { %v947_v44 = vshll.u32 %v946_v38, 16 }
 0x2bb   :  { %v1029_v8 = vpop.xlane.xlu2 %1028  ;;  %v969_v39 = vpop.xlane.xlu1 %968 }
 0x2bc   :  { %v972_v42 = vcvt.f32.s32 %v969_v39  ;;  %v1031_v41 = vcvt.f32.s32 %v1029_v8 }
 0x2bd   :  { %v942_v43 = vpop.xlane.xlu0 %941 }
 0x2be   :  { %v975_v37 = vadd.s32 %v974_v40, %v972_v42  ;;  %v945_v45 = vcvt.f32.s32 %v942_v43  ;;  %v1032_v56 = vshll.u32 %v1031_v41, 16 }
 0x2c0   :  { %v976_v47 = vrot.slane %v975_v37, 4  ;;  %v948_v50 = vadd.s32 %v947_v44, %v945_v45 }
 0x2c2   :  { %v949_v53 = vrot.slane %v948_v50, 4  ;;  %v977_v54 = vadd.s32 %v976_v47, %v975_v37 }
 0x2c3   :  { %v1027_v55 = vpop.xlane.xlu2 %1026  ;;  %v1058_v46 = vpop.xlane.xlu1 %1057 }
 0x2c4   :  { %v1030_v52 = vcvt.f32.s32 %v1027_v55  ;;  %v950_v57 = vadd.s32 %v949_v53, %v948_v50  ;;  %v978_v60 = vrot.slane %v977_v54, 2  ;;  %v1060_v4 = vcvt.f32.s32 %v1058_v46 }
 0x2c5   :  { %v998_v61 = vpop.xlane.xlu0 %997 }
 0x2c6   :  { %v1033_v63 = vadd.s32 %v1032_v56, %v1030_v52  ;;  %v1001_v0 = vcvt.f32.s32 %v998_v61  ;;  %v951_v1 = vrot.slane %v950_v57, 2  ;;  %v979_v2 = vadd.s32 %v978_v60, %v977_v54 }
 0x2c7   :  { %v1061_v19 = vshll.u32 %v1060_v4, 16 }
 0x2c8   :  { %v1034_v3 = vrot.slane %v1033_v63, 4  ;;  %v1004_v10 = vadd.s32 %v1003_v62, %v1001_v0  ;;  %v952_v11 = vadd.s32 %v951_v1, %v950_v57  ;;  %v980_v12 = vrot.slane %v979_v2, 1 }
 0x2ca   :  { %v1005_v13 = vrot.slane %v1004_v10, 4  ;;  %v953_v14 = vrot.slane %v952_v11, 1  ;;  %v1035_v15 = vadd.s32 %v1034_v3, %v1033_v63  ;;  %v981_v18 = vadd.s32 %v980_v12, %v979_v2 }
 0x2cb   :  { %v1116_v16 = vpop.xlane.xlu2 %1115  ;;  %v1056_v17 = vpop.xlane.xlu1 %1055 }
 0x2cc   :  { %v1059_v48 = vcvt.f32.s32 %v1056_v17  ;;  %v954_v20 = vadd.s32 %v953_v14, %v952_v11  ;;  %v1006_v49 = vadd.s32 %v1005_v13, %v1004_v10  ;;  %v1036_v22 = vrot.slane %v1035_v15, 2 }
 0x2cd   :  { %v1087_v21 = vpop.xlane.xlu0 %1086  ;;  %v1118_v26 = vcvt.f32.s32 %v1116_v16 }
 0x2ce   :  { %v1062_v23 = vadd.s32 %v1061_v19, %v1059_v48  ;;  %3675 = vpush %v954_v20  ;;  %v1007_v24 = vrot.slane %v1006_v49, 2  ;;  %v1037_v25 = vadd.s32 %v1036_v22, %v1035_v15  ;;  %v1089_v29 = vcvt.f32.s32 %v1087_v21 }
 0x2cf   :  { %3677 = vpush %v981_v18  ;;  %v1119_v34 = vshll.u32 %v1118_v26, 16 }
 0x2d0   :  { %v1063_v27 = vrot.slane %v1062_v23, 4  ;;  %v1008_v28 = vadd.s32 %v1007_v24, %v1006_v49  ;;  %v1038_v58 = vrot.slane %v1037_v25, 1  ;;  %v1090_v8 = vshll.u32 %v1089_v29, 16 }
 0x2d2   :  { %v1009_v59 = vrot.slane %v1008_v28, 1  ;;  %v1064_v30 = vadd.s32 %v1063_v27, %v1062_v23  ;;  %v1039_v33 = vadd.s32 %v1038_v58, %v1037_v25 }
 0x2d3   :  { %v1114_v31 = vpop.xlane.xlu2 %1113  ;;  %v1145_v32 = vpop.xlane.xlu1 %1144 }
 0x2d4   :  { %v1117_v35 = vcvt.f32.s32 %v1114_v31  ;;  %v1010_v36 = vadd.s32 %v1009_v59, %v1008_v28  ;;  %v1065_v7 = vrot.slane %v1064_v30, 2  ;;  %v1147_v44 = vcvt.f32.s32 %v1145_v32 }
 0x2d5   :  { %v1085_v38 = vpop.xlane.xlu0 %1084 }
 0x2d6   :  { %v1120_v39 = vadd.s32 %v1119_v34, %v1117_v35  ;;  %v1088_v40 = vcvt.f32.s32 %v1085_v38  ;;  %3679 = vpush %v1010_v36  ;;  %v1066_v42 = vadd.s32 %v1065_v7, %v1064_v30  ;;  %v1148_v54 = vshll.u32 %v1147_v44, 16 }
 0x2d7   :  { %3681 = vpush %v1039_v33 }
 0x2d8   :  { %v1121_v43 = vrot.slane %v1120_v39, 4  ;;  %v1091_v37 = vadd.s32 %v1090_v8, %v1088_v40  ;;  %v1067_v45 = vrot.slane %v1066_v42, 1 }
 0x2da   :  { %v1092_v41 = vrot.slane %v1091_v37, 4  ;;  %v1068_v47 = vadd.s32 %v1067_v45, %v1066_v42  ;;  %v1122_v50 = vadd.s32 %v1121_v43, %v1120_v39 }
 0x2db   :  { %v1203_v51 = vpop.xlane.xlu2 %1202  ;;  %v1143_v53 = vpop.xlane.xlu1 %1142 }
 0x2dc   :  { %v1146_v55 = vcvt.f32.s32 %v1143_v53  ;;  %3683 = vpush %v1068_v47  ;;  %v1093_v46 = vadd.s32 %v1092_v41, %v1091_v37  ;;  %v1123_v56 = vrot.slane %v1122_v50, 2  ;;  %v1205_v62 = vcvt.f32.s32 %v1203_v51 }
 0x2dd   :  { %v1174_v52 = vpop.xlane.xlu0 %1173 }
 0x2de   :  { %v1149_v57 = vadd.s32 %v1148_v54, %v1146_v55  ;;  %v1094_v60 = vrot.slane %v1093_v46, 2  ;;  %v1124_v61 = vadd.s32 %v1123_v56, %v1122_v50  ;;  %v1176_v2 = vcvt.f32.s32 %v1174_v52 }
 0x2df   :  { %v1206_v13 = vshll.u32 %v1205_v62, 16 }
 0x2e0   :  { %v1150_v63 = vrot.slane %v1149_v57, 4  ;;  %v1095_v0 = vadd.s32 %v1094_v60, %v1093_v46  ;;  %v1125_v1 = vrot.slane %v1124_v61, 1  ;;  %v1177_v18 = vshll.u32 %v1176_v2, 16 }
 0x2e2   :  { %v1096_v3 = vrot.slane %v1095_v0, 1  ;;  %v1151_v4 = vadd.s32 %v1150_v63, %v1149_v57  ;;  %v1126_v12 = vadd.s32 %v1125_v1, %v1124_v61 }
 0x2e3   :  { %v1201_v10 = vpop.xlane.xlu2 %1200  ;;  %v1232_v11 = vpop.xlane.xlu1 %1231 }
 0x2e4   :  { %v1204_v14 = vcvt.f32.s32 %v1201_v10  ;;  %v1097_v15 = vadd.s32 %v1096_v3, %v1095_v0  ;;  %v1152_v16 = vrot.slane %v1151_v4, 2  ;;  %v1234_v21 = vcvt.f32.s32 %v1232_v11 }
 0x2e5   :  { %v1172_v17 = vpop.xlane.xlu0 %1171 }
 0x2e6   :  { %v1207_v19 = vadd.s32 %v1206_v13, %v1204_v14  ;;  %v1175_v48 = vcvt.f32.s32 %v1172_v17  ;;  %3685 = vpush %v1097_v15  ;;  %v1153_v20 = vadd.s32 %v1152_v16, %v1151_v4  ;;  %v1235_v58 = vshll.u32 %v1234_v21, 16 }
 0x2e7   :  { %3687 = vpush %v1126_v12 }
 0x2e8   :  { %v1208_v49 = vrot.slane %v1207_v19, 4  ;;  %v1178_v22 = vadd.s32 %v1177_v18, %v1175_v48  ;;  %v1154_v23 = vrot.slane %v1153_v20, 1 }
 0x2ea   :  { %v1179_v24 = vrot.slane %v1178_v22, 4  ;;  %v1155_v25 = vadd.s32 %v1154_v23, %v1153_v20  ;;  %v1209_v26 = vadd.s32 %v1208_v49, %v1207_v19 }
 0x2eb   :  { %v1290_v27 = vpop.xlane.xlu2 %1289  ;;  %v1230_v28 = vpop.xlane.xlu1 %1229 }
 0x2ec   :  { %v1233_v29 = vcvt.f32.s32 %v1230_v28  ;;  %3689 = vpush %v1155_v25  ;;  %v1180_v59 = vadd.s32 %v1179_v24, %v1178_v22  ;;  %v1210_v30 = vrot.slane %v1209_v26, 2  ;;  %v1292_v35 = vcvt.f32.s32 %v1290_v27 }
 0x2ed   :  { %v1261_v31 = vpop.xlane.xlu0 %1260 }
 0x2ee   :  { %v1236_v32 = vadd.s32 %v1235_v58, %v1233_v29  ;;  %v1181_v33 = vrot.slane %v1180_v59, 2  ;;  %v1211_v34 = vadd.s32 %v1210_v30, %v1209_v26  ;;  %v1263_v8 = vcvt.f32.s32 %v1261_v31 }
 0x2ef   :  { %v1293_v37 = vshll.u32 %v1292_v35, 16  ;;  %v1368_v31 = vshra.s32 %v3937_v5, 16 }
 0x2f0   :  { %v1237_v36 = vrot.slane %v1236_v32, 4  ;;  %v1182_v7 = vadd.s32 %v1181_v33, %v1180_v59  ;;  %v1212_v38 = vrot.slane %v1211_v34, 1  ;;  %v1264_v51 = vshll.u32 %v1263_v8, 16 }
 0x2f1   :  { %v1372_v33 = vand.u32 4293918720, %v3937_v5  ;;  %v1370_v35 = vand.u32 15, %v1368_v31 }
 0x2f2   :  { %v1183_v39 = vrot.slane %v1182_v7, 1  ;;  %v1238_v40 = vadd.s32 %v1237_v36, %v1236_v32  ;;  %v1213_v44 = vadd.s32 %v1212_v38, %v1211_v34  ;;  %v1369_v32 = vshra.s32 %v3939_v6, 16 }
 0x2f3   :  { %v1288_v42 = vpop.xlane.xlu2 %1287  ;;  %v1319_v43 = vpop.xlane.xlu1 %1318  ;;  %v1373_v34 = vand.u32 4293918720, %v3939_v6 }
 0x2f4   :  { %v1291_v45 = vcvt.f32.s32 %v1288_v42  ;;  %v1184_v41 = vadd.s32 %v1183_v39, %v1182_v7  ;;  %v1239_v47 = vrot.slane %v1238_v40, 2  ;;  %v1321_v56 = vcvt.f32.s32 %v1319_v43 }
 0x2f5   :  { %v1259_v50 = vpop.xlane.xlu0 %1258  ;;  %v1371_v36 = vand.u32 15, %v1369_v32 }
 0x2f6   :  { %v1294_v53 = vadd.s32 %v1293_v37, %v1291_v45  ;;  %v1262_v54 = vcvt.f32.s32 %v1259_v50  ;;  %3691 = vpush %v1184_v41  ;;  %v1240_v55 = vadd.s32 %v1239_v47, %v1238_v40  ;;  %v1322_v0 = vshll.u32 %v1321_v56, 16 }
 0x2f7   :  { %3693 = vpush %v1213_v44 }
 0x2f8   :  { %v1295_v46 = vrot.slane %v1294_v53, 4  ;;  %v1265_v52 = vadd.s32 %v1264_v51, %v1262_v54  ;;  %v1241_v57 = vrot.slane %v1240_v55, 1 }
 0x2fa   :  { %v1266_v60 = vrot.slane %v1265_v52, 4  ;;  %v1242_v61 = vadd.s32 %v1241_v57, %v1240_v55  ;;  %v1296_v62 = vadd.s32 %v1295_v46, %v1294_v53 }
 0x2fb   :  { %v1317_v63 = vpop.xlane.xlu1 %1316  ;;  %v1346_v1 = vpop.xlane.xlu2 %1345 }
 0x2fc   :  { %v1320_v2 = vcvt.f32.s32 %v1317_v63  ;;  %3695 = vpush %v1242_v61  ;;  %v1267_v3 = vadd.s32 %v1266_v60, %v1265_v52  ;;  %v1297_v4 = vrot.slane %v1296_v62, 2  ;;  %v1349_v15 = vcvt.f32.s32 %v1346_v1 }
 0x2fd   :  { %v1348_v10 = vpop.xlane.xlu0 %1347 }
 0x2fe   :  { %v1323_v11 = vadd.s32 %v1322_v0, %v1320_v2  ;;  %v1350_v12 = vcvt.f32.s32 %v1348_v10  ;;  %v1268_v13 = vrot.slane %v1267_v3, 2  ;;  %v1298_v14 = vadd.s32 %v1297_v4, %v1296_v62 }
 0x2ff   :  { %s4295_s24 = spop %3675 }
 0x300   :  { %v1324_v16 = vrot.slane %v1323_v11, 4  ;;  %v1351_v17 = vshll.u32 %v1350_v12, 16  ;;  %p956_p2 = scmp.le.s32.totalorder %s4295_s24, %s4293_s26  ;;  %s3678_s19 = spop %3677  ;;  %v1269_v18 = vadd.s32 %v1268_v13, %v1267_v3  ;;  %v1299_v19 = vrot.slane %v1298_v14, 1 }
 0x301   :  { %s4300_s25 = sadd.s32 %s3678_s19, %s4295_s24 }
 0x302   :  { %v1352_v48 = vadd.s32 %v1351_v17, %v1349_v15  ;;  %v1270_v20 = vrot.slane %v1269_v18, 1  ;;  %v1325_v49 = vadd.s32 %v1324_v16, %v1323_v11  ;;  %s958_s28 = scalar_select %p956_p2, %s4295_s24, 0  ;;  %v1300_v21 = vadd.s32 %v1299_v19, %v1298_v14 }
 0x303   :  { %p984_p3 = scmp.le.s32.totalorder %s4300_s25, %s4293_s26 }
 0x304   :  { %v1353_v22 = vrot.slane %v1352_v48, 4  ;;  %v1271_v23 = vadd.s32 %v1270_v20, %v1269_v18  ;;  %v1326_v24 = vrot.slane %v1325_v49, 2  ;;  %s957_s9 = scalar_select %p956_p2, 1, 0 }
 0x305   :  { %s987_s27 = scalar_select %p984_p3, %s4300_s25, %s958_s28 }
 0x306   :  { %3697 = vpush %v1271_v23  ;;  %v1327_v25 = vadd.s32 %v1326_v24, %v1325_v49  ;;  %v1354_v26 = vadd.s32 %v1353_v22, %v1352_v48  ;;  %s985_s14 = scalar_select %p984_p3, 1, 0 }
 0x307   :  { %3699 = vpush %v1300_v21  ;;  %s3680_s30 = spop %3679 }
 0x308   :  { %v1328_v27 = vrot.slane %v1327_v25, 1  ;;  %v1355_v28 = vrot.slane %v1354_v26, 2  ;;  %s4313_s2 = sadd.s32 %s3680_s30, %s4300_s25  ;;  %s3682_s3 = spop %3681 }
 0x309   :  { %p1013_p4 = scmp.le.s32.totalorder %s4313_s2, %s4293_s26  ;;  %s1041_s29 = sadd.s32 %s3682_s3, %s4313_s2 }
 0x30a   :  { %v1329_v58 = vadd.s32 %v1328_v27, %v1327_v25  ;;  %v1356_v29 = vadd.s32 %v1355_v28, %v1354_v26  ;;  %p1042_p5 = scmp.le.s32.totalorder %s1041_s29, %s4293_s26  ;;  %s986_s22 = sadd.s32 %s985_s14, %s957_s9 }
 0x30b   :  { %s1016_s4 = scalar_select %p1013_p4, %s4313_s2, %s987_s27 }
 0x30c   :  { %3701 = vpush %v1329_v58  ;;  %v1357_v59 = vrot.slane %v1356_v29, 1  ;;  %s1014_s18 = scalar_select %p1013_p4, 1, 0 }
 0x30d   :  { %s3684_s7 = spop %3683 }
 0x30e   :  { %v1358_v30 = vadd.s32 %v1357_v59, %v1356_v29  ;;  %s1045_s10 = scalar_select %p1042_p5, %s1041_s29, %s1016_s4 }
 0x30f   :  { %s1070_s23 = sadd.s32 %s3684_s7, %s1041_s29  ;;  %s1015_s27 = sadd.s32 %s1014_s18, %s986_s22 }
 0x310   :  { %3703 = vpush %v1358_v30  ;;  %p1071_p6 = scmp.le.s32.totalorder %s1070_s23, %s4293_s26 }
 0x311   :  { %s1043_s24 = scalar_select %p1042_p5, 1, 0 }
 0x312   :  { %s1074_s13 = scalar_select %p1071_p6, %s1070_s23, %s1045_s10 }
 0x313   :  { %s1072_s25 = scalar_select %p1071_p6, 1, 0 }
 0x314   :  { %s1044_s10 = sadd.s32 %s1043_s24, %s1015_s27 }
 0x317   :  { %s3686_s5 = spop %3685 }
 0x318   :  { %s1099_s15 = sadd.s32 %s3686_s5, %s1070_s23  ;;  %s3688_s8 = spop %3687 }
 0x319   :  { %p1100_p7 = scmp.le.s32.totalorder %s1099_s15, %s4293_s26  ;;  %s1128_s16 = sadd.s32 %s3688_s8, %s1099_s15 }
 0x31a   :  { %p1129_p8 = scmp.le.s32.totalorder %s1128_s16, %s4293_s26 }
 0x31b   :  { %s1103_s6 = scalar_select %p1100_p7, %s1099_s15, %s1074_s13 }
 0x31c   :  { %s1101_s28 = scalar_select %p1100_p7, 1, 0 }
 0x31d   :  { %s3690_s0 = spop %3689  ;;  %s1073_s13 = sadd.s32 %s1072_s25, %s1044_s10 }
 0x31e   :  { %s1132_s17 = scalar_select %p1129_p8, %s1128_s16, %s1103_s6 }
 0x31f   :  { %s1157_s21 = sadd.s32 %s3690_s0, %s1128_s16  ;;  %s1102_s9 = sadd.s32 %s1101_s28, %s1073_s13 }
 0x320   :  { %p1158_p9 = scmp.le.s32.totalorder %s1157_s21, %s4293_s26 }
 0x321   :  { %s1130_s2 = scalar_select %p1129_p8, 1, 0 }
 0x322   :  { %s1161_s19 = scalar_select %p1158_p9, %s1157_s21, %s1132_s17 }
 0x323   :  { %s1131_s8 = sadd.s32 %s1130_s2, %s1102_s9 }
 0x324   :  { %s1159_s14 = scalar_select %p1158_p9, 1, 0 }
 0x326   :  { %s1160_s22 = sadd.s32 %s1159_s14, %s1131_s8 }
 0x327   :  { %s3692_s30 = spop %3691 }
 0x328   :  { %s1186_s3 = sadd.s32 %s3692_s30, %s1157_s21  ;;  %s3694_s4 = spop %3693 }
 0x329   :  { %p1187_p10 = scmp.le.s32.totalorder %s1186_s3, %s4293_s26  ;;  %s1215_s7 = sadd.s32 %s3694_s4, %s1186_s3 }
 0x32a   :  { %p1216_p11 = scmp.le.s32.totalorder %s1215_s7, %s4293_s26 }
 0x32b   :  { %s1190_s29 = scalar_select %p1187_p10, %s1186_s3, %s1161_s19 }
 0x32c   :  { %s1188_s6 = scalar_select %p1187_p10, 1, 0 }
 0x32d   :  { %s3696_s23 = spop %3695 }
 0x32e   :  { %s1219_s5 = scalar_select %p1216_p11, %s1215_s7, %s1190_s29 }
 0x32f   :  { %s1244_s15 = sadd.s32 %s3696_s23, %s1215_s7  ;;  %s1189_s28 = sadd.s32 %s1188_s6, %s1160_s22 }
 0x330   :  { %p1245_p12 = scmp.le.s32.totalorder %s1244_s15, %s4293_s26 }
 0x331   :  { %s1217_s16 = scalar_select %p1216_p11, 1, 0 }
 0x332   :  { %s1248_s0 = scalar_select %p1245_p12, %s1244_s15, %s1219_s5 }
 0x333   :  { %s1246_s17 = scalar_select %p1245_p12, 1, 0 }
 0x334   :  { %s1218_s30 = sadd.s32 %s1217_s16, %s1189_s28 }
 0x335   :  { %s1247_s7 = sadd.s32 %s1246_s17, %s1218_s30 }
 0x337   :  { %s3698_s18 = spop %3697 }
 0x338   :  { %s1273_s24 = sadd.s32 %s3698_s18, %s1244_s15  ;;  %s3700_s19 = spop %3699 }
 0x339   :  { %p1274_p13 = scmp.le.s32.totalorder %s1273_s24, %s4293_s26  ;;  %s1302_s25 = sadd.s32 %s3700_s19, %s1273_s24 }
 0x33a   :  { %p1303_p0 = scmp.le.s32.totalorder %s1302_s25, %s4293_s26 }
 0x33b   :  { %s1275_s27 = scalar_select %p1274_p13, 1, 0 }
 0x33c   :  { %s5122_s24 = smov (!%p1274_p13, %s1273_s24), %s1248_s0 }
 0x33d   :  { %s3702_s21 = spop %3701  ;;  %s1276_s29 = sadd.s32 %s1275_s27, %s1247_s7 }
 0x33e   :  { %s1304_s4 = scalar_select %p1303_p0, 1, 0 }
 0x33f   :  { %s1306_s3 = scalar_select %p1303_p0, %s1302_s25, %s5122_s24 }
 0x340   :  { %s1331_s2 = sadd.s32 %s3702_s21, %s1302_s25  ;;  %s1305_s9 = sadd.s32 %s1304_s4, %s1276_s29 }
 0x341   :  { %p1332_p1 = scmp.le.s32.totalorder %s1331_s2, %s4293_s26  ;;  %s3704_s10 = spop %3703 }
 0x342   :  { %s1360_s13 = sadd.s32 %s3704_s10, %s1331_s2 }
 0x343   :  { %s1333_s23 = scalar_select %p1332_p1, 1, 0 }
 0x344   :  { %s5124_s2 = smov (!%p1332_p1, %s1331_s2), %s1306_s3  ;;  %p1361_p2 = scmp.le.s32.totalorder %s1360_s13, %s4293_s26 }
 0x345   :  { %s1334_s5 = sadd.s32 %s1333_s23, %s1305_s9 }
 0x346   :  { %s1362_s15 = scalar_select %p1361_p2, 1, 0 }
 0x347   :  { %s5126_s13 = smov (!%p1361_p2, %s1360_s13), %s5124_s2 }
 0x348   :  { %s1363_s8 = sadd.s32 %s1362_s15, %s1334_s5 }
 0x349   :  { %s1366_s14 = sshll.u32 %s1363_s8, 20 }
 0x34a   :  { %s4374_s6 = sor.u32 %s1366_s14, %s4216_s20  ;;  %s4451_s20 = ssub.s32 %s4293_s26, %s5126_s13 }
 0x34b   :  { %v1374_v7 = vstv %s4374_s6 }
 0x34c   :  { %vm1375_vm0 = vcmp.eq.s32.totalorder %v1372_v33, %v1374_v7  ;;  %vm1376_vm1 = vcmp.eq.s32.totalorder %v1373_v34, %v1374_v7 }
 0x34d   :  { %v4377_v38 = vsel %vm1375_vm0, %v1370_v35, 16  ;;  %v4379_v8 = vsel %vm1376_vm1, %v1371_v36, 16 }
 0x34e   :  { %vm1435_vm2 = vcmp.eq.s32.totalorder %v4377_v38, 2  ;;  %vm1436_vm3 = vcmp.eq.s32.totalorder %v4379_v8, 2  ;;  %vm1406_vm4 = vcmp.eq.s32.totalorder %v4377_v38, 1  ;;  %vm1407_vm5 = vcmp.eq.s32.totalorder %v4379_v8, 1 }
 0x34f   :  { %v1437_v39 = vsel %vm1435_vm2, 1, %v3919_v9  ;;  %v1438_v40 = vsel %vm1436_vm3, 1, %v3919_v9  ;;  %v1408_v42 = vsel %vm1406_vm4, 1, %v3919_v9  ;;  %v1409_v43 = vsel %vm1407_vm5, 1, %v3919_v9 }
 0x350   :  { %v1439_v44 = vadd.s32 %v1438_v40, %v1437_v39  ;;  %v1410_v37 = vadd.s32 %v1409_v43, %v1408_v42  ;;  %vm1379_vm6 = vcmp.eq.s32.totalorder %v4377_v38, 0  ;;  %vm1380_vm7 = vcmp.eq.s32.totalorder %v4379_v8, 0 }
 0x351   :  { %v1381_v45 = vsel %vm1379_vm6, 1, %v3919_v9  ;;  %v1382_v41 = vsel %vm1380_vm7, 1, %v3919_v9  ;;  %vm1464_vm8 = vcmp.eq.s32.totalorder %v4377_v38, 3  ;;  %vm1465_vm9 = vcmp.eq.s32.totalorder %v4379_v8, 3 }
 0x352   :  { %v1441_v47 = vshrl.u32 %v1439_v44, 16  ;;  %v1412_v50 = vshrl.u32 %v1410_v37, 16  ;;  %v1383_v51 = vadd.s32 %v1382_v41, %v1381_v45  ;;  %v1466_v53 = vsel %vm1464_vm8, 1, %v3919_v9 }
 0x353   :  { %v1467_v54 = vsel %vm1465_vm9, 1, %v3919_v9  ;;  %vm1493_vm10 = vcmp.eq.s32.totalorder %v4377_v38, 4  ;;  %vm1494_vm11 = vcmp.eq.s32.totalorder %v4379_v8, 4  ;;  %v1411_v61 = vand.u32 65535, %v1410_v37 }
 0x354   :  { %v1443_v55 = vcvt.s32.f32 %v1441_v47  ;;  %v1414_v46 = vcvt.s32.f32 %v1412_v50  ;;  %v1385_v56 = vshrl.u32 %v1383_v51, 16  ;;  %v1468_v52 = vadd.s32 %v1467_v54, %v1466_v53 }
 0x355   :  { %v1495_v62 = vsel %vm1493_vm10, 1, %v3919_v9  ;;  %v1496_v63 = vsel %vm1494_vm11, 1, %v3919_v9  ;;  %v1384_v0 = vand.u32 65535, %v1383_v51  ;;  %v1413_v2 = vcvt.s32.f32 %v1411_v61 }
 0x356   :  { %1446 = vadd.xlane.f32.xlu2 %v1443_v55  ;;  %1417 = vadd.xlane.f32.xlu1 %v1414_v46  ;;  %v1387_v57 = vcvt.s32.f32 %v1385_v56  ;;  %v1470_v60 = vshrl.u32 %v1468_v52, 16  ;;  %v1497_v3 = vadd.s32 %v1496_v63, %v1495_v62  ;;  %vm1551_vm12 = vcmp.eq.s32.totalorder %v4377_v38, 6 }
 0x357   :  { %v1386_v4 = vcvt.s32.f32 %v1384_v0  ;;  %vm1552_vm13 = vcmp.eq.s32.totalorder %v4379_v8, 6  ;;  %v1469_v10 = vand.u32 65535, %v1468_v52  ;;  %vm1522_vm14 = vcmp.eq.s32.totalorder %v4377_v38, 5 }
 0x358   :  { %1390 = vadd.xlane.f32.xlu0 %v1387_v57  ;;  %v1472_v1 = vcvt.s32.f32 %v1470_v60  ;;  %v1499_v11 = vshrl.u32 %v1497_v3, 16  ;;  %vm1523_vm15 = vcmp.eq.s32.totalorder %v4379_v8, 5  ;;  %v1553_v12 = vsel %vm1551_vm12, 1, %v3919_v9 }
 0x359   :  { %v1554_v13 = vsel %vm1552_vm13, 1, %v3919_v9  ;;  %v1440_v14 = vand.u32 65535, %v1439_v44  ;;  %v1524_v15 = vsel %vm1522_vm14, 1, %v3919_v9  ;;  %v1525_v16 = vsel %vm1523_vm15, 1, %v3919_v9 }
 0x35a   :  { %v1471_v17 = vcvt.s32.f32 %v1469_v10  ;;  %v1501_v18 = vcvt.s32.f32 %v1499_v11  ;;  %v1555_v19 = vadd.s32 %v1554_v13, %v1553_v12  ;;  %v1526_v20 = vadd.s32 %v1525_v16, %v1524_v15 }
 0x35b   :  { %v1442_v48 = vcvt.s32.f32 %v1440_v14  ;;  %vm1580_vm0 = vcmp.eq.s32.totalorder %v4377_v38, 7  ;;  %vm1581_vm1 = vcmp.eq.s32.totalorder %v4379_v8, 7  ;;  %v1498_v49 = vand.u32 65535, %v1497_v3 }
 0x35c   :  { %v1557_v21 = vshrl.u32 %v1555_v19, 16  ;;  %vm1754_vm2 = vcmp.eq.s32.totalorder %v4377_v38, 13  ;;  %vm1755_vm3 = vcmp.eq.s32.totalorder %v4379_v8, 13  ;;  %v1582_v22 = vsel %vm1580_vm0, 1, %v3919_v9 }
 0x35d   :  { %v1583_v23 = vsel %vm1581_vm1, 1, %v3919_v9  ;;  %v1528_v24 = vshrl.u32 %v1526_v20, 16  ;;  %v1756_v25 = vsel %vm1754_vm2, 1, %v3919_v9  ;;  %v1757_v26 = vsel %vm1755_vm3, 1, %v3919_v9 }
 0x35e   :  { %1475 = vadd.xlane.f32.xlu2 %v1472_v1  ;;  %1415 = vadd.xlane.f32.xlu1 %v1413_v2  ;;  %vm1783_vm4 = vcmp.eq.s32.totalorder %v4377_v38, 14  ;;  %v1500_v27 = vcvt.s32.f32 %v1498_v49  ;;  %v4418_v28 = vadd.s32 %v1757_v26, %v1756_v25  ;;  %v1559_v58 = vcvt.s32.f32 %v1557_v21 }
 0x35f   :  { %v1584_v29 = vadd.s32 %v1583_v23, %v1582_v22  ;;  %vm1784_vm5 = vcmp.eq.s32.totalorder %v4379_v8, 14  ;;  %v1785_v59 = vsel %vm1783_vm4, 1, %v3919_v9  ;;  %v1530_v31 = vcvt.s32.f32 %v1528_v24 }
 0x360   :  { %1388 = vadd.xlane.f32.xlu0 %v1386_v4  ;;  %v1786_v30 = vsel %vm1784_vm5, 1, %v3919_v9  ;;  %vm1638_vm6 = vcmp.eq.s32.totalorder %v4377_v38, 9  ;;  %vm1639_vm7 = vcmp.eq.s32.totalorder %v4379_v8, 9  ;;  %v1556_v33 = vand.u32 65535, %v1555_v19 }
 0x361   :  { %v4425_v32 = vadd.s32 %v1786_v30, %v1785_v59  ;;  %v1586_v34 = vshrl.u32 %v1584_v29, 16  ;;  %vm1609_vm8 = vcmp.eq.s32.totalorder %v4377_v38, 8  ;;  %vm1610_vm9 = vcmp.eq.s32.totalorder %v4379_v8, 8 }
 0x362   :  { %v1640_v35 = vsel %vm1638_vm6, 1, %v3919_v9  ;;  %v1641_v36 = vsel %vm1639_vm7, 1, %v3919_v9  ;;  %v1527_v7 = vand.u32 65535, %v1526_v20  ;;  %v1611_v39 = vsel %vm1609_vm8, 1, %v3919_v9 }
 0x363   :  { %v1612_v40 = vsel %vm1610_vm9, 1, %v3919_v9  ;;  %v1558_v42 = vcvt.s32.f32 %v1556_v33  ;;  %v1588_v43 = vcvt.s32.f32 %v1586_v34  ;;  %v1642_v44 = vadd.s32 %v1641_v36, %v1640_v35 }
 0x364   :  { %v1529_v37 = vcvt.s32.f32 %v1527_v7  ;;  %v1613_v45 = vadd.s32 %v1612_v40, %v1611_v39  ;;  %vm1667_vm10 = vcmp.eq.s32.totalorder %v4377_v38, 10  ;;  %vm1668_vm11 = vcmp.eq.s32.totalorder %v4379_v8, 10 }
 0x365   :  { %v1644_v41 = vshrl.u32 %v1642_v44, 16  ;;  %v1585_v47 = vand.u32 65535, %v1584_v29  ;;  %v1669_v50 = vsel %vm1667_vm10, 1, %v3919_v9  ;;  %v1670_v51 = vsel %vm1668_vm11, 1, %v3919_v9 }
 0x366   :  { %1473 = vadd.xlane.f32.xlu2 %v1471_v17  ;;  %1504 = vadd.xlane.f32.xlu1 %v1501_v18  ;;  %v1615_v53 = vshrl.u32 %v1613_v45, 16  ;;  %v1671_v46 = vadd.s32 %v1670_v51, %v1669_v50  ;;  %vm1725_vm12 = vcmp.eq.s32.totalorder %v4377_v38, 12  ;;  %vm1726_vm13 = vcmp.eq.s32.totalorder %v4379_v8, 12 }
 0x367   :  { %v1646_v54 = vcvt.s32.f32 %v1644_v41  ;;  %v1587_v55 = vcvt.s32.f32 %v1585_v47  ;;  %v1643_v52 = vand.u32 65535, %v1642_v44  ;;  %vm1696_vm14 = vcmp.eq.s32.totalorder %v4377_v38, 11 }
 0x368   :  { %1444 = vadd.xlane.f32.xlu0 %v1442_v48  ;;  %v1617_v56 = vcvt.s32.f32 %v1615_v53  ;;  %v1673_v57 = vshrl.u32 %v1671_v46, 16  ;;  %vm1697_vm15 = vcmp.eq.s32.totalorder %v4379_v8, 11  ;;  %v1727_v60 = vsel %vm1725_vm12, 1, %v3919_v9 }
 0x369   :  { %v1728_v61 = vsel %vm1726_vm13, 1, %v3919_v9  ;;  %v1614_v62 = vand.u32 65535, %v1613_v45  ;;  %v1698_v63 = vsel %vm1696_vm14, 1, %v3919_v9  ;;  %v1699_v0 = vsel %vm1697_vm15, 1, %v3919_v9 }
 0x36a   :  { %v1645_v1 = vcvt.s32.f32 %v1643_v52  ;;  %v1675_v2 = vcvt.s32.f32 %v1673_v57  ;;  %v1729_v3 = vadd.s32 %v1728_v61, %v1727_v60  ;;  %v1700_v10 = vadd.s32 %v1699_v0, %v1698_v63 }
 0x36b   :  { %v1616_v4 = vcvt.s32.f32 %v1614_v62  ;;  %v1672_v11 = vand.u32 65535, %v1671_v46  ;;  %v1760_v16 = vshrl.u32 %v4418_v28, 16  ;;  %v1788_v20 = vand.u32 65535, %v4425_v32 }
 0x36c   :  { %v1731_v38 = vshrl.u32 %v1729_v3, 16  ;;  %v1702_v8 = vshrl.u32 %v1700_v10, 16  ;;  %v1730_v15 = vand.u32 65535, %v1729_v3  ;;  %v1701_v17 = vand.u32 65535, %v1700_v10 }
 0x36d   :  { %v1674_v13 = vcvt.s32.f32 %v1672_v11  ;;  %v1762_v19 = vcvt.s32.f32 %v1760_v16  ;;  %v1759_v49 = vand.u32 65535, %v4418_v28  ;;  %v1789_v21 = vshrl.u32 %v4425_v32, 16 }
 0x36e   :  { %1562 = vadd.xlane.f32.xlu2 %v1559_v58  ;;  %1502 = vadd.xlane.f32.xlu1 %v1500_v27  ;;  %v1733_v12 = vcvt.s32.f32 %v1731_v38  ;;  %v1704_v14 = vcvt.s32.f32 %v1702_v8  ;;  %v1732_v18 = vcvt.s32.f32 %v1730_v15  ;;  %v1703_v48 = vcvt.s32.f32 %v1701_v17 }
 0x36f   :  { %v1790_v22 = vcvt.s32.f32 %v1788_v20  ;;  %v1761_v23 = vcvt.s32.f32 %v1759_v49  ;;  %v1791_v24 = vcvt.s32.f32 %v1789_v21 }
 0x370   :  { %1533 = vadd.xlane.f32.xlu0 %v1530_v31 }
 0x376   :  { %1560 = vadd.xlane.f32.xlu2 %v1558_v42  ;;  %1591 = vadd.xlane.f32.xlu1 %v1588_v43 }
 0x378   :  { %1531 = vadd.xlane.f32.xlu0 %v1529_v37 }
 0x37e   :  { %1649 = vadd.xlane.f32.xlu2 %v1646_v54  ;;  %1589 = vadd.xlane.f32.xlu1 %v1587_v55 }
 0x380   :  { %1620 = vadd.xlane.f32.xlu0 %v1617_v56 }
 0x386   :  { %1647 = vadd.xlane.f32.xlu2 %v1645_v1  ;;  %1678 = vadd.xlane.f32.xlu1 %v1675_v2 }
 0x388   :  { %1618 = vadd.xlane.f32.xlu0 %v1616_v4 }
 0x38e   :  { %1736 = vadd.xlane.f32.xlu2 %v1733_v12  ;;  %1676 = vadd.xlane.f32.xlu1 %v1674_v13 }
 0x390   :  { %1707 = vadd.xlane.f32.xlu0 %v1704_v14 }
 0x396   :  { %1734 = vadd.xlane.f32.xlu2 %v1732_v18  ;;  %1765 = vadd.xlane.f32.xlu1 %v1762_v19 }
 0x398   :  { %1705 = vadd.xlane.f32.xlu0 %v1703_v48 }
 0x39e   :  { %1792 = vadd.xlane.f32.xlu2 %v1790_v22  ;;  %1763 = vadd.xlane.f32.xlu1 %v1761_v23 }
 0x3a0   :  { %1794 = vadd.xlane.f32.xlu0 %v1791_v24 }
 0x3c9   :  { %v1447_v25 = vpop.xlane.xlu2 %1446  ;;  %v1418_v26 = vpop.xlane.xlu1 %1417 }
 0x3ca   :  { %v1420_v58 = vcvt.f32.s32 %v1418_v26  ;;  %v1449_v40 = vcvt.f32.s32 %v1447_v25 }
 0x3cb   :  { %v1391_v27 = vpop.xlane.xlu0 %1390 }
 0x3cc   :  { %v1393_v29 = vcvt.f32.s32 %v1391_v27  ;;  %v1421_v31 = vshll.u32 %v1420_v58, 16  ;;  %v1450_v53 = vshll.u32 %v1449_v40, 16 }
 0x3ce   :  { %v1394_v35 = vshll.u32 %v1393_v29, 16 }
 0x3d1   :  { %v1476_v59 = vpop.xlane.xlu2 %1475  ;;  %v1416_v30 = vpop.xlane.xlu1 %1415 }
 0x3d2   :  { %v1419_v33 = vcvt.f32.s32 %v1416_v30  ;;  %v1478_v32 = vcvt.f32.s32 %v1476_v59 }
 0x3d3   :  { %v1389_v34 = vpop.xlane.xlu0 %1388 }
 0x3d4   :  { %v1422_v28 = vadd.s32 %v1421_v31, %v1419_v33  ;;  %v1392_v36 = vcvt.f32.s32 %v1389_v34  ;;  %v1479_v45 = vshll.u32 %v1478_v32, 16 }
 0x3d6   :  { %v1423_v7 = vrot.slane %v1422_v28, 4  ;;  %v1395_v39 = vadd.s32 %v1394_v35, %v1392_v36 }
 0x3d8   :  { %v1424_v42 = vadd.s32 %v1423_v7, %v1422_v28  ;;  %v1396_v43 = vrot.slane %v1395_v39, 4 }
 0x3d9   :  { %v1474_v44 = vpop.xlane.xlu2 %1473  ;;  %v1505_v37 = vpop.xlane.xlu1 %1504 }
 0x3da   :  { %v1397_v41 = vadd.s32 %v1396_v43, %v1395_v39  ;;  %v1477_v47 = vcvt.f32.s32 %v1474_v44  ;;  %v1425_v50 = vrot.slane %v1424_v42, 2  ;;  %v1507_v57 = vcvt.f32.s32 %v1505_v37 }
 0x3db   :  { %v1445_v51 = vpop.xlane.xlu0 %1444 }
 0x3dc   :  { %v1480_v54 = vadd.s32 %v1479_v45, %v1477_v47  ;;  %v1448_v55 = vcvt.f32.s32 %v1445_v51  ;;  %v1398_v46 = vrot.slane %v1397_v41, 2  ;;  %v1426_v56 = vadd.s32 %v1425_v50, %v1424_v42 }
 0x3dd   :  { %v1508_v10 = vshll.u32 %v1507_v57, 16 }
 0x3de   :  { %v1481_v52 = vrot.slane %v1480_v54, 4  ;;  %v1451_v60 = vadd.s32 %v1450_v53, %v1448_v55  ;;  %v1399_v61 = vadd.s32 %v1398_v46, %v1397_v41  ;;  %v1427_v62 = vrot.slane %v1426_v56, 1 }
 0x3e0   :  { %v1482_v63 = vadd.s32 %v1481_v52, %v1480_v54  ;;  %v1452_v0 = vrot.slane %v1451_v60, 4  ;;  %v1400_v1 = vrot.slane %v1399_v61, 1  ;;  %v1428_v4 = vadd.s32 %v1427_v62, %v1426_v56 }
 0x3e1   :  { %v1563_v2 = vpop.xlane.xlu2 %1562  ;;  %v1503_v3 = vpop.xlane.xlu1 %1502 }
 0x3e2   :  { %v1453_v38 = vadd.s32 %v1452_v0, %v1451_v60  ;;  %v1506_v11 = vcvt.f32.s32 %v1503_v3  ;;  %v1401_v8 = vadd.s32 %v1400_v1, %v1399_v61  ;;  %v1483_v13 = vrot.slane %v1482_v63, 2 }
 0x3e3   :  { %v1534_v12 = vpop.xlane.xlu0 %1533  ;;  %v1565_v17 = vcvt.f32.s32 %v1563_v2 }
 0x3e4   :  { %v1509_v14 = vadd.s32 %v1508_v10, %v1506_v11  ;;  %3705 = vpush %v1401_v8  ;;  %v1454_v15 = vrot.slane %v1453_v38, 2  ;;  %v1484_v16 = vadd.s32 %v1483_v13, %v1482_v63  ;;  %v1536_v49 = vcvt.f32.s32 %v1534_v12 }
 0x3e5   :  { %3707 = vpush %v1428_v4  ;;  %v1566_v25 = vshll.u32 %v1565_v17, 16 }
 0x3e6   :  { %v1510_v18 = vrot.slane %v1509_v14, 4  ;;  %v1455_v19 = vadd.s32 %v1454_v15, %v1453_v38  ;;  %v1485_v48 = vrot.slane %v1484_v16, 1  ;;  %v1537_v59 = vshll.u32 %v1536_v49, 16 }
 0x3e8   :  { %v1511_v20 = vadd.s32 %v1510_v18, %v1509_v14  ;;  %v1456_v21 = vrot.slane %v1455_v19, 1  ;;  %v1486_v24 = vadd.s32 %v1485_v48, %v1484_v16 }
 0x3e9   :  { %v1561_v22 = vpop.xlane.xlu2 %1560  ;;  %v1592_v23 = vpop.xlane.xlu1 %1591 }
 0x3ea   :  { %v1564_v26 = vcvt.f32.s32 %v1561_v22  ;;  %v1457_v27 = vadd.s32 %v1456_v21, %v1455_v19  ;;  %v1512_v58 = vrot.slane %v1511_v20, 2  ;;  %v1594_v35 = vcvt.f32.s32 %v1592_v23 }
 0x3eb   :  { %v1532_v29 = vpop.xlane.xlu0 %1531 }
 0x3ec   :  { %v1567_v30 = vadd.s32 %v1566_v25, %v1564_v26  ;;  %v1535_v31 = vcvt.f32.s32 %v1532_v29  ;;  %3709 = vpush %v1457_v27  ;;  %v1513_v33 = vadd.s32 %v1512_v58, %v1511_v20  ;;  %v1595_v43 = vshll.u32 %v1594_v35, 16 }
 0x3ed   :  { %3711 = vpush %v1486_v24 }
 0x3ee   :  { %v1568_v34 = vrot.slane %v1567_v30, 4  ;;  %v1538_v28 = vadd.s32 %v1537_v59, %v1535_v31  ;;  %v1514_v36 = vrot.slane %v1513_v33, 1 }
 0x3f0   :  { %v1569_v32 = vadd.s32 %v1568_v34, %v1567_v30  ;;  %v1539_v7 = vrot.slane %v1538_v28, 4  ;;  %v1515_v39 = vadd.s32 %v1514_v36, %v1513_v33 }
 0x3f1   :  { %v1650_v40 = vpop.xlane.xlu2 %1649  ;;  %v1590_v42 = vpop.xlane.xlu1 %1589 }
 0x3f2   :  { %v1540_v44 = vadd.s32 %v1539_v7, %v1538_v28  ;;  %v1593_v37 = vcvt.f32.s32 %v1590_v42  ;;  %3713 = vpush %v1515_v39  ;;  %v1570_v45 = vrot.slane %v1569_v32, 2  ;;  %v1652_v53 = vcvt.f32.s32 %v1650_v40 }
 0x3f3   :  { %v1621_v41 = vpop.xlane.xlu0 %1620 }
 0x3f4   :  { %v1596_v47 = vadd.s32 %v1595_v43, %v1593_v37  ;;  %v1541_v50 = vrot.slane %v1540_v44, 2  ;;  %v1571_v51 = vadd.s32 %v1570_v45, %v1569_v32  ;;  %v1623_v52 = vcvt.f32.s32 %v1621_v41 }
 0x3f5   :  { %v1653_v63 = vshll.u32 %v1652_v53, 16 }
 0x3f6   :  { %v1597_v54 = vrot.slane %v1596_v47, 4  ;;  %v1542_v55 = vadd.s32 %v1541_v50, %v1540_v44  ;;  %v1572_v46 = vrot.slane %v1571_v51, 1  ;;  %v1624_v4 = vshll.u32 %v1623_v52, 16 }
 0x3f8   :  { %v1598_v56 = vadd.s32 %v1597_v54, %v1596_v47  ;;  %v1543_v57 = vrot.slane %v1542_v55, 1  ;;  %v1573_v62 = vadd.s32 %v1572_v46, %v1571_v51 }
 0x3f9   :  { %v1648_v60 = vpop.xlane.xlu2 %1647  ;;  %v1679_v61 = vpop.xlane.xlu1 %1678 }
 0x3fa   :  { %v1651_v0 = vcvt.f32.s32 %v1648_v60  ;;  %v1544_v1 = vadd.s32 %v1543_v57, %v1542_v55  ;;  %v1599_v2 = vrot.slane %v1598_v56, 2  ;;  %v1681_v12 = vcvt.f32.s32 %v1679_v61 }
 0x3fb   :  { %v1619_v3 = vpop.xlane.xlu0 %1618 }
 0x3fc   :  { %v1654_v10 = vadd.s32 %v1653_v63, %v1651_v0  ;;  %v1622_v38 = vcvt.f32.s32 %v1619_v3  ;;  %3715 = vpush %v1544_v1  ;;  %v1600_v11 = vadd.s32 %v1599_v2, %v1598_v56  ;;  %v1682_v48 = vshll.u32 %v1681_v12, 16 }
 0x3fd   :  { %3717 = vpush %v1573_v62 }
 0x3fe   :  { %v1655_v8 = vrot.slane %v1654_v10, 4  ;;  %v1625_v13 = vadd.s32 %v1624_v4, %v1622_v38  ;;  %v1601_v14 = vrot.slane %v1600_v11, 1 }
 0x400   :  { %v1656_v15 = vadd.s32 %v1655_v8, %v1654_v10  ;;  %v1626_v16 = vrot.slane %v1625_v13, 4  ;;  %v1602_v17 = vadd.s32 %v1601_v14, %v1600_v11 }
 0x401   :  { %v1737_v18 = vpop.xlane.xlu2 %1736  ;;  %v1677_v19 = vpop.xlane.xlu1 %1676 }
 0x402   :  { %v1627_v20 = vadd.s32 %v1626_v16, %v1625_v13  ;;  %v1680_v49 = vcvt.f32.s32 %v1677_v19  ;;  %3719 = vpush %v1602_v17  ;;  %v1657_v21 = vrot.slane %v1656_v15, 2  ;;  %v1739_v26 = vcvt.f32.s32 %v1737_v18 }
 0x403   :  { %v1708_v22 = vpop.xlane.xlu0 %1707 }
 0x404   :  { %v1683_v23 = vadd.s32 %v1682_v48, %v1680_v49  ;;  %v1628_v24 = vrot.slane %v1627_v20, 2  ;;  %v1658_v25 = vadd.s32 %v1657_v21, %v1656_v15  ;;  %v1710_v30 = vcvt.f32.s32 %v1708_v22 }
 0x405   :  { %v1740_v28 = vshll.u32 %v1739_v26, 16  ;;  %v1815_v22 = vshra.s32 %v3937_v5, 12 }
 0x406   :  { %v1684_v27 = vrot.slane %v1683_v23, 4  ;;  %v1629_v58 = vadd.s32 %v1628_v24, %v1627_v20  ;;  %v1659_v29 = vrot.slane %v1658_v25, 1  ;;  %v1711_v40 = vshll.u32 %v1710_v30, 16 }
 0x407   :  { %v1819_v24 = vand.u32 4294901760, %v3937_v5  ;;  %v1817_v26 = vand.u32 15, %v1815_v22 }
 0x408   :  { %v1685_v59 = vadd.s32 %v1684_v27, %v1683_v23  ;;  %v1630_v31 = vrot.slane %v1629_v58, 1  ;;  %v1660_v35 = vadd.s32 %v1659_v29, %v1658_v25  ;;  %v1816_v23 = vshra.s32 %v3939_v6, 12 }
 0x409   :  { %v1735_v33 = vpop.xlane.xlu2 %1734  ;;  %v1766_v34 = vpop.xlane.xlu1 %1765  ;;  %v1820_v25 = vand.u32 4294901760, %v3939_v6 }
 0x40a   :  { %v1738_v36 = vcvt.f32.s32 %v1735_v33  ;;  %v1631_v32 = vadd.s32 %v1630_v31, %v1629_v58  ;;  %v1686_v7 = vrot.slane %v1685_v59, 2  ;;  %v1768_v45 = vcvt.f32.s32 %v1766_v34 }
 0x40b   :  { %v1706_v39 = vpop.xlane.xlu0 %1705  ;;  %v1818_v27 = vand.u32 15, %v1816_v23 }
 0x40c   :  { %v1741_v42 = vadd.s32 %v1740_v28, %v1738_v36  ;;  %v1709_v43 = vcvt.f32.s32 %v1706_v39  ;;  %3721 = vpush %v1631_v32  ;;  %v1687_v44 = vadd.s32 %v1686_v7, %v1685_v59  ;;  %v1769_v55 = vshll.u32 %v1768_v45, 16 }
 0x40d   :  { %3723 = vpush %v1660_v35 }
 0x40e   :  { %v1742_v37 = vrot.slane %v1741_v42, 4  ;;  %v1712_v41 = vadd.s32 %v1711_v40, %v1709_v43  ;;  %v1688_v47 = vrot.slane %v1687_v44, 1 }
 0x410   :  { %v1743_v50 = vadd.s32 %v1742_v37, %v1741_v42  ;;  %v1713_v51 = vrot.slane %v1712_v41, 4  ;;  %v1689_v53 = vadd.s32 %v1688_v47, %v1687_v44 }
 0x411   :  { %v1764_v54 = vpop.xlane.xlu1 %1763  ;;  %v1793_v56 = vpop.xlane.xlu2 %1792 }
 0x412   :  { %v1714_v46 = vadd.s32 %v1713_v51, %v1712_v41  ;;  %v1767_v52 = vcvt.f32.s32 %v1764_v54  ;;  %3725 = vpush %v1689_v53  ;;  %v1744_v57 = vrot.slane %v1743_v50, 2  ;;  %v1796_v1 = vcvt.f32.s32 %v1793_v56 }
 0x413   :  { %v1795_v60 = vpop.xlane.xlu0 %1794 }
 0x414   :  { %v1770_v61 = vadd.s32 %v1769_v55, %v1767_v52  ;;  %v1797_v62 = vcvt.f32.s32 %v1795_v60  ;;  %v1715_v63 = vrot.slane %v1714_v46, 2  ;;  %v1745_v0 = vadd.s32 %v1744_v57, %v1743_v50 }
 0x415   :  { %s4453_s0 = spop %3705 }
 0x416   :  { %v1771_v2 = vrot.slane %v1770_v61, 4  ;;  %v1798_v3 = vshll.u32 %v1797_v62, 16  ;;  %p1403_p3 = scmp.le.s32.totalorder %s4453_s0, %s4451_s20  ;;  %s3708_s16 = spop %3707  ;;  %v1716_v4 = vadd.s32 %v1715_v63, %v1714_v46  ;;  %v1746_v10 = vrot.slane %v1745_v0, 1 }
 0x417   :  { %s4458_s17 = sadd.s32 %s3708_s16, %s4453_s0 }
 0x418   :  { %v1772_v38 = vadd.s32 %v1771_v2, %v1770_v61  ;;  %v1799_v11 = vadd.s32 %v1798_v3, %v1796_v1  ;;  %v1717_v8 = vrot.slane %v1716_v4, 1  ;;  %s1405_s26 = scalar_select %p1403_p3, %s4453_s0, 0  ;;  %v1747_v12 = vadd.s32 %v1746_v10, %v1745_v0 }
 0x419   :  { %p1431_p4 = scmp.le.s32.totalorder %s4458_s17, %s4451_s20 }
 0x41a   :  { %v1800_v13 = vrot.slane %v1799_v11, 4  ;;  %v1718_v14 = vadd.s32 %v1717_v8, %v1716_v4  ;;  %v1773_v15 = vrot.slane %v1772_v38, 2  ;;  %s1404_s3 = scalar_select %p1403_p3, 1, 0 }
 0x41b   :  { %s1434_s22 = scalar_select %p1431_p4, %s4458_s17, %s1405_s26 }
 0x41c   :  { %v1801_v16 = vadd.s32 %v1800_v13, %v1799_v11  ;;  %3727 = vpush %v1718_v14  ;;  %v1774_v17 = vadd.s32 %v1773_v15, %v1772_v38  ;;  %s1432_s13 = scalar_select %p1431_p4, 1, 0 }
 0x41d   :  { %3729 = vpush %v1747_v12  ;;  %s3710_s18 = spop %3709 }
 0x41e   :  { %v1775_v18 = vrot.slane %v1774_v17, 1  ;;  %v1802_v19 = vrot.slane %v1801_v16, 2  ;;  %s4471_s24 = sadd.s32 %s3710_s18, %s4458_s17  ;;  %s3712_s19 = spop %3711 }
 0x41f   :  { %p1460_p5 = scmp.le.s32.totalorder %s4471_s24, %s4451_s20  ;;  %s1488_s25 = sadd.s32 %s3712_s19, %s4471_s24 }
 0x420   :  { %v1776_v48 = vadd.s32 %v1775_v18, %v1774_v17  ;;  %v1803_v20 = vadd.s32 %v1802_v19, %v1801_v16  ;;  %p1489_p6 = scmp.le.s32.totalorder %s1488_s25, %s4451_s20  ;;  %s1433_s8 = sadd.s32 %s1432_s13, %s1404_s3 }
 0x421   :  { %s1463_s28 = scalar_select %p1460_p5, %s4471_s24, %s1434_s22 }
 0x422   :  { %3731 = vpush %v1776_v48  ;;  %v1804_v49 = vrot.slane %v1803_v20, 1  ;;  %s1461_s14 = scalar_select %p1460_p5, 1, 0 }
 0x423   :  { %s3714_s27 = spop %3713 }
 0x424   :  { %v1805_v21 = vadd.s32 %v1804_v49, %v1803_v20  ;;  %s1492_s30 = scalar_select %p1489_p6, %s1488_s25, %s1463_s28 }
 0x425   :  { %s1517_s21 = sadd.s32 %s3714_s27, %s1488_s25  ;;  %s1462_s22 = sadd.s32 %s1461_s14, %s1433_s8 }
 0x426   :  { %3733 = vpush %v1805_v21  ;;  %p1518_p7 = scmp.le.s32.totalorder %s1517_s21, %s4451_s20 }
 0x427   :  { %s1490_s0 = scalar_select %p1489_p6, 1, 0 }
 0x428   :  { %s1521_s4 = scalar_select %p1518_p7, %s1517_s21, %s1492_s30 }
 0x429   :  { %s1519_s17 = scalar_select %p1518_p7, 1, 0 }
 0x42a   :  { %s1491_s30 = sadd.s32 %s1490_s0, %s1462_s22 }
 0x42d   :  { %s3716_s7 = spop %3715 }
 0x42e   :  { %s1546_s2 = sadd.s32 %s3716_s7, %s1517_s21  ;;  %s3718_s10 = spop %3717 }
 0x42f   :  { %p1547_p8 = scmp.le.s32.totalorder %s1546_s2, %s4451_s20  ;;  %s1575_s29 = sadd.s32 %s3718_s10, %s1546_s2 }
 0x430   :  { %p1576_p9 = scmp.le.s32.totalorder %s1575_s29, %s4451_s20 }
 0x431   :  { %s1550_s23 = scalar_select %p1547_p8, %s1546_s2, %s1521_s4 }
 0x432   :  { %s1548_s26 = scalar_select %p1547_p8, 1, 0 }
 0x433   :  { %s3720_s9 = spop %3719  ;;  %s1520_s4 = sadd.s32 %s1519_s17, %s1491_s30 }
 0x434   :  { %s1579_s5 = scalar_select %p1576_p9, %s1575_s29, %s1550_s23 }
 0x435   :  { %s1604_s15 = sadd.s32 %s3720_s9, %s1575_s29  ;;  %s1549_s3 = sadd.s32 %s1548_s26, %s1520_s4 }
 0x436   :  { %p1605_p10 = scmp.le.s32.totalorder %s1604_s15, %s4451_s20 }
 0x437   :  { %s1577_s24 = scalar_select %p1576_p9, 1, 0 }
 0x438   :  { %s1608_s16 = scalar_select %p1605_p10, %s1604_s15, %s1579_s5 }
 0x439   :  { %s1578_s10 = sadd.s32 %s1577_s24, %s1549_s3 }
 0x43a   :  { %s1606_s13 = scalar_select %p1605_p10, 1, 0 }
 0x43c   :  { %s1607_s8 = sadd.s32 %s1606_s13, %s1578_s10 }
 0x43d   :  { %s3722_s18 = spop %3721 }
 0x43e   :  { %s1633_s19 = sadd.s32 %s3722_s18, %s1604_s15  ;;  %s3724_s28 = spop %3723 }
 0x43f   :  { %p1634_p11 = scmp.le.s32.totalorder %s1633_s19, %s4451_s20  ;;  %s1662_s27 = sadd.s32 %s3724_s28, %s1633_s19 }
 0x440   :  { %p1663_p12 = scmp.le.s32.totalorder %s1662_s27, %s4451_s20 }
 0x441   :  { %s1637_s25 = scalar_select %p1634_p11, %s1633_s19, %s1608_s16 }
 0x442   :  { %s1635_s23 = scalar_select %p1634_p11, 1, 0 }
 0x443   :  { %s3726_s21 = spop %3725 }
 0x444   :  { %s1666_s7 = scalar_select %p1663_p12, %s1662_s27, %s1637_s25 }
 0x445   :  { %s1691_s2 = sadd.s32 %s3726_s21, %s1662_s27  ;;  %s1636_s26 = sadd.s32 %s1635_s23, %s1607_s8 }
 0x446   :  { %p1692_p13 = scmp.le.s32.totalorder %s1691_s2, %s4451_s20 }
 0x447   :  { %s1664_s29 = scalar_select %p1663_p12, 1, 0 }
 0x448   :  { %s1695_s9 = scalar_select %p1692_p13, %s1691_s2, %s1666_s7 }
 0x449   :  { %s1693_s5 = scalar_select %p1692_p13, 1, 0 }
 0x44a   :  { %s1665_s18 = sadd.s32 %s1664_s29, %s1636_s26 }
 0x44b   :  { %s1694_s27 = sadd.s32 %s1693_s5, %s1665_s18 }
 0x44d   :  { %s3728_s14 = spop %3727 }
 0x44e   :  { %s1720_s0 = sadd.s32 %s3728_s14, %s1691_s2  ;;  %s3730_s16 = spop %3729 }
 0x44f   :  { %p1721_p0 = scmp.le.s32.totalorder %s1720_s0, %s4451_s20  ;;  %s1749_s17 = sadd.s32 %s3730_s16, %s1720_s0 }
 0x450   :  { %p1750_p1 = scmp.le.s32.totalorder %s1749_s17, %s4451_s20 }
 0x451   :  { %s1722_s22 = scalar_select %p1721_p0, 1, 0 }
 0x452   :  { %s5128_s0 = smov (!%p1721_p0, %s1720_s0), %s1695_s9 }
 0x453   :  { %s3732_s15 = spop %3731  ;;  %s1723_s25 = sadd.s32 %s1722_s22, %s1694_s27 }
 0x454   :  { %s1751_s28 = scalar_select %p1750_p1, 1, 0 }
 0x455   :  { %s1753_s19 = scalar_select %p1750_p1, %s1749_s17, %s5128_s0 }
 0x456   :  { %s1778_s24 = sadd.s32 %s3732_s15, %s1749_s17  ;;  %s1752_s3 = sadd.s32 %s1751_s28, %s1723_s25 }
 0x457   :  { %p1779_p2 = scmp.le.s32.totalorder %s1778_s24, %s4451_s20  ;;  %s3734_s30 = spop %3733 }
 0x458   :  { %s1807_s4 = sadd.s32 %s3734_s30, %s1778_s24 }
 0x459   :  { %s1780_s21 = scalar_select %p1779_p2, 1, 0 }
 0x45a   :  { %s5130_s24 = smov (!%p1779_p2, %s1778_s24), %s1753_s19  ;;  %p1808_p3 = scmp.le.s32.totalorder %s1807_s4, %s4451_s20 }
 0x45b   :  { %s1781_s7 = sadd.s32 %s1780_s21, %s1752_s3 }
 0x45c   :  { %s1809_s2 = scalar_select %p1808_p3, 1, 0 }
 0x45d   :  { %s5132_s4 = smov (!%p1808_p3, %s1807_s4), %s5130_s24 }
 0x45e   :  { %s1810_s10 = sadd.s32 %s1809_s2, %s1781_s7 }
 0x45f   :  { %s1813_s13 = sshll.u32 %s1810_s10, 16 }
 0x460   :  { %s4532_s23 = sor.u32 %s1813_s13, %s4374_s6  ;;  %s4609_s6 = ssub.s32 %s4451_s20, %s5132_s4 }
 0x461   :  { %v1821_v58 = vstv %s4532_s23 }
 0x462   :  { %vm1822_vm0 = vcmp.eq.s32.totalorder %v1819_v24, %v1821_v58  ;;  %vm1823_vm1 = vcmp.eq.s32.totalorder %v1820_v25, %v1821_v58 }
 0x463   :  { %v4535_v29 = vsel %vm1822_vm0, %v1817_v26, 16  ;;  %v4537_v59 = vsel %vm1823_vm1, %v1818_v27, 16 }
 0x464   :  { %vm1882_vm2 = vcmp.eq.s32.totalorder %v4535_v29, 2  ;;  %vm1883_vm3 = vcmp.eq.s32.totalorder %v4537_v59, 2  ;;  %vm1853_vm4 = vcmp.eq.s32.totalorder %v4535_v29, 1  ;;  %vm1854_vm5 = vcmp.eq.s32.totalorder %v4537_v59, 1 }
 0x465   :  { %v1884_v30 = vsel %vm1882_vm2, 1, %v3919_v9  ;;  %v1885_v31 = vsel %vm1883_vm3, 1, %v3919_v9  ;;  %v1855_v33 = vsel %vm1853_vm4, 1, %v3919_v9  ;;  %v1856_v34 = vsel %vm1854_vm5, 1, %v3919_v9 }
 0x466   :  { %v1886_v35 = vadd.s32 %v1885_v31, %v1884_v30  ;;  %v1857_v28 = vadd.s32 %v1856_v34, %v1855_v33  ;;  %vm1826_vm6 = vcmp.eq.s32.totalorder %v4535_v29, 0  ;;  %vm1827_vm7 = vcmp.eq.s32.totalorder %v4537_v59, 0 }
 0x467   :  { %v1828_v36 = vsel %vm1826_vm6, 1, %v3919_v9  ;;  %v1829_v32 = vsel %vm1827_vm7, 1, %v3919_v9  ;;  %vm1911_vm8 = vcmp.eq.s32.totalorder %v4535_v29, 3  ;;  %vm1912_vm9 = vcmp.eq.s32.totalorder %v4537_v59, 3 }
 0x468   :  { %v1888_v7 = vshrl.u32 %v1886_v35, 16  ;;  %v1859_v39 = vshrl.u32 %v1857_v28, 16  ;;  %v1830_v40 = vadd.s32 %v1829_v32, %v1828_v36  ;;  %v1913_v42 = vsel %vm1911_vm8, 1, %v3919_v9 }
 0x469   :  { %v1914_v43 = vsel %vm1912_vm9, 1, %v3919_v9  ;;  %vm1940_vm10 = vcmp.eq.s32.totalorder %v4535_v29, 4  ;;  %vm1941_vm11 = vcmp.eq.s32.totalorder %v4537_v59, 4  ;;  %v1858_v51 = vand.u32 65535, %v1857_v28 }
 0x46a   :  { %v1890_v44 = vcvt.s32.f32 %v1888_v7  ;;  %v1861_v37 = vcvt.s32.f32 %v1859_v39  ;;  %v1832_v45 = vshrl.u32 %v1830_v40, 16  ;;  %v1915_v41 = vadd.s32 %v1914_v43, %v1913_v42 }
 0x46b   :  { %v1942_v53 = vsel %vm1940_vm10, 1, %v3919_v9  ;;  %v1943_v54 = vsel %vm1941_vm11, 1, %v3919_v9  ;;  %v1831_v55 = vand.u32 65535, %v1830_v40  ;;  %v1860_v56 = vcvt.s32.f32 %v1858_v51 }
 0x46c   :  { %1893 = vadd.xlane.f32.xlu2 %v1890_v44  ;;  %1864 = vadd.xlane.f32.xlu1 %v1861_v37  ;;  %v1834_v47 = vcvt.s32.f32 %v1832_v45  ;;  %v1917_v50 = vshrl.u32 %v1915_v41, 16  ;;  %v1944_v52 = vadd.s32 %v1943_v54, %v1942_v53  ;;  %vm1998_vm12 = vcmp.eq.s32.totalorder %v4535_v29, 6 }
 0x46d   :  { %v1833_v57 = vcvt.s32.f32 %v1831_v55  ;;  %vm1999_vm13 = vcmp.eq.s32.totalorder %v4537_v59, 6  ;;  %v1916_v60 = vand.u32 65535, %v1915_v41  ;;  %vm1969_vm14 = vcmp.eq.s32.totalorder %v4535_v29, 5 }
 0x46e   :  { %1837 = vadd.xlane.f32.xlu0 %v1834_v47  ;;  %v1919_v46 = vcvt.s32.f32 %v1917_v50  ;;  %v1946_v61 = vshrl.u32 %v1944_v52, 16  ;;  %vm1970_vm15 = vcmp.eq.s32.totalorder %v4537_v59, 5  ;;  %v2000_v62 = vsel %vm1998_vm12, 1, %v3919_v9 }
 0x46f   :  { %v2001_v63 = vsel %vm1999_vm13, 1, %v3919_v9  ;;  %v1887_v0 = vand.u32 65535, %v1886_v35  ;;  %v1971_v1 = vsel %vm1969_vm14, 1, %v3919_v9  ;;  %v1972_v2 = vsel %vm1970_vm15, 1, %v3919_v9 }
 0x470   :  { %v1918_v3 = vcvt.s32.f32 %v1916_v60  ;;  %v1948_v4 = vcvt.s32.f32 %v1946_v61  ;;  %v2002_v10 = vadd.s32 %v2001_v63, %v2000_v62  ;;  %v1973_v11 = vadd.s32 %v1972_v2, %v1971_v1 }
 0x471   :  { %v1889_v38 = vcvt.s32.f32 %v1887_v0  ;;  %vm2027_vm0 = vcmp.eq.s32.totalorder %v4535_v29, 7  ;;  %vm2028_vm1 = vcmp.eq.s32.totalorder %v4537_v59, 7  ;;  %v1945_v8 = vand.u32 65535, %v1944_v52 }
 0x472   :  { %v2004_v12 = vshrl.u32 %v2002_v10, 16  ;;  %vm2201_vm2 = vcmp.eq.s32.totalorder %v4535_v29, 13  ;;  %vm2202_vm3 = vcmp.eq.s32.totalorder %v4537_v59, 13  ;;  %v2029_v13 = vsel %vm2027_vm0, 1, %v3919_v9 }
 0x473   :  { %v2030_v14 = vsel %vm2028_vm1, 1, %v3919_v9  ;;  %v1975_v15 = vshrl.u32 %v1973_v11, 16  ;;  %v2203_v16 = vsel %vm2201_vm2, 1, %v3919_v9  ;;  %v2204_v17 = vsel %vm2202_vm3, 1, %v3919_v9 }
 0x474   :  { %1922 = vadd.xlane.f32.xlu2 %v1919_v46  ;;  %1862 = vadd.xlane.f32.xlu1 %v1860_v56  ;;  %vm2230_vm4 = vcmp.eq.s32.totalorder %v4535_v29, 14  ;;  %v1947_v18 = vcvt.s32.f32 %v1945_v8  ;;  %v4576_v19 = vadd.s32 %v2204_v17, %v2203_v16  ;;  %v2006_v48 = vcvt.s32.f32 %v2004_v12 }
 0x475   :  { %v2031_v20 = vadd.s32 %v2030_v14, %v2029_v13  ;;  %vm2231_vm5 = vcmp.eq.s32.totalorder %v4537_v59, 14  ;;  %v2232_v49 = vsel %vm2230_vm4, 1, %v3919_v9  ;;  %v1977_v22 = vcvt.s32.f32 %v1975_v15 }
 0x476   :  { %1835 = vadd.xlane.f32.xlu0 %v1833_v57  ;;  %v2233_v21 = vsel %vm2231_vm5, 1, %v3919_v9  ;;  %vm2085_vm6 = vcmp.eq.s32.totalorder %v4535_v29, 9  ;;  %vm2086_vm7 = vcmp.eq.s32.totalorder %v4537_v59, 9  ;;  %v2003_v24 = vand.u32 65535, %v2002_v10 }
 0x477   :  { %v4583_v23 = vadd.s32 %v2233_v21, %v2232_v49  ;;  %v2033_v25 = vshrl.u32 %v2031_v20, 16  ;;  %vm2056_vm8 = vcmp.eq.s32.totalorder %v4535_v29, 8  ;;  %vm2057_vm9 = vcmp.eq.s32.totalorder %v4537_v59, 8 }
 0x478   :  { %v2087_v26 = vsel %vm2085_vm6, 1, %v3919_v9  ;;  %v2088_v27 = vsel %vm2086_vm7, 1, %v3919_v9  ;;  %v1974_v58 = vand.u32 65535, %v1973_v11  ;;  %v2058_v30 = vsel %vm2056_vm8, 1, %v3919_v9 }
 0x479   :  { %v2059_v31 = vsel %vm2057_vm9, 1, %v3919_v9  ;;  %v2005_v33 = vcvt.s32.f32 %v2003_v24  ;;  %v2035_v34 = vcvt.s32.f32 %v2033_v25  ;;  %v2089_v35 = vadd.s32 %v2088_v27, %v2087_v26 }
 0x47a   :  { %v1976_v28 = vcvt.s32.f32 %v1974_v58  ;;  %v2060_v36 = vadd.s32 %v2059_v31, %v2058_v30  ;;  %vm2114_vm10 = vcmp.eq.s32.totalorder %v4535_v29, 10  ;;  %vm2115_vm11 = vcmp.eq.s32.totalorder %v4537_v59, 10 }
 0x47b   :  { %v2091_v32 = vshrl.u32 %v2089_v35, 16  ;;  %v2032_v7 = vand.u32 65535, %v2031_v20  ;;  %v2116_v39 = vsel %vm2114_vm10, 1, %v3919_v9  ;;  %v2117_v40 = vsel %vm2115_vm11, 1, %v3919_v9 }
 0x47c   :  { %1920 = vadd.xlane.f32.xlu2 %v1918_v3  ;;  %1951 = vadd.xlane.f32.xlu1 %v1948_v4  ;;  %v2062_v42 = vshrl.u32 %v2060_v36, 16  ;;  %v2118_v37 = vadd.s32 %v2117_v40, %v2116_v39  ;;  %vm2172_vm12 = vcmp.eq.s32.totalorder %v4535_v29, 12  ;;  %vm2173_vm13 = vcmp.eq.s32.totalorder %v4537_v59, 12 }
 0x47d   :  { %v2093_v43 = vcvt.s32.f32 %v2091_v32  ;;  %v2034_v44 = vcvt.s32.f32 %v2032_v7  ;;  %v2090_v41 = vand.u32 65535, %v2089_v35  ;;  %vm2143_vm14 = vcmp.eq.s32.totalorder %v4535_v29, 11 }
 0x47e   :  { %1891 = vadd.xlane.f32.xlu0 %v1889_v38  ;;  %v2064_v45 = vcvt.s32.f32 %v2062_v42  ;;  %v2120_v47 = vshrl.u32 %v2118_v37, 16  ;;  %vm2144_vm15 = vcmp.eq.s32.totalorder %v4537_v59, 11  ;;  %v2174_v50 = vsel %vm2172_vm12, 1, %v3919_v9 }
 0x47f   :  { %v2175_v51 = vsel %vm2173_vm13, 1, %v3919_v9  ;;  %v2061_v53 = vand.u32 65535, %v2060_v36  ;;  %v2145_v54 = vsel %vm2143_vm14, 1, %v3919_v9  ;;  %v2146_v55 = vsel %vm2144_vm15, 1, %v3919_v9 }
 0x480   :  { %v2092_v46 = vcvt.s32.f32 %v2090_v41  ;;  %v2122_v56 = vcvt.s32.f32 %v2120_v47  ;;  %v2176_v52 = vadd.s32 %v2175_v51, %v2174_v50  ;;  %v2147_v60 = vadd.s32 %v2146_v55, %v2145_v54 }
 0x481   :  { %v2063_v57 = vcvt.s32.f32 %v2061_v53  ;;  %v2119_v61 = vand.u32 65535, %v2118_v37  ;;  %v2207_v2 = vshrl.u32 %v4576_v19, 16  ;;  %v2235_v11 = vand.u32 65535, %v4583_v23 }
 0x482   :  { %v2178_v29 = vshrl.u32 %v2176_v52, 16  ;;  %v2149_v59 = vshrl.u32 %v2147_v60, 16  ;;  %v2177_v1 = vand.u32 65535, %v2176_v52  ;;  %v2148_v3 = vand.u32 65535, %v2147_v60 }
 0x483   :  { %v2121_v63 = vcvt.s32.f32 %v2119_v61  ;;  %v2209_v10 = vcvt.s32.f32 %v2207_v2  ;;  %v2206_v8 = vand.u32 65535, %v4576_v19  ;;  %v2236_v12 = vshrl.u32 %v4583_v23, 16 }
 0x484   :  { %2009 = vadd.xlane.f32.xlu2 %v2006_v48  ;;  %1949 = vadd.xlane.f32.xlu1 %v1947_v18  ;;  %v2180_v62 = vcvt.s32.f32 %v2178_v29  ;;  %v2151_v0 = vcvt.s32.f32 %v2149_v59  ;;  %v2179_v4 = vcvt.s32.f32 %v2177_v1  ;;  %v2150_v38 = vcvt.s32.f32 %v2148_v3 }
 0x485   :  { %v2237_v13 = vcvt.s32.f32 %v2235_v11  ;;  %v2208_v14 = vcvt.s32.f32 %v2206_v8  ;;  %v2238_v15 = vcvt.s32.f32 %v2236_v12 }
 0x486   :  { %1980 = vadd.xlane.f32.xlu0 %v1977_v22 }
 0x48c   :  { %2007 = vadd.xlane.f32.xlu2 %v2005_v33  ;;  %2038 = vadd.xlane.f32.xlu1 %v2035_v34 }
 0x48e   :  { %1978 = vadd.xlane.f32.xlu0 %v1976_v28 }
 0x494   :  { %2096 = vadd.xlane.f32.xlu2 %v2093_v43  ;;  %2036 = vadd.xlane.f32.xlu1 %v2034_v44 }
 0x496   :  { %2067 = vadd.xlane.f32.xlu0 %v2064_v45 }
 0x49c   :  { %2094 = vadd.xlane.f32.xlu2 %v2092_v46  ;;  %2125 = vadd.xlane.f32.xlu1 %v2122_v56 }
 0x49e   :  { %2065 = vadd.xlane.f32.xlu0 %v2063_v57 }
 0x4a4   :  { %2183 = vadd.xlane.f32.xlu2 %v2180_v62  ;;  %2123 = vadd.xlane.f32.xlu1 %v2121_v63 }
 0x4a6   :  { %2154 = vadd.xlane.f32.xlu0 %v2151_v0 }
 0x4ac   :  { %2181 = vadd.xlane.f32.xlu2 %v2179_v4  ;;  %2212 = vadd.xlane.f32.xlu1 %v2209_v10 }
 0x4ae   :  { %2152 = vadd.xlane.f32.xlu0 %v2150_v38 }
 0x4b4   :  { %2239 = vadd.xlane.f32.xlu2 %v2237_v13  ;;  %2210 = vadd.xlane.f32.xlu1 %v2208_v14 }
 0x4b6   :  { %2241 = vadd.xlane.f32.xlu0 %v2238_v15 }
 0x4df   :  { %v1894_v16 = vpop.xlane.xlu2 %1893  ;;  %v1865_v17 = vpop.xlane.xlu1 %1864 }
 0x4e0   :  { %v1867_v48 = vcvt.f32.s32 %v1865_v17  ;;  %v1896_v31 = vcvt.f32.s32 %v1894_v16 }
 0x4e1   :  { %v1838_v18 = vpop.xlane.xlu0 %1837 }
 0x4e2   :  { %v1840_v20 = vcvt.f32.s32 %v1838_v18  ;;  %v1868_v22 = vshll.u32 %v1867_v48, 16  ;;  %v1897_v42 = vshll.u32 %v1896_v31, 16 }
 0x4e4   :  { %v1841_v26 = vshll.u32 %v1840_v20, 16 }
 0x4e7   :  { %v1923_v49 = vpop.xlane.xlu2 %1922  ;;  %v1863_v21 = vpop.xlane.xlu1 %1862 }
 0x4e8   :  { %v1866_v24 = vcvt.f32.s32 %v1863_v21  ;;  %v1925_v23 = vcvt.f32.s32 %v1923_v49 }
 0x4e9   :  { %v1836_v25 = vpop.xlane.xlu0 %1835 }
 0x4ea   :  { %v1869_v19 = vadd.s32 %v1868_v22, %v1866_v24  ;;  %v1839_v27 = vcvt.f32.s32 %v1836_v25  ;;  %v1926_v36 = vshll.u32 %v1925_v23, 16 }
 0x4ec   :  { %v1870_v58 = vrot.slane %v1869_v19, 4  ;;  %v1842_v30 = vadd.s32 %v1841_v26, %v1839_v27 }
 0x4ee   :  { %v1871_v33 = vadd.s32 %v1870_v58, %v1869_v19  ;;  %v1843_v34 = vrot.slane %v1842_v30, 4 }
 0x4ef   :  { %v1921_v35 = vpop.xlane.xlu2 %1920  ;;  %v1952_v28 = vpop.xlane.xlu1 %1951 }
 0x4f0   :  { %v1844_v32 = vadd.s32 %v1843_v34, %v1842_v30  ;;  %v1924_v7 = vcvt.f32.s32 %v1921_v35  ;;  %v1872_v39 = vrot.slane %v1871_v33, 2  ;;  %v1954_v47 = vcvt.f32.s32 %v1952_v28 }
 0x4f1   :  { %v1892_v40 = vpop.xlane.xlu0 %1891 }
 0x4f2   :  { %v1927_v43 = vadd.s32 %v1926_v36, %v1924_v7  ;;  %v1895_v44 = vcvt.f32.s32 %v1892_v40  ;;  %v1845_v37 = vrot.slane %v1844_v32, 2  ;;  %v1873_v45 = vadd.s32 %v1872_v39, %v1871_v33 }
 0x4f3   :  { %v1955_v60 = vshll.u32 %v1954_v47, 16 }
 0x4f4   :  { %v1928_v41 = vrot.slane %v1927_v43, 4  ;;  %v1898_v50 = vadd.s32 %v1897_v42, %v1895_v44  ;;  %v1846_v51 = vadd.s32 %v1845_v37, %v1844_v32  ;;  %v1874_v53 = vrot.slane %v1873_v45, 1 }
 0x4f6   :  { %v1929_v54 = vadd.s32 %v1928_v41, %v1927_v43  ;;  %v1899_v55 = vrot.slane %v1898_v50, 4  ;;  %v1847_v46 = vrot.slane %v1846_v51, 1  ;;  %v1875_v57 = vadd.s32 %v1874_v53, %v1873_v45 }
 0x4f7   :  { %v2010_v56 = vpop.xlane.xlu2 %2009  ;;  %v1950_v52 = vpop.xlane.xlu1 %1949 }
 0x4f8   :  { %v1900_v29 = vadd.s32 %v1899_v55, %v1898_v50  ;;  %v1953_v61 = vcvt.f32.s32 %v1950_v52  ;;  %v1848_v59 = vadd.s32 %v1847_v46, %v1846_v51  ;;  %v1930_v63 = vrot.slane %v1929_v54, 2 }
 0x4f9   :  { %v1981_v62 = vpop.xlane.xlu0 %1980  ;;  %v2012_v3 = vcvt.f32.s32 %v2010_v56 }
 0x4fa   :  { %v1956_v0 = vadd.s32 %v1955_v60, %v1953_v61  ;;  %3735 = vpush %v1848_v59  ;;  %v1901_v1 = vrot.slane %v1900_v29, 2  ;;  %v1931_v2 = vadd.s32 %v1930_v63, %v1929_v54  ;;  %v1983_v8 = vcvt.f32.s32 %v1981_v62 }
 0x4fb   :  { %3737 = vpush %v1875_v57  ;;  %v2013_v16 = vshll.u32 %v2012_v3, 16 }
 0x4fc   :  { %v1957_v4 = vrot.slane %v1956_v0, 4  ;;  %v1902_v10 = vadd.s32 %v1901_v1, %v1900_v29  ;;  %v1932_v38 = vrot.slane %v1931_v2, 1  ;;  %v1984_v49 = vshll.u32 %v1983_v8, 16 }
 0x4fe   :  { %v1958_v11 = vadd.s32 %v1957_v4, %v1956_v0  ;;  %v1903_v12 = vrot.slane %v1902_v10, 1  ;;  %v1933_v15 = vadd.s32 %v1932_v38, %v1931_v2 }
 0x4ff   :  { %v2008_v13 = vpop.xlane.xlu2 %2007  ;;  %v2039_v14 = vpop.xlane.xlu1 %2038 }
 0x500   :  { %v2011_v17 = vcvt.f32.s32 %v2008_v13  ;;  %v1904_v18 = vadd.s32 %v1903_v12, %v1902_v10  ;;  %v1959_v48 = vrot.slane %v1958_v11, 2  ;;  %v2041_v26 = vcvt.f32.s32 %v2039_v14 }
 0x501   :  { %v1979_v20 = vpop.xlane.xlu0 %1978 }
 0x502   :  { %v2014_v21 = vadd.s32 %v2013_v16, %v2011_v17  ;;  %v1982_v22 = vcvt.f32.s32 %v1979_v20  ;;  %3739 = vpush %v1904_v18  ;;  %v1960_v24 = vadd.s32 %v1959_v48, %v1958_v11  ;;  %v2042_v34 = vshll.u32 %v2041_v26, 16 }
 0x503   :  { %3741 = vpush %v1933_v15 }
 0x504   :  { %v2015_v25 = vrot.slane %v2014_v21, 4  ;;  %v1985_v19 = vadd.s32 %v1984_v49, %v1982_v22  ;;  %v1961_v27 = vrot.slane %v1960_v24, 1 }
 0x506   :  { %v2016_v23 = vadd.s32 %v2015_v25, %v2014_v21  ;;  %v1986_v58 = vrot.slane %v1985_v19, 4  ;;  %v1962_v30 = vadd.s32 %v1961_v27, %v1960_v24 }
 0x507   :  { %v2097_v31 = vpop.xlane.xlu2 %2096  ;;  %v2037_v33 = vpop.xlane.xlu1 %2036 }
 0x508   :  { %v1987_v35 = vadd.s32 %v1986_v58, %v1985_v19  ;;  %v2040_v28 = vcvt.f32.s32 %v2037_v33  ;;  %3743 = vpush %v1962_v30  ;;  %v2017_v36 = vrot.slane %v2016_v23, 2  ;;  %v2099_v42 = vcvt.f32.s32 %v2097_v31 }
 0x509   :  { %v2068_v32 = vpop.xlane.xlu0 %2067 }
 0x50a   :  { %v2043_v7 = vadd.s32 %v2042_v34, %v2040_v28  ;;  %v1988_v39 = vrot.slane %v1987_v35, 2  ;;  %v2018_v40 = vadd.s32 %v2017_v36, %v2016_v23  ;;  %v2070_v41 = vcvt.f32.s32 %v2068_v32 }
 0x50b   :  { %v2100_v54 = vshll.u32 %v2099_v42, 16 }
 0x50c   :  { %v2044_v43 = vrot.slane %v2043_v7, 4  ;;  %v1989_v44 = vadd.s32 %v1988_v39, %v1987_v35  ;;  %v2019_v37 = vrot.slane %v2018_v40, 1  ;;  %v2071_v57 = vshll.u32 %v2070_v41, 16 }
 0x50e   :  { %v2045_v45 = vadd.s32 %v2044_v43, %v2043_v7  ;;  %v1990_v47 = vrot.slane %v1989_v44, 1  ;;  %v2020_v53 = vadd.s32 %v2019_v37, %v2018_v40 }
 0x50f   :  { %v2095_v50 = vpop.xlane.xlu2 %2094  ;;  %v2126_v51 = vpop.xlane.xlu1 %2125 }
 0x510   :  { %v2098_v55 = vcvt.f32.s32 %v2095_v50  ;;  %v1991_v46 = vadd.s32 %v1990_v47, %v1989_v44  ;;  %v2046_v56 = vrot.slane %v2045_v45, 2  ;;  %v2128_v62 = vcvt.f32.s32 %v2126_v51 }
 0x511   :  { %v2066_v52 = vpop.xlane.xlu0 %2065 }
 0x512   :  { %v2101_v60 = vadd.s32 %v2100_v54, %v2098_v55  ;;  %v2069_v29 = vcvt.f32.s32 %v2066_v52  ;;  %3745 = vpush %v1991_v46  ;;  %v2047_v61 = vadd.s32 %v2046_v56, %v2045_v45  ;;  %v2129_v38 = vshll.u32 %v2128_v62, 16 }
 0x513   :  { %3747 = vpush %v2020_v53 }
 0x514   :  { %v2102_v59 = vrot.slane %v2101_v60, 4  ;;  %v2072_v63 = vadd.s32 %v2071_v57, %v2069_v29  ;;  %v2048_v0 = vrot.slane %v2047_v61, 1 }
 0x516   :  { %v2103_v1 = vadd.s32 %v2102_v59, %v2101_v60  ;;  %v2073_v2 = vrot.slane %v2072_v63, 4  ;;  %v2049_v3 = vadd.s32 %v2048_v0, %v2047_v61 }
 0x517   :  { %v2184_v4 = vpop.xlane.xlu2 %2183  ;;  %v2124_v10 = vpop.xlane.xlu1 %2123 }
 0x518   :  { %v2074_v11 = vadd.s32 %v2073_v2, %v2072_v63  ;;  %v2127_v8 = vcvt.f32.s32 %v2124_v10  ;;  %3749 = vpush %v2049_v3  ;;  %v2104_v12 = vrot.slane %v2103_v1, 2  ;;  %v2186_v17 = vcvt.f32.s32 %v2184_v4 }
 0x519   :  { %v2155_v13 = vpop.xlane.xlu0 %2154 }
 0x51a   :  { %v2130_v14 = vadd.s32 %v2129_v38, %v2127_v8  ;;  %v2075_v15 = vrot.slane %v2074_v11, 2  ;;  %v2105_v16 = vadd.s32 %v2104_v12, %v2103_v1  ;;  %v2157_v21 = vcvt.f32.s32 %v2155_v13 }
 0x51b   :  { %v2187_v19 = vshll.u32 %v2186_v17, 16  ;;  %v2262_v13 = vshra.s32 %v3937_v5, 8 }
 0x51c   :  { %v2131_v18 = vrot.slane %v2130_v14, 4  ;;  %v2076_v48 = vadd.s32 %v2075_v15, %v2074_v11  ;;  %v2106_v20 = vrot.slane %v2105_v16, 1  ;;  %v2158_v31 = vshll.u32 %v2157_v21, 16 }
 0x51d   :  { %v2266_v15 = vand.u32 4294963200, %v3937_v5  ;;  %v2264_v17 = vand.u32 15, %v2262_v13 }
 0x51e   :  { %v2132_v49 = vadd.s32 %v2131_v18, %v2130_v14  ;;  %v2077_v22 = vrot.slane %v2076_v48, 1  ;;  %v2107_v26 = vadd.s32 %v2106_v20, %v2105_v16  ;;  %v2263_v14 = vshra.s32 %v3939_v6, 8 }
 0x51f   :  { %v2182_v24 = vpop.xlane.xlu2 %2181  ;;  %v2213_v25 = vpop.xlane.xlu1 %2212  ;;  %v2267_v16 = vand.u32 4294963200, %v3939_v6 }
 0x520   :  { %v2185_v27 = vcvt.f32.s32 %v2182_v24  ;;  %v2078_v23 = vadd.s32 %v2077_v22, %v2076_v48  ;;  %v2133_v58 = vrot.slane %v2132_v49, 2  ;;  %v2215_v36 = vcvt.f32.s32 %v2213_v25 }
 0x521   :  { %v2153_v30 = vpop.xlane.xlu0 %2152  ;;  %v2265_v18 = vand.u32 15, %v2263_v14 }
 0x522   :  { %v2188_v33 = vadd.s32 %v2187_v19, %v2185_v27  ;;  %v2156_v34 = vcvt.f32.s32 %v2153_v30  ;;  %3751 = vpush %v2078_v23  ;;  %v2134_v35 = vadd.s32 %v2133_v58, %v2132_v49  ;;  %v2216_v44 = vshll.u32 %v2215_v36, 16 }
 0x523   :  { %3753 = vpush %v2107_v26 }
 0x524   :  { %v2189_v28 = vrot.slane %v2188_v33, 4  ;;  %v2159_v32 = vadd.s32 %v2158_v31, %v2156_v34  ;;  %v2135_v7 = vrot.slane %v2134_v35, 1 }
 0x526   :  { %v2190_v39 = vadd.s32 %v2189_v28, %v2188_v33  ;;  %v2160_v40 = vrot.slane %v2159_v32, 4  ;;  %v2136_v42 = vadd.s32 %v2135_v7, %v2134_v35 }
 0x527   :  { %v2211_v43 = vpop.xlane.xlu1 %2210  ;;  %v2240_v45 = vpop.xlane.xlu2 %2239 }
 0x528   :  { %v2161_v37 = vadd.s32 %v2160_v40, %v2159_v32  ;;  %v2214_v41 = vcvt.f32.s32 %v2211_v43  ;;  %3755 = vpush %v2136_v42  ;;  %v2191_v47 = vrot.slane %v2190_v39, 2  ;;  %v2243_v46 = vcvt.f32.s32 %v2240_v45 }
 0x529   :  { %v2242_v50 = vpop.xlane.xlu0 %2241 }
 0x52a   :  { %v2217_v51 = vadd.s32 %v2216_v44, %v2214_v41  ;;  %v2244_v53 = vcvt.f32.s32 %v2242_v50  ;;  %v2162_v54 = vrot.slane %v2161_v37, 2  ;;  %v2192_v55 = vadd.s32 %v2191_v47, %v2190_v39 }
 0x52b   :  { %s4611_s9 = spop %3735 }
 0x52c   :  { %v2218_v56 = vrot.slane %v2217_v51, 4  ;;  %v2245_v52 = vshll.u32 %v2244_v53, 16  ;;  %p1850_p4 = scmp.le.s32.totalorder %s4611_s9, %s4609_s6  ;;  %s3738_s29 = spop %3737  ;;  %v2163_v57 = vadd.s32 %v2162_v54, %v2161_v37  ;;  %v2193_v60 = vrot.slane %v2192_v55, 1 }
 0x52d   :  { %s4616_s5 = sadd.s32 %s3738_s29, %s4611_s9 }
 0x52e   :  { %v2219_v29 = vadd.s32 %v2218_v56, %v2217_v51  ;;  %v2246_v61 = vadd.s32 %v2245_v52, %v2243_v46  ;;  %v2164_v59 = vrot.slane %v2163_v57, 1  ;;  %s1852_s20 = scalar_select %p1850_p4, %s4611_s9, 0  ;;  %v2194_v62 = vadd.s32 %v2193_v60, %v2192_v55 }
 0x52f   :  { %p1878_p5 = scmp.le.s32.totalorder %s4616_s5, %s4609_s6 }
 0x530   :  { %v2247_v63 = vrot.slane %v2246_v61, 4  ;;  %v2165_v0 = vadd.s32 %v2164_v59, %v2163_v57  ;;  %v2220_v1 = vrot.slane %v2219_v29, 2  ;;  %s1851_s19 = scalar_select %p1850_p4, 1, 0 }
 0x531   :  { %s1881_s8 = scalar_select %p1878_p5, %s4616_s5, %s1852_s20 }
 0x532   :  { %v2248_v2 = vadd.s32 %v2247_v63, %v2246_v61  ;;  %3757 = vpush %v2165_v0  ;;  %v2221_v3 = vadd.s32 %v2220_v1, %v2219_v29  ;;  %s1879_s4 = scalar_select %p1878_p5, 1, 0 }
 0x533   :  { %3759 = vpush %v2194_v62  ;;  %s3740_s14 = spop %3739 }
 0x534   :  { %v2222_v4 = vrot.slane %v2221_v3, 1  ;;  %v2249_v10 = vrot.slane %v2248_v2, 2  ;;  %s4629_s0 = sadd.s32 %s3740_s14, %s4616_s5  ;;  %s3742_s16 = spop %3741 }
 0x535   :  { %p1907_p6 = scmp.le.s32.totalorder %s4629_s0, %s4609_s6  ;;  %s1935_s17 = sadd.s32 %s3742_s16, %s4629_s0 }
 0x536   :  { %v2223_v38 = vadd.s32 %v2222_v4, %v2221_v3  ;;  %v2250_v11 = vadd.s32 %v2249_v10, %v2248_v2  ;;  %p1936_p7 = scmp.le.s32.totalorder %s1935_s17, %s4609_s6  ;;  %s1880_s10 = sadd.s32 %s1879_s4, %s1851_s19 }
 0x537   :  { %s1910_s26 = scalar_select %p1907_p6, %s4629_s0, %s1881_s8 }
 0x538   :  { %3761 = vpush %v2223_v38  ;;  %v2251_v8 = vrot.slane %v2250_v11, 1  ;;  %s1908_s13 = scalar_select %p1907_p6, 1, 0 }
 0x539   :  { %s3744_s22 = spop %3743 }
 0x53a   :  { %v2252_v12 = vadd.s32 %v2251_v8, %v2250_v11  ;;  %s1939_s18 = scalar_select %p1936_p7, %s1935_s17, %s1910_s26 }
 0x53b   :  { %s1964_s15 = sadd.s32 %s3744_s22, %s1935_s17  ;;  %s1909_s8 = sadd.s32 %s1908_s13, %s1880_s10 }
 0x53c   :  { %3763 = vpush %v2252_v12  ;;  %p1965_p8 = scmp.le.s32.totalorder %s1964_s15, %s4609_s6 }
 0x53d   :  { %s1937_s9 = scalar_select %p1936_p7, 1, 0 }
 0x53e   :  { %s1968_s28 = scalar_select %p1965_p8, %s1964_s15, %s1939_s18 }
 0x53f   :  { %s1966_s5 = scalar_select %p1965_p8, 1, 0 }
 0x540   :  { %s1938_s18 = sadd.s32 %s1937_s9, %s1909_s8 }
 0x543   :  { %s3746_s27 = spop %3745 }
 0x544   :  { %s1993_s24 = sadd.s32 %s3746_s27, %s1964_s15  ;;  %s3748_s30 = spop %3747 }
 0x545   :  { %p1994_p9 = scmp.le.s32.totalorder %s1993_s24, %s4609_s6  ;;  %s2022_s25 = sadd.s32 %s3748_s30, %s1993_s24 }
 0x546   :  { %p2023_p10 = scmp.le.s32.totalorder %s2022_s25, %s4609_s6 }
 0x547   :  { %s1997_s21 = scalar_select %p1994_p9, %s1993_s24, %s1968_s28 }
 0x548   :  { %s1995_s20 = scalar_select %p1994_p9, 1, 0 }
 0x549   :  { %s3750_s3 = spop %3749  ;;  %s1967_s28 = sadd.s32 %s1966_s5, %s1938_s18 }
 0x54a   :  { %s2026_s7 = scalar_select %p2023_p10, %s2022_s25, %s1997_s21 }
 0x54b   :  { %s2051_s2 = sadd.s32 %s3750_s3, %s2022_s25  ;;  %s1996_s19 = sadd.s32 %s1995_s20, %s1967_s28 }
 0x54c   :  { %p2052_p11 = scmp.le.s32.totalorder %s2051_s2, %s4609_s6 }
 0x54d   :  { %s2024_s0 = scalar_select %p2023_p10, 1, 0 }
 0x54e   :  { %s2055_s29 = scalar_select %p2052_p11, %s2051_s2, %s2026_s7 }
 0x54f   :  { %s2025_s30 = sadd.s32 %s2024_s0, %s1996_s19 }
 0x550   :  { %s2053_s4 = scalar_select %p2052_p11, 1, 0 }
 0x552   :  { %s2054_s10 = sadd.s32 %s2053_s4, %s2025_s30 }
 0x553   :  { %s3752_s14 = spop %3751 }
 0x554   :  { %s2080_s16 = sadd.s32 %s3752_s14, %s2051_s2  ;;  %s3754_s26 = spop %3753 }
 0x555   :  { %p2081_p12 = scmp.le.s32.totalorder %s2080_s16, %s4609_s6  ;;  %s2109_s22 = sadd.s32 %s3754_s26, %s2080_s16 }
 0x556   :  { %p2110_p13 = scmp.le.s32.totalorder %s2109_s22, %s4609_s6 }
 0x557   :  { %s2084_s17 = scalar_select %p2081_p12, %s2080_s16, %s2055_s29 }
 0x558   :  { %s2082_s21 = scalar_select %p2081_p12, 1, 0 }
 0x559   :  { %s3756_s15 = spop %3755 }
 0x55a   :  { %s2113_s27 = scalar_select %p2110_p13, %s2109_s22, %s2084_s17 }
 0x55b   :  { %s2138_s24 = sadd.s32 %s3756_s15, %s2109_s22  ;;  %s2083_s20 = sadd.s32 %s2082_s21, %s2054_s10 }
 0x55c   :  { %p2139_p0 = scmp.le.s32.totalorder %s2138_s24, %s4609_s6 }
 0x55d   :  { %s2111_s25 = scalar_select %p2110_p13, 1, 0 }
 0x55e   :  { %s2142_s3 = scalar_select %p2139_p0, %s2138_s24, %s2113_s27 }
 0x55f   :  { %s2140_s7 = scalar_select %p2139_p0, 1, 0 }
 0x560   :  { %s2112_s14 = sadd.s32 %s2111_s25, %s2083_s20 }
 0x561   :  { %s2141_s22 = sadd.s32 %s2140_s7, %s2112_s14 }
 0x563   :  { %s3758_s13 = spop %3757 }
 0x564   :  { %s2167_s9 = sadd.s32 %s3758_s13, %s2138_s24  ;;  %s3760_s29 = spop %3759 }
 0x565   :  { %p2168_p1 = scmp.le.s32.totalorder %s2167_s9, %s4609_s6  ;;  %s2196_s5 = sadd.s32 %s3760_s29, %s2167_s9 }
 0x566   :  { %p2197_p2 = scmp.le.s32.totalorder %s2196_s5, %s4609_s6 }
 0x567   :  { %s2169_s8 = scalar_select %p2168_p1, 1, 0 }
 0x568   :  { %s5134_s9 = smov (!%p2168_p1, %s2167_s9), %s2142_s3 }
 0x569   :  { %s3762_s2 = spop %3761  ;;  %s2170_s17 = sadd.s32 %s2169_s8, %s2141_s22 }
 0x56a   :  { %s2198_s26 = scalar_select %p2197_p2, 1, 0 }
 0x56b   :  { %s2200_s16 = scalar_select %p2197_p2, %s2196_s5, %s5134_s9 }
 0x56c   :  { %s2225_s0 = sadd.s32 %s3762_s2, %s2196_s5  ;;  %s2199_s19 = sadd.s32 %s2198_s26, %s2170_s17 }
 0x56d   :  { %p2226_p3 = scmp.le.s32.totalorder %s2225_s0, %s4609_s6  ;;  %s3764_s18 = spop %3763 }
 0x56e   :  { %s2254_s28 = sadd.s32 %s3764_s18, %s2225_s0 }
 0x56f   :  { %s2227_s15 = scalar_select %p2226_p3, 1, 0 }
 0x570   :  { %s5136_s0 = smov (!%p2226_p3, %s2225_s0), %s2200_s16  ;;  %p2255_p4 = scmp.le.s32.totalorder %s2254_s28, %s4609_s6 }
 0x571   :  { %s2228_s27 = sadd.s32 %s2227_s15, %s2199_s19 }
 0x572   :  { %s2256_s24 = scalar_select %p2255_p4, 1, 0 }
 0x573   :  { %s5138_s28 = smov (!%p2255_p4, %s2254_s28), %s5136_s0 }
 0x574   :  { %s2257_s30 = sadd.s32 %s2256_s24, %s2228_s27 }
 0x575   :  { %s2260_s4 = sshll.u32 %s2257_s30, 12 }
 0x576   :  { %s4690_s21 = sor.u32 %s2260_s4, %s4532_s23  ;;  %s4767_s23 = ssub.s32 %s4609_s6, %s5138_s28 }
 0x577   :  { %v2268_v48 = vstv %s4690_s21 }
 0x578   :  { %vm2269_vm0 = vcmp.eq.s32.totalorder %v2266_v15, %v2268_v48  ;;  %vm2270_vm1 = vcmp.eq.s32.totalorder %v2267_v16, %v2268_v48 }
 0x579   :  { %v4693_v20 = vsel %vm2269_vm0, %v2264_v17, 16  ;;  %v4695_v49 = vsel %vm2270_vm1, %v2265_v18, 16 }
 0x57a   :  { %vm2329_vm2 = vcmp.eq.s32.totalorder %v4693_v20, 2  ;;  %vm2330_vm3 = vcmp.eq.s32.totalorder %v4695_v49, 2  ;;  %vm2300_vm4 = vcmp.eq.s32.totalorder %v4693_v20, 1  ;;  %vm2301_vm5 = vcmp.eq.s32.totalorder %v4695_v49, 1 }
 0x57b   :  { %v2331_v21 = vsel %vm2329_vm2, 1, %v3919_v9  ;;  %v2332_v22 = vsel %vm2330_vm3, 1, %v3919_v9  ;;  %v2302_v24 = vsel %vm2300_vm4, 1, %v3919_v9  ;;  %v2303_v25 = vsel %vm2301_vm5, 1, %v3919_v9 }
 0x57c   :  { %v2333_v26 = vadd.s32 %v2332_v22, %v2331_v21  ;;  %v2304_v19 = vadd.s32 %v2303_v25, %v2302_v24  ;;  %vm2273_vm6 = vcmp.eq.s32.totalorder %v4693_v20, 0  ;;  %vm2274_vm7 = vcmp.eq.s32.totalorder %v4695_v49, 0 }
 0x57d   :  { %v2275_v27 = vsel %vm2273_vm6, 1, %v3919_v9  ;;  %v2276_v23 = vsel %vm2274_vm7, 1, %v3919_v9  ;;  %vm2358_vm8 = vcmp.eq.s32.totalorder %v4693_v20, 3  ;;  %vm2359_vm9 = vcmp.eq.s32.totalorder %v4695_v49, 3 }
 0x57e   :  { %v2335_v58 = vshrl.u32 %v2333_v26, 16  ;;  %v2306_v30 = vshrl.u32 %v2304_v19, 16  ;;  %v2277_v31 = vadd.s32 %v2276_v23, %v2275_v27  ;;  %v2360_v33 = vsel %vm2358_vm8, 1, %v3919_v9 }
 0x57f   :  { %v2361_v34 = vsel %vm2359_vm9, 1, %v3919_v9  ;;  %vm2387_vm10 = vcmp.eq.s32.totalorder %v4693_v20, 4  ;;  %vm2388_vm11 = vcmp.eq.s32.totalorder %v4695_v49, 4  ;;  %v2305_v40 = vand.u32 65535, %v2304_v19 }
 0x580   :  { %v2337_v35 = vcvt.s32.f32 %v2335_v58  ;;  %v2308_v28 = vcvt.s32.f32 %v2306_v30  ;;  %v2279_v36 = vshrl.u32 %v2277_v31, 16  ;;  %v2362_v32 = vadd.s32 %v2361_v34, %v2360_v33 }
 0x581   :  { %v2389_v42 = vsel %vm2387_vm10, 1, %v3919_v9  ;;  %v2390_v43 = vsel %vm2388_vm11, 1, %v3919_v9  ;;  %v2278_v44 = vand.u32 65535, %v2277_v31  ;;  %v2307_v45 = vcvt.s32.f32 %v2305_v40 }
 0x582   :  { %2340 = vadd.xlane.f32.xlu2 %v2337_v35  ;;  %2311 = vadd.xlane.f32.xlu1 %v2308_v28  ;;  %v2281_v7 = vcvt.s32.f32 %v2279_v36  ;;  %v2364_v39 = vshrl.u32 %v2362_v32, 16  ;;  %v2391_v41 = vadd.s32 %v2390_v43, %v2389_v42  ;;  %vm2445_vm12 = vcmp.eq.s32.totalorder %v4693_v20, 6 }
 0x583   :  { %v2280_v47 = vcvt.s32.f32 %v2278_v44  ;;  %vm2446_vm13 = vcmp.eq.s32.totalorder %v4695_v49, 6  ;;  %v2363_v50 = vand.u32 65535, %v2362_v32  ;;  %vm2416_vm14 = vcmp.eq.s32.totalorder %v4693_v20, 5 }
 0x584   :  { %2284 = vadd.xlane.f32.xlu0 %v2281_v7  ;;  %v2366_v37 = vcvt.s32.f32 %v2364_v39  ;;  %v2393_v51 = vshrl.u32 %v2391_v41, 16  ;;  %vm2417_vm15 = vcmp.eq.s32.totalorder %v4695_v49, 5  ;;  %v2447_v53 = vsel %vm2445_vm12, 1, %v3919_v9 }
 0x585   :  { %v2448_v54 = vsel %vm2446_vm13, 1, %v3919_v9  ;;  %v2334_v55 = vand.u32 65535, %v2333_v26  ;;  %v2418_v46 = vsel %vm2416_vm14, 1, %v3919_v9  ;;  %v2419_v56 = vsel %vm2417_vm15, 1, %v3919_v9 }
 0x586   :  { %v2365_v52 = vcvt.s32.f32 %v2363_v50  ;;  %v2395_v57 = vcvt.s32.f32 %v2393_v51  ;;  %v2449_v60 = vadd.s32 %v2448_v54, %v2447_v53  ;;  %v2420_v61 = vadd.s32 %v2419_v56, %v2418_v46 }
 0x587   :  { %v2336_v29 = vcvt.s32.f32 %v2334_v55  ;;  %vm2474_vm0 = vcmp.eq.s32.totalorder %v4693_v20, 7  ;;  %vm2475_vm1 = vcmp.eq.s32.totalorder %v4695_v49, 7  ;;  %v2392_v59 = vand.u32 65535, %v2391_v41 }
 0x588   :  { %v2451_v62 = vshrl.u32 %v2449_v60, 16  ;;  %vm2648_vm2 = vcmp.eq.s32.totalorder %v4693_v20, 13  ;;  %vm2649_vm3 = vcmp.eq.s32.totalorder %v4695_v49, 13  ;;  %v2476_v63 = vsel %vm2474_vm0, 1, %v3919_v9 }
 0x589   :  { %v2477_v0 = vsel %vm2475_vm1, 1, %v3919_v9  ;;  %v2422_v1 = vshrl.u32 %v2420_v61, 16  ;;  %v2650_v2 = vsel %vm2648_vm2, 1, %v3919_v9  ;;  %v2651_v3 = vsel %vm2649_vm3, 1, %v3919_v9 }
 0x58a   :  { %2369 = vadd.xlane.f32.xlu2 %v2366_v37  ;;  %2309 = vadd.xlane.f32.xlu1 %v2307_v45  ;;  %vm2677_vm4 = vcmp.eq.s32.totalorder %v4693_v20, 14  ;;  %v2394_v4 = vcvt.s32.f32 %v2392_v59  ;;  %v4734_v10 = vadd.s32 %v2651_v3, %v2650_v2  ;;  %v2453_v38 = vcvt.s32.f32 %v2451_v62 }
 0x58b   :  { %v2478_v11 = vadd.s32 %v2477_v0, %v2476_v63  ;;  %vm2678_vm5 = vcmp.eq.s32.totalorder %v4695_v49, 14  ;;  %v2679_v8 = vsel %vm2677_vm4, 1, %v3919_v9  ;;  %v2424_v13 = vcvt.s32.f32 %v2422_v1 }
 0x58c   :  { %2282 = vadd.xlane.f32.xlu0 %v2280_v47  ;;  %v2680_v12 = vsel %vm2678_vm5, 1, %v3919_v9  ;;  %vm2532_vm6 = vcmp.eq.s32.totalorder %v4693_v20, 9  ;;  %vm2533_vm7 = vcmp.eq.s32.totalorder %v4695_v49, 9  ;;  %v2450_v15 = vand.u32 65535, %v2449_v60 }
 0x58d   :  { %v4741_v14 = vadd.s32 %v2680_v12, %v2679_v8  ;;  %v2480_v16 = vshrl.u32 %v2478_v11, 16  ;;  %vm2503_vm8 = vcmp.eq.s32.totalorder %v4693_v20, 8  ;;  %vm2504_vm9 = vcmp.eq.s32.totalorder %v4695_v49, 8 }
 0x58e   :  { %v2534_v17 = vsel %vm2532_vm6, 1, %v3919_v9  ;;  %v2535_v18 = vsel %vm2533_vm7, 1, %v3919_v9  ;;  %v2421_v48 = vand.u32 65535, %v2420_v61  ;;  %v2505_v21 = vsel %vm2503_vm8, 1, %v3919_v9 }
 0x58f   :  { %v2506_v22 = vsel %vm2504_vm9, 1, %v3919_v9  ;;  %v2452_v24 = vcvt.s32.f32 %v2450_v15  ;;  %v2482_v25 = vcvt.s32.f32 %v2480_v16  ;;  %v2536_v26 = vadd.s32 %v2535_v18, %v2534_v17 }
 0x590   :  { %v2423_v19 = vcvt.s32.f32 %v2421_v48  ;;  %v2507_v27 = vadd.s32 %v2506_v22, %v2505_v21  ;;  %vm2561_vm10 = vcmp.eq.s32.totalorder %v4693_v20, 10  ;;  %vm2562_vm11 = vcmp.eq.s32.totalorder %v4695_v49, 10 }
 0x591   :  { %v2538_v23 = vshrl.u32 %v2536_v26, 16  ;;  %v2479_v58 = vand.u32 65535, %v2478_v11  ;;  %v2563_v30 = vsel %vm2561_vm10, 1, %v3919_v9  ;;  %v2564_v31 = vsel %vm2562_vm11, 1, %v3919_v9 }
 0x592   :  { %2367 = vadd.xlane.f32.xlu2 %v2365_v52  ;;  %2398 = vadd.xlane.f32.xlu1 %v2395_v57  ;;  %v2509_v33 = vshrl.u32 %v2507_v27, 16  ;;  %v2565_v28 = vadd.s32 %v2564_v31, %v2563_v30  ;;  %vm2619_vm12 = vcmp.eq.s32.totalorder %v4693_v20, 12  ;;  %vm2620_vm13 = vcmp.eq.s32.totalorder %v4695_v49, 12 }
 0x593   :  { %v2540_v34 = vcvt.s32.f32 %v2538_v23  ;;  %v2481_v35 = vcvt.s32.f32 %v2479_v58  ;;  %v2537_v32 = vand.u32 65535, %v2536_v26  ;;  %vm2590_vm14 = vcmp.eq.s32.totalorder %v4693_v20, 11 }
 0x594   :  { %2338 = vadd.xlane.f32.xlu0 %v2336_v29  ;;  %v2511_v36 = vcvt.s32.f32 %v2509_v33  ;;  %v2567_v7 = vshrl.u32 %v2565_v28, 16  ;;  %vm2591_vm15 = vcmp.eq.s32.totalorder %v4695_v49, 11  ;;  %v2621_v39 = vsel %vm2619_vm12, 1, %v3919_v9 }
 0x595   :  { %v2622_v40 = vsel %vm2620_vm13, 1, %v3919_v9  ;;  %v2508_v42 = vand.u32 65535, %v2507_v27  ;;  %v2592_v43 = vsel %vm2590_vm14, 1, %v3919_v9  ;;  %v2593_v44 = vsel %vm2591_vm15, 1, %v3919_v9 }
 0x596   :  { %v2539_v37 = vcvt.s32.f32 %v2537_v32  ;;  %v2569_v45 = vcvt.s32.f32 %v2567_v7  ;;  %v2623_v41 = vadd.s32 %v2622_v40, %v2621_v39  ;;  %v2594_v50 = vadd.s32 %v2593_v44, %v2592_v43 }
 0x597   :  { %v2510_v47 = vcvt.s32.f32 %v2508_v42  ;;  %v2566_v51 = vand.u32 65535, %v2565_v28  ;;  %v2654_v56 = vshrl.u32 %v4734_v10, 16  ;;  %v2682_v61 = vand.u32 65535, %v4741_v14 }
 0x598   :  { %v2625_v20 = vshrl.u32 %v2623_v41, 16  ;;  %v2596_v49 = vshrl.u32 %v2594_v50, 16  ;;  %v2624_v46 = vand.u32 65535, %v2623_v41  ;;  %v2595_v52 = vand.u32 65535, %v2594_v50 }
 0x599   :  { %v2568_v54 = vcvt.s32.f32 %v2566_v51  ;;  %v2656_v60 = vcvt.s32.f32 %v2654_v56  ;;  %v2653_v59 = vand.u32 65535, %v4734_v10  ;;  %v2683_v62 = vshrl.u32 %v4741_v14, 16 }
 0x59a   :  { %2456 = vadd.xlane.f32.xlu2 %v2453_v38  ;;  %2396 = vadd.xlane.f32.xlu1 %v2394_v4  ;;  %v2627_v53 = vcvt.s32.f32 %v2625_v20  ;;  %v2598_v55 = vcvt.s32.f32 %v2596_v49  ;;  %v2626_v57 = vcvt.s32.f32 %v2624_v46  ;;  %v2597_v29 = vcvt.s32.f32 %v2595_v52 }
 0x59b   :  { %v2684_v63 = vcvt.s32.f32 %v2682_v61  ;;  %v2655_v0 = vcvt.s32.f32 %v2653_v59  ;;  %v2685_v1 = vcvt.s32.f32 %v2683_v62 }
 0x59c   :  { %2427 = vadd.xlane.f32.xlu0 %v2424_v13 }
 0x5a2   :  { %2454 = vadd.xlane.f32.xlu2 %v2452_v24  ;;  %2485 = vadd.xlane.f32.xlu1 %v2482_v25 }
 0x5a4   :  { %2425 = vadd.xlane.f32.xlu0 %v2423_v19 }
 0x5aa   :  { %2543 = vadd.xlane.f32.xlu2 %v2540_v34  ;;  %2483 = vadd.xlane.f32.xlu1 %v2481_v35 }
 0x5ac   :  { %2514 = vadd.xlane.f32.xlu0 %v2511_v36 }
 0x5b2   :  { %2541 = vadd.xlane.f32.xlu2 %v2539_v37  ;;  %2572 = vadd.xlane.f32.xlu1 %v2569_v45 }
 0x5b4   :  { %2512 = vadd.xlane.f32.xlu0 %v2510_v47 }
 0x5ba   :  { %2630 = vadd.xlane.f32.xlu2 %v2627_v53  ;;  %2570 = vadd.xlane.f32.xlu1 %v2568_v54 }
 0x5bc   :  { %2601 = vadd.xlane.f32.xlu0 %v2598_v55 }
 0x5c2   :  { %2628 = vadd.xlane.f32.xlu2 %v2626_v57  ;;  %2659 = vadd.xlane.f32.xlu1 %v2656_v60 }
 0x5c4   :  { %2599 = vadd.xlane.f32.xlu0 %v2597_v29 }
 0x5ca   :  { %2686 = vadd.xlane.f32.xlu2 %v2684_v63  ;;  %2657 = vadd.xlane.f32.xlu1 %v2655_v0 }
 0x5cc   :  { %2688 = vadd.xlane.f32.xlu0 %v2685_v1 }
 0x5f5   :  { %v2341_v2 = vpop.xlane.xlu2 %2340  ;;  %v2312_v3 = vpop.xlane.xlu1 %2311 }
 0x5f6   :  { %v2314_v38 = vcvt.f32.s32 %v2312_v3  ;;  %v2343_v22 = vcvt.f32.s32 %v2341_v2 }
 0x5f7   :  { %v2285_v4 = vpop.xlane.xlu0 %2284 }
 0x5f8   :  { %v2287_v11 = vcvt.f32.s32 %v2285_v4  ;;  %v2315_v13 = vshll.u32 %v2314_v38, 16  ;;  %v2344_v33 = vshll.u32 %v2343_v22, 16 }
 0x5fa   :  { %v2288_v17 = vshll.u32 %v2287_v11, 16 }
 0x5fd   :  { %v2370_v8 = vpop.xlane.xlu2 %2369  ;;  %v2310_v12 = vpop.xlane.xlu1 %2309 }
 0x5fe   :  { %v2313_v15 = vcvt.f32.s32 %v2310_v12  ;;  %v2372_v14 = vcvt.f32.s32 %v2370_v8 }
 0x5ff   :  { %v2283_v16 = vpop.xlane.xlu0 %2282 }
 0x600   :  { %v2316_v10 = vadd.s32 %v2315_v13, %v2313_v15  ;;  %v2286_v18 = vcvt.f32.s32 %v2283_v16  ;;  %v2373_v27 = vshll.u32 %v2372_v14, 16 }
 0x602   :  { %v2317_v48 = vrot.slane %v2316_v10, 4  ;;  %v2289_v21 = vadd.s32 %v2288_v17, %v2286_v18 }
 0x604   :  { %v2318_v24 = vadd.s32 %v2317_v48, %v2316_v10  ;;  %v2290_v25 = vrot.slane %v2289_v21, 4 }
 0x605   :  { %v2368_v26 = vpop.xlane.xlu2 %2367  ;;  %v2399_v19 = vpop.xlane.xlu1 %2398 }
 0x606   :  { %v2291_v23 = vadd.s32 %v2290_v25, %v2289_v21  ;;  %v2371_v58 = vcvt.f32.s32 %v2368_v26  ;;  %v2319_v30 = vrot.slane %v2318_v24, 2  ;;  %v2401_v7 = vcvt.f32.s32 %v2399_v19 }
 0x607   :  { %v2339_v31 = vpop.xlane.xlu0 %2338 }
 0x608   :  { %v2374_v34 = vadd.s32 %v2373_v27, %v2371_v58  ;;  %v2342_v35 = vcvt.f32.s32 %v2339_v31  ;;  %v2292_v28 = vrot.slane %v2291_v23, 2  ;;  %v2320_v36 = vadd.s32 %v2319_v30, %v2318_v24 }
 0x609   :  { %v2402_v50 = vshll.u32 %v2401_v7, 16 }
 0x60a   :  { %v2375_v32 = vrot.slane %v2374_v34, 4  ;;  %v2345_v39 = vadd.s32 %v2344_v33, %v2342_v35  ;;  %v2293_v40 = vadd.s32 %v2292_v28, %v2291_v23  ;;  %v2321_v42 = vrot.slane %v2320_v36, 1 }
 0x60c   :  { %v2376_v43 = vadd.s32 %v2375_v32, %v2374_v34  ;;  %v2346_v44 = vrot.slane %v2345_v39, 4  ;;  %v2294_v37 = vrot.slane %v2293_v40, 1  ;;  %v2322_v47 = vadd.s32 %v2321_v42, %v2320_v36 }
 0x60d   :  { %v2457_v45 = vpop.xlane.xlu2 %2456  ;;  %v2397_v41 = vpop.xlane.xlu1 %2396 }
 0x60e   :  { %v2347_v20 = vadd.s32 %v2346_v44, %v2345_v39  ;;  %v2400_v51 = vcvt.f32.s32 %v2397_v41  ;;  %v2295_v49 = vadd.s32 %v2294_v37, %v2293_v40  ;;  %v2377_v54 = vrot.slane %v2376_v43, 2 }
 0x60f   :  { %v2428_v53 = vpop.xlane.xlu0 %2427  ;;  %v2459_v52 = vcvt.f32.s32 %v2457_v45 }
 0x610   :  { %v2403_v55 = vadd.s32 %v2402_v50, %v2400_v51  ;;  %3765 = vpush %v2295_v49  ;;  %v2348_v46 = vrot.slane %v2347_v20, 2  ;;  %v2378_v56 = vadd.s32 %v2377_v54, %v2376_v43  ;;  %v2430_v59 = vcvt.f32.s32 %v2428_v53 }
 0x611   :  { %3767 = vpush %v2322_v47  ;;  %v2460_v2 = vshll.u32 %v2459_v52, 16 }
 0x612   :  { %v2404_v57 = vrot.slane %v2403_v55, 4  ;;  %v2349_v60 = vadd.s32 %v2348_v46, %v2347_v20  ;;  %v2379_v29 = vrot.slane %v2378_v56, 1  ;;  %v2431_v8 = vshll.u32 %v2430_v59, 16 }
 0x614   :  { %v2405_v61 = vadd.s32 %v2404_v57, %v2403_v55  ;;  %v2350_v62 = vrot.slane %v2349_v60, 1  ;;  %v2380_v1 = vadd.s32 %v2379_v29, %v2378_v56 }
 0x615   :  { %v2455_v63 = vpop.xlane.xlu2 %2454  ;;  %v2486_v0 = vpop.xlane.xlu1 %2485 }
 0x616   :  { %v2458_v3 = vcvt.f32.s32 %v2455_v63  ;;  %v2351_v4 = vadd.s32 %v2350_v62, %v2349_v60  ;;  %v2406_v38 = vrot.slane %v2405_v61, 2  ;;  %v2488_v17 = vcvt.f32.s32 %v2486_v0 }
 0x617   :  { %v2426_v11 = vpop.xlane.xlu0 %2425 }
 0x618   :  { %v2461_v12 = vadd.s32 %v2460_v2, %v2458_v3  ;;  %v2429_v13 = vcvt.f32.s32 %v2426_v11  ;;  %3769 = vpush %v2351_v4  ;;  %v2407_v15 = vadd.s32 %v2406_v38, %v2405_v61  ;;  %v2489_v25 = vshll.u32 %v2488_v17, 16 }
 0x619   :  { %3771 = vpush %v2380_v1 }
 0x61a   :  { %v2462_v16 = vrot.slane %v2461_v12, 4  ;;  %v2432_v10 = vadd.s32 %v2431_v8, %v2429_v13  ;;  %v2408_v18 = vrot.slane %v2407_v15, 1 }
 0x61c   :  { %v2463_v14 = vadd.s32 %v2462_v16, %v2461_v12  ;;  %v2433_v48 = vrot.slane %v2432_v10, 4  ;;  %v2409_v21 = vadd.s32 %v2408_v18, %v2407_v15 }
 0x61d   :  { %v2544_v22 = vpop.xlane.xlu2 %2543  ;;  %v2484_v24 = vpop.xlane.xlu1 %2483 }
 0x61e   :  { %v2434_v26 = vadd.s32 %v2433_v48, %v2432_v10  ;;  %v2487_v19 = vcvt.f32.s32 %v2484_v24  ;;  %3773 = vpush %v2409_v21  ;;  %v2464_v27 = vrot.slane %v2463_v14, 2  ;;  %v2546_v33 = vcvt.f32.s32 %v2544_v22 }
 0x61f   :  { %v2515_v23 = vpop.xlane.xlu0 %2514 }
 0x620   :  { %v2490_v58 = vadd.s32 %v2489_v25, %v2487_v19  ;;  %v2435_v30 = vrot.slane %v2434_v26, 2  ;;  %v2465_v31 = vadd.s32 %v2464_v27, %v2463_v14  ;;  %v2517_v32 = vcvt.f32.s32 %v2515_v23 }
 0x621   :  { %v2547_v43 = vshll.u32 %v2546_v33, 16 }
 0x622   :  { %v2491_v34 = vrot.slane %v2490_v58, 4  ;;  %v2436_v35 = vadd.s32 %v2435_v30, %v2434_v26  ;;  %v2466_v28 = vrot.slane %v2465_v31, 1  ;;  %v2518_v47 = vshll.u32 %v2517_v32, 16 }
 0x624   :  { %v2492_v36 = vadd.s32 %v2491_v34, %v2490_v58  ;;  %v2437_v7 = vrot.slane %v2436_v35, 1  ;;  %v2467_v42 = vadd.s32 %v2466_v28, %v2465_v31 }
 0x625   :  { %v2542_v39 = vpop.xlane.xlu2 %2541  ;;  %v2573_v40 = vpop.xlane.xlu1 %2572 }
 0x626   :  { %v2545_v44 = vcvt.f32.s32 %v2542_v39  ;;  %v2438_v37 = vadd.s32 %v2437_v7, %v2436_v35  ;;  %v2493_v45 = vrot.slane %v2492_v36, 2  ;;  %v2575_v53 = vcvt.f32.s32 %v2573_v40 }
 0x627   :  { %v2513_v41 = vpop.xlane.xlu0 %2512 }
 0x628   :  { %v2548_v50 = vadd.s32 %v2547_v43, %v2545_v44  ;;  %v2516_v20 = vcvt.f32.s32 %v2513_v41  ;;  %3775 = vpush %v2438_v37  ;;  %v2494_v51 = vadd.s32 %v2493_v45, %v2492_v36  ;;  %v2576_v29 = vshll.u32 %v2575_v53, 16 }
 0x629   :  { %3777 = vpush %v2467_v42 }
 0x62a   :  { %v2549_v49 = vrot.slane %v2548_v50, 4  ;;  %v2519_v54 = vadd.s32 %v2518_v47, %v2516_v20  ;;  %v2495_v55 = vrot.slane %v2494_v51, 1 }
 0x62c   :  { %v2550_v46 = vadd.s32 %v2549_v49, %v2548_v50  ;;  %v2520_v56 = vrot.slane %v2519_v54, 4  ;;  %v2496_v52 = vadd.s32 %v2495_v55, %v2494_v51 }
 0x62d   :  { %v2631_v57 = vpop.xlane.xlu2 %2630  ;;  %v2571_v60 = vpop.xlane.xlu1 %2570 }
 0x62e   :  { %v2521_v61 = vadd.s32 %v2520_v56, %v2519_v54  ;;  %v2574_v59 = vcvt.f32.s32 %v2571_v60  ;;  %3779 = vpush %v2496_v52  ;;  %v2551_v62 = vrot.slane %v2550_v46, 2  ;;  %v2633_v3 = vcvt.f32.s32 %v2631_v57 }
 0x62f   :  { %v2602_v63 = vpop.xlane.xlu0 %2601 }
 0x630   :  { %v2577_v0 = vadd.s32 %v2576_v29, %v2574_v59  ;;  %v2522_v1 = vrot.slane %v2521_v61, 2  ;;  %v2552_v2 = vadd.s32 %v2551_v62, %v2550_v46  ;;  %v2604_v12 = vcvt.f32.s32 %v2602_v63 }
 0x631   :  { %v2634_v10 = vshll.u32 %v2633_v3, 16  ;;  %v2709_v63 = vshra.s32 %v3937_v5, 4 }
 0x632   :  { %v2578_v4 = vrot.slane %v2577_v0, 4  ;;  %v2523_v38 = vadd.s32 %v2522_v1, %v2521_v61  ;;  %v2553_v11 = vrot.slane %v2552_v2, 1  ;;  %v2605_v22 = vshll.u32 %v2604_v12, 16 }
 0x633   :  { %v2713_v1 = vand.u32 4294967040, %v3937_v5  ;;  %v2711_v3 = vand.u32 15, %v2709_v63 }
 0x634   :  { %v2579_v8 = vadd.s32 %v2578_v4, %v2577_v0  ;;  %v2524_v13 = vrot.slane %v2523_v38, 1  ;;  %v2554_v17 = vadd.s32 %v2553_v11, %v2552_v2  ;;  %v2710_v0 = vshra.s32 %v3939_v6, 4 }
 0x635   :  { %v2629_v15 = vpop.xlane.xlu2 %2628  ;;  %v2660_v16 = vpop.xlane.xlu1 %2659  ;;  %v2714_v2 = vand.u32 4294967040, %v3939_v6 }
 0x636   :  { %v2632_v18 = vcvt.f32.s32 %v2629_v15  ;;  %v2525_v14 = vadd.s32 %v2524_v13, %v2523_v38  ;;  %v2580_v48 = vrot.slane %v2579_v8, 2  ;;  %v2662_v27 = vcvt.f32.s32 %v2660_v16 }
 0x637   :  { %v2600_v21 = vpop.xlane.xlu0 %2599  ;;  %v2712_v4 = vand.u32 15, %v2710_v0 }
 0x638   :  { %v2635_v24 = vadd.s32 %v2634_v10, %v2632_v18  ;;  %v2603_v25 = vcvt.f32.s32 %v2600_v21  ;;  %3781 = vpush %v2525_v14  ;;  %v2581_v26 = vadd.s32 %v2580_v48, %v2579_v8  ;;  %v2663_v35 = vshll.u32 %v2662_v27, 16 }
 0x639   :  { %3783 = vpush %v2554_v17 }
 0x63a   :  { %v2636_v19 = vrot.slane %v2635_v24, 4  ;;  %v2606_v23 = vadd.s32 %v2605_v22, %v2603_v25  ;;  %v2582_v58 = vrot.slane %v2581_v26, 1 }
 0x63c   :  { %v2637_v30 = vadd.s32 %v2636_v19, %v2635_v24  ;;  %v2607_v31 = vrot.slane %v2606_v23, 4  ;;  %v2583_v33 = vadd.s32 %v2582_v58, %v2581_v26 }
 0x63d   :  { %v2658_v34 = vpop.xlane.xlu1 %2657  ;;  %v2687_v36 = vpop.xlane.xlu2 %2686 }
 0x63e   :  { %v2608_v28 = vadd.s32 %v2607_v31, %v2606_v23  ;;  %v2661_v32 = vcvt.f32.s32 %v2658_v34  ;;  %3785 = vpush %v2583_v33  ;;  %v2638_v7 = vrot.slane %v2637_v30, 2  ;;  %v2690_v37 = vcvt.f32.s32 %v2687_v36 }
 0x63f   :  { %v2689_v39 = vpop.xlane.xlu0 %2688 }
 0x640   :  { %v2664_v40 = vadd.s32 %v2663_v35, %v2661_v32  ;;  %v2691_v42 = vcvt.f32.s32 %v2689_v39  ;;  %v2609_v43 = vrot.slane %v2608_v28, 2  ;;  %v2639_v44 = vadd.s32 %v2638_v7, %v2637_v30 }
 0x641   :  { %s4769_s3 = spop %3765 }
 0x642   :  { %v2665_v45 = vrot.slane %v2664_v40, 4  ;;  %v2692_v41 = vshll.u32 %v2691_v42, 16  ;;  %p2297_p5 = scmp.le.s32.totalorder %s4769_s3, %s4767_s23  ;;  %s3768_s25 = spop %3767  ;;  %v2610_v47 = vadd.s32 %v2609_v43, %v2608_v28  ;;  %v2640_v50 = vrot.slane %v2639_v44, 1 }
 0x643   :  { %s4774_s7 = sadd.s32 %s3768_s25, %s4769_s3 }
 0x644   :  { %v2666_v20 = vadd.s32 %v2665_v45, %v2664_v40  ;;  %v2693_v51 = vadd.s32 %v2692_v41, %v2690_v37  ;;  %v2611_v49 = vrot.slane %v2610_v47, 1  ;;  %s2299_s6 = scalar_select %p2297_p5, %s4769_s3, 0  ;;  %v2641_v53 = vadd.s32 %v2640_v50, %v2639_v44 }
 0x645   :  { %p2325_p6 = scmp.le.s32.totalorder %s4774_s7, %s4767_s23 }
 0x646   :  { %v2694_v54 = vrot.slane %v2693_v51, 4  ;;  %v2612_v55 = vadd.s32 %v2611_v49, %v2610_v47  ;;  %v2667_v46 = vrot.slane %v2666_v20, 2  ;;  %s2298_s16 = scalar_select %p2297_p5, 1, 0 }
 0x647   :  { %s2328_s10 = scalar_select %p2325_p6, %s4774_s7, %s2299_s6 }
 0x648   :  { %v2695_v56 = vadd.s32 %v2694_v54, %v2693_v51  ;;  %3787 = vpush %v2612_v55  ;;  %v2668_v52 = vadd.s32 %v2667_v46, %v2666_v20  ;;  %s2326_s28 = scalar_select %p2325_p6, 1, 0 }
 0x649   :  { %3789 = vpush %v2641_v53  ;;  %s3770_s13 = spop %3769 }
 0x64a   :  { %v2669_v57 = vrot.slane %v2668_v52, 1  ;;  %v2696_v60 = vrot.slane %v2695_v56, 2  ;;  %s4787_s9 = sadd.s32 %s3770_s13, %s4774_s7  ;;  %s3772_s29 = spop %3771 }
 0x64b   :  { %p2354_p7 = scmp.le.s32.totalorder %s4787_s9, %s4767_s23  ;;  %s2382_s5 = sadd.s32 %s3772_s29, %s4787_s9 }
 0x64c   :  { %v2670_v29 = vadd.s32 %v2669_v57, %v2668_v52  ;;  %v2697_v61 = vadd.s32 %v2696_v60, %v2695_v56  ;;  %p2383_p8 = scmp.le.s32.totalorder %s2382_s5, %s4767_s23  ;;  %s2327_s30 = sadd.s32 %s2326_s28, %s2298_s16 }
 0x64d   :  { %s2357_s20 = scalar_select %p2354_p7, %s4787_s9, %s2328_s10 }
 0x64e   :  { %3791 = vpush %v2670_v29  ;;  %v2698_v59 = vrot.slane %v2697_v61, 1  ;;  %s2355_s4 = scalar_select %p2354_p7, 1, 0 }
 0x64f   :  { %s3774_s8 = spop %3773 }
 0x650   :  { %v2699_v62 = vadd.s32 %v2698_v59, %v2697_v61  ;;  %s2386_s14 = scalar_select %p2383_p8, %s2382_s5, %s2357_s20 }
 0x651   :  { %s2411_s2 = sadd.s32 %s3774_s8, %s2382_s5  ;;  %s2356_s10 = sadd.s32 %s2355_s4, %s2327_s30 }
 0x652   :  { %3793 = vpush %v2699_v62  ;;  %p2412_p9 = scmp.le.s32.totalorder %s2411_s2, %s4767_s23 }
 0x653   :  { %s2384_s3 = scalar_select %p2383_p8, 1, 0 }
 0x654   :  { %s2415_s26 = scalar_select %p2412_p9, %s2411_s2, %s2386_s14 }
 0x655   :  { %s2413_s7 = scalar_select %p2412_p9, 1, 0 }
 0x656   :  { %s2385_s14 = sadd.s32 %s2384_s3, %s2356_s10 }
 0x659   :  { %s3776_s22 = spop %3775 }
 0x65a   :  { %s2440_s0 = sadd.s32 %s3776_s22, %s2411_s2  ;;  %s3778_s18 = spop %3777 }
 0x65b   :  { %p2441_p10 = scmp.le.s32.totalorder %s2440_s0, %s4767_s23  ;;  %s2469_s17 = sadd.s32 %s3778_s18, %s2440_s0 }
 0x65c   :  { %p2470_p11 = scmp.le.s32.totalorder %s2469_s17, %s4767_s23 }
 0x65d   :  { %s2444_s15 = scalar_select %p2441_p10, %s2440_s0, %s2415_s26 }
 0x65e   :  { %s2442_s6 = scalar_select %p2441_p10, 1, 0 }
 0x65f   :  { %s3780_s19 = spop %3779  ;;  %s2414_s26 = sadd.s32 %s2413_s7, %s2385_s14 }
 0x660   :  { %s2473_s27 = scalar_select %p2470_p11, %s2469_s17, %s2444_s15 }
 0x661   :  { %s2498_s24 = sadd.s32 %s3780_s19, %s2469_s17  ;;  %s2443_s16 = sadd.s32 %s2442_s6, %s2414_s26 }
 0x662   :  { %p2499_p12 = scmp.le.s32.totalorder %s2498_s24, %s4767_s23 }
 0x663   :  { %s2471_s9 = scalar_select %p2470_p11, 1, 0 }
 0x664   :  { %s2502_s25 = scalar_select %p2499_p12, %s2498_s24, %s2473_s27 }
 0x665   :  { %s2472_s18 = sadd.s32 %s2471_s9, %s2443_s16 }
 0x666   :  { %s2500_s28 = scalar_select %p2499_p12, 1, 0 }
 0x668   :  { %s2501_s30 = sadd.s32 %s2500_s28, %s2472_s18 }
 0x669   :  { %s3782_s13 = spop %3781 }
 0x66a   :  { %s2527_s29 = sadd.s32 %s3782_s13, %s2498_s24  ;;  %s3784_s20 = spop %3783 }
 0x66b   :  { %p2528_p13 = scmp.le.s32.totalorder %s2527_s29, %s4767_s23  ;;  %s2556_s8 = sadd.s32 %s3784_s20, %s2527_s29 }
 0x66c   :  { %p2557_p0 = scmp.le.s32.totalorder %s2556_s8, %s4767_s23 }
 0x66d   :  { %s2531_s5 = scalar_select %p2528_p13, %s2527_s29, %s2502_s25 }
 0x66e   :  { %s2529_s15 = scalar_select %p2528_p13, 1, 0 }
 0x66f   :  { %s3786_s2 = spop %3785 }
 0x670   :  { %s2560_s22 = scalar_select %p2557_p0, %s2556_s8, %s2531_s5 }
 0x671   :  { %s2585_s0 = sadd.s32 %s3786_s2, %s2556_s8  ;;  %s2530_s6 = sadd.s32 %s2529_s15, %s2501_s30 }
 0x672   :  { %p2586_p1 = scmp.le.s32.totalorder %s2585_s0, %s4767_s23 }
 0x673   :  { %s2558_s17 = scalar_select %p2557_p0, 1, 0 }
 0x674   :  { %s2589_s19 = scalar_select %p2586_p1, %s2585_s0, %s2560_s22 }
 0x675   :  { %s2587_s27 = scalar_select %p2586_p1, 1, 0 }
 0x676   :  { %s2559_s13 = sadd.s32 %s2558_s17, %s2530_s6 }
 0x677   :  { %s2588_s8 = sadd.s32 %s2587_s27, %s2559_s13 }
 0x679   :  { %s3788_s4 = spop %3787 }
 0x67a   :  { %s2614_s3 = sadd.s32 %s3788_s4, %s2585_s0  ;;  %s3790_s25 = spop %3789 }
 0x67b   :  { %p2615_p2 = scmp.le.s32.totalorder %s2614_s3, %s4767_s23  ;;  %s2643_s7 = sadd.s32 %s3790_s25, %s2614_s3 }
 0x67c   :  { %p2644_p3 = scmp.le.s32.totalorder %s2643_s7, %s4767_s23 }
 0x67d   :  { %s2616_s10 = scalar_select %p2615_p2, 1, 0 }
 0x67e   :  { %s5140_s3 = smov (!%p2615_p2, %s2614_s3), %s2589_s19 }
 0x67f   :  { %s3792_s24 = spop %3791  ;;  %s2617_s5 = sadd.s32 %s2616_s10, %s2588_s8 }
 0x680   :  { %s2645_s20 = scalar_select %p2644_p3, 1, 0 }
 0x681   :  { %s2647_s29 = scalar_select %p2644_p3, %s2643_s7, %s5140_s3 }
 0x682   :  { %s2672_s9 = sadd.s32 %s3792_s24, %s2643_s7  ;;  %s2646_s16 = sadd.s32 %s2645_s20, %s2617_s5 }
 0x683   :  { %p2673_p4 = scmp.le.s32.totalorder %s2672_s9, %s4767_s23  ;;  %s3794_s14 = spop %3793 }
 0x684   :  { %s2701_s26 = sadd.s32 %s3794_s14, %s2672_s9 }
 0x685   :  { %s2674_s2 = scalar_select %p2673_p4, 1, 0 }
 0x686   :  { %s5142_s9 = smov (!%p2673_p4, %s2672_s9), %s2647_s29  ;;  %p2702_p5 = scmp.le.s32.totalorder %s2701_s26, %s4767_s23 }
 0x687   :  { %s2675_s22 = sadd.s32 %s2674_s2, %s2646_s16 }
 0x688   :  { %s2703_s0 = scalar_select %p2702_p5, 1, 0 }
 0x689   :  { %s5144_s26 = smov (!%p2702_p5, %s2701_s26), %s5142_s9 }
 0x68a   :  { %s2704_s18 = sadd.s32 %s2703_s0, %s2675_s22 }
 0x68b   :  { %s2707_s28 = sshll.u32 %s2704_s18, 8 }
 0x68c   :  { %s4848_s15 = sor.u32 %s2707_s28, %s4690_s21  ;;  %s4925_s21 = ssub.s32 %s4767_s23, %s5144_s26 }
 0x68d   :  { %v2715_v38 = vstv %s4848_s15 }
 0x68e   :  { %vm2716_vm0 = vcmp.eq.s32.totalorder %v2713_v1, %v2715_v38  ;;  %vm2717_vm1 = vcmp.eq.s32.totalorder %v2714_v2, %v2715_v38 }
 0x68f   :  { %v4851_v11 = vsel %vm2716_vm0, %v2711_v3, 16  ;;  %v4853_v8 = vsel %vm2717_vm1, %v2712_v4, 16 }
 0x690   :  { %vm2776_vm2 = vcmp.eq.s32.totalorder %v4851_v11, 2  ;;  %vm2777_vm3 = vcmp.eq.s32.totalorder %v4853_v8, 2  ;;  %vm2747_vm4 = vcmp.eq.s32.totalorder %v4851_v11, 1  ;;  %vm2748_vm5 = vcmp.eq.s32.totalorder %v4853_v8, 1 }
 0x691   :  { %v2778_v12 = vsel %vm2776_vm2, 1, %v3919_v9  ;;  %v2779_v13 = vsel %vm2777_vm3, 1, %v3919_v9  ;;  %v2749_v15 = vsel %vm2747_vm4, 1, %v3919_v9  ;;  %v2750_v16 = vsel %vm2748_vm5, 1, %v3919_v9 }
 0x692   :  { %v2780_v17 = vadd.s32 %v2779_v13, %v2778_v12  ;;  %v2751_v10 = vadd.s32 %v2750_v16, %v2749_v15  ;;  %vm2720_vm6 = vcmp.eq.s32.totalorder %v4851_v11, 0  ;;  %vm2721_vm7 = vcmp.eq.s32.totalorder %v4853_v8, 0 }
 0x693   :  { %v2722_v18 = vsel %vm2720_vm6, 1, %v3919_v9  ;;  %v2723_v14 = vsel %vm2721_vm7, 1, %v3919_v9  ;;  %vm2805_vm8 = vcmp.eq.s32.totalorder %v4851_v11, 3  ;;  %vm2806_vm9 = vcmp.eq.s32.totalorder %v4853_v8, 3 }
 0x694   :  { %v2782_v48 = vshrl.u32 %v2780_v17, 16  ;;  %v2753_v21 = vshrl.u32 %v2751_v10, 16  ;;  %v2724_v22 = vadd.s32 %v2723_v14, %v2722_v18  ;;  %v2807_v24 = vsel %vm2805_vm8, 1, %v3919_v9 }
 0x695   :  { %v2808_v25 = vsel %vm2806_vm9, 1, %v3919_v9  ;;  %vm2834_vm10 = vcmp.eq.s32.totalorder %v4851_v11, 4  ;;  %vm2835_vm11 = vcmp.eq.s32.totalorder %v4853_v8, 4  ;;  %v2752_v31 = vand.u32 65535, %v2751_v10 }
 0x696   :  { %v2784_v26 = vcvt.s32.f32 %v2782_v48  ;;  %v2755_v19 = vcvt.s32.f32 %v2753_v21  ;;  %v2726_v27 = vshrl.u32 %v2724_v22, 16  ;;  %v2809_v23 = vadd.s32 %v2808_v25, %v2807_v24 }
 0x697   :  { %v2836_v33 = vsel %vm2834_vm10, 1, %v3919_v9  ;;  %v2837_v34 = vsel %vm2835_vm11, 1, %v3919_v9  ;;  %v2725_v35 = vand.u32 65535, %v2724_v22  ;;  %v2754_v36 = vcvt.s32.f32 %v2752_v31 }
 0x698   :  { %2787 = vadd.xlane.f32.xlu2 %v2784_v26  ;;  %2758 = vadd.xlane.f32.xlu1 %v2755_v19  ;;  %v2728_v58 = vcvt.s32.f32 %v2726_v27  ;;  %v2811_v30 = vshrl.u32 %v2809_v23, 16  ;;  %v2838_v32 = vadd.s32 %v2837_v34, %v2836_v33  ;;  %vm2892_vm12 = vcmp.eq.s32.totalorder %v4851_v11, 6 }
 0x699   :  { %v2727_v7 = vcvt.s32.f32 %v2725_v35  ;;  %vm2893_vm13 = vcmp.eq.s32.totalorder %v4853_v8, 6  ;;  %v2810_v39 = vand.u32 65535, %v2809_v23  ;;  %vm2863_vm14 = vcmp.eq.s32.totalorder %v4851_v11, 5 }
 0x69a   :  { %2731 = vadd.xlane.f32.xlu0 %v2728_v58  ;;  %v2813_v28 = vcvt.s32.f32 %v2811_v30  ;;  %v2840_v40 = vshrl.u32 %v2838_v32, 16  ;;  %vm2864_vm15 = vcmp.eq.s32.totalorder %v4853_v8, 5  ;;  %v2894_v42 = vsel %vm2892_vm12, 1, %v3919_v9 }
 0x69b   :  { %v2895_v43 = vsel %vm2893_vm13, 1, %v3919_v9  ;;  %v2781_v44 = vand.u32 65535, %v2780_v17  ;;  %v2865_v37 = vsel %vm2863_vm14, 1, %v3919_v9  ;;  %v2866_v45 = vsel %vm2864_vm15, 1, %v3919_v9 }
 0x69c   :  { %v2812_v41 = vcvt.s32.f32 %v2810_v39  ;;  %v2842_v47 = vcvt.s32.f32 %v2840_v40  ;;  %v2896_v50 = vadd.s32 %v2895_v43, %v2894_v42  ;;  %v2867_v51 = vadd.s32 %v2866_v45, %v2865_v37 }
 0x69d   :  { %v2783_v20 = vcvt.s32.f32 %v2781_v44  ;;  %vm2921_vm0 = vcmp.eq.s32.totalorder %v4851_v11, 7  ;;  %vm2922_vm1 = vcmp.eq.s32.totalorder %v4853_v8, 7  ;;  %v2839_v49 = vand.u32 65535, %v2838_v32 }
 0x69e   :  { %v2898_v53 = vshrl.u32 %v2896_v50, 16  ;;  %vm3095_vm2 = vcmp.eq.s32.totalorder %v4851_v11, 13  ;;  %vm3096_vm3 = vcmp.eq.s32.totalorder %v4853_v8, 13  ;;  %v2923_v54 = vsel %vm2921_vm0, 1, %v3919_v9 }
 0x69f   :  { %v2924_v55 = vsel %vm2922_vm1, 1, %v3919_v9  ;;  %v2869_v46 = vshrl.u32 %v2867_v51, 16  ;;  %v3097_v56 = vsel %vm3095_vm2, 1, %v3919_v9  ;;  %v3098_v52 = vsel %vm3096_vm3, 1, %v3919_v9 }
 0x6a0   :  { %2816 = vadd.xlane.f32.xlu2 %v2813_v28  ;;  %2756 = vadd.xlane.f32.xlu1 %v2754_v36  ;;  %vm3124_vm4 = vcmp.eq.s32.totalorder %v4851_v11, 14  ;;  %v2841_v57 = vcvt.s32.f32 %v2839_v49  ;;  %v4892_v60 = vadd.s32 %v3098_v52, %v3097_v56  ;;  %v2900_v29 = vcvt.s32.f32 %v2898_v53 }
 0x6a1   :  { %v2925_v61 = vadd.s32 %v2924_v55, %v2923_v54  ;;  %vm3125_vm5 = vcmp.eq.s32.totalorder %v4853_v8, 14  ;;  %v3126_v59 = vsel %vm3124_vm4, 1, %v3919_v9  ;;  %v2871_v63 = vcvt.s32.f32 %v2869_v46 }
 0x6a2   :  { %2729 = vadd.xlane.f32.xlu0 %v2727_v7  ;;  %v3127_v62 = vsel %vm3125_vm5, 1, %v3919_v9  ;;  %vm2979_vm6 = vcmp.eq.s32.totalorder %v4851_v11, 9  ;;  %vm2980_vm7 = vcmp.eq.s32.totalorder %v4853_v8, 9  ;;  %v2897_v1 = vand.u32 65535, %v2896_v50 }
 0x6a3   :  { %v4899_v0 = vadd.s32 %v3127_v62, %v3126_v59  ;;  %v2927_v2 = vshrl.u32 %v2925_v61, 16  ;;  %vm2950_vm8 = vcmp.eq.s32.totalorder %v4851_v11, 8  ;;  %vm2951_vm9 = vcmp.eq.s32.totalorder %v4853_v8, 8 }
 0x6a4   :  { %v2981_v3 = vsel %vm2979_vm6, 1, %v3919_v9  ;;  %v2982_v4 = vsel %vm2980_vm7, 1, %v3919_v9  ;;  %v2868_v38 = vand.u32 65535, %v2867_v51  ;;  %v2952_v12 = vsel %vm2950_vm8, 1, %v3919_v9 }
 0x6a5   :  { %v2953_v13 = vsel %vm2951_vm9, 1, %v3919_v9  ;;  %v2899_v15 = vcvt.s32.f32 %v2897_v1  ;;  %v2929_v16 = vcvt.s32.f32 %v2927_v2  ;;  %v2983_v17 = vadd.s32 %v2982_v4, %v2981_v3 }
 0x6a6   :  { %v2870_v10 = vcvt.s32.f32 %v2868_v38  ;;  %v2954_v18 = vadd.s32 %v2953_v13, %v2952_v12  ;;  %vm3008_vm10 = vcmp.eq.s32.totalorder %v4851_v11, 10  ;;  %vm3009_vm11 = vcmp.eq.s32.totalorder %v4853_v8, 10 }
 0x6a7   :  { %v2985_v14 = vshrl.u32 %v2983_v17, 16  ;;  %v2926_v48 = vand.u32 65535, %v2925_v61  ;;  %v3010_v21 = vsel %vm3008_vm10, 1, %v3919_v9  ;;  %v3011_v22 = vsel %vm3009_vm11, 1, %v3919_v9 }
 0x6a8   :  { %2814 = vadd.xlane.f32.xlu2 %v2812_v41  ;;  %2845 = vadd.xlane.f32.xlu1 %v2842_v47  ;;  %v2956_v24 = vshrl.u32 %v2954_v18, 16  ;;  %v3012_v19 = vadd.s32 %v3011_v22, %v3010_v21  ;;  %vm3066_vm12 = vcmp.eq.s32.totalorder %v4851_v11, 12  ;;  %vm3067_vm13 = vcmp.eq.s32.totalorder %v4853_v8, 12 }
 0x6a9   :  { %v2987_v25 = vcvt.s32.f32 %v2985_v14  ;;  %v2928_v26 = vcvt.s32.f32 %v2926_v48  ;;  %v2984_v23 = vand.u32 65535, %v2983_v17  ;;  %vm3037_vm14 = vcmp.eq.s32.totalorder %v4851_v11, 11 }
 0x6aa   :  { %2785 = vadd.xlane.f32.xlu0 %v2783_v20  ;;  %v2958_v27 = vcvt.s32.f32 %v2956_v24  ;;  %v3014_v58 = vshrl.u32 %v3012_v19, 16  ;;  %vm3038_vm15 = vcmp.eq.s32.totalorder %v4853_v8, 11  ;;  %v3068_v30 = vsel %vm3066_vm12, 1, %v3919_v9 }
 0x6ab   :  { %v3069_v31 = vsel %vm3067_vm13, 1, %v3919_v9  ;;  %v2955_v33 = vand.u32 65535, %v2954_v18  ;;  %v3039_v34 = vsel %vm3037_vm14, 1, %v3919_v9  ;;  %v3040_v35 = vsel %vm3038_vm15, 1, %v3919_v9 }
 0x6ac   :  { %v2986_v28 = vcvt.s32.f32 %v2984_v23  ;;  %v3016_v36 = vcvt.s32.f32 %v3014_v58  ;;  %v3070_v32 = vadd.s32 %v3069_v31, %v3068_v30  ;;  %v3041_v39 = vadd.s32 %v3040_v35, %v3039_v34 }
 0x6ad   :  { %v2957_v7 = vcvt.s32.f32 %v2955_v33  ;;  %v3013_v40 = vand.u32 65535, %v3012_v19  ;;  %v3101_v45 = vshrl.u32 %v4892_v60, 16  ;;  %v3129_v51 = vand.u32 65535, %v4899_v0 }
 0x6ae   :  { %v3072_v11 = vshrl.u32 %v3070_v32, 16  ;;  %v3043_v8 = vshrl.u32 %v3041_v39, 16  ;;  %v3071_v37 = vand.u32 65535, %v3070_v32  ;;  %v3042_v41 = vand.u32 65535, %v3041_v39 }
 0x6af   :  { %v3015_v43 = vcvt.s32.f32 %v3013_v40  ;;  %v3103_v50 = vcvt.s32.f32 %v3101_v45  ;;  %v3100_v49 = vand.u32 65535, %v4892_v60  ;;  %v3130_v53 = vshrl.u32 %v4899_v0, 16 }
 0x6b0   :  { %2903 = vadd.xlane.f32.xlu2 %v2900_v29  ;;  %2843 = vadd.xlane.f32.xlu1 %v2841_v57  ;;  %v3074_v42 = vcvt.s32.f32 %v3072_v11  ;;  %v3045_v44 = vcvt.s32.f32 %v3043_v8  ;;  %v3073_v47 = vcvt.s32.f32 %v3071_v37  ;;  %v3044_v20 = vcvt.s32.f32 %v3042_v41 }
 0x6b1   :  { %v3131_v54 = vcvt.s32.f32 %v3129_v51  ;;  %v3102_v55 = vcvt.s32.f32 %v3100_v49  ;;  %v3132_v46 = vcvt.s32.f32 %v3130_v53 }
 0x6b2   :  { %2874 = vadd.xlane.f32.xlu0 %v2871_v63 }
 0x6b8   :  { %2901 = vadd.xlane.f32.xlu2 %v2899_v15  ;;  %2932 = vadd.xlane.f32.xlu1 %v2929_v16 }
 0x6ba   :  { %2872 = vadd.xlane.f32.xlu0 %v2870_v10 }
 0x6c0   :  { %2990 = vadd.xlane.f32.xlu2 %v2987_v25  ;;  %2930 = vadd.xlane.f32.xlu1 %v2928_v26 }
 0x6c2   :  { %2961 = vadd.xlane.f32.xlu0 %v2958_v27 }
 0x6c8   :  { %2988 = vadd.xlane.f32.xlu2 %v2986_v28  ;;  %3019 = vadd.xlane.f32.xlu1 %v3016_v36 }
 0x6ca   :  { %2959 = vadd.xlane.f32.xlu0 %v2957_v7 }
 0x6d0   :  { %3077 = vadd.xlane.f32.xlu2 %v3074_v42  ;;  %3017 = vadd.xlane.f32.xlu1 %v3015_v43 }
 0x6d2   :  { %3048 = vadd.xlane.f32.xlu0 %v3045_v44 }
 0x6d8   :  { %3075 = vadd.xlane.f32.xlu2 %v3073_v47  ;;  %3106 = vadd.xlane.f32.xlu1 %v3103_v50 }
 0x6da   :  { %3046 = vadd.xlane.f32.xlu0 %v3044_v20 }
 0x6e0   :  { %3133 = vadd.xlane.f32.xlu2 %v3131_v54  ;;  %3104 = vadd.xlane.f32.xlu1 %v3102_v55 }
 0x6e2   :  { %3135 = vadd.xlane.f32.xlu0 %v3132_v46 }
 0x70b   :  { %v2788_v56 = vpop.xlane.xlu2 %2787  ;;  %v2759_v52 = vpop.xlane.xlu1 %2758 }
 0x70c   :  { %v2761_v29 = vcvt.f32.s32 %v2759_v52  ;;  %v2790_v13 = vcvt.f32.s32 %v2788_v56 }
 0x70d   :  { %v2732_v57 = vpop.xlane.xlu0 %2731 }
 0x70e   :  { %v2734_v61 = vcvt.f32.s32 %v2732_v57  ;;  %v2762_v63 = vshll.u32 %v2761_v29, 16  ;;  %v2791_v24 = vshll.u32 %v2790_v13, 16 }
 0x710   :  { %v2735_v3 = vshll.u32 %v2734_v61, 16 }
 0x713   :  { %v2817_v59 = vpop.xlane.xlu2 %2816  ;;  %v2757_v62 = vpop.xlane.xlu1 %2756 }
 0x714   :  { %v2760_v1 = vcvt.f32.s32 %v2757_v62  ;;  %v2819_v0 = vcvt.f32.s32 %v2817_v59 }
 0x715   :  { %v2730_v2 = vpop.xlane.xlu0 %2729 }
 0x716   :  { %v2763_v60 = vadd.s32 %v2762_v63, %v2760_v1  ;;  %v2733_v4 = vcvt.f32.s32 %v2730_v2  ;;  %v2820_v18 = vshll.u32 %v2819_v0, 16 }
 0x718   :  { %v2764_v38 = vrot.slane %v2763_v60, 4  ;;  %v2736_v12 = vadd.s32 %v2735_v3, %v2733_v4 }
 0x71a   :  { %v2765_v15 = vadd.s32 %v2764_v38, %v2763_v60  ;;  %v2737_v16 = vrot.slane %v2736_v12, 4 }
 0x71b   :  { %v2815_v17 = vpop.xlane.xlu2 %2814  ;;  %v2846_v10 = vpop.xlane.xlu1 %2845 }
 0x71c   :  { %v2738_v14 = vadd.s32 %v2737_v16, %v2736_v12  ;;  %v2818_v48 = vcvt.f32.s32 %v2815_v17  ;;  %v2766_v21 = vrot.slane %v2765_v15, 2  ;;  %v2848_v58 = vcvt.f32.s32 %v2846_v10 }
 0x71d   :  { %v2786_v22 = vpop.xlane.xlu0 %2785 }
 0x71e   :  { %v2821_v25 = vadd.s32 %v2820_v18, %v2818_v48  ;;  %v2789_v26 = vcvt.f32.s32 %v2786_v22  ;;  %v2739_v19 = vrot.slane %v2738_v14, 2  ;;  %v2767_v27 = vadd.s32 %v2766_v21, %v2765_v15 }
 0x71f   :  { %v2849_v39 = vshll.u32 %v2848_v58, 16 }
 0x720   :  { %v2822_v23 = vrot.slane %v2821_v25, 4  ;;  %v2792_v30 = vadd.s32 %v2791_v24, %v2789_v26  ;;  %v2740_v31 = vadd.s32 %v2739_v19, %v2738_v14  ;;  %v2768_v33 = vrot.slane %v2767_v27, 1 }
 0x722   :  { %v2823_v34 = vadd.s32 %v2822_v23, %v2821_v25  ;;  %v2793_v35 = vrot.slane %v2792_v30, 4  ;;  %v2741_v28 = vrot.slane %v2740_v31, 1  ;;  %v2769_v7 = vadd.s32 %v2768_v33, %v2767_v27 }
 0x723   :  { %v2904_v36 = vpop.xlane.xlu2 %2903  ;;  %v2844_v32 = vpop.xlane.xlu1 %2843 }
 0x724   :  { %v2794_v11 = vadd.s32 %v2793_v35, %v2792_v30  ;;  %v2847_v40 = vcvt.f32.s32 %v2844_v32  ;;  %v2742_v8 = vadd.s32 %v2741_v28, %v2740_v31  ;;  %v2824_v43 = vrot.slane %v2823_v34, 2 }
 0x725   :  { %v2875_v42 = vpop.xlane.xlu0 %2874  ;;  %v2906_v41 = vcvt.f32.s32 %v2904_v36 }
 0x726   :  { %v2850_v44 = vadd.s32 %v2849_v39, %v2847_v40  ;;  %3795 = vpush %v2742_v8  ;;  %v2795_v37 = vrot.slane %v2794_v11, 2  ;;  %v2825_v45 = vadd.s32 %v2824_v43, %v2823_v34  ;;  %v2877_v49 = vcvt.f32.s32 %v2875_v42 }
 0x727   :  { %3797 = vpush %v2769_v7  ;;  %v2907_v56 = vshll.u32 %v2906_v41, 16 }
 0x728   :  { %v2851_v47 = vrot.slane %v2850_v44, 4  ;;  %v2796_v50 = vadd.s32 %v2795_v37, %v2794_v11  ;;  %v2826_v20 = vrot.slane %v2825_v45, 1  ;;  %v2878_v59 = vshll.u32 %v2877_v49, 16 }
 0x72a   :  { %v2852_v51 = vadd.s32 %v2851_v47, %v2850_v44  ;;  %v2797_v53 = vrot.slane %v2796_v50, 1  ;;  %v2827_v46 = vadd.s32 %v2826_v20, %v2825_v45 }
 0x72b   :  { %v2902_v54 = vpop.xlane.xlu2 %2901  ;;  %v2933_v55 = vpop.xlane.xlu1 %2932 }
 0x72c   :  { %v2905_v52 = vcvt.f32.s32 %v2902_v54  ;;  %v2798_v57 = vadd.s32 %v2797_v53, %v2796_v50  ;;  %v2853_v29 = vrot.slane %v2852_v51, 2  ;;  %v2935_v3 = vcvt.f32.s32 %v2933_v55 }
 0x72d   :  { %v2873_v61 = vpop.xlane.xlu0 %2872 }
 0x72e   :  { %v2908_v62 = vadd.s32 %v2907_v56, %v2905_v52  ;;  %v2876_v63 = vcvt.f32.s32 %v2873_v61  ;;  %3799 = vpush %v2798_v57  ;;  %v2854_v1 = vadd.s32 %v2853_v29, %v2852_v51  ;;  %v2936_v16 = vshll.u32 %v2935_v3, 16 }
 0x72f   :  { %3801 = vpush %v2827_v46 }
 0x730   :  { %v2909_v2 = vrot.slane %v2908_v62, 4  ;;  %v2879_v60 = vadd.s32 %v2878_v59, %v2876_v63  ;;  %v2855_v4 = vrot.slane %v2854_v1, 1 }
 0x732   :  { %v2910_v0 = vadd.s32 %v2909_v2, %v2908_v62  ;;  %v2880_v38 = vrot.slane %v2879_v60, 4  ;;  %v2856_v12 = vadd.s32 %v2855_v4, %v2854_v1 }
 0x733   :  { %v2991_v13 = vpop.xlane.xlu2 %2990  ;;  %v2931_v15 = vpop.xlane.xlu1 %2930 }
 0x734   :  { %v2881_v17 = vadd.s32 %v2880_v38, %v2879_v60  ;;  %v2934_v10 = vcvt.f32.s32 %v2931_v15  ;;  %3803 = vpush %v2856_v12  ;;  %v2911_v18 = vrot.slane %v2910_v0, 2  ;;  %v2993_v24 = vcvt.f32.s32 %v2991_v13 }
 0x735   :  { %v2962_v14 = vpop.xlane.xlu0 %2961 }
 0x736   :  { %v2937_v48 = vadd.s32 %v2936_v16, %v2934_v10  ;;  %v2882_v21 = vrot.slane %v2881_v17, 2  ;;  %v2912_v22 = vadd.s32 %v2911_v18, %v2910_v0  ;;  %v2964_v23 = vcvt.f32.s32 %v2962_v14 }
 0x737   :  { %v2994_v34 = vshll.u32 %v2993_v24, 16 }
 0x738   :  { %v2938_v25 = vrot.slane %v2937_v48, 4  ;;  %v2883_v26 = vadd.s32 %v2882_v21, %v2881_v17  ;;  %v2913_v19 = vrot.slane %v2912_v22, 1  ;;  %v2965_v7 = vshll.u32 %v2964_v23, 16 }
 0x73a   :  { %v2939_v27 = vadd.s32 %v2938_v25, %v2937_v48  ;;  %v2884_v58 = vrot.slane %v2883_v26, 1  ;;  %v2914_v33 = vadd.s32 %v2913_v19, %v2912_v22 }
 0x73b   :  { %v2989_v30 = vpop.xlane.xlu2 %2988  ;;  %v3020_v31 = vpop.xlane.xlu1 %3019 }
 0x73c   :  { %v2992_v35 = vcvt.f32.s32 %v2989_v30  ;;  %v2885_v28 = vadd.s32 %v2884_v58, %v2883_v26  ;;  %v2940_v36 = vrot.slane %v2939_v27, 2  ;;  %v3022_v42 = vcvt.f32.s32 %v3020_v31 }
 0x73d   :  { %v2960_v32 = vpop.xlane.xlu0 %2959 }
 0x73e   :  { %v2995_v39 = vadd.s32 %v2994_v34, %v2992_v35  ;;  %v2963_v11 = vcvt.f32.s32 %v2960_v32  ;;  %3805 = vpush %v2885_v28  ;;  %v2941_v40 = vadd.s32 %v2940_v36, %v2939_v27  ;;  %v3023_v20 = vshll.u32 %v3022_v42, 16 }
 0x73f   :  { %3807 = vpush %v2914_v33 }
 0x740   :  { %v2996_v8 = vrot.slane %v2995_v39, 4  ;;  %v2966_v43 = vadd.s32 %v2965_v7, %v2963_v11  ;;  %v2942_v44 = vrot.slane %v2941_v40, 1 }
 0x742   :  { %v2997_v37 = vadd.s32 %v2996_v8, %v2995_v39  ;;  %v2967_v45 = vrot.slane %v2966_v43, 4  ;;  %v2943_v41 = vadd.s32 %v2942_v44, %v2941_v40 }
 0x743   :  { %v3078_v47 = vpop.xlane.xlu2 %3077  ;;  %v3018_v50 = vpop.xlane.xlu1 %3017 }
 0x744   :  { %v2968_v51 = vadd.s32 %v2967_v45, %v2966_v43  ;;  %v3021_v49 = vcvt.f32.s32 %v3018_v50  ;;  %3809 = vpush %v2943_v41  ;;  %v2998_v53 = vrot.slane %v2997_v37, 2  ;;  %v3080_v52 = vcvt.f32.s32 %v3078_v47 }
 0x745   :  { %v3049_v54 = vpop.xlane.xlu0 %3048 }
 0x746   :  { %v3024_v55 = vadd.s32 %v3023_v20, %v3021_v49  ;;  %v2969_v46 = vrot.slane %v2968_v51, 2  ;;  %v2999_v56 = vadd.s32 %v2998_v53, %v2997_v37  ;;  %v3051_v62 = vcvt.f32.s32 %v3049_v54 }
 0x747   :  { %v3081_v60 = vshll.u32 %v3080_v52, 16  ;;  %v3158_v54 = vand.u32 4294967280, %v3937_v5 }
 0x748   :  { %v3025_v57 = vrot.slane %v3024_v55, 4  ;;  %v2970_v29 = vadd.s32 %v2969_v46, %v2968_v51  ;;  %v3000_v61 = vrot.slane %v2999_v56, 1  ;;  %v3052_v13 = vshll.u32 %v3051_v62, 16 }
 0x749   :  { %v3156_v46 = vand.u32 15, %v3937_v5 }
 0x74a   :  { %v3026_v59 = vadd.s32 %v3025_v57, %v3024_v55  ;;  %v2971_v63 = vrot.slane %v2970_v29, 1  ;;  %v3001_v3 = vadd.s32 %v3000_v61, %v2999_v56  ;;  %v3159_v55 = vand.u32 4294967280, %v3939_v6 }
 0x74b   :  { %v3076_v1 = vpop.xlane.xlu2 %3075  ;;  %v3107_v2 = vpop.xlane.xlu1 %3106  ;;  %v3157_v56 = vand.u32 15, %v3939_v6 }
 0x74c   :  { %v3079_v4 = vcvt.f32.s32 %v3076_v1  ;;  %v2972_v0 = vadd.s32 %v2971_v63, %v2970_v29  ;;  %v3027_v38 = vrot.slane %v3026_v59, 2  ;;  %v3109_v18 = vcvt.f32.s32 %v3107_v2 }
 0x74d   :  { %v3047_v12 = vpop.xlane.xlu0 %3046 }
 0x74e   :  { %v3082_v15 = vadd.s32 %v3081_v60, %v3079_v4  ;;  %v3050_v16 = vcvt.f32.s32 %v3047_v12  ;;  %3811 = vpush %v2972_v0  ;;  %v3028_v17 = vadd.s32 %v3027_v38, %v3026_v59  ;;  %v3110_v26 = vshll.u32 %v3109_v18, 16 }
 0x74f   :  { %3813 = vpush %v3001_v3 }
 0x750   :  { %v3083_v10 = vrot.slane %v3082_v15, 4  ;;  %v3053_v14 = vadd.s32 %v3052_v13, %v3050_v16  ;;  %v3029_v48 = vrot.slane %v3028_v17, 1 }
 0x752   :  { %v3084_v21 = vadd.s32 %v3083_v10, %v3082_v15  ;;  %v3054_v22 = vrot.slane %v3053_v14, 4  ;;  %v3030_v24 = vadd.s32 %v3029_v48, %v3028_v17 }
 0x753   :  { %v3105_v25 = vpop.xlane.xlu1 %3104  ;;  %v3134_v27 = vpop.xlane.xlu2 %3133 }
 0x754   :  { %v3055_v19 = vadd.s32 %v3054_v22, %v3053_v14  ;;  %v3108_v23 = vcvt.f32.s32 %v3105_v25  ;;  %3815 = vpush %v3030_v24  ;;  %v3085_v58 = vrot.slane %v3084_v21, 2  ;;  %v3137_v28 = vcvt.f32.s32 %v3134_v27 }
 0x755   :  { %v3136_v30 = vpop.xlane.xlu0 %3135 }
 0x756   :  { %v3111_v31 = vadd.s32 %v3110_v26, %v3108_v23  ;;  %v3138_v33 = vcvt.f32.s32 %v3136_v30  ;;  %v3056_v34 = vrot.slane %v3055_v19, 2  ;;  %v3086_v35 = vadd.s32 %v3085_v58, %v3084_v21 }
 0x757   :  { %s4927_s19 = spop %3795 }
 0x758   :  { %v3112_v36 = vrot.slane %v3111_v31, 4  ;;  %v3139_v32 = vshll.u32 %v3138_v33, 16  ;;  %p2744_p6 = scmp.le.s32.totalorder %s4927_s19, %s4925_s21  ;;  %s3798_s17 = spop %3797  ;;  %v3057_v7 = vadd.s32 %v3056_v34, %v3055_v19  ;;  %v3087_v39 = vrot.slane %v3086_v35, 1 }
 0x759   :  { %s4932_s27 = sadd.s32 %s3798_s17, %s4927_s19 }
 0x75a   :  { %v3113_v11 = vadd.s32 %v3112_v36, %v3111_v31  ;;  %v3140_v40 = vadd.s32 %v3139_v32, %v3137_v28  ;;  %v3058_v8 = vrot.slane %v3057_v7, 1  ;;  %s2746_s23 = scalar_select %p2744_p6, %s4927_s19, 0  ;;  %v3088_v42 = vadd.s32 %v3087_v39, %v3086_v35 }
 0x75b   :  { %p2772_p7 = scmp.le.s32.totalorder %s4932_s27, %s4925_s21 }
 0x75c   :  { %v3141_v43 = vrot.slane %v3140_v40, 4  ;;  %v3059_v44 = vadd.s32 %v3058_v8, %v3057_v7  ;;  %v3114_v37 = vrot.slane %v3113_v11, 2  ;;  %s2745_s29 = scalar_select %p2744_p6, 1, 0 }
 0x75d   :  { %s2775_s30 = scalar_select %p2772_p7, %s4932_s27, %s2746_s23 }
 0x75e   :  { %v3142_v45 = vadd.s32 %v3141_v43, %v3140_v40  ;;  %3817 = vpush %v3059_v44  ;;  %v3115_v41 = vadd.s32 %v3114_v37, %v3113_v11  ;;  %s2773_s26 = scalar_select %p2772_p7, 1, 0 }
 0x75f   :  { %3819 = vpush %v3088_v42  ;;  %s3800_s4 = spop %3799 }
 0x760   :  { %v3116_v47 = vrot.slane %v3115_v41, 1  ;;  %v3143_v50 = vrot.slane %v3142_v45, 2  ;;  %s4945_s3 = sadd.s32 %s3800_s4, %s4932_s27  ;;  %s3802_s25 = spop %3801 }
 0x761   :  { %p2801_p8 = scmp.le.s32.totalorder %s4945_s3, %s4925_s21  ;;  %s2829_s7 = sadd.s32 %s3802_s25, %s4945_s3 }
 0x762   :  { %v3117_v20 = vadd.s32 %v3116_v47, %v3115_v41  ;;  %v3144_v51 = vadd.s32 %v3143_v50, %v3142_v45  ;;  %p2830_p9 = scmp.le.s32.totalorder %s2829_s7, %s4925_s21  ;;  %s2774_s18 = sadd.s32 %s2773_s26, %s2745_s29 }
 0x763   :  { %s2804_s6 = scalar_select %p2801_p8, %s4945_s3, %s2775_s30 }
 0x764   :  { %3821 = vpush %v3117_v20  ;;  %v3145_v49 = vrot.slane %v3144_v51, 1  ;;  %s2802_s28 = scalar_select %p2801_p8, 1, 0 }
 0x765   :  { %s3804_s10 = spop %3803 }
 0x766   :  { %v3146_v53 = vadd.s32 %v3145_v49, %v3144_v51  ;;  %s2833_s13 = scalar_select %p2830_p9, %s2829_s7, %s2804_s6 }
 0x767   :  { %s2858_s24 = sadd.s32 %s3804_s10, %s2829_s7  ;;  %s2803_s30 = sadd.s32 %s2802_s28, %s2774_s18 }
 0x768   :  { %3823 = vpush %v3146_v53  ;;  %p2859_p10 = scmp.le.s32.totalorder %s2858_s24, %s4925_s21 }
 0x769   :  { %s2831_s19 = scalar_select %p2830_p9, 1, 0 }
 0x76a   :  { %s2862_s20 = scalar_select %p2859_p10, %s2858_s24, %s2833_s13 }
 0x76b   :  { %s2860_s27 = scalar_select %p2859_p10, 1, 0 }
 0x76c   :  { %s2832_s13 = sadd.s32 %s2831_s19, %s2803_s30 }
 0x76f   :  { %s3806_s8 = spop %3805 }
 0x770   :  { %s2887_s9 = sadd.s32 %s3806_s8, %s2858_s24  ;;  %s3808_s14 = spop %3807 }
 0x771   :  { %p2888_p11 = scmp.le.s32.totalorder %s2887_s9, %s4925_s21  ;;  %s2916_s5 = sadd.s32 %s3808_s14, %s2887_s9 }
 0x772   :  { %p2917_p12 = scmp.le.s32.totalorder %s2916_s5, %s4925_s21 }
 0x773   :  { %s2891_s2 = scalar_select %p2888_p11, %s2887_s9, %s2862_s20 }
 0x774   :  { %s2889_s23 = scalar_select %p2888_p11, 1, 0 }
 0x775   :  { %s3810_s16 = spop %3809  ;;  %s2861_s20 = sadd.s32 %s2860_s27, %s2832_s13 }
 0x776   :  { %s2920_s22 = scalar_select %p2917_p12, %s2916_s5, %s2891_s2 }
 0x777   :  { %s2945_s0 = sadd.s32 %s3810_s16, %s2916_s5  ;;  %s2890_s29 = sadd.s32 %s2889_s23, %s2861_s20 }
 0x778   :  { %p2946_p13 = scmp.le.s32.totalorder %s2945_s0, %s4925_s21 }
 0x779   :  { %s2918_s3 = scalar_select %p2917_p12, 1, 0 }
 0x77a   :  { %s2949_s17 = scalar_select %p2946_p13, %s2945_s0, %s2920_s22 }
 0x77b   :  { %s2919_s14 = sadd.s32 %s2918_s3, %s2890_s29 }
 0x77c   :  { %s2947_s26 = scalar_select %p2946_p13, 1, 0 }
 0x77e   :  { %s2948_s18 = sadd.s32 %s2947_s26, %s2919_s14 }
 0x77f   :  { %s3812_s4 = spop %3811 }
 0x780   :  { %s2974_s25 = sadd.s32 %s3812_s4, %s2945_s0  ;;  %s3814_s6 = spop %3813 }
 0x781   :  { %p2975_p0 = scmp.le.s32.totalorder %s2974_s25, %s4925_s21  ;;  %s3003_s10 = sadd.s32 %s3814_s6, %s2974_s25 }
 0x782   :  { %p3004_p1 = scmp.le.s32.totalorder %s3003_s10, %s4925_s21 }
 0x783   :  { %s2978_s7 = scalar_select %p2975_p0, %s2974_s25, %s2949_s17 }
 0x784   :  { %s2976_s2 = scalar_select %p2975_p0, 1, 0 }
 0x785   :  { %s3816_s24 = spop %3815 }
 0x786   :  { %s3007_s8 = scalar_select %p3004_p1, %s3003_s10, %s2978_s7 }
 0x787   :  { %s3032_s9 = sadd.s32 %s3816_s24, %s3003_s10  ;;  %s2977_s23 = sadd.s32 %s2976_s2, %s2948_s18 }
 0x788   :  { %p3033_p2 = scmp.le.s32.totalorder %s3032_s9, %s4925_s21 }
 0x789   :  { %s3005_s5 = scalar_select %p3004_p1, 1, 0 }
 0x78a   :  { %s3036_s16 = scalar_select %p3033_p2, %s3032_s9, %s3007_s8 }
 0x78b   :  { %s3034_s22 = scalar_select %p3033_p2, 1, 0 }
 0x78c   :  { %s3006_s4 = sadd.s32 %s3005_s5, %s2977_s23 }
 0x78d   :  { %s3035_s10 = sadd.s32 %s3034_s22, %s3006_s4 }
 0x78f   :  { %s3818_s28 = spop %3817 }
 0x790   :  { %s3061_s19 = sadd.s32 %s3818_s28, %s3032_s9  ;;  %s3820_s17 = spop %3819 }
 0x791   :  { %p3062_p3 = scmp.le.s32.totalorder %s3061_s19, %s4925_s21  ;;  %s3090_s27 = sadd.s32 %s3820_s17, %s3061_s19 }
 0x792   :  { %p3091_p4 = scmp.le.s32.totalorder %s3090_s27, %s4925_s21 }
 0x793   :  { %s3063_s30 = scalar_select %p3062_p3, 1, 0 }
 0x794   :  { %s5146_s19 = smov (!%p3062_p3, %s3061_s19), %s3036_s16 }
 0x795   :  { %s3822_s0 = spop %3821  ;;  %s3064_s7 = sadd.s32 %s3063_s30, %s3035_s10 }
 0x796   :  { %s3092_s6 = scalar_select %p3091_p4, 1, 0 }
 0x797   :  { %s3094_s25 = scalar_select %p3091_p4, %s3090_s27, %s5146_s19 }
 0x798   :  { %s3119_s3 = sadd.s32 %s3822_s0, %s3090_s27  ;;  %s3093_s29 = sadd.s32 %s3092_s6, %s3064_s7 }
 0x799   :  { %p3120_p5 = scmp.le.s32.totalorder %s3119_s3, %s4925_s21  ;;  %s3824_s13 = spop %3823 }
 0x79a   :  { %s3148_s20 = sadd.s32 %s3824_s13, %s3119_s3 }
 0x79b   :  { %s3121_s24 = scalar_select %p3120_p5, 1, 0 }
 0x79c   :  { %s5148_s3 = smov (!%p3120_p5, %s3119_s3), %s3094_s25  ;;  %p3149_p6 = scmp.le.s32.totalorder %s3148_s20, %s4925_s21 }
 0x79d   :  { %s3122_s8 = sadd.s32 %s3121_s24, %s3093_s29 }
 0x79e   :  { %s3150_s9 = scalar_select %p3149_p6, 1, 0 }
 0x79f   :  { %s5150_s20 = smov (!%p3149_p6, %s3148_s20), %s5148_s3 }
 0x7a0   :  { %s3151_s14 = sadd.s32 %s3150_s9, %s3122_s8  ;;  %s5083_s5 = ssub.s32 %s4925_s21, %s5150_s20 }
 0x7a1   :  { %s3154_s26 = sshll.u32 %s3151_s14, 4 }
 0x7a2   :  { %s5006_s2 = sor.u32 %s3154_s26, %s4848_s15 }
 0x7a3   :  { %v3160_v52 = vstv %s5006_s2 }
 0x7a4   :  { %vm3161_vm0 = vcmp.eq.s32.totalorder %v3158_v54, %v3160_v52  ;;  %vm3162_vm1 = vcmp.eq.s32.totalorder %v3159_v55, %v3160_v52 }
 0x7a5   :  { %v5009_v57 = vsel %vm3161_vm0, %v3156_v46, 16  ;;  %v5011_v29 = vsel %vm3162_vm1, %v3157_v56, 16 }
 0x7a6   :  { %vm3219_vm2 = vcmp.eq.s32.totalorder %v5009_v57, 2  ;;  %vm3220_vm3 = vcmp.eq.s32.totalorder %v5011_v29, 2  ;;  %vm3191_vm4 = vcmp.eq.s32.totalorder %v5009_v57, 1  ;;  %vm3192_vm5 = vcmp.eq.s32.totalorder %v5011_v29, 1 }
 0x7a7   :  { %v3221_v5 = vsel %vm3219_vm2, 1, %v3919_v9  ;;  %v3222_v6 = vsel %vm3220_vm3, 1, %v3919_v9  ;;  %v3193_v61 = vsel %vm3191_vm4, 1, %v3919_v9  ;;  %v3194_v59 = vsel %vm3192_vm5, 1, %v3919_v9 }
 0x7a8   :  { %v3223_v62 = vadd.s32 %v3222_v6, %v3221_v5  ;;  %v3195_v63 = vadd.s32 %v3194_v59, %v3193_v61  ;;  %vm3165_vm6 = vcmp.eq.s32.totalorder %v5009_v57, 0  ;;  %vm3166_vm7 = vcmp.eq.s32.totalorder %v5011_v29, 0 }
 0x7a9   :  { %v3167_v1 = vsel %vm3165_vm6, 1, %v3919_v9  ;;  %v3168_v2 = vsel %vm3166_vm7, 1, %v3919_v9  ;;  %vm3247_vm8 = vcmp.eq.s32.totalorder %v5009_v57, 3  ;;  %vm3248_vm9 = vcmp.eq.s32.totalorder %v5011_v29, 3 }
 0x7aa   :  { %v3225_v3 = vshrl.u32 %v3223_v62, 16  ;;  %v3197_v60 = vshrl.u32 %v3195_v63, 16  ;;  %v3169_v4 = vadd.s32 %v3168_v2, %v3167_v1  ;;  %v3249_v0 = vsel %vm3247_vm8, 1, %v3919_v9 }
 0x7ab   :  { %v3250_v38 = vsel %vm3248_vm9, 1, %v3919_v9  ;;  %vm3275_vm10 = vcmp.eq.s32.totalorder %v5009_v57, 4  ;;  %vm3276_vm11 = vcmp.eq.s32.totalorder %v5011_v29, 4  ;;  %v3196_v18 = vand.u32 65535, %v3195_v63 }
 0x7ac   :  { %v3227_v12 = vcvt.s32.f32 %v3225_v3  ;;  %v3199_v13 = vcvt.s32.f32 %v3197_v60  ;;  %v3171_v15 = vshrl.u32 %v3169_v4, 16  ;;  %v3251_v16 = vadd.s32 %v3250_v38, %v3249_v0 }
 0x7ad   :  { %v3277_v14 = vsel %vm3275_vm10, 1, %v3919_v9  ;;  %v3278_v48 = vsel %vm3276_vm11, 1, %v3919_v9  ;;  %v3170_v21 = vand.u32 65535, %v3169_v4  ;;  %v3198_v24 = vcvt.s32.f32 %v3196_v18 }
 0x7ae   :  { %3230 = vadd.xlane.f32.xlu2 %v3227_v12  ;;  %3202 = vadd.xlane.f32.xlu1 %v3199_v13  ;;  %v3173_v17 = vcvt.s32.f32 %v3171_v15  ;;  %v3253_v10 = vshrl.u32 %v3251_v16, 16  ;;  %v3279_v25 = vadd.s32 %v3278_v48, %v3277_v14  ;;  %vm3331_vm12 = vcmp.eq.s32.totalorder %v5009_v57, 6 }
 0x7af   :  { %v3172_v26 = vcvt.s32.f32 %v3170_v21  ;;  %vm3332_vm13 = vcmp.eq.s32.totalorder %v5011_v29, 6  ;;  %v3252_v19 = vand.u32 65535, %v3251_v16  ;;  %vm3303_vm14 = vcmp.eq.s32.totalorder %v5009_v57, 5 }
 0x7b0   :  { %3176 = vadd.xlane.f32.xlu0 %v3173_v17  ;;  %v3255_v22 = vcvt.s32.f32 %v3253_v10  ;;  %v3281_v27 = vshrl.u32 %v3279_v25, 16  ;;  %vm3304_vm15 = vcmp.eq.s32.totalorder %v5011_v29, 5  ;;  %v3333_v23 = vsel %vm3331_vm12, 1, %v3919_v9 }
 0x7b1   :  { %v3334_v58 = vsel %vm3332_vm13, 1, %v3919_v9  ;;  %v3224_v30 = vand.u32 65535, %v3223_v62  ;;  %v3305_v31 = vsel %vm3303_vm14, 1, %v3919_v9  ;;  %v3306_v33 = vsel %vm3304_vm15, 1, %v3919_v9 }
 0x7b2   :  { %v3254_v34 = vcvt.s32.f32 %v3252_v19  ;;  %v3283_v35 = vcvt.s32.f32 %v3281_v27  ;;  %v3335_v28 = vadd.s32 %v3334_v58, %v3333_v23  ;;  %v3307_v32 = vadd.s32 %v3306_v33, %v3305_v31 }
 0x7b3   :  { %v3226_v36 = vcvt.s32.f32 %v3224_v30  ;;  %vm3359_vm0 = vcmp.eq.s32.totalorder %v5009_v57, 7  ;;  %vm3360_vm1 = vcmp.eq.s32.totalorder %v5011_v29, 7  ;;  %v3280_v7 = vand.u32 65535, %v3279_v25 }
 0x7b4   :  { %v3337_v39 = vshrl.u32 %v3335_v28, 16  ;;  %vm3527_vm2 = vcmp.eq.s32.totalorder %v5009_v57, 13  ;;  %vm3528_vm3 = vcmp.eq.s32.totalorder %v5011_v29, 13  ;;  %v3361_v11 = vsel %vm3359_vm0, 1, %v3919_v9 }
 0x7b5   :  { %v3362_v40 = vsel %vm3360_vm1, 1, %v3919_v9  ;;  %v3309_v8 = vshrl.u32 %v3307_v32, 16  ;;  %v3529_v42 = vsel %vm3527_vm2, 1, %v3919_v9  ;;  %v3530_v43 = vsel %vm3528_vm3, 1, %v3919_v9 }
 0x7b6   :  { %3258 = vadd.xlane.f32.xlu2 %v3255_v22  ;;  %3200 = vadd.xlane.f32.xlu1 %v3198_v24  ;;  %vm3555_vm4 = vcmp.eq.s32.totalorder %v5009_v57, 14  ;;  %v3282_v44 = vcvt.s32.f32 %v3280_v7  ;;  %v5050_v37 = vadd.s32 %v3530_v43, %v3529_v42  ;;  %v3339_v45 = vcvt.s32.f32 %v3337_v39 }
 0x7b7   :  { %v3363_v41 = vadd.s32 %v3362_v40, %v3361_v11  ;;  %vm3556_vm5 = vcmp.eq.s32.totalorder %v5011_v29, 14  ;;  %v3557_v47 = vsel %vm3555_vm4, 1, %v3919_v9  ;;  %v3311_v20 = vcvt.s32.f32 %v3309_v8 }
 0x7b8   :  { %3174 = vadd.xlane.f32.xlu0 %v3172_v26  ;;  %v3558_v50 = vsel %vm3556_vm5, 1, %v3919_v9  ;;  %vm3415_vm6 = vcmp.eq.s32.totalorder %v5009_v57, 9  ;;  %vm3416_vm7 = vcmp.eq.s32.totalorder %v5011_v29, 9  ;;  %v3336_v49 = vand.u32 65535, %v3335_v28 }
 0x7b9   :  { %v5057_v51 = vadd.s32 %v3558_v50, %v3557_v47  ;;  %v3365_v53 = vshrl.u32 %v3363_v41, 16  ;;  %vm3387_vm8 = vcmp.eq.s32.totalorder %v5009_v57, 8  ;;  %vm3388_vm9 = vcmp.eq.s32.totalorder %v5011_v29, 8 }
 0x7ba   :  { %v3417_v54 = vsel %vm3415_vm6, 1, %v3919_v9  ;;  %v3418_v55 = vsel %vm3416_vm7, 1, %v3919_v9  ;;  %v3308_v46 = vand.u32 65535, %v3307_v32  ;;  %v3389_v56 = vsel %vm3387_vm8, 1, %v3919_v9 }
 0x7bb   :  { %v3390_v52 = vsel %vm3388_vm9, 1, %v3919_v9  ;;  %v3338_v5 = vcvt.s32.f32 %v3336_v49  ;;  %v3367_v6 = vcvt.s32.f32 %v3365_v53  ;;  %v3419_v61 = vadd.s32 %v3418_v55, %v3417_v54 }
 0x7bc   :  { %v3310_v59 = vcvt.s32.f32 %v3308_v46  ;;  %v3391_v62 = vadd.s32 %v3390_v52, %v3389_v56  ;;  %vm3443_vm10 = vcmp.eq.s32.totalorder %v5009_v57, 10  ;;  %vm3444_vm11 = vcmp.eq.s32.totalorder %v5011_v29, 10 }
 0x7bd   :  { %v3421_v63 = vshrl.u32 %v3419_v61, 16  ;;  %v3364_v1 = vand.u32 65535, %v3363_v41  ;;  %v3445_v2 = vsel %vm3443_vm10, 1, %v3919_v9  ;;  %v3446_v3 = vsel %vm3444_vm11, 1, %v3919_v9 }
 0x7be   :  { %3256 = vadd.xlane.f32.xlu2 %v3254_v34  ;;  %3286 = vadd.xlane.f32.xlu1 %v3283_v35  ;;  %v3393_v60 = vshrl.u32 %v3391_v62, 16  ;;  %v3447_v38 = vadd.s32 %v3446_v3, %v3445_v2  ;;  %vm3499_vm12 = vcmp.eq.s32.totalorder %v5009_v57, 12  ;;  %vm3500_vm13 = vcmp.eq.s32.totalorder %v5011_v29, 12 }
 0x7bf   :  { %v3423_v4 = vcvt.s32.f32 %v3421_v63  ;;  %v3366_v0 = vcvt.s32.f32 %v3364_v1  ;;  %v3420_v13 = vand.u32 65535, %v3419_v61  ;;  %vm3471_vm14 = vcmp.eq.s32.totalorder %v5009_v57, 11 }
 0x7c0   :  { %3228 = vadd.xlane.f32.xlu0 %v3226_v36  ;;  %v3395_v12 = vcvt.s32.f32 %v3393_v60  ;;  %v3449_v15 = vshrl.u32 %v3447_v38, 16  ;;  %vm3472_vm15 = vcmp.eq.s32.totalorder %v5011_v29, 11  ;;  %v3501_v16 = vsel %vm3499_vm12, 1, %v3919_v9 }
 0x7c1   :  { %v3502_v17 = vsel %vm3500_vm13, 1, %v3919_v9  ;;  %v3392_v10 = vand.u32 65535, %v3391_v62  ;;  %v3473_v18 = vsel %vm3471_vm14, 1, %v3919_v9  ;;  %v3474_v14 = vsel %vm3472_vm15, 1, %v3919_v9 }
 0x7c2   :  { %v3422_v48 = vcvt.s32.f32 %v3420_v13  ;;  %v3451_v21 = vcvt.s32.f32 %v3449_v15  ;;  %v3503_v22 = vadd.s32 %v3502_v17, %v3501_v16  ;;  %v3475_v25 = vadd.s32 %v3474_v14, %v3473_v18 }
 0x7c3   :  { %v3394_v24 = vcvt.s32.f32 %v3392_v10  ;;  %v3448_v26 = vand.u32 65535, %v3447_v38  ;;  %v3533_v9 = vshrl.u32 %v5050_v37, 16  ;;  %v3560_v35 = vand.u32 65535, %v5057_v51 }
 0x7c4   :  { %v3505_v57 = vshrl.u32 %v3503_v22, 16  ;;  %v3477_v29 = vshrl.u32 %v3475_v25, 16  ;;  %v3504_v58 = vand.u32 65535, %v3503_v22  ;;  %v3476_v30 = vand.u32 65535, %v3475_v25 }
 0x7c5   :  { %v3450_v27 = vcvt.s32.f32 %v3448_v26  ;;  %v3535_v33 = vcvt.s32.f32 %v3533_v9  ;;  %v3532_v28 = vand.u32 65535, %v5050_v37  ;;  %v3561_v36 = vshrl.u32 %v5057_v51, 16 }
 0x7c6   :  { %3342 = vadd.xlane.f32.xlu2 %v3339_v45  ;;  %3284 = vadd.xlane.f32.xlu1 %v3282_v44  ;;  %v3507_v19 = vcvt.s32.f32 %v3505_v57  ;;  %v3479_v23 = vcvt.s32.f32 %v3477_v29  ;;  %v3506_v31 = vcvt.s32.f32 %v3504_v58  ;;  %v3478_v34 = vcvt.s32.f32 %v3476_v30 }
 0x7c7   :  { %v3562_v32 = vcvt.s32.f32 %v3560_v35  ;;  %v3534_v7 = vcvt.s32.f32 %v3532_v28  ;;  %v3563_v39 = vcvt.s32.f32 %v3561_v36 }
 0x7c8   :  { %3314 = vadd.xlane.f32.xlu0 %v3311_v20 }
 0x7ce   :  { %3340 = vadd.xlane.f32.xlu2 %v3338_v5  ;;  %3370 = vadd.xlane.f32.xlu1 %v3367_v6 }
 0x7d0   :  { %3312 = vadd.xlane.f32.xlu0 %v3310_v59 }
 0x7d6   :  { %3426 = vadd.xlane.f32.xlu2 %v3423_v4  ;;  %3368 = vadd.xlane.f32.xlu1 %v3366_v0 }
 0x7d8   :  { %3398 = vadd.xlane.f32.xlu0 %v3395_v12 }
 0x7de   :  { %3424 = vadd.xlane.f32.xlu2 %v3422_v48  ;;  %3454 = vadd.xlane.f32.xlu1 %v3451_v21 }
 0x7e0   :  { %3396 = vadd.xlane.f32.xlu0 %v3394_v24 }
 0x7e6   :  { %3510 = vadd.xlane.f32.xlu2 %v3507_v19  ;;  %3452 = vadd.xlane.f32.xlu1 %v3450_v27 }
 0x7e8   :  { %3482 = vadd.xlane.f32.xlu0 %v3479_v23 }
 0x7ee   :  { %3508 = vadd.xlane.f32.xlu2 %v3506_v31  ;;  %3538 = vadd.xlane.f32.xlu1 %v3535_v33 }
 0x7f0   :  { %3480 = vadd.xlane.f32.xlu0 %v3478_v34 }
 0x7f6   :  { %3564 = vadd.xlane.f32.xlu2 %v3562_v32  ;;  %3536 = vadd.xlane.f32.xlu1 %v3534_v7 }
 0x7f8   :  { %3566 = vadd.xlane.f32.xlu0 %v3563_v39 }
 0x821   :  { %v3231_v11 = vpop.xlane.xlu2 %3230  ;;  %v3203_v40 = vpop.xlane.xlu1 %3202 }
 0x822   :  { %v3205_v42 = vcvt.f32.s32 %v3203_v40  ;;  %v3233_v55 = vcvt.f32.s32 %v3231_v11 }
 0x823   :  { %v3177_v8 = vpop.xlane.xlu0 %3176 }
 0x824   :  { %v3179_v43 = vcvt.f32.s32 %v3177_v8  ;;  %v3206_v41 = vshll.u32 %v3205_v42, 16  ;;  %v3234_v1 = vshll.u32 %v3233_v55, 16 }
 0x826   :  { %v3180_v20 = vshll.u32 %v3179_v43, 16 }
 0x829   :  { %v3259_v44 = vpop.xlane.xlu2 %3258  ;;  %v3201_v45 = vpop.xlane.xlu1 %3200 }
 0x82a   :  { %v3204_v47 = vcvt.f32.s32 %v3201_v45  ;;  %v3261_v51 = vcvt.f32.s32 %v3259_v44 }
 0x82b   :  { %v3175_v50 = vpop.xlane.xlu0 %3174 }
 0x82c   :  { %v3207_v37 = vadd.s32 %v3206_v41, %v3204_v47  ;;  %v3178_v49 = vcvt.f32.s32 %v3175_v50  ;;  %v3262_v6 = vshll.u32 %v3261_v51, 16 }
 0x82e   :  { %v3208_v53 = vrot.slane %v3207_v37, 4  ;;  %v3181_v54 = vadd.s32 %v3180_v20, %v3178_v49 }
 0x830   :  { %v3209_v46 = vadd.s32 %v3208_v53, %v3207_v37  ;;  %v3182_v56 = vrot.slane %v3181_v54, 4 }
 0x831   :  { %v3257_v52 = vpop.xlane.xlu2 %3256  ;;  %v3287_v5 = vpop.xlane.xlu1 %3286 }
 0x832   :  { %v3183_v61 = vadd.s32 %v3182_v56, %v3181_v54  ;;  %v3260_v59 = vcvt.f32.s32 %v3257_v52  ;;  %v3210_v62 = vrot.slane %v3209_v46, 2  ;;  %v3289_v38 = vcvt.f32.s32 %v3287_v5 }
 0x833   :  { %v3229_v63 = vpop.xlane.xlu0 %3228 }
 0x834   :  { %v3263_v2 = vadd.s32 %v3262_v6, %v3260_v59  ;;  %v3232_v3 = vcvt.f32.s32 %v3229_v63  ;;  %v3184_v60 = vrot.slane %v3183_v61, 2  ;;  %v3211_v4 = vadd.s32 %v3210_v62, %v3209_v46 }
 0x835   :  { %v3290_v21 = vshll.u32 %v3289_v38, 16 }
 0x836   :  { %v3264_v0 = vrot.slane %v3263_v2, 4  ;;  %v3235_v12 = vadd.s32 %v3234_v1, %v3232_v3  ;;  %v3185_v13 = vadd.s32 %v3184_v60, %v3183_v61  ;;  %v3212_v15 = vrot.slane %v3211_v4, 1 }
 0x838   :  { %v3265_v16 = vadd.s32 %v3264_v0, %v3263_v2  ;;  %v3236_v17 = vrot.slane %v3235_v12, 4  ;;  %v3186_v10 = vrot.slane %v3185_v13, 1  ;;  %v3213_v48 = vadd.s32 %v3212_v15, %v3211_v4 }
 0x839   :  { %v3343_v18 = vpop.xlane.xlu2 %3342  ;;  %v3285_v14 = vpop.xlane.xlu1 %3284 }
 0x83a   :  { %v3237_v22 = vadd.s32 %v3236_v17, %v3235_v12  ;;  %v3288_v24 = vcvt.f32.s32 %v3285_v14  ;;  %v3187_v25 = vadd.s32 %v3186_v10, %v3185_v13  ;;  %v3266_v26 = vrot.slane %v3265_v16, 2 }
 0x83b   :  { %v3315_v57 = vpop.xlane.xlu0 %3314  ;;  %v3345_v23 = vcvt.f32.s32 %v3343_v18 }
 0x83c   :  { %v3291_v29 = vadd.s32 %v3290_v21, %v3288_v24  ;;  %3825 = vpush %v3187_v25  ;;  %v3238_v19 = vrot.slane %v3237_v22, 2  ;;  %v3267_v27 = vadd.s32 %v3266_v26, %v3265_v16  ;;  %v3317_v33 = vcvt.f32.s32 %v3315_v57 }
 0x83d   :  { %3827 = vpush %v3213_v48  ;;  %v3346_v32 = vshll.u32 %v3345_v23, 16 }
 0x83e   :  { %v3292_v58 = vrot.slane %v3291_v29, 4  ;;  %v3239_v9 = vadd.s32 %v3238_v19, %v3237_v22  ;;  %v3268_v30 = vrot.slane %v3267_v27, 1  ;;  %v3318_v8 = vshll.u32 %v3317_v33, 16 }
 0x840   :  { %v3293_v31 = vadd.s32 %v3292_v58, %v3291_v29  ;;  %v3240_v34 = vrot.slane %v3239_v9, 1  ;;  %v3269_v36 = vadd.s32 %v3268_v30, %v3267_v27 }
 0x841   :  { %v3341_v35 = vpop.xlane.xlu2 %3340  ;;  %v3371_v28 = vpop.xlane.xlu1 %3370 }
 0x842   :  { %v3344_v7 = vcvt.f32.s32 %v3341_v35  ;;  %v3241_v39 = vadd.s32 %v3240_v34, %v3239_v9  ;;  %v3294_v11 = vrot.slane %v3293_v31, 2  ;;  %v3373_v41 = vcvt.f32.s32 %v3371_v28 }
 0x843   :  { %v3313_v40 = vpop.xlane.xlu0 %3312 }
 0x844   :  { %v3347_v42 = vadd.s32 %v3346_v32, %v3344_v7  ;;  %v3316_v43 = vcvt.f32.s32 %v3313_v40  ;;  %3829 = vpush %v3241_v39  ;;  %v3295_v44 = vadd.s32 %v3294_v11, %v3293_v31  ;;  %v3374_v54 = vshll.u32 %v3373_v41, 16 }
 0x845   :  { %3831 = vpush %v3269_v36 }
 0x846   :  { %v3348_v45 = vrot.slane %v3347_v42, 4  ;;  %v3319_v47 = vadd.s32 %v3318_v8, %v3316_v43  ;;  %v3296_v50 = vrot.slane %v3295_v44, 1 }
 0x848   :  { %v3349_v20 = vadd.s32 %v3348_v45, %v3347_v42  ;;  %v3320_v37 = vrot.slane %v3319_v47, 4  ;;  %v3297_v49 = vadd.s32 %v3296_v50, %v3295_v44 }
 0x849   :  { %v3427_v51 = vpop.xlane.xlu2 %3426  ;;  %v3369_v53 = vpop.xlane.xlu1 %3368 }
 0x84a   :  { %v3321_v55 = vadd.s32 %v3320_v37, %v3319_v47  ;;  %v3372_v46 = vcvt.f32.s32 %v3369_v53  ;;  %3833 = vpush %v3297_v49  ;;  %v3350_v56 = vrot.slane %v3349_v20, 2  ;;  %v3429_v59 = vcvt.f32.s32 %v3427_v51 }
 0x84b   :  { %v3399_v52 = vpop.xlane.xlu0 %3398 }
 0x84c   :  { %v3375_v5 = vadd.s32 %v3374_v54, %v3372_v46  ;;  %v3322_v6 = vrot.slane %v3321_v55, 2  ;;  %v3351_v61 = vadd.s32 %v3350_v56, %v3349_v20  ;;  %v3401_v3 = vcvt.f32.s32 %v3399_v52 }
 0x84d   :  { %v3430_v12 = vshll.u32 %v3429_v59, 16 }
 0x84e   :  { %v3376_v62 = vrot.slane %v3375_v5, 4  ;;  %v3323_v63 = vadd.s32 %v3322_v6, %v3321_v55  ;;  %v3352_v1 = vrot.slane %v3351_v61, 1  ;;  %v3402_v10 = vshll.u32 %v3401_v3, 16 }
 0x850   :  { %v3377_v2 = vadd.s32 %v3376_v62, %v3375_v5  ;;  %v3324_v60 = vrot.slane %v3323_v63, 1  ;;  %v3353_v38 = vadd.s32 %v3352_v1, %v3351_v61 }
 0x851   :  { %v3425_v4 = vpop.xlane.xlu2 %3424  ;;  %v3455_v0 = vpop.xlane.xlu1 %3454 }
 0x852   :  { %v3428_v13 = vcvt.f32.s32 %v3425_v4  ;;  %v3325_v15 = vadd.s32 %v3324_v60, %v3323_v63  ;;  %v3378_v16 = vrot.slane %v3377_v2, 2  ;;  %v3457_v22 = vcvt.f32.s32 %v3455_v0 }
 0x853   :  { %v3397_v17 = vpop.xlane.xlu0 %3396 }
 0x854   :  { %v3431_v18 = vadd.s32 %v3430_v12, %v3428_v13  ;;  %v3400_v14 = vcvt.f32.s32 %v3397_v17  ;;  %3835 = vpush %v3325_v15  ;;  %v3379_v48 = vadd.s32 %v3378_v16, %v3377_v2  ;;  %v3458_v23 = vshll.u32 %v3457_v22, 16 }
 0x855   :  { %3837 = vpush %v3353_v38 }
 0x856   :  { %v3432_v21 = vrot.slane %v3431_v18, 4  ;;  %v3403_v24 = vadd.s32 %v3402_v10, %v3400_v14  ;;  %v3380_v25 = vrot.slane %v3379_v48, 1 }
 0x858   :  { %v3433_v57 = vadd.s32 %v3432_v21, %v3431_v18  ;;  %v3404_v26 = vrot.slane %v3403_v24, 4  ;;  %v3381_v29 = vadd.s32 %v3380_v25, %v3379_v48 }
 0x859   :  { %v3511_v19 = vpop.xlane.xlu2 %3510  ;;  %v3453_v27 = vpop.xlane.xlu1 %3452 }
 0x85a   :  { %v3405_v58 = vadd.s32 %v3404_v26, %v3403_v24  ;;  %v3456_v9 = vcvt.f32.s32 %v3453_v27  ;;  %3839 = vpush %v3381_v29  ;;  %v3434_v30 = vrot.slane %v3433_v57, 2  ;;  %v3513_v28 = vcvt.f32.s32 %v3511_v19 }
 0x85b   :  { %v3483_v31 = vpop.xlane.xlu0 %3482 }
 0x85c   :  { %v3459_v33 = vadd.s32 %v3458_v23, %v3456_v9  ;;  %v3406_v34 = vrot.slane %v3405_v58, 2  ;;  %v3435_v35 = vadd.s32 %v3434_v30, %v3433_v57  ;;  %v3485_v11 = vcvt.f32.s32 %v3483_v31  ;;  %v3861_v9 = vld [vmem:[#allocation2] sm:$0xff]  ;;  %v3862_v31 = vld [vmem:[#allocation2 + $0x8] sm:$0xff] }
 0x85d   :  { %v3514_v44 = vshll.u32 %v3513_v28, 16 }
 0x85e   :  { %v3460_v36 = vrot.slane %v3459_v33, 4  ;;  %v3407_v32 = vadd.s32 %v3406_v34, %v3405_v58  ;;  %v3436_v7 = vrot.slane %v3435_v35, 1  ;;  %v3486_v20 = vshll.u32 %v3485_v11, 16 }
 0x860   :  { %v3461_v39 = vadd.s32 %v3460_v36, %v3459_v33  ;;  %v3408_v40 = vrot.slane %v3407_v32, 1  ;;  %v3437_v43 = vadd.s32 %v3436_v7, %v3435_v35 }
 0x861   :  { %v3509_v8 = vpop.xlane.xlu2 %3508  ;;  %v3539_v42 = vpop.xlane.xlu1 %3538 }
 0x862   :  { %v3512_v45 = vcvt.f32.s32 %v3509_v8  ;;  %v3409_v41 = vadd.s32 %v3408_v40, %v3407_v32  ;;  %v3462_v47 = vrot.slane %v3461_v39, 2  ;;  %v3541_v54 = vcvt.f32.s32 %v3539_v42 }
 0x863   :  { %v3481_v50 = vpop.xlane.xlu0 %3480 }
 0x864   :  { %v3515_v37 = vadd.s32 %v3514_v44, %v3512_v45  ;;  %v3484_v49 = vcvt.f32.s32 %v3481_v50  ;;  %3841 = vpush %v3409_v41  ;;  %v3463_v51 = vadd.s32 %v3462_v47, %v3461_v39  ;;  %v3542_v61 = vshll.u32 %v3541_v54, 16 }
 0x865   :  { %3843 = vpush %v3437_v43 }
 0x866   :  { %v3516_v53 = vrot.slane %v3515_v37, 4  ;;  %v3487_v55 = vadd.s32 %v3486_v20, %v3484_v49  ;;  %v3464_v46 = vrot.slane %v3463_v51, 1 }
 0x868   :  { %v3517_v56 = vadd.s32 %v3516_v53, %v3515_v37  ;;  %v3488_v52 = vrot.slane %v3487_v55, 4  ;;  %v3465_v5 = vadd.s32 %v3464_v46, %v3463_v51 }
 0x869   :  { %v3537_v6 = vpop.xlane.xlu1 %3536  ;;  %v3565_v62 = vpop.xlane.xlu2 %3564 }
 0x86a   :  { %v3489_v59 = vadd.s32 %v3488_v52, %v3487_v55  ;;  %v3540_v63 = vcvt.f32.s32 %v3537_v6  ;;  %3845 = vpush %v3465_v5  ;;  %v3518_v1 = vrot.slane %v3517_v56, 2  ;;  %v3568_v38 = vcvt.f32.s32 %v3565_v62 }
 0x86b   :  { %v3567_v2 = vpop.xlane.xlu0 %3566 }
 0x86c   :  { %v3543_v3 = vadd.s32 %v3542_v61, %v3540_v63  ;;  %v3569_v60 = vcvt.f32.s32 %v3567_v2  ;;  %v3490_v4 = vrot.slane %v3489_v59, 2  ;;  %v3519_v0 = vadd.s32 %v3518_v1, %v3517_v56 }
 0x86d   :  { %s3826_s15 = spop %3825 }
 0x86e   :  { %v3544_v12 = vrot.slane %v3543_v3, 4  ;;  %v3570_v13 = vshll.u32 %v3569_v60, 16  ;;  %v3491_v15 = vadd.s32 %v3490_v4, %v3489_v59  ;;  %v3520_v16 = vrot.slane %v3519_v0, 1  ;;  %s3828_s16 = spop %3827  ;;  %p3189_p7 = scmp.le.s32.totalorder %s3826_s15, %s5083_s5 }
 0x86f   :  { %s3215_s22 = sadd.s32 %s3828_s16, %s3826_s15 }
 0x870   :  { %v3545_v17 = vadd.s32 %v3544_v12, %v3543_v3  ;;  %v3571_v10 = vadd.s32 %v3570_v13, %v3568_v38  ;;  %v3492_v18 = vrot.slane %v3491_v15, 1  ;;  %v3521_v14 = vadd.s32 %v3520_v16, %v3519_v0  ;;  %p3216_p8 = scmp.le.s32.totalorder %s3215_s22, %s5083_s5 }
 0x871   :  { %s3190_s28 = scalar_select %p3189_p7, 1, 0 }
 0x872   :  { %v3572_v48 = vrot.slane %v3571_v10, 4  ;;  %v3493_v21 = vadd.s32 %v3492_v18, %v3491_v15  ;;  %v3546_v22 = vrot.slane %v3545_v17, 2  ;;  %s3217_s23 = scalar_select %p3216_p8, 1, 0 }
 0x874   :  { %v3573_v24 = vadd.s32 %v3572_v48, %v3571_v10  ;;  %3847 = vpush %v3493_v21  ;;  %v3547_v25 = vadd.s32 %v3546_v22, %v3545_v17  ;;  %s3218_s0 = sadd.s32 %s3217_s23, %s3190_s28 }
 0x875   :  { %3849 = vpush %v3521_v14  ;;  %s3830_s18 = spop %3829 }
 0x876   :  { %v3548_v57 = vrot.slane %v3547_v25, 1  ;;  %v3574_v26 = vrot.slane %v3573_v24, 2  ;;  %s3243_s19 = sadd.s32 %s3830_s18, %s3215_s22  ;;  %s3832_s17 = spop %3831 }
 0x877   :  { %s3271_s30 = sadd.s32 %s3832_s17, %s3243_s19  ;;  %p3244_p9 = scmp.le.s32.totalorder %s3243_s19, %s5083_s5 }
 0x878   :  { %v3549_v29 = vadd.s32 %v3548_v57, %v3547_v25  ;;  %v3575_v19 = vadd.s32 %v3574_v26, %v3573_v24  ;;  %p3272_p10 = scmp.le.s32.totalorder %s3271_s30, %s5083_s5 }
 0x879   :  { %s3245_s10 = scalar_select %p3244_p9, 1, 0 }
 0x87a   :  { %3851 = vpush %v3549_v29  ;;  %v3576_v27 = vrot.slane %v3575_v19, 1  ;;  %s3273_s3 = scalar_select %p3272_p10, 1, 0 }
 0x87b   :  { %s3834_s27 = spop %3833  ;;  %s3246_s20 = sadd.s32 %s3245_s10, %s3218_s0 }
 0x87c   :  { %v3577_v23 = vadd.s32 %v3576_v27, %v3575_v19  ;;  %s3299_s4 = sadd.s32 %s3834_s27, %s3271_s30  ;;  %s3274_s9 = sadd.s32 %s3273_s3, %s3246_s20 }
 0x87d   :  { %p3300_p11 = scmp.le.s32.totalorder %s3299_s4, %s5083_s5 }
 0x87e   :  { %3853 = vpush %v3577_v23 }
 0x87f   :  { %s3301_s7 = scalar_select %p3300_p11, 1, 0 }
 0x881   :  { %s3302_s22 = sadd.s32 %s3301_s7, %s3274_s9 }
 0x885   :  { %s3836_s21 = spop %3835 }
 0x886   :  { %s3327_s6 = sadd.s32 %s3836_s21, %s3299_s4  ;;  %s3838_s25 = spop %3837 }
 0x887   :  { %p3328_p12 = scmp.le.s32.totalorder %s3327_s6, %s5083_s5  ;;  %s3355_s13 = sadd.s32 %s3838_s25, %s3327_s6 }
 0x888   :  { %p3356_p13 = scmp.le.s32.totalorder %s3355_s13, %s5083_s5 }
 0x889   :  { %s3329_s8 = scalar_select %p3328_p12, 1, 0 }
 0x88a   :  { %s3357_s16 = scalar_select %p3356_p13, 1, 0 }
 0x88b   :  { %s3840_s24 = spop %3839  ;;  %s3330_s28 = sadd.s32 %s3329_s8, %s3302_s22 }
 0x88c   :  { %s3383_s14 = sadd.s32 %s3840_s24, %s3355_s13  ;;  %s3358_s27 = sadd.s32 %s3357_s16, %s3330_s28 }
 0x88d   :  { %p3384_p0 = scmp.le.s32.totalorder %s3383_s14, %s5083_s5 }
 0x88f   :  { %s3385_s23 = scalar_select %p3384_p0, 1, 0 }
 0x891   :  { %s3386_s0 = sadd.s32 %s3385_s23, %s3358_s27 }
 0x895   :  { %s3842_s29 = spop %3841 }
 0x896   :  { %s3411_s26 = sadd.s32 %s3842_s29, %s3383_s14  ;;  %s3844_s15 = spop %3843 }
 0x897   :  { %s3439_s19 = sadd.s32 %s3844_s15, %s3411_s26  ;;  %p3412_p1 = scmp.le.s32.totalorder %s3411_s26, %s5083_s5 }
 0x898   :  { %p3440_p2 = scmp.le.s32.totalorder %s3439_s19, %s5083_s5 }
 0x899   :  { %s3413_s30 = scalar_select %p3412_p1, 1, 0 }
 0x89a   :  { %s3441_s4 = scalar_select %p3440_p2, 1, 0 }
 0x89b   :  { %s3846_s18 = spop %3845  ;;  %s3414_s13 = sadd.s32 %s3413_s30, %s3386_s0 }
 0x89c   :  { %s3467_s17 = sadd.s32 %s3846_s18, %s3439_s19  ;;  %s3442_s29 = sadd.s32 %s3441_s4, %s3414_s13 }
 0x89d   :  { %p3468_p3 = scmp.le.s32.totalorder %s3467_s17, %s5083_s5  ;;  %s3920_s30 = smov [#allocation5]  }
 0x89e   :  { %s3598_s0 = sshll.u32 %s3920_s30, 4  ;;  %s3599_s0 = int_to_ptr.vmem [resolvable:$true] %s3598_s0 }
 0x89f   :  { %s3469_s21 = scalar_select %p3468_p3, 1, 0 }
 0x8a1   :  { %s3470_s9 = sadd.s32 %s3469_s21, %s3442_s29  ;;  %s3600_s21 = sshll.u32 %s5108_s1, 4  ;;  %s3601_s21 = int_to_ptr.hbm [resolvable:$true] %s3600_s21 }
 0x8a5   :  { %s3848_s6 = spop %3847 }
 0x8a6   :  { %s3495_s25 = sadd.s32 %s3848_s6, %s3467_s17  ;;  %s3850_s10 = spop %3849 }
 0x8a7   :  { %p3496_p4 = scmp.le.s32.totalorder %s3495_s25, %s5083_s5  ;;  %s3523_s3 = sadd.s32 %s3850_s10, %s3495_s25 }
 0x8a8   :  { %p3524_p5 = scmp.le.s32.totalorder %s3523_s3, %s5083_s5 }
 0x8a9   :  { %s3497_s7 = scalar_select %p3496_p4, 1, 0 }
 0x8aa   :  { %s3525_s20 = scalar_select %p3524_p5, 1, 0 }
 0x8ab   :  { %s3852_s24 = spop %3851  ;;  %s3498_s14 = sadd.s32 %s3497_s7, %s3470_s9 }
 0x8ac   :  { %s3551_s8 = sadd.s32 %s3852_s24, %s3523_s3  ;;  %s3526_s22 = sadd.s32 %s3525_s20, %s3498_s14 }
 0x8ad   :  { %p3552_p6 = scmp.le.s32.totalorder %s3551_s8, %s5083_s5 }
 0x8af   :  { %s3553_s26 = scalar_select %p3552_p6, 1, 0 }
 0x8b0   :  { %s3854_s15 = spop %3853 }
 0x8b1   :  { %s3579_s16 = sadd.s32 %s3854_s15, %s3551_s8  ;;  %s3554_s18 = sadd.s32 %s3553_s26, %s3526_s22 }
 0x8b2   :  { %p3580_p7 = scmp.le.s32.totalorder %s3579_s16, %s5083_s5 }
 0x8b4   :  { %s3581_s28 = scalar_select %p3580_p7, 1, 0 }
 0x8b6   :  { %s3582_s19 = sadd.s32 %s3581_s28, %s3554_s18 }
 0x8b7   :  { %s3583_s17 = sor.u32 %s3582_s19, %s5006_s2 }
 0x8b8   :  { %p3584_p8 = scmp.lt.s32.totalorder %s3583_s17, 0  ;;  %s3585_s27 = sxor.u32 2147483648, %s3583_s17 }
 0x8b9   :  { %s3586_s23 = sxor.u32 4294967295, %s3583_s17 }
 0x8ba   :  { %s5152_s27 = smov (!%p3584_p8, %s3585_s27), %s3586_s23 }
 0x8bb   :  { %v3588_v58 = vstv %s5152_s27 }
 0x8bc   :  { %v3590_v30 = vsub.f32 %v3861_v9, %v3588_v58  ;;  %v3591_v33 = vsub.f32 %v3862_v31, %v3588_v58 }
 0x8be   :  { %3592 = vst [vmem:[#allocation5] sm:$0xff] %v3590_v30 }
 0x8bf   :  { %3593 = vst [vmem:[#allocation5 + $0x8] sm:$0xff] %v3591_v33 }
 0x8c0   :  { %3606 = dma.vmem_to_hbm [thread:$0]  %s3599_s0, 256, %s3601_s21, [#allocation4], %s3916_s11, %s3916_s11, %s3917_s12  }
 0x8c1   :  { %3913 = dma.done.wait [#allocation4], 256  }
 0x8c2   :  { %3914 = vsyncadd [#allocation4], 4294967040 }
 0x8c3   :  { %3611 = vsyncpa [#allocation3], 1 }
 0x8c4   :  { %3612 = vsyncpa [#allocation4], 1 }

</bundles_post_ra>
